<compile_context>
chip_gen: v7x
topology: tpu7x:2x2x1
jax: 0.10.0
libtpu: 0.0.40
codegen_flags: <defaults>
</compile_context>

<pallas_src>
import jax
import jax.numpy as jnp
from jax.experimental import pallas as pl
from jax.experimental.pallas import tpu as pltpu

# ---------------- configuration (small, consistent with the module) ----------------
B = 2            # batch
DIM = 32         # channels (dim)
H = W = 8        # spatial (input_size)
HEADS = 4        # num_heads
HEAD_DIM = DIM // HEADS
DEC = 2          # decrease_scale
DIM_OUT = DIM // DEC
N_TOK = H * W
M = B * N_TOK    # batch stacked into matmul M dim
EPS = 1e-5
_INV_SQRT2 = 0.7071067811865476

# padded halo scratch geometry: H halo = 1 (major dim, cheap); W gets a left pad of
# 8 so the interior store lands on a sublane-tile boundary.
PADH = H + 2
WOFF = 8                     # data columns live at [WOFF, WOFF + W)
PADW = WOFF + W + 8          # 24


def _gelu(x):
    # exact (erf) GELU, matching nn.GELU(approximate='none')
    return 0.5 * x * (1.0 + jax.lax.erf(x * _INV_SQRT2))


def _full_spec(shape):
    nd = len(shape)
    return pl.BlockSpec(shape, lambda i, _nd=nd: (0,) * _nd)


# ---------------- single fused kernel ----------------
def upblock_kernel(x_ref, wdw_ref, s1_ref, b1_ref,
                   w2_ref, s2_ref, b2_ref, pos_ref,
                   wqkv_ref, bqkv_ref, wproj_ref, bproj_ref,
                   s3_ref, b3_ref, wt_ref, bt_ref, s4_ref, b4_ref,
                   out_ref, xpad_ref):
    f32 = jnp.float32
    x = x_ref[...]                                            # (B, H, W, C)

    # ---- in-kernel halo padding: zero border persists for both convolutions ----
    xpad_ref[...] = jnp.zeros((B, PADH, PADW, DIM), f32)
    xpad_ref[:, 1:H + 1, WOFF:WOFF + W, :] = x                # tile-aligned interior store

    # ---- conv1: depthwise 3x3 + BN1 (folded) + GELU ----
    xp = xpad_ref[...]
    wdw = wdw_ref[...]                                        # (3, 3, C)
    acc1 = jnp.zeros((B, H, W, DIM), f32)
    for kh in range(3):
        for kw in range(3):
            c0 = WOFF - 1 + kw
            acc1 = acc1 + xp[:, kh:kh + H, c0:c0 + W, :] * wdw[kh, kw, :]
    y1 = _gelu(acc1 * s1_ref[0] + b1_ref[0])                  # (B, H, W, C)

    # ---- conv2: full 3x3 (batch stacked into M=128) + BN2 + residual + GELU + pos ----
    xpad_ref[:, 1:H + 1, WOFF:WOFF + W, :] = y1               # border stays zero
    yp = xpad_ref[...]
    acc2 = jnp.zeros((M, DIM), f32)
    for kh in range(3):
        for kw in range(3):
            c0 = WOFF - 1 + kw
            patch = yp[:, kh:kh + H, c0:c0 + W, :].reshape(M, DIM)
            acc2 = acc2 + jnp.dot(patch, w2_ref[kh, kw],
                                  preferred_element_type=f32)
    y2 = _gelu(acc2 * s2_ref[0] + b2_ref[0] + x.reshape(M, DIM))
    y2 = y2.reshape(B, N_TOK, DIM) + pos_ref[0]               # + pos_embed (broadcast over B)

    # ---- global multi-head self-attention (window_size == 0) ----
    qkv = jnp.dot(y2.reshape(M, DIM), wqkv_ref[...],
                  preferred_element_type=f32) + bqkv_ref[0]   # (M, 3C)
    scale = HEAD_DIM ** -0.5
    q = (qkv[:, 0:DIM] * scale).reshape(B, N_TOK, DIM)
    k = qkv[:, DIM:2 * DIM].reshape(B, N_TOK, DIM)
    v = qkv[:, 2 * DIM:3 * DIM].reshape(B, N_TOK, DIM)

    proj = jnp.zeros((M, DIM), f32)
    for h in range(HEADS):                                    # static, unrolled
        lo, hi = h * HEAD_DIM, (h + 1) * HEAD_DIM
        s = jnp.einsum('bnd,bmd->bnm', q[:, :, lo:hi], k[:, :, lo:hi],
                       preferred_element_type=f32)            # (B, N, N)
        s = s - jnp.max(s, axis=-1, keepdims=True)
        e = jnp.exp(s)
        p = e * pl.reciprocal(jnp.sum(e, axis=-1, keepdims=True), approx=True)
        o = jnp.einsum('bnm,bmd->bnd', p, v[:, :, lo:hi],
                       preferred_element_type=f32)            # (B, N, HEAD_DIM)
        # accumulate this head directly through its slice of the projection matrix
        proj = proj + jnp.dot(o.reshape(M, HEAD_DIM), wproj_ref[lo:hi, :],
                              preferred_element_type=f32)
    attn = proj + bproj_ref[0]                                # (M, C)

    # ---- BN3 + ConvTranspose2d(k=2,s=2) as one fat dot + BN4 + GELU ----
    xn = attn * s3_ref[0] + b3_ref[0]
    up = jnp.dot(xn, wt_ref[...], preferred_element_type=f32) + bt_ref[0]   # (M, 4*C_out)
    out_ref[...] = _gelu(up * s4_ref[0] + b4_ref[0])          # lane-dense (128, 64) output


# ---------------- wrapper (NCHW in, NCHW out) ----------------
def upblock_forward(x_nchw, p):
    x = jnp.transpose(x_nchw, (0, 2, 3, 1))                   # NCHW -> NHWC
    out = pl.pallas_call(
        upblock_kernel,
        out_shape=jax.ShapeDtypeStruct((M, 4 * DIM_OUT), jnp.float32),
        grid=(1,),
        in_specs=[_full_spec((B, H, W, DIM)),                                   # x
                  _full_spec((3, 3, DIM)),                                      # depthwise w
                  _full_spec((1, DIM)), _full_spec((1, DIM)),                   # BN1
                  _full_spec((3, 3, DIM, DIM)),                                 # conv2 w
                  _full_spec((1, DIM)), _full_spec((1, DIM)),                   # BN2
                  _full_spec((1, N_TOK, DIM)),                                  # pos_embed
                  _full_spec((DIM, 3 * DIM)), _full_spec((1, 3 * DIM)),         # qkv
                  _full_spec((DIM, DIM)), _full_spec((1, DIM)),                 # proj
                  _full_spec((1, DIM)), _full_spec((1, DIM)),                   # BN3
                  _full_spec((DIM, 4 * DIM_OUT)), _full_spec((1, 4 * DIM_OUT)), # upsample
                  _full_spec((1, 4 * DIM_OUT)), _full_spec((1, 4 * DIM_OUT))],  # BN4
        out_specs=_full_spec((M, 4 * DIM_OUT)),
        scratch_shapes=[pltpu.VMEM((B, PADH, PADW, DIM), jnp.float32)],
        compiler_params=pltpu.CompilerParams(dimension_semantics=("arbitrary",)),
    )(x, p["w_dw"], p["s1"], p["b1"], p["w2"], p["s2"], p["b2"], p["pos"],
      p["wqkv"], p["bqkv"], p["wproj"], p["bproj"], p["s3"], p["b3"],
      p["wt"], p["bt"], p["s4"], p["b4"])

    # (B*H*W, 4*C_out) with columns ordered (i, j, c_out) -> NCHW (B, C_out, 2H, 2W)
    y = out.reshape(B, H, W, 2, 2, DIM_OUT)
    y = jnp.transpose(y, (0, 5, 1, 3, 2, 4)).reshape(B, DIM_OUT, 2 * H, 2 * W)
    return y


# ---------------- parameter construction (deterministic, in-script) ----------------
def _bn_scale_shift(gamma, beta, mean, var):
    s = gamma / jnp.sqrt(var + EPS)
    return s.reshape(1, -1), (beta - mean * s).reshape(1, -1)


def make_params():
    key = jax.random.PRNGKey(0)
    ks = jax.random.split(key, 24)
    rnd = lambda k, shape, sc=0.1: jax.random.normal(k, shape, jnp.float32) * sc

    p = {}
    # conv1: depthwise 3x3 (torch (DIM,1,3,3)) -> stored as (3,3,DIM)
    p["w_dw"] = rnd(ks[0], (3, 3, DIM))
    # conv2: full 3x3 (torch (Cout,Cin,3,3)) -> stored as (3,3,Cin,Cout)
    p["w2"] = rnd(ks[1], (3, 3, DIM, DIM))
    # attention qkv / proj (stored pre-transposed: y = x @ W + b)
    p["wqkv"] = rnd(ks[2], (DIM, 3 * DIM))
    p["bqkv"] = rnd(ks[3], (1, 3 * DIM))
    p["wproj"] = rnd(ks[4], (DIM, DIM))
    p["bproj"] = rnd(ks[5], (1, DIM))
    # upsample: ConvTranspose2d weight (Cin,Cout,2,2); sub-pixel idx = i*2+j.
    # Stacked to (Cin, 4*Cout) so the transposed conv is a single dot.
    wt4 = rnd(ks[6], (4, DIM, DIM_OUT))
    p["wt"] = jnp.transpose(wt4, (1, 0, 2)).reshape(DIM, 4 * DIM_OUT)
    bt = rnd(ks[7], (1, DIM_OUT))
    p["bt"] = jnp.tile(bt, (1, 4))
    # pos_embed initialized to zeros (as in __init__), token layout
    p["pos"] = jnp.zeros((1, N_TOK, DIM), jnp.float32)

    # BatchNorm (eval mode): fold (gamma, beta, running_mean, running_var) -> scale/shift
    def bn(kg, kb, km, kv, c):
        gamma = 1.0 + rnd(kg, (c,))
        beta = rnd(kb, (c,))
        mean = rnd(km, (c,))
        var = 0.5 + jax.random.uniform(kv, (c,), jnp.float32)
        return _bn_scale_shift(gamma, beta, mean, var)

    p["s1"], p["b1"] = bn(ks[8], ks[9], ks[10], ks[11], DIM)
    p["s2"], p["b2"] = bn(ks[12], ks[13], ks[14], ks[15], DIM)
    p["s3"], p["b3"] = bn(ks[16], ks[17], ks[18], ks[19], DIM)
    s4, b4 = bn(ks[20], ks[21], ks[22], ks[23], DIM_OUT)
    p["s4"] = jnp.tile(s4, (1, 4))      # tiled to match the (i,j,c_out) column layout
    p["b4"] = jnp.tile(b4, (1, 4))
    return p


if __name__ == "__main__":
    params = make_params()
    x = jax.random.normal(jax.random.PRNGKey(0), (B, DIM, H, W), jnp.float32)
    fwd = jax.jit(upblock_forward)
    out = jax.block_until_ready(fwd(x, params))
    assert out.shape == (B, DIM_OUT, 2 * H, 2 * W), out.shape
    assert bool(jnp.all(jnp.isfinite(out)))
    print("KERNEL_OK")
</pallas_src>

<mosaic_0001>
module attributes {stable_mosaic.version = 11 : i64} {
  func.func @upblock_kernel(%arg0: i32, %arg1: memref<2x8x8x32xf32, #tpu.memory_space<vmem>>, %arg2: memref<3x3x32xf32, #tpu.memory_space<vmem>>, %arg3: memref<1x32xf32, #tpu.memory_space<vmem>>, %arg4: memref<1x32xf32, #tpu.memory_space<vmem>>, %arg5: memref<3x3x32x32xf32, #tpu.memory_space<vmem>>, %arg6: memref<1x32xf32, #tpu.memory_space<vmem>>, %arg7: memref<1x32xf32, #tpu.memory_space<vmem>>, %arg8: memref<1x64x32xf32, #tpu.memory_space<vmem>>, %arg9: memref<32x96xf32, #tpu.memory_space<vmem>>, %arg10: memref<1x96xf32, #tpu.memory_space<vmem>>, %arg11: memref<32x32xf32, #tpu.memory_space<vmem>>, %arg12: memref<1x32xf32, #tpu.memory_space<vmem>>, %arg13: memref<1x32xf32, #tpu.memory_space<vmem>>, %arg14: memref<1x32xf32, #tpu.memory_space<vmem>>, %arg15: memref<32x64xf32, #tpu.memory_space<vmem>>, %arg16: memref<1x64xf32, #tpu.memory_space<vmem>>, %arg17: memref<1x64xf32, #tpu.memory_space<vmem>>, %arg18: memref<1x64xf32, #tpu.memory_space<vmem>>, %arg19: memref<128x64xf32, #tpu.memory_space<vmem>>, %arg20: memref<2x10x24x32xf32, #tpu.memory_space<vmem>>) attributes {dimension_semantics = [#tpu.dimension_semantics<arbitrary>], iteration_bounds = array<i64: 1>, scalar_prefetch = 0 : i64, scratch_operands = 1 : i64, tpu.core_type = #tpu.core_type<tc>, window_params = [{pipeline_mode = #tpu.pipeline_mode<synchronous>, transform_indices = @transform_0, window_bounds = array<i64: 2, 8, 8, 32>}, {pipeline_mode = #tpu.pipeline_mode<synchronous>, transform_indices = @transform_1, window_bounds = array<i64: 3, 3, 32>}, {pipeline_mode = #tpu.pipeline_mode<synchronous>, transform_indices = @transform_2, window_bounds = array<i64: 1, 32>}, {pipeline_mode = #tpu.pipeline_mode<synchronous>, transform_indices = @transform_3, window_bounds = array<i64: 1, 32>}, {pipeline_mode = #tpu.pipeline_mode<synchronous>, transform_indices = @transform_4, window_bounds = array<i64: 3, 3, 32, 32>}, {pipeline_mode = #tpu.pipeline_mode<synchronous>, transform_indices = @transform_5, window_bounds = array<i64: 1, 32>}, {pipeline_mode = #tpu.pipeline_mode<synchronous>, transform_indices = @transform_6, window_bounds = array<i64: 1, 32>}, {pipeline_mode = #tpu.pipeline_mode<synchronous>, transform_indices = @transform_7, window_bounds = array<i64: 1, 64, 32>}, {pipeline_mode = #tpu.pipeline_mode<synchronous>, transform_indices = @transform_8, window_bounds = array<i64: 32, 96>}, {pipeline_mode = #tpu.pipeline_mode<synchronous>, transform_indices = @transform_9, window_bounds = array<i64: 1, 96>}, {pipeline_mode = #tpu.pipeline_mode<synchronous>, transform_indices = @transform_10, window_bounds = array<i64: 32, 32>}, {pipeline_mode = #tpu.pipeline_mode<synchronous>, transform_indices = @transform_11, window_bounds = array<i64: 1, 32>}, {pipeline_mode = #tpu.pipeline_mode<synchronous>, transform_indices = @transform_12, window_bounds = array<i64: 1, 32>}, {pipeline_mode = #tpu.pipeline_mode<synchronous>, transform_indices = @transform_13, window_bounds = array<i64: 1, 32>}, {pipeline_mode = #tpu.pipeline_mode<synchronous>, transform_indices = @transform_14, window_bounds = array<i64: 32, 64>}, {pipeline_mode = #tpu.pipeline_mode<synchronous>, transform_indices = @transform_15, window_bounds = array<i64: 1, 64>}, {pipeline_mode = #tpu.pipeline_mode<synchronous>, transform_indices = @transform_16, window_bounds = array<i64: 1, 64>}, {pipeline_mode = #tpu.pipeline_mode<synchronous>, transform_indices = @transform_17, window_bounds = array<i64: 1, 64>}, {pipeline_mode = #tpu.pipeline_mode<synchronous>, transform_indices = @transform_18, window_bounds = array<i64: 128, 64>}]} {
    %c0 = arith.constant 0 : index
    %c0_0 = arith.constant 0 : index
    %c0_1 = arith.constant 0 : index
    %c0_2 = arith.constant 0 : index
    %0 = vector.load %arg1[%c0, %c0_0, %c0_1, %c0_2] : memref<2x8x8x32xf32, #tpu.memory_space<vmem>>, vector<2x8x8x32xf32>
    %cst = arith.constant 0.000000e+00 : f32
    %1 = vector.broadcast %cst : f32 to vector<2x10x24x32xf32>
    %c0_3 = arith.constant 0 : index
    %c0_4 = arith.constant 0 : index
    %c0_5 = arith.constant 0 : index
    %c0_6 = arith.constant 0 : index
    %2 = vector.load %arg20[%c0_3, %c0_4, %c0_5, %c0_6] : memref<2x10x24x32xf32, #tpu.memory_space<vmem>>, vector<2x10x24x32xf32>
    tpu.vector_store %arg20[%c0_3, %c0_4, %c0_5, %c0_6], %1 {strides = array<i32>} : memref<2x10x24x32xf32, #tpu.memory_space<vmem>>, vector<2x10x24x32xf32>,
    %c0_7 = arith.constant 0 : index
    %c1 = arith.constant 1 : index
    %c8 = arith.constant 8 : index
    %c0_8 = arith.constant 0 : index
    %3 = vector.load %arg20[%c0_7, %c1, %c8, %c0_8] : memref<2x10x24x32xf32, #tpu.memory_space<vmem>>, vector<2x8x8x32xf32>
    tpu.vector_store %arg20[%c0_7, %c1, %c8, %c0_8], %0 {strides = array<i32>} : memref<2x10x24x32xf32, #tpu.memory_space<vmem>>, vector<2x8x8x32xf32>,
    %c0_9 = arith.constant 0 : index
    %c0_10 = arith.constant 0 : index
    %c0_11 = arith.constant 0 : index
    %c0_12 = arith.constant 0 : index
    %4 = vector.load %arg20[%c0_9, %c0_10, %c0_11, %c0_12] : memref<2x10x24x32xf32, #tpu.memory_space<vmem>>, vector<2x10x24x32xf32>
    %c0_13 = arith.constant 0 : index
    %c0_14 = arith.constant 0 : index
    %c0_15 = arith.constant 0 : index
    %5 = vector.load %arg2[%c0_13, %c0_14, %c0_15] : memref<3x3x32xf32, #tpu.memory_space<vmem>>, vector<3x3x32xf32>
    %cst_16 = arith.constant 0.000000e+00 : f32
    %6 = vector.broadcast %cst_16 : f32 to vector<2x8x8x32xf32>
    %7 = vector.extract_strided_slice %4 {offsets = [0, 0, 7, 0], sizes = [2, 8, 8, 32], strides = [1, 1, 1, 1]} : vector<2x10x24x32xf32> to vector<2x8x8x32xf32>
    %8 = vector.extract_strided_slice %5 {offsets = [0, 0, 0], sizes = [1, 1, 32], strides = [1, 1, 1]} : vector<3x3x32xf32> to vector<1x1x32xf32>
    %9 = vector.shape_cast %8 : vector<1x1x32xf32> to vector<32xf32>
    %10 = vector.shape_cast %9 : vector<32xf32> to vector<1x1x1x32xf32>
    %11 = vector.broadcast %10 : vector<1x1x1x32xf32> to vector<2x8x8x32xf32>
    %12 = arith.mulf %7, %11 : vector<2x8x8x32xf32>
    %13 = arith.addf %6, %12 : vector<2x8x8x32xf32>
    %14 = vector.extract_strided_slice %4 {offsets = [0, 0, 8, 0], sizes = [2, 8, 8, 32], strides = [1, 1, 1, 1]} : vector<2x10x24x32xf32> to vector<2x8x8x32xf32>
    %15 = vector.extract_strided_slice %5 {offsets = [0, 1, 0], sizes = [1, 1, 32], strides = [1, 1, 1]} : vector<3x3x32xf32> to vector<1x1x32xf32>
    %16 = vector.shape_cast %15 : vector<1x1x32xf32> to vector<32xf32>
    %17 = vector.shape_cast %16 : vector<32xf32> to vector<1x1x1x32xf32>
    %18 = vector.broadcast %17 : vector<1x1x1x32xf32> to vector<2x8x8x32xf32>
    %19 = arith.mulf %14, %18 : vector<2x8x8x32xf32>
    %20 = arith.addf %13, %19 : vector<2x8x8x32xf32>
    %21 = vector.extract_strided_slice %4 {offsets = [0, 0, 9, 0], sizes = [2, 8, 8, 32], strides = [1, 1, 1, 1]} : vector<2x10x24x32xf32> to vector<2x8x8x32xf32>
    %22 = vector.extract_strided_slice %5 {offsets = [0, 2, 0], sizes = [1, 1, 32], strides = [1, 1, 1]} : vector<3x3x32xf32> to vector<1x1x32xf32>
    %23 = vector.shape_cast %22 : vector<1x1x32xf32> to vector<32xf32>
    %24 = vector.shape_cast %23 : vector<32xf32> to vector<1x1x1x32xf32>
    %25 = vector.broadcast %24 : vector<1x1x1x32xf32> to vector<2x8x8x32xf32>
    %26 = arith.mulf %21, %25 : vector<2x8x8x32xf32>
    %27 = arith.addf %20, %26 : vector<2x8x8x32xf32>
    %28 = vector.extract_strided_slice %4 {offsets = [0, 1, 7, 0], sizes = [2, 8, 8, 32], strides = [1, 1, 1, 1]} : vector<2x10x24x32xf32> to vector<2x8x8x32xf32>
    %29 = vector.extract_strided_slice %5 {offsets = [1, 0, 0], sizes = [1, 1, 32], strides = [1, 1, 1]} : vector<3x3x32xf32> to vector<1x1x32xf32>
    %30 = vector.shape_cast %29 : vector<1x1x32xf32> to vector<32xf32>
    %31 = vector.shape_cast %30 : vector<32xf32> to vector<1x1x1x32xf32>
    %32 = vector.broadcast %31 : vector<1x1x1x32xf32> to vector<2x8x8x32xf32>
    %33 = arith.mulf %28, %32 : vector<2x8x8x32xf32>
    %34 = arith.addf %27, %33 : vector<2x8x8x32xf32>
    %35 = vector.extract_strided_slice %4 {offsets = [0, 1, 8, 0], sizes = [2, 8, 8, 32], strides = [1, 1, 1, 1]} : vector<2x10x24x32xf32> to vector<2x8x8x32xf32>
    %36 = vector.extract_strided_slice %5 {offsets = [1, 1, 0], sizes = [1, 1, 32], strides = [1, 1, 1]} : vector<3x3x32xf32> to vector<1x1x32xf32>
    %37 = vector.shape_cast %36 : vector<1x1x32xf32> to vector<32xf32>
    %38 = vector.shape_cast %37 : vector<32xf32> to vector<1x1x1x32xf32>
    %39 = vector.broadcast %38 : vector<1x1x1x32xf32> to vector<2x8x8x32xf32>
    %40 = arith.mulf %35, %39 : vector<2x8x8x32xf32>
    %41 = arith.addf %34, %40 : vector<2x8x8x32xf32>
    %42 = vector.extract_strided_slice %4 {offsets = [0, 1, 9, 0], sizes = [2, 8, 8, 32], strides = [1, 1, 1, 1]} : vector<2x10x24x32xf32> to vector<2x8x8x32xf32>
    %43 = vector.extract_strided_slice %5 {offsets = [1, 2, 0], sizes = [1, 1, 32], strides = [1, 1, 1]} : vector<3x3x32xf32> to vector<1x1x32xf32>
    %44 = vector.shape_cast %43 : vector<1x1x32xf32> to vector<32xf32>
    %45 = vector.shape_cast %44 : vector<32xf32> to vector<1x1x1x32xf32>
    %46 = vector.broadcast %45 : vector<1x1x1x32xf32> to vector<2x8x8x32xf32>
    %47 = arith.mulf %42, %46 : vector<2x8x8x32xf32>
    %48 = arith.addf %41, %47 : vector<2x8x8x32xf32>
    %49 = vector.extract_strided_slice %4 {offsets = [0, 2, 7, 0], sizes = [2, 8, 8, 32], strides = [1, 1, 1, 1]} : vector<2x10x24x32xf32> to vector<2x8x8x32xf32>
    %50 = vector.extract_strided_slice %5 {offsets = [2, 0, 0], sizes = [1, 1, 32], strides = [1, 1, 1]} : vector<3x3x32xf32> to vector<1x1x32xf32>
    %51 = vector.shape_cast %50 : vector<1x1x32xf32> to vector<32xf32>
    %52 = vector.shape_cast %51 : vector<32xf32> to vector<1x1x1x32xf32>
    %53 = vector.broadcast %52 : vector<1x1x1x32xf32> to vector<2x8x8x32xf32>
    %54 = arith.mulf %49, %53 : vector<2x8x8x32xf32>
    %55 = arith.addf %48, %54 : vector<2x8x8x32xf32>
    %56 = vector.extract_strided_slice %4 {offsets = [0, 2, 8, 0], sizes = [2, 8, 8, 32], strides = [1, 1, 1, 1]} : vector<2x10x24x32xf32> to vector<2x8x8x32xf32>
    %57 = vector.extract_strided_slice %5 {offsets = [2, 1, 0], sizes = [1, 1, 32], strides = [1, 1, 1]} : vector<3x3x32xf32> to vector<1x1x32xf32>
    %58 = vector.shape_cast %57 : vector<1x1x32xf32> to vector<32xf32>
    %59 = vector.shape_cast %58 : vector<32xf32> to vector<1x1x1x32xf32>
    %60 = vector.broadcast %59 : vector<1x1x1x32xf32> to vector<2x8x8x32xf32>
    %61 = arith.mulf %56, %60 : vector<2x8x8x32xf32>
    %62 = arith.addf %55, %61 : vector<2x8x8x32xf32>
    %63 = vector.extract_strided_slice %4 {offsets = [0, 2, 9, 0], sizes = [2, 8, 8, 32], strides = [1, 1, 1, 1]} : vector<2x10x24x32xf32> to vector<2x8x8x32xf32>
    %64 = vector.extract_strided_slice %5 {offsets = [2, 2, 0], sizes = [1, 1, 32], strides = [1, 1, 1]} : vector<3x3x32xf32> to vector<1x1x32xf32>
    %65 = vector.shape_cast %64 : vector<1x1x32xf32> to vector<32xf32>
    %66 = vector.shape_cast %65 : vector<32xf32> to vector<1x1x1x32xf32>
    %67 = vector.broadcast %66 : vector<1x1x1x32xf32> to vector<2x8x8x32xf32>
    %68 = arith.mulf %63, %67 : vector<2x8x8x32xf32>
    %69 = arith.addf %62, %68 : vector<2x8x8x32xf32>
    %c0_17 = arith.constant 0 : index
    %c0_18 = arith.constant 0 : index
    %70 = vector.load %arg3[%c0_17, %c0_18] : memref<1x32xf32, #tpu.memory_space<vmem>>, vector<1x32xf32>
    %71 = vector.shape_cast %70 : vector<1x32xf32> to vector<32xf32>
    %72 = vector.shape_cast %71 : vector<32xf32> to vector<1x1x1x32xf32>
    %73 = vector.broadcast %72 : vector<1x1x1x32xf32> to vector<2x8x8x32xf32>
    %74 = arith.mulf %69, %73 : vector<2x8x8x32xf32>
    %c0_19 = arith.constant 0 : index
    %c0_20 = arith.constant 0 : index
    %75 = vector.load %arg4[%c0_19, %c0_20] : memref<1x32xf32, #tpu.memory_space<vmem>>, vector<1x32xf32>
    %76 = vector.shape_cast %75 : vector<1x32xf32> to vector<32xf32>
    %77 = vector.shape_cast %76 : vector<32xf32> to vector<1x1x1x32xf32>
    %78 = vector.broadcast %77 : vector<1x1x1x32xf32> to vector<2x8x8x32xf32>
    %79 = arith.addf %74, %78 : vector<2x8x8x32xf32>
    %cst_21 = arith.constant 5.000000e-01 : f32
    %80 = vector.broadcast %cst_21 : f32 to vector<2x8x8x32xf32>
    %81 = arith.mulf %80, %79 : vector<2x8x8x32xf32>
    %cst_22 = arith.constant 0.707106769 : f32
    %82 = vector.broadcast %cst_22 : f32 to vector<2x8x8x32xf32>
    %83 = arith.mulf %79, %82 : vector<2x8x8x32xf32>
    %84 = math.erf %83 : vector<2x8x8x32xf32>
    %cst_23 = arith.constant 1.000000e+00 : f32
    %85 = vector.broadcast %cst_23 : f32 to vector<2x8x8x32xf32>
    %86 = arith.addf %85, %84 : vector<2x8x8x32xf32>
    %87 = arith.mulf %81, %86 : vector<2x8x8x32xf32>
    %c0_24 = arith.constant 0 : index
    %c1_25 = arith.constant 1 : index
    %c8_26 = arith.constant 8 : index
    %c0_27 = arith.constant 0 : index
    %88 = vector.load %arg20[%c0_24, %c1_25, %c8_26, %c0_27] : memref<2x10x24x32xf32, #tpu.memory_space<vmem>>, vector<2x8x8x32xf32>
    tpu.vector_store %arg20[%c0_24, %c1_25, %c8_26, %c0_27], %87 {strides = array<i32>} : memref<2x10x24x32xf32, #tpu.memory_space<vmem>>, vector<2x8x8x32xf32>,
    %c0_28 = arith.constant 0 : index
    %c0_29 = arith.constant 0 : index
    %c0_30 = arith.constant 0 : index
    %c0_31 = arith.constant 0 : index
    %89 = vector.load %arg20[%c0_28, %c0_29, %c0_30, %c0_31] : memref<2x10x24x32xf32, #tpu.memory_space<vmem>>, vector<2x10x24x32xf32>
    %cst_32 = arith.constant 0.000000e+00 : f32
    %90 = vector.broadcast %cst_32 : f32 to vector<128x32xf32>
    %91 = vector.extract_strided_slice %89 {offsets = [0, 0, 7, 0], sizes = [2, 8, 8, 32], strides = [1, 1, 1, 1]} : vector<2x10x24x32xf32> to vector<2x8x8x32xf32>
    %92 = vector.shape_cast %91 : vector<2x8x8x32xf32> to vector<128x32xf32>
    %c0_33 = arith.constant 0 : index
    %c0_34 = arith.constant 0 : index
    %c0_35 = arith.constant 0 : index
    %c0_36 = arith.constant 0 : index
    %93 = vector.load %arg5[%c0_33, %c0_34, %c0_35, %c0_36] : memref<3x3x32x32xf32, #tpu.memory_space<vmem>>, vector<1x1x32x32xf32>
    %94 = vector.shape_cast %93 : vector<1x1x32x32xf32> to vector<32x32xf32>
    %cst_37 = arith.constant dense<0.000000e+00> : vector<128x32xf32>
    %95 = tpu.matmul %92, %94, %cst_37 {dimension_numbers = #tpu.dot_dimension_numbers<[1], [0], [0], [1], [0, 0, 1, 1], [], []>} : vector<128x32xf32>, vector<32x32xf32>, vector<128x32xf32> -> vector<128x32xf32>
    %96 = arith.addf %90, %95 : vector<128x32xf32>
    %97 = vector.extract_strided_slice %89 {offsets = [0, 0, 8, 0], sizes = [2, 8, 8, 32], strides = [1, 1, 1, 1]} : vector<2x10x24x32xf32> to vector<2x8x8x32xf32>
    %98 = vector.shape_cast %97 : vector<2x8x8x32xf32> to vector<128x32xf32>
    %c0_38 = arith.constant 0 : index
    %c1_39 = arith.constant 1 : index
    %c0_40 = arith.constant 0 : index
    %c0_41 = arith.constant 0 : index
    %99 = vector.load %arg5[%c0_38, %c1_39, %c0_40, %c0_41] : memref<3x3x32x32xf32, #tpu.memory_space<vmem>>, vector<1x1x32x32xf32>
    %100 = vector.shape_cast %99 : vector<1x1x32x32xf32> to vector<32x32xf32>
    %cst_42 = arith.constant dense<0.000000e+00> : vector<128x32xf32>
    %101 = tpu.matmul %98, %100, %cst_42 {dimension_numbers = #tpu.dot_dimension_numbers<[1], [0], [0], [1], [0, 0, 1, 1], [], []>} : vector<128x32xf32>, vector<32x32xf32>, vector<128x32xf32> -> vector<128x32xf32>
    %102 = arith.addf %96, %101 : vector<128x32xf32>
    %103 = vector.extract_strided_slice %89 {offsets = [0, 0, 9, 0], sizes = [2, 8, 8, 32], strides = [1, 1, 1, 1]} : vector<2x10x24x32xf32> to vector<2x8x8x32xf32>
    %104 = vector.shape_cast %103 : vector<2x8x8x32xf32> to vector<128x32xf32>
    %c0_43 = arith.constant 0 : index
    %c2 = arith.constant 2 : index
    %c0_44 = arith.constant 0 : index
    %c0_45 = arith.constant 0 : index
    %105 = vector.load %arg5[%c0_43, %c2, %c0_44, %c0_45] : memref<3x3x32x32xf32, #tpu.memory_space<vmem>>, vector<1x1x32x32xf32>
    %106 = vector.shape_cast %105 : vector<1x1x32x32xf32> to vector<32x32xf32>
    %cst_46 = arith.constant dense<0.000000e+00> : vector<128x32xf32>
    %107 = tpu.matmul %104, %106, %cst_46 {dimension_numbers = #tpu.dot_dimension_numbers<[1], [0], [0], [1], [0, 0, 1, 1], [], []>} : vector<128x32xf32>, vector<32x32xf32>, vector<128x32xf32> -> vector<128x32xf32>
    %108 = arith.addf %102, %107 : vector<128x32xf32>
    %109 = vector.extract_strided_slice %89 {offsets = [0, 1, 7, 0], sizes = [2, 8, 8, 32], strides = [1, 1, 1, 1]} : vector<2x10x24x32xf32> to vector<2x8x8x32xf32>
    %110 = vector.shape_cast %109 : vector<2x8x8x32xf32> to vector<128x32xf32>
    %c1_47 = arith.constant 1 : index
    %c0_48 = arith.constant 0 : index
    %c0_49 = arith.constant 0 : index
    %c0_50 = arith.constant 0 : index
    %111 = vector.load %arg5[%c1_47, %c0_48, %c0_49, %c0_50] : memref<3x3x32x32xf32, #tpu.memory_space<vmem>>, vector<1x1x32x32xf32>
    %112 = vector.shape_cast %111 : vector<1x1x32x32xf32> to vector<32x32xf32>
    %cst_51 = arith.constant dense<0.000000e+00> : vector<128x32xf32>
    %113 = tpu.matmul %110, %112, %cst_51 {dimension_numbers = #tpu.dot_dimension_numbers<[1], [0], [0], [1], [0, 0, 1, 1], [], []>} : vector<128x32xf32>, vector<32x32xf32>, vector<128x32xf32> -> vector<128x32xf32>
    %114 = arith.addf %108, %113 : vector<128x32xf32>
    %115 = vector.extract_strided_slice %89 {offsets = [0, 1, 8, 0], sizes = [2, 8, 8, 32], strides = [1, 1, 1, 1]} : vector<2x10x24x32xf32> to vector<2x8x8x32xf32>
    %116 = vector.shape_cast %115 : vector<2x8x8x32xf32> to vector<128x32xf32>
    %c1_52 = arith.constant 1 : index
    %c1_53 = arith.constant 1 : index
    %c0_54 = arith.constant 0 : index
    %c0_55 = arith.constant 0 : index
    %117 = vector.load %arg5[%c1_52, %c1_53, %c0_54, %c0_55] : memref<3x3x32x32xf32, #tpu.memory_space<vmem>>, vector<1x1x32x32xf32>
    %118 = vector.shape_cast %117 : vector<1x1x32x32xf32> to vector<32x32xf32>
    %cst_56 = arith.constant dense<0.000000e+00> : vector<128x32xf32>
    %119 = tpu.matmul %116, %118, %cst_56 {dimension_numbers = #tpu.dot_dimension_numbers<[1], [0], [0], [1], [0, 0, 1, 1], [], []>} : vector<128x32xf32>, vector<32x32xf32>, vector<128x32xf32> -> vector<128x32xf32>
    %120 = arith.addf %114, %119 : vector<128x32xf32>
    %121 = vector.extract_strided_slice %89 {offsets = [0, 1, 9, 0], sizes = [2, 8, 8, 32], strides = [1, 1, 1, 1]} : vector<2x10x24x32xf32> to vector<2x8x8x32xf32>
    %122 = vector.shape_cast %121 : vector<2x8x8x32xf32> to vector<128x32xf32>
    %c1_57 = arith.constant 1 : index
    %c2_58 = arith.constant 2 : index
    %c0_59 = arith.constant 0 : index
    %c0_60 = arith.constant 0 : index
    %123 = vector.load %arg5[%c1_57, %c2_58, %c0_59, %c0_60] : memref<3x3x32x32xf32, #tpu.memory_space<vmem>>, vector<1x1x32x32xf32>
    %124 = vector.shape_cast %123 : vector<1x1x32x32xf32> to vector<32x32xf32>
    %cst_61 = arith.constant dense<0.000000e+00> : vector<128x32xf32>
    %125 = tpu.matmul %122, %124, %cst_61 {dimension_numbers = #tpu.dot_dimension_numbers<[1], [0], [0], [1], [0, 0, 1, 1], [], []>} : vector<128x32xf32>, vector<32x32xf32>, vector<128x32xf32> -> vector<128x32xf32>
    %126 = arith.addf %120, %125 : vector<128x32xf32>
    %127 = vector.extract_strided_slice %89 {offsets = [0, 2, 7, 0], sizes = [2, 8, 8, 32], strides = [1, 1, 1, 1]} : vector<2x10x24x32xf32> to vector<2x8x8x32xf32>
    %128 = vector.shape_cast %127 : vector<2x8x8x32xf32> to vector<128x32xf32>
    %c2_62 = arith.constant 2 : index
    %c0_63 = arith.constant 0 : index
    %c0_64 = arith.constant 0 : index
    %c0_65 = arith.constant 0 : index
    %129 = vector.load %arg5[%c2_62, %c0_63, %c0_64, %c0_65] : memref<3x3x32x32xf32, #tpu.memory_space<vmem>>, vector<1x1x32x32xf32>
    %130 = vector.shape_cast %129 : vector<1x1x32x32xf32> to vector<32x32xf32>
    %cst_66 = arith.constant dense<0.000000e+00> : vector<128x32xf32>
    %131 = tpu.matmul %128, %130, %cst_66 {dimension_numbers = #tpu.dot_dimension_numbers<[1], [0], [0], [1], [0, 0, 1, 1], [], []>} : vector<128x32xf32>, vector<32x32xf32>, vector<128x32xf32> -> vector<128x32xf32>
    %132 = arith.addf %126, %131 : vector<128x32xf32>
    %133 = vector.extract_strided_slice %89 {offsets = [0, 2, 8, 0], sizes = [2, 8, 8, 32], strides = [1, 1, 1, 1]} : vector<2x10x24x32xf32> to vector<2x8x8x32xf32>
    %134 = vector.shape_cast %133 : vector<2x8x8x32xf32> to vector<128x32xf32>
    %c2_67 = arith.constant 2 : index
    %c1_68 = arith.constant 1 : index
    %c0_69 = arith.constant 0 : index
    %c0_70 = arith.constant 0 : index
    %135 = vector.load %arg5[%c2_67, %c1_68, %c0_69, %c0_70] : memref<3x3x32x32xf32, #tpu.memory_space<vmem>>, vector<1x1x32x32xf32>
    %136 = vector.shape_cast %135 : vector<1x1x32x32xf32> to vector<32x32xf32>
    %cst_71 = arith.constant dense<0.000000e+00> : vector<128x32xf32>
    %137 = tpu.matmul %134, %136, %cst_71 {dimension_numbers = #tpu.dot_dimension_numbers<[1], [0], [0], [1], [0, 0, 1, 1], [], []>} : vector<128x32xf32>, vector<32x32xf32>, vector<128x32xf32> -> vector<128x32xf32>
    %138 = arith.addf %132, %137 : vector<128x32xf32>
    %139 = vector.extract_strided_slice %89 {offsets = [0, 2, 9, 0], sizes = [2, 8, 8, 32], strides = [1, 1, 1, 1]} : vector<2x10x24x32xf32> to vector<2x8x8x32xf32>
    %140 = vector.shape_cast %139 : vector<2x8x8x32xf32> to vector<128x32xf32>
    %c2_72 = arith.constant 2 : index
    %c2_73 = arith.constant 2 : index
    %c0_74 = arith.constant 0 : index
    %c0_75 = arith.constant 0 : index
    %141 = vector.load %arg5[%c2_72, %c2_73, %c0_74, %c0_75] : memref<3x3x32x32xf32, #tpu.memory_space<vmem>>, vector<1x1x32x32xf32>
    %142 = vector.shape_cast %141 : vector<1x1x32x32xf32> to vector<32x32xf32>
    %cst_76 = arith.constant dense<0.000000e+00> : vector<128x32xf32>
    %143 = tpu.matmul %140, %142, %cst_76 {dimension_numbers = #tpu.dot_dimension_numbers<[1], [0], [0], [1], [0, 0, 1, 1], [], []>} : vector<128x32xf32>, vector<32x32xf32>, vector<128x32xf32> -> vector<128x32xf32>
    %144 = arith.addf %138, %143 : vector<128x32xf32>
    %c0_77 = arith.constant 0 : index
    %c0_78 = arith.constant 0 : index
    %145 = vector.load %arg6[%c0_77, %c0_78] : memref<1x32xf32, #tpu.memory_space<vmem>>, vector<1x32xf32>
    %146 = vector.shape_cast %145 : vector<1x32xf32> to vector<32xf32>
    %147 = vector.shape_cast %146 : vector<32xf32> to vector<1x32xf32>
    %148 = vector.broadcast %147 : vector<1x32xf32> to vector<128x32xf32>
    %149 = arith.mulf %144, %148 : vector<128x32xf32>
    %c0_79 = arith.constant 0 : index
    %c0_80 = arith.constant 0 : index
    %150 = vector.load %arg7[%c0_79, %c0_80] : memref<1x32xf32, #tpu.memory_space<vmem>>, vector<1x32xf32>
    %151 = vector.shape_cast %150 : vector<1x32xf32> to vector<32xf32>
    %152 = vector.shape_cast %151 : vector<32xf32> to vector<1x32xf32>
    %153 = vector.broadcast %152 : vector<1x32xf32> to vector<128x32xf32>
    %154 = arith.addf %149, %153 : vector<128x32xf32>
    %155 = vector.shape_cast %0 : vector<2x8x8x32xf32> to vector<128x32xf32>
    %156 = arith.addf %154, %155 : vector<128x32xf32>
    %cst_81 = arith.constant 5.000000e-01 : f32
    %157 = vector.broadcast %cst_81 : f32 to vector<128x32xf32>
    %158 = arith.mulf %157, %156 : vector<128x32xf32>
    %cst_82 = arith.constant 0.707106769 : f32
    %159 = vector.broadcast %cst_82 : f32 to vector<128x32xf32>
    %160 = arith.mulf %156, %159 : vector<128x32xf32>
    %161 = math.erf %160 : vector<128x32xf32>
    %cst_83 = arith.constant 1.000000e+00 : f32
    %162 = vector.broadcast %cst_83 : f32 to vector<128x32xf32>
    %163 = arith.addf %162, %161 : vector<128x32xf32>
    %164 = arith.mulf %158, %163 : vector<128x32xf32>
    %165 = vector.shape_cast %164 : vector<128x32xf32> to vector<2x64x32xf32>
    %c0_84 = arith.constant 0 : index
    %c0_85 = arith.constant 0 : index
    %c0_86 = arith.constant 0 : index
    %166 = vector.load %arg8[%c0_84, %c0_85, %c0_86] : memref<1x64x32xf32, #tpu.memory_space<vmem>>, vector<1x64x32xf32>
    %167 = vector.shape_cast %166 : vector<1x64x32xf32> to vector<64x32xf32>
    %168 = vector.shape_cast %167 : vector<64x32xf32> to vector<1x64x32xf32>
    %169 = vector.broadcast %168 : vector<1x64x32xf32> to vector<2x64x32xf32>
    %170 = arith.addf %165, %169 : vector<2x64x32xf32>
    %171 = vector.shape_cast %170 : vector<2x64x32xf32> to vector<128x32xf32>
    %c0_87 = arith.constant 0 : index
    %c0_88 = arith.constant 0 : index
    %172 = vector.load %arg9[%c0_87, %c0_88] : memref<32x96xf32, #tpu.memory_space<vmem>>, vector<32x96xf32>
    %cst_89 = arith.constant dense<0.000000e+00> : vector<128x96xf32>
    %173 = tpu.matmul %171, %172, %cst_89 {dimension_numbers = #tpu.dot_dimension_numbers<[1], [0], [0], [1], [0, 0, 1, 1], [], []>} : vector<128x32xf32>, vector<32x96xf32>, vector<128x96xf32> -> vector<128x96xf32>
    %c0_90 = arith.constant 0 : index
    %c0_91 = arith.constant 0 : index
    %174 = vector.load %arg10[%c0_90, %c0_91] : memref<1x96xf32, #tpu.memory_space<vmem>>, vector<1x96xf32>
    %175 = vector.shape_cast %174 : vector<1x96xf32> to vector<96xf32>
    %176 = vector.shape_cast %175 : vector<96xf32> to vector<1x96xf32>
    %177 = vector.broadcast %176 : vector<1x96xf32> to vector<128x96xf32>
    %178 = arith.addf %173, %177 : vector<128x96xf32>
    %179 = vector.extract_strided_slice %178 {offsets = [0, 0], sizes = [128, 32], strides = [1, 1]} : vector<128x96xf32> to vector<128x32xf32>
    %cst_92 = arith.constant 0.353553385 : f32
    %180 = vector.broadcast %cst_92 : f32 to vector<128x32xf32>
    %181 = arith.mulf %179, %180 : vector<128x32xf32>
    %182 = vector.shape_cast %181 : vector<128x32xf32> to vector<2x64x32xf32>
    %183 = vector.extract_strided_slice %178 {offsets = [0, 32], sizes = [128, 32], strides = [1, 1]} : vector<128x96xf32> to vector<128x32xf32>
    %184 = vector.shape_cast %183 : vector<128x32xf32> to vector<2x64x32xf32>
    %185 = vector.extract_strided_slice %178 {offsets = [0, 64], sizes = [128, 32], strides = [1, 1]} : vector<128x96xf32> to vector<128x32xf32>
    %186 = vector.shape_cast %185 : vector<128x32xf32> to vector<2x64x32xf32>
    %cst_93 = arith.constant 0.000000e+00 : f32
    %187 = vector.broadcast %cst_93 : f32 to vector<128x32xf32>
    %188 = vector.extract_strided_slice %182 {offsets = [0, 0, 0], sizes = [2, 64, 8], strides = [1, 1, 1]} : vector<2x64x32xf32> to vector<2x64x8xf32>
    %189 = vector.extract_strided_slice %184 {offsets = [0, 0, 0], sizes = [2, 64, 8], strides = [1, 1, 1]} : vector<2x64x32xf32> to vector<2x64x8xf32>
    "tpu.trace_start"() <{level = 10 : i32, message = "bnd,bmd->bnm"}> : () -> ()
    %cst_94 = arith.constant dense<0.000000e+00> : vector<2x64x64xf32>
    %190 = tpu.matmul %188, %189, %cst_94 {dimension_numbers = #tpu.dot_dimension_numbers<[2], [2], [1], [1], [0, 0, 0, 1, 1, 1], [0], [0]>} : vector<2x64x8xf32>, vector<2x64x8xf32>, vector<2x64x64xf32> -> vector<2x64x64xf32>
    "tpu.trace_stop"() : () -> ()
    %cst_95 = arith.constant dense<0xFF800000> : vector<2x64xf32>
    %191 = vector.multi_reduction <maximumf>, %190, %cst_95 [2] : vector<2x64x64xf32> to vector<2x64xf32>
    %192 = vector.shape_cast %191 : vector<2x64xf32> to vector<2x64x1xf32>
    %193 = vector.broadcast %192 : vector<2x64x1xf32> to vector<2x64x64xf32>
    %194 = arith.subf %190, %193 : vector<2x64x64xf32>
    %195 = math.exp %194 : vector<2x64x64xf32>
    %cst_96 = arith.constant dense<0.000000e+00> : vector<2x64xf32>
    %196 = vector.multi_reduction <add>, %195, %cst_96 [2] : vector<2x64x64xf32> to vector<2x64xf32>
    %197 = vector.shape_cast %196 : vector<2x64xf32> to vector<2x64x1xf32>
    %198 = tpu.reciprocal %197 {approx = true} : vector<2x64x1xf32> -> vector<2x64x1xf32>
    %199 = vector.broadcast %198 : vector<2x64x1xf32> to vector<2x64x64xf32>
    %200 = arith.mulf %195, %199 : vector<2x64x64xf32>
    %201 = vector.extract_strided_slice %186 {offsets = [0, 0, 0], sizes = [2, 64, 8], strides = [1, 1, 1]} : vector<2x64x32xf32> to vector<2x64x8xf32>
    "tpu.trace_start"() <{level = 10 : i32, message = "bnm,bmd->bnd"}> : () -> ()
    %cst_97 = arith.constant dense<0.000000e+00> : vector<2x64x8xf32>
    %202 = tpu.matmul %200, %201, %cst_97 {dimension_numbers = #tpu.dot_dimension_numbers<[2], [1], [1], [2], [0, 0, 0, 1, 1, 2], [0], [0]>} : vector<2x64x64xf32>, vector<2x64x8xf32>, vector<2x64x8xf32> -> vector<2x64x8xf32>
    "tpu.trace_stop"() : () -> ()
    %203 = vector.shape_cast %202 : vector<2x64x8xf32> to vector<128x8xf32>
    %c0_98 = arith.constant 0 : index
    %c0_99 = arith.constant 0 : index
    %204 = vector.load %arg11[%c0_98, %c0_99] : memref<32x32xf32, #tpu.memory_space<vmem>>, vector<8x32xf32>
    %cst_100 = arith.constant dense<0.000000e+00> : vector<128x32xf32>
    %205 = tpu.matmul %203, %204, %cst_100 {dimension_numbers = #tpu.dot_dimension_numbers<[1], [0], [0], [1], [0, 0, 1, 1], [], []>} : vector<128x8xf32>, vector<8x32xf32>, vector<128x32xf32> -> vector<128x32xf32>
    %206 = arith.addf %187, %205 : vector<128x32xf32>
    %207 = vector.extract_strided_slice %182 {offsets = [0, 0, 8], sizes = [2, 64, 8], strides = [1, 1, 1]} : vector<2x64x32xf32> to vector<2x64x8xf32>
    %208 = vector.extract_strided_slice %184 {offsets = [0, 0, 8], sizes = [2, 64, 8], strides = [1, 1, 1]} : vector<2x64x32xf32> to vector<2x64x8xf32>
    "tpu.trace_start"() <{level = 10 : i32, message = "bnd,bmd->bnm"}> : () -> ()
    %cst_101 = arith.constant dense<0.000000e+00> : vector<2x64x64xf32>
    %209 = tpu.matmul %207, %208, %cst_101 {dimension_numbers = #tpu.dot_dimension_numbers<[2], [2], [1], [1], [0, 0, 0, 1, 1, 1], [0], [0]>} : vector<2x64x8xf32>, vector<2x64x8xf32>, vector<2x64x64xf32> -> vector<2x64x64xf32>
    "tpu.trace_stop"() : () -> ()
    %cst_102 = arith.constant dense<0xFF800000> : vector<2x64xf32>
    %210 = vector.multi_reduction <maximumf>, %209, %cst_102 [2] : vector<2x64x64xf32> to vector<2x64xf32>
    %211 = vector.shape_cast %210 : vector<2x64xf32> to vector<2x64x1xf32>
    %212 = vector.broadcast %211 : vector<2x64x1xf32> to vector<2x64x64xf32>
    %213 = arith.subf %209, %212 : vector<2x64x64xf32>
    %214 = math.exp %213 : vector<2x64x64xf32>
    %cst_103 = arith.constant dense<0.000000e+00> : vector<2x64xf32>
    %215 = vector.multi_reduction <add>, %214, %cst_103 [2] : vector<2x64x64xf32> to vector<2x64xf32>
    %216 = vector.shape_cast %215 : vector<2x64xf32> to vector<2x64x1xf32>
    %217 = tpu.reciprocal %216 {approx = true} : vector<2x64x1xf32> -> vector<2x64x1xf32>
    %218 = vector.broadcast %217 : vector<2x64x1xf32> to vector<2x64x64xf32>
    %219 = arith.mulf %214, %218 : vector<2x64x64xf32>
    %220 = vector.extract_strided_slice %186 {offsets = [0, 0, 8], sizes = [2, 64, 8], strides = [1, 1, 1]} : vector<2x64x32xf32> to vector<2x64x8xf32>
    "tpu.trace_start"() <{level = 10 : i32, message = "bnm,bmd->bnd"}> : () -> ()
    %cst_104 = arith.constant dense<0.000000e+00> : vector<2x64x8xf32>
    %221 = tpu.matmul %219, %220, %cst_104 {dimension_numbers = #tpu.dot_dimension_numbers<[2], [1], [1], [2], [0, 0, 0, 1, 1, 2], [0], [0]>} : vector<2x64x64xf32>, vector<2x64x8xf32>, vector<2x64x8xf32> -> vector<2x64x8xf32>
    "tpu.trace_stop"() : () -> ()
    %222 = vector.shape_cast %221 : vector<2x64x8xf32> to vector<128x8xf32>
    %c8_105 = arith.constant 8 : index
    %c0_106 = arith.constant 0 : index
    %223 = vector.load %arg11[%c8_105, %c0_106] : memref<32x32xf32, #tpu.memory_space<vmem>>, vector<8x32xf32>
    %cst_107 = arith.constant dense<0.000000e+00> : vector<128x32xf32>
    %224 = tpu.matmul %222, %223, %cst_107 {dimension_numbers = #tpu.dot_dimension_numbers<[1], [0], [0], [1], [0, 0, 1, 1], [], []>} : vector<128x8xf32>, vector<8x32xf32>, vector<128x32xf32> -> vector<128x32xf32>
    %225 = arith.addf %206, %224 : vector<128x32xf32>
    %226 = vector.extract_strided_slice %182 {offsets = [0, 0, 16], sizes = [2, 64, 8], strides = [1, 1, 1]} : vector<2x64x32xf32> to vector<2x64x8xf32>
    %227 = vector.extract_strided_slice %184 {offsets = [0, 0, 16], sizes = [2, 64, 8], strides = [1, 1, 1]} : vector<2x64x32xf32> to vector<2x64x8xf32>
    "tpu.trace_start"() <{level = 10 : i32, message = "bnd,bmd->bnm"}> : () -> ()
    %cst_108 = arith.constant dense<0.000000e+00> : vector<2x64x64xf32>
    %228 = tpu.matmul %226, %227, %cst_108 {dimension_numbers = #tpu.dot_dimension_numbers<[2], [2], [1], [1], [0, 0, 0, 1, 1, 1], [0], [0]>} : vector<2x64x8xf32>, vector<2x64x8xf32>, vector<2x64x64xf32> -> vector<2x64x64xf32>
    "tpu.trace_stop"() : () -> ()
    %cst_109 = arith.constant dense<0xFF800000> : vector<2x64xf32>
    %229 = vector.multi_reduction <maximumf>, %228, %cst_109 [2] : vector<2x64x64xf32> to vector<2x64xf32>
    %230 = vector.shape_cast %229 : vector<2x64xf32> to vector<2x64x1xf32>
    %231 = vector.broadcast %230 : vector<2x64x1xf32> to vector<2x64x64xf32>
    %232 = arith.subf %228, %231 : vector<2x64x64xf32>
    %233 = math.exp %232 : vector<2x64x64xf32>
    %cst_110 = arith.constant dense<0.000000e+00> : vector<2x64xf32>
    %234 = vector.multi_reduction <add>, %233, %cst_110 [2] : vector<2x64x64xf32> to vector<2x64xf32>
    %235 = vector.shape_cast %234 : vector<2x64xf32> to vector<2x64x1xf32>
    %236 = tpu.reciprocal %235 {approx = true} : vector<2x64x1xf32> -> vector<2x64x1xf32>
    %237 = vector.broadcast %236 : vector<2x64x1xf32> to vector<2x64x64xf32>
    %238 = arith.mulf %233, %237 : vector<2x64x64xf32>
    %239 = vector.extract_strided_slice %186 {offsets = [0, 0, 16], sizes = [2, 64, 8], strides = [1, 1, 1]} : vector<2x64x32xf32> to vector<2x64x8xf32>
    "tpu.trace_start"() <{level = 10 : i32, message = "bnm,bmd->bnd"}> : () -> ()
    %cst_111 = arith.constant dense<0.000000e+00> : vector<2x64x8xf32>
    %240 = tpu.matmul %238, %239, %cst_111 {dimension_numbers = #tpu.dot_dimension_numbers<[2], [1], [1], [2], [0, 0, 0, 1, 1, 2], [0], [0]>} : vector<2x64x64xf32>, vector<2x64x8xf32>, vector<2x64x8xf32> -> vector<2x64x8xf32>
    "tpu.trace_stop"() : () -> ()
    %241 = vector.shape_cast %240 : vector<2x64x8xf32> to vector<128x8xf32>
    %c16 = arith.constant 16 : index
    %c0_112 = arith.constant 0 : index
    %242 = vector.load %arg11[%c16, %c0_112] : memref<32x32xf32, #tpu.memory_space<vmem>>, vector<8x32xf32>
    %cst_113 = arith.constant dense<0.000000e+00> : vector<128x32xf32>
    %243 = tpu.matmul %241, %242, %cst_113 {dimension_numbers = #tpu.dot_dimension_numbers<[1], [0], [0], [1], [0, 0, 1, 1], [], []>} : vector<128x8xf32>, vector<8x32xf32>, vector<128x32xf32> -> vector<128x32xf32>
    %244 = arith.addf %225, %243 : vector<128x32xf32>
    %245 = vector.extract_strided_slice %182 {offsets = [0, 0, 24], sizes = [2, 64, 8], strides = [1, 1, 1]} : vector<2x64x32xf32> to vector<2x64x8xf32>
    %246 = vector.extract_strided_slice %184 {offsets = [0, 0, 24], sizes = [2, 64, 8], strides = [1, 1, 1]} : vector<2x64x32xf32> to vector<2x64x8xf32>
    "tpu.trace_start"() <{level = 10 : i32, message = "bnd,bmd->bnm"}> : () -> ()
    %cst_114 = arith.constant dense<0.000000e+00> : vector<2x64x64xf32>
    %247 = tpu.matmul %245, %246, %cst_114 {dimension_numbers = #tpu.dot_dimension_numbers<[2], [2], [1], [1], [0, 0, 0, 1, 1, 1], [0], [0]>} : vector<2x64x8xf32>, vector<2x64x8xf32>, vector<2x64x64xf32> -> vector<2x64x64xf32>
    "tpu.trace_stop"() : () -> ()
    %cst_115 = arith.constant dense<0xFF800000> : vector<2x64xf32>
    %248 = vector.multi_reduction <maximumf>, %247, %cst_115 [2] : vector<2x64x64xf32> to vector<2x64xf32>
    %249 = vector.shape_cast %248 : vector<2x64xf32> to vector<2x64x1xf32>
    %250 = vector.broadcast %249 : vector<2x64x1xf32> to vector<2x64x64xf32>
    %251 = arith.subf %247, %250 : vector<2x64x64xf32>
    %252 = math.exp %251 : vector<2x64x64xf32>
    %cst_116 = arith.constant dense<0.000000e+00> : vector<2x64xf32>
    %253 = vector.multi_reduction <add>, %252, %cst_116 [2] : vector<2x64x64xf32> to vector<2x64xf32>
    %254 = vector.shape_cast %253 : vector<2x64xf32> to vector<2x64x1xf32>
    %255 = tpu.reciprocal %254 {approx = true} : vector<2x64x1xf32> -> vector<2x64x1xf32>
    %256 = vector.broadcast %255 : vector<2x64x1xf32> to vector<2x64x64xf32>
    %257 = arith.mulf %252, %256 : vector<2x64x64xf32>
    %258 = vector.extract_strided_slice %186 {offsets = [0, 0, 24], sizes = [2, 64, 8], strides = [1, 1, 1]} : vector<2x64x32xf32> to vector<2x64x8xf32>
    "tpu.trace_start"() <{level = 10 : i32, message = "bnm,bmd->bnd"}> : () -> ()
    %cst_117 = arith.constant dense<0.000000e+00> : vector<2x64x8xf32>
    %259 = tpu.matmul %257, %258, %cst_117 {dimension_numbers = #tpu.dot_dimension_numbers<[2], [1], [1], [2], [0, 0, 0, 1, 1, 2], [0], [0]>} : vector<2x64x64xf32>, vector<2x64x8xf32>, vector<2x64x8xf32> -> vector<2x64x8xf32>
    "tpu.trace_stop"() : () -> ()
    %260 = vector.shape_cast %259 : vector<2x64x8xf32> to vector<128x8xf32>
    %c24 = arith.constant 24 : index
    %c0_118 = arith.constant 0 : index
    %261 = vector.load %arg11[%c24, %c0_118] : memref<32x32xf32, #tpu.memory_space<vmem>>, vector<8x32xf32>
    %cst_119 = arith.constant dense<0.000000e+00> : vector<128x32xf32>
    %262 = tpu.matmul %260, %261, %cst_119 {dimension_numbers = #tpu.dot_dimension_numbers<[1], [0], [0], [1], [0, 0, 1, 1], [], []>} : vector<128x8xf32>, vector<8x32xf32>, vector<128x32xf32> -> vector<128x32xf32>
    %263 = arith.addf %244, %262 : vector<128x32xf32>
    %c0_120 = arith.constant 0 : index
    %c0_121 = arith.constant 0 : index
    %264 = vector.load %arg12[%c0_120, %c0_121] : memref<1x32xf32, #tpu.memory_space<vmem>>, vector<1x32xf32>
    %265 = vector.shape_cast %264 : vector<1x32xf32> to vector<32xf32>
    %266 = vector.shape_cast %265 : vector<32xf32> to vector<1x32xf32>
    %267 = vector.broadcast %266 : vector<1x32xf32> to vector<128x32xf32>
    %268 = arith.addf %263, %267 : vector<128x32xf32>
    %c0_122 = arith.constant 0 : index
    %c0_123 = arith.constant 0 : index
    %269 = vector.load %arg13[%c0_122, %c0_123] : memref<1x32xf32, #tpu.memory_space<vmem>>, vector<1x32xf32>
    %270 = vector.shape_cast %269 : vector<1x32xf32> to vector<32xf32>
    %271 = vector.shape_cast %270 : vector<32xf32> to vector<1x32xf32>
    %272 = vector.broadcast %271 : vector<1x32xf32> to vector<128x32xf32>
    %273 = arith.mulf %268, %272 : vector<128x32xf32>
    %c0_124 = arith.constant 0 : index
    %c0_125 = arith.constant 0 : index
    %274 = vector.load %arg14[%c0_124, %c0_125] : memref<1x32xf32, #tpu.memory_space<vmem>>, vector<1x32xf32>
    %275 = vector.shape_cast %274 : vector<1x32xf32> to vector<32xf32>
    %276 = vector.shape_cast %275 : vector<32xf32> to vector<1x32xf32>
    %277 = vector.broadcast %276 : vector<1x32xf32> to vector<128x32xf32>
    %278 = arith.addf %273, %277 : vector<128x32xf32>
    %c0_126 = arith.constant 0 : index
    %c0_127 = arith.constant 0 : index
    %279 = vector.load %arg15[%c0_126, %c0_127] : memref<32x64xf32, #tpu.memory_space<vmem>>, vector<32x64xf32>
    %cst_128 = arith.constant dense<0.000000e+00> : vector<128x64xf32>
    %280 = tpu.matmul %278, %279, %cst_128 {dimension_numbers = #tpu.dot_dimension_numbers<[1], [0], [0], [1], [0, 0, 1, 1], [], []>} : vector<128x32xf32>, vector<32x64xf32>, vector<128x64xf32> -> vector<128x64xf32>
    %c0_129 = arith.constant 0 : index
    %c0_130 = arith.constant 0 : index
    %281 = vector.load %arg16[%c0_129, %c0_130] : memref<1x64xf32, #tpu.memory_space<vmem>>, vector<1x64xf32>
    %282 = vector.shape_cast %281 : vector<1x64xf32> to vector<64xf32>
    %283 = vector.shape_cast %282 : vector<64xf32> to vector<1x64xf32>
    %284 = vector.broadcast %283 : vector<1x64xf32> to vector<128x64xf32>
    %285 = arith.addf %280, %284 : vector<128x64xf32>
    %c0_131 = arith.constant 0 : index
    %c0_132 = arith.constant 0 : index
    %286 = vector.load %arg17[%c0_131, %c0_132] : memref<1x64xf32, #tpu.memory_space<vmem>>, vector<1x64xf32>
    %287 = vector.shape_cast %286 : vector<1x64xf32> to vector<64xf32>
    %288 = vector.shape_cast %287 : vector<64xf32> to vector<1x64xf32>
    %289 = vector.broadcast %288 : vector<1x64xf32> to vector<128x64xf32>
    %290 = arith.mulf %285, %289 : vector<128x64xf32>
    %c0_133 = arith.constant 0 : index
    %c0_134 = arith.constant 0 : index
    %291 = vector.load %arg18[%c0_133, %c0_134] : memref<1x64xf32, #tpu.memory_space<vmem>>, vector<1x64xf32>
    %292 = vector.shape_cast %291 : vector<1x64xf32> to vector<64xf32>
    %293 = vector.shape_cast %292 : vector<64xf32> to vector<1x64xf32>
    %294 = vector.broadcast %293 : vector<1x64xf32> to vector<128x64xf32>
    %295 = arith.addf %290, %294 : vector<128x64xf32>
    %cst_135 = arith.constant 5.000000e-01 : f32
    %296 = vector.broadcast %cst_135 : f32 to vector<128x64xf32>
    %297 = arith.mulf %296, %295 : vector<128x64xf32>
    %cst_136 = arith.constant 0.707106769 : f32
    %298 = vector.broadcast %cst_136 : f32 to vector<128x64xf32>
    %299 = arith.mulf %295, %298 : vector<128x64xf32>
    %300 = math.erf %299 : vector<128x64xf32>
    %cst_137 = arith.constant 1.000000e+00 : f32
    %301 = vector.broadcast %cst_137 : f32 to vector<128x64xf32>
    %302 = arith.addf %301, %300 : vector<128x64xf32>
    %303 = arith.mulf %297, %302 : vector<128x64xf32>
    %c0_138 = arith.constant 0 : index
    %c0_139 = arith.constant 0 : index
    %304 = vector.load %arg19[%c0_138, %c0_139] : memref<128x64xf32, #tpu.memory_space<vmem>>, vector<128x64xf32>
    tpu.vector_store %arg19[%c0_138, %c0_139], %303 {strides = array<i32>} : memref<128x64xf32, #tpu.memory_space<vmem>>, vector<128x64xf32>,
    return
  }
  func.func @transform_0(%arg0: i32) -> (i32, i32, i32, i32) {
    %c0_i32 = arith.constant 0 : i32
    %c0_i32_0 = arith.constant 0 : i32
    %c0_i32_1 = arith.constant 0 : i32
    %c0_i32_2 = arith.constant 0 : i32
    %c0_i32_3 = arith.constant 0 : i32
    return %c0_i32, %c0_i32_0, %c0_i32_1, %c0_i32_2 : i32, i32, i32, i32
  }
  func.func @transform_1(%arg0: i32) -> (i32, i32, i32) {
    %c0_i32 = arith.constant 0 : i32
    %c0_i32_0 = arith.constant 0 : i32
    %c0_i32_1 = arith.constant 0 : i32
    %c0_i32_2 = arith.constant 0 : i32
    return %c0_i32, %c0_i32_0, %c0_i32_1 : i32, i32, i32
  }
  func.func @transform_2(%arg0: i32) -> (i32, i32) {
    %c0_i32 = arith.constant 0 : i32
    %c0_i32_0 = arith.constant 0 : i32
    %c0_i32_1 = arith.constant 0 : i32
    return %c0_i32, %c0_i32_0 : i32, i32
  }
  func.func @transform_3(%arg0: i32) -> (i32, i32) {
    %c0_i32 = arith.constant 0 : i32
    %c0_i32_0 = arith.constant 0 : i32
    %c0_i32_1 = arith.constant 0 : i32
    return %c0_i32, %c0_i32_0 : i32, i32
  }
  func.func @transform_4(%arg0: i32) -> (i32, i32, i32, i32) {
    %c0_i32 = arith.constant 0 : i32
    %c0_i32_0 = arith.constant 0 : i32
    %c0_i32_1 = arith.constant 0 : i32
    %c0_i32_2 = arith.constant 0 : i32
    %c0_i32_3 = arith.constant 0 : i32
    return %c0_i32, %c0_i32_0, %c0_i32_1, %c0_i32_2 : i32, i32, i32, i32
  }
  func.func @transform_5(%arg0: i32) -> (i32, i32) {
    %c0_i32 = arith.constant 0 : i32
    %c0_i32_0 = arith.constant 0 : i32
    %c0_i32_1 = arith.constant 0 : i32
    return %c0_i32, %c0_i32_0 : i32, i32
  }
  func.func @transform_6(%arg0: i32) -> (i32, i32) {
    %c0_i32 = arith.constant 0 : i32
    %c0_i32_0 = arith.constant 0 : i32
    %c0_i32_1 = arith.constant 0 : i32
    return %c0_i32, %c0_i32_0 : i32, i32
  }
  func.func @transform_7(%arg0: i32) -> (i32, i32, i32) {
    %c0_i32 = arith.constant 0 : i32
    %c0_i32_0 = arith.constant 0 : i32
    %c0_i32_1 = arith.constant 0 : i32
    %c0_i32_2 = arith.constant 0 : i32
    return %c0_i32, %c0_i32_0, %c0_i32_1 : i32, i32, i32
  }
  func.func @transform_8(%arg0: i32) -> (i32, i32) {
    %c0_i32 = arith.constant 0 : i32
    %c0_i32_0 = arith.constant 0 : i32
    %c0_i32_1 = arith.constant 0 : i32
    return %c0_i32, %c0_i32_0 : i32, i32
  }
  func.func @transform_9(%arg0: i32) -> (i32, i32) {
    %c0_i32 = arith.constant 0 : i32
    %c0_i32_0 = arith.constant 0 : i32
    %c0_i32_1 = arith.constant 0 : i32
    return %c0_i32, %c0_i32_0 : i32, i32
  }
  func.func @transform_10(%arg0: i32) -> (i32, i32) {
    %c0_i32 = arith.constant 0 : i32
    %c0_i32_0 = arith.constant 0 : i32
    %c0_i32_1 = arith.constant 0 : i32
    return %c0_i32, %c0_i32_0 : i32, i32
  }
  func.func @transform_11(%arg0: i32) -> (i32, i32) {
    %c0_i32 = arith.constant 0 : i32
    %c0_i32_0 = arith.constant 0 : i32
    %c0_i32_1 = arith.constant 0 : i32
    return %c0_i32, %c0_i32_0 : i32, i32
  }
  func.func @transform_12(%arg0: i32) -> (i32, i32) {
    %c0_i32 = arith.constant 0 : i32
    %c0_i32_0 = arith.constant 0 : i32
    %c0_i32_1 = arith.constant 0 : i32
    return %c0_i32, %c0_i32_0 : i32, i32
  }
  func.func @transform_13(%arg0: i32) -> (i32, i32) {
    %c0_i32 = arith.constant 0 : i32
    %c0_i32_0 = arith.constant 0 : i32
    %c0_i32_1 = arith.constant 0 : i32
    return %c0_i32, %c0_i32_0 : i32, i32
  }
  func.func @transform_14(%arg0: i32) -> (i32, i32) {
    %c0_i32 = arith.constant 0 : i32
    %c0_i32_0 = arith.constant 0 : i32
    %c0_i32_1 = arith.constant 0 : i32
    return %c0_i32, %c0_i32_0 : i32, i32
  }
  func.func @transform_15(%arg0: i32) -> (i32, i32) {
    %c0_i32 = arith.constant 0 : i32
    %c0_i32_0 = arith.constant 0 : i32
    %c0_i32_1 = arith.constant 0 : i32
    return %c0_i32, %c0_i32_0 : i32, i32
  }
  func.func @transform_16(%arg0: i32) -> (i32, i32) {
    %c0_i32 = arith.constant 0 : i32
    %c0_i32_0 = arith.constant 0 : i32
    %c0_i32_1 = arith.constant 0 : i32
    return %c0_i32, %c0_i32_0 : i32, i32
  }
  func.func @transform_17(%arg0: i32) -> (i32, i32) {
    %c0_i32 = arith.constant 0 : i32
    %c0_i32_0 = arith.constant 0 : i32
    %c0_i32_1 = arith.constant 0 : i32
    return %c0_i32, %c0_i32_0 : i32, i32
  }
  func.func @transform_18(%arg0: i32) -> (i32, i32) {
    %c0_i32 = arith.constant 0 : i32
    %c0_i32_0 = arith.constant 0 : i32
    %c0_i32_1 = arith.constant 0 : i32
    return %c0_i32, %c0_i32_0 : i32, i32
  }
}

</mosaic_0001>

<bundles_post_ra>
// kernel: upblock_forward.1
= control target key start
LH: loop header
LB: loop body
LE: loop exit
PB: predicated region body
PF: predicated region fallthrough
CT: control target
= control target key end

     0   :  { %s15252_s0 = inlined_call_operand.hbm [shape: f32[2,8,8,32], index: 0, kind: input, shape index: {}]   ;;  %s15253_s1 = inlined_call_operand.vmem [shape: f32[3,3,32], index: 1, kind: input, shape index: {}]   ;;  %s15254_s2 = inlined_call_operand.vmem [shape: f32[1,32], index: 2, kind: input, shape index: {}]   ;;  %s15255_s3 = inlined_call_operand.hbm [shape: f32[1,32], index: 3, kind: input, shape index: {}]   ;;  %s15256_s4 = inlined_call_operand.hbm [shape: f32[3,3,32,32], index: 4, kind: input, shape index: {}]   ;;  %s15257_s5 = inlined_call_operand.hbm [shape: f32[1,32], index: 5, kind: input, shape index: {}]   ;;  %s15258_s6 = inlined_call_operand.hbm [shape: f32[1,32], index: 6, kind: input, shape index: {}]   ;;  %s15259_s7 = inlined_call_operand.vmem [shape: f32[1,64,32], index: 7, kind: input, shape index: {}]   ;;  %s15260_s8 = inlined_call_operand.vmem [shape: f32[32,96], index: 8, kind: input, shape index: {}]   ;;  %s15261_s9 = inlined_call_operand.hbm [shape: f32[1,96], index: 9, kind: input, shape index: {}]   ;;  %s15262_s10 = inlined_call_operand.vmem [shape: f32[32,32], index: 10, kind: input, shape index: {}]   ;;  %s15263_s11 = inlined_call_operand.hbm [shape: f32[1,32], index: 11, kind: input, shape index: {}]   ;;  %s15264_s12 = inlined_call_operand.hbm [shape: f32[1,32], index: 12, kind: input, shape index: {}]   ;;  %s15265_s13 = inlined_call_operand.hbm [shape: f32[1,32], index: 13, kind: input, shape index: {}]   ;;  %s15266_s14 = inlined_call_operand.vmem [shape: f32[32,64], index: 14, kind: input, shape index: {}]   ;;  %s15267_s15 = inlined_call_operand.hbm [shape: f32[1,64], index: 15, kind: input, shape index: {}]   ;;  %s15268_s16 = inlined_call_operand.vmem [shape: f32[1,64], index: 16, kind: input, shape index: {}]   ;;  %s15269_s17 = inlined_call_operand.hbm [shape: f32[1,64], index: 17, kind: input, shape index: {}]   ;;  %s15270_s18 = inlined_call_operand.vmem [shape: f32[128,64], index: 18, kind: output, shape index: {}]  }
   0x1   :  { %15297 = sst [smem:[#allocation45_spill]] %s15252_s0 }
   0x2   :  { %15298 = sst [smem:[#allocation46_spill]] %s15253_s1 }
   0x3   :  { %15299 = sst [smem:[#allocation47_spill]] %s15254_s2 }
   0x4   :  { %23 = vsyncpa [#allocation4], 0 }
   0x5   :  { %24 = vsyncpa [#allocation6], 0 }
   0x6   :  { %25 = vsyncpa [#allocation9], 0 }
   0x7   :  { %26 = vsyncpa [#allocation12], 0 }
   0x8   :  { %27 = vsyncpa [#allocation15], 0 }
   0x9   :  { %28 = vsyncpa [#allocation18], 0  ;;  %s11866_s27 = smov [#allocation5]   ;;  %s11867_s29 = smov [#allocation8]  }
   0xa   :  { %s51_s28 = sshll.u32 %s11866_s27, 4  ;;  %s73_s30 = sshll.u32 %s11867_s29, 4  ;;  %s52_s28 = int_to_ptr.vmem [resolvable:$true] %s51_s28  ;;  %s74_s30 = int_to_ptr.vmem [resolvable:$true] %s73_s30 }
   0xb   :  { %s11612_s1 = scalar_lea.hbm %s15255_s3, 16 }
   0xc   :  { %p11613_p0 = scmp.ne.s32.totalorder %s15255_s3, %s11612_s1  ;;  %p11616_p1 = scmp.lt.u32.totalorder %s11612_s1, %s15255_s3 }
   0xe   :  { %p11618_p2 = pnand %p11616_p1, %p11613_p0 }
  0x10   :  { %11621 = shalt.err (!%p11618_p2)
}
  0x11   :  { %s11622_s23 = scalar_lea.vmem %s52_s28, 16  ;;  %s11626_s24 = scalar_lea.vmem %s52_s28, 32 }
  0x12   :  { %p11623_p3 = scmp.ne.s32.totalorder %s52_s28, %s11622_s23  ;;  %p11627_p4 = scmp.lt.s32.totalorder %s52_s28, %s52_s28 }
  0x13   :  { %p11628_p5 = scmp.lt.s32.totalorder %s11626_s24, %s11622_s23 }
  0x15   :  { %p11629_p6 = por %p11628_p5, %p11627_p4 }
  0x17   :  { %p11630_p7 = pnand %p11629_p6, %p11623_p3 }
  0x19   :  { %11633 = shalt.err (!%p11630_p7)
}
  0x1a   :  { %54 = dma.hbm_to_vmem [thread:$0]  %s15255_s3, 16, %s52_s28, [#allocation6]  }
  0x1b   :  { %s11634_s0 = scalar_lea.hbm %s15257_s5, 16 }
  0x1c   :  { %p11635_p8 = scmp.ne.s32.totalorder %s15257_s5, %s11634_s0  ;;  %p11638_p9 = scmp.lt.u32.totalorder %s11634_s0, %s15257_s5 }
  0x1e   :  { %p11640_p10 = pnand %p11638_p9, %p11635_p8 }
  0x20   :  { %11643 = shalt.err (!%p11640_p10)
}
  0x21   :  { %s11644_s22 = scalar_lea.vmem %s74_s30, 16  ;;  %s11648_s2 = scalar_lea.vmem %s74_s30, 32 }
  0x22   :  { %p11645_p11 = scmp.ne.s32.totalorder %s74_s30, %s11644_s22  ;;  %p11649_p12 = scmp.lt.s32.totalorder %s74_s30, %s74_s30 }
  0x23   :  { %p11650_p13 = scmp.lt.s32.totalorder %s11648_s2, %s11644_s22 }
  0x25   :  { %p11651_p0 = por %p11650_p13, %p11649_p12 }
  0x27   :  { %p11652_p1 = pnand %p11651_p0, %p11645_p11 }
  0x29   :  { %11655 = shalt.err (!%p11652_p1)
}
  0x2a   :  { %76 = dma.hbm_to_vmem [thread:$0]  %s15257_s5, 16, %s74_s30, [#allocation9]  }
  0x2b   :  { %s11868_s23 = smov [#allocation11]   ;;  %s11869_s25 = smov [#allocation14]  }
  0x2c   :  { %s97_s24 = sshll.u32 %s11868_s23, 4  ;;  %s119_s26 = sshll.u32 %s11869_s25, 4  ;;  %s98_s24 = int_to_ptr.vmem [resolvable:$true] %s97_s24  ;;  %s120_s26 = int_to_ptr.vmem [resolvable:$true] %s119_s26 }
  0x2d   :  { %s11656_s0 = scalar_lea.hbm %s15261_s9, 16 }
  0x2e   :  { %p11657_p2 = scmp.ne.s32.totalorder %s15261_s9, %s11656_s0  ;;  %p11660_p3 = scmp.lt.u32.totalorder %s11656_s0, %s15261_s9 }
  0x30   :  { %p11662_p4 = pnand %p11660_p3, %p11657_p2 }
  0x32   :  { %11665 = shalt.err (!%p11662_p4)
}
  0x33   :  { %s11666_s5 = scalar_lea.vmem %s98_s24, 16  ;;  %s11670_s30 = scalar_lea.vmem %s98_s24, 32 }
  0x34   :  { %p11667_p5 = scmp.ne.s32.totalorder %s98_s24, %s11666_s5  ;;  %p11671_p6 = scmp.lt.s32.totalorder %s98_s24, %s98_s24 }
  0x35   :  { %p11672_p7 = scmp.lt.s32.totalorder %s11670_s30, %s11666_s5 }
  0x37   :  { %p11673_p8 = por %p11672_p7, %p11671_p6 }
  0x39   :  { %p11674_p9 = pnand %p11673_p8, %p11667_p5 }
  0x3b   :  { %11677 = shalt.err (!%p11674_p9)
}
  0x3c   :  { %100 = dma.hbm_to_vmem [thread:$0]  %s15261_s9, 16, %s98_s24, [#allocation12]  }
  0x3d   :  { %s11678_s23 = scalar_lea.hbm %s15264_s12, 16 }
  0x3e   :  { %p11679_p10 = scmp.ne.s32.totalorder %s15264_s12, %s11678_s23  ;;  %p11682_p11 = scmp.lt.u32.totalorder %s11678_s23, %s15264_s12 }
  0x40   :  { %p11684_p12 = pnand %p11682_p11, %p11679_p10 }
  0x42   :  { %11687 = shalt.err (!%p11684_p12)
}
  0x43   :  { %s11688_s19 = scalar_lea.vmem %s120_s26, 16  ;;  %s11692_s1 = scalar_lea.vmem %s120_s26, 32 }
  0x44   :  { %p11689_p13 = scmp.ne.s32.totalorder %s120_s26, %s11688_s19  ;;  %p11693_p0 = scmp.lt.s32.totalorder %s120_s26, %s120_s26 }
  0x45   :  { %p11694_p1 = scmp.lt.s32.totalorder %s11692_s1, %s11688_s19 }
  0x47   :  { %p11695_p2 = por %p11694_p1, %p11693_p0 }
  0x49   :  { %p11696_p3 = pnand %p11695_p2, %p11689_p13 }
  0x4b   :  { %11699 = shalt.err (!%p11696_p3)
}
  0x4c   :  { %122 = dma.hbm_to_vmem [thread:$0]  %s15264_s12, 16, %s120_s26, [#allocation15]  }
  0x4d   :  { %s11870_s20 = smov [#allocation17]   ;;  %s11871_s5 = smov [#allocation3]  }
  0x4e   :  { %s141_s21 = sshll.u32 %s11870_s20, 4  ;;  %s34_s30 = sshll.u32 %s11871_s5, 4  ;;  %s142_s21 = int_to_ptr.vmem [resolvable:$true] %s141_s21  ;;  %s12034_s30 = int_to_ptr.vmem [resolvable:$true] %s34_s30 }
  0x4f   :  { %s11700_s3 = scalar_lea.hbm %s15267_s15, 16 }
  0x50   :  { %p11701_p4 = scmp.ne.s32.totalorder %s15267_s15, %s11700_s3  ;;  %p11704_p5 = scmp.lt.u32.totalorder %s11700_s3, %s15267_s15 }
  0x52   :  { %p11706_p6 = pnand %p11704_p5, %p11701_p4 }
  0x54   :  { %11709 = shalt.err (!%p11706_p6)
}
  0x55   :  { %s11710_s12 = scalar_lea.vmem %s142_s21, 16  ;;  %s11714_s26 = scalar_lea.vmem %s142_s21, 32 }
  0x56   :  { %p11711_p7 = scmp.ne.s32.totalorder %s142_s21, %s11710_s12  ;;  %p11715_p8 = scmp.lt.s32.totalorder %s142_s21, %s142_s21 }
  0x57   :  { %p11716_p9 = scmp.lt.s32.totalorder %s11714_s26, %s11710_s12 }
  0x59   :  { %p11717_p10 = por %p11716_p9, %p11715_p8 }
  0x5b   :  { %p11718_p11 = pnand %p11717_p10, %p11711_p7 }
  0x5d   :  { %11721 = shalt.err (!%p11718_p11)
}
  0x5e   :  { %144 = dma.hbm_to_vmem [thread:$0]  %s15267_s15, 16, %s142_s21, [#allocation18]  }
  0x5f   :  { %s15300_s9 = sld [smem:[#allocation45_spill]] }
  0x65   :  { %s11722_s24 = scalar_lea.hbm %s15300_s9, 2048 }
  0x66   :  { %p11723_p12 = scmp.ne.s32.totalorder %s15300_s9, %s11722_s24  ;;  %p11726_p13 = scmp.lt.u32.totalorder %s11722_s24, %s15300_s9 }
  0x68   :  { %p11728_p0 = pnand %p11726_p13, %p11723_p12 }
  0x6a   :  { %11731 = shalt.err (!%p11728_p0)
}
  0x6b   :  { %s11732_s3 = scalar_lea.vmem %s12034_s30, 2048  ;;  %p11737_p2 = scmp.lt.s32.totalorder %s12034_s30, %s12034_s30 }
  0x6c   :  { %p11733_p1 = scmp.ne.s32.totalorder %s12034_s30, %s11732_s3  ;;  %p11738_p3 = scmp.lt.s32.totalorder %s11732_s3, %s11732_s3 }
  0x6e   :  { %p11739_p4 = por %p11738_p3, %p11737_p2 }
  0x70   :  { %p11740_p5 = pnand %p11739_p4, %p11733_p1 }
  0x72   :  { %11743 = shalt.err (!%p11740_p5)
}
  0x73   :  { %s11872_s15 = smov 128   ;;  %s11873_s21 = smov 8  }
  0x74   :  { %40 = dma.hbm_to_vmem [thread:$0]  %s15300_s9, 2048, %s12034_s30, [#allocation4], %s11872_s15, %s11872_s15, %s11873_s21  }
  0x75   :  { %s11874_s25 = smov [#allocation7]   ;;  %s11875_s12 = smov [#allocation10]  }
  0x76   :  { %s60_s27 = sshll.u32 %s11874_s25, 4  ;;  %s83_s26 = sshll.u32 %s11875_s12, 4  ;;  %s61_s27 = int_to_ptr.vmem [resolvable:$true] %s60_s27  ;;  %s84_s26 = int_to_ptr.vmem [resolvable:$true] %s83_s26 }
  0x77   :  { %s11744_s19 = scalar_lea.hbm %s15256_s4, 4608 }
  0x78   :  { %p11745_p6 = scmp.ne.s32.totalorder %s15256_s4, %s11744_s19  ;;  %p11748_p7 = scmp.lt.u32.totalorder %s11744_s19, %s15256_s4 }
  0x7a   :  { %p11750_p8 = pnand %p11748_p7, %p11745_p6 }
  0x7c   :  { %11753 = shalt.err (!%p11750_p8)
}
  0x7d   :  { %s11754_s30 = scalar_lea.vmem %s61_s27, 4608  ;;  %p11759_p10 = scmp.lt.s32.totalorder %s61_s27, %s61_s27 }
  0x7e   :  { %p11755_p9 = scmp.ne.s32.totalorder %s61_s27, %s11754_s30  ;;  %p11760_p11 = scmp.lt.s32.totalorder %s11754_s30, %s11754_s30 }
  0x80   :  { %p11761_p12 = por %p11760_p11, %p11759_p10 }
  0x82   :  { %p11762_p13 = pnand %p11761_p12, %p11755_p9 }
  0x84   :  { %11765 = shalt.err (!%p11762_p13)
}
  0x85   :  { %66 = dma.hbm_to_vmem [thread:$0]  %s15256_s4, 4608, %s61_s27, [#allocation6], %s11872_s15, %s11872_s15, %s11873_s21  }
  0x86   :  { %s11766_s28 = scalar_lea.hbm %s15258_s6, 16 }
  0x87   :  { %p11767_p0 = scmp.ne.s32.totalorder %s15258_s6, %s11766_s28  ;;  %p11770_p1 = scmp.lt.u32.totalorder %s11766_s28, %s15258_s6 }
  0x89   :  { %p11772_p2 = pnand %p11770_p1, %p11767_p0 }
  0x8b   :  { %11775 = shalt.err (!%p11772_p2)
}
  0x8c   :  { %s11776_s0 = scalar_lea.vmem %s84_s26, 16  ;;  %s11780_s19 = scalar_lea.vmem %s84_s26, 32 }
  0x8d   :  { %p11777_p3 = scmp.ne.s32.totalorder %s84_s26, %s11776_s0  ;;  %p11781_p4 = scmp.lt.s32.totalorder %s84_s26, %s84_s26 }
  0x8e   :  { %p11782_p5 = scmp.lt.s32.totalorder %s11780_s19, %s11776_s0 }
  0x90   :  { %p11783_p6 = por %p11782_p5, %p11781_p4 }
  0x92   :  { %p11784_p7 = pnand %p11783_p6, %p11777_p3 }
  0x94   :  { %11787 = shalt.err (!%p11784_p7)
}
  0x95   :  { %86 = dma.hbm_to_vmem [thread:$0]  %s15258_s6, 16, %s84_s26, [#allocation9]  }
  0x96   :  { %s11876_s21 = smov [#allocation13]   ;;  %s11877_s1 = smov [#allocation16]  }
  0x97   :  { %s109_s27 = sshll.u32 %s11876_s21, 4  ;;  %s129_s24 = sshll.u32 %s11877_s1, 4  ;;  %s110_s27 = int_to_ptr.vmem [resolvable:$true] %s109_s27  ;;  %s130_s24 = int_to_ptr.vmem [resolvable:$true] %s129_s24 }
  0x98   :  { %s11788_s30 = scalar_lea.hbm %s15263_s11, 16 }
  0x99   :  { %p11789_p8 = scmp.ne.s32.totalorder %s15263_s11, %s11788_s30  ;;  %p11792_p9 = scmp.lt.u32.totalorder %s11788_s30, %s15263_s11 }
  0x9b   :  { %p11794_p10 = pnand %p11792_p9, %p11789_p8 }
  0x9d   :  { %11797 = shalt.err (!%p11794_p10)
}
  0x9e   :  { %s11798_s6 = scalar_lea.vmem %s110_s27, 16  ;;  %s11802_s26 = scalar_lea.vmem %s110_s27, 32 }
  0x9f   :  { %p11799_p11 = scmp.ne.s32.totalorder %s110_s27, %s11798_s6  ;;  %p11803_p12 = scmp.lt.s32.totalorder %s110_s27, %s110_s27 }
  0xa0   :  { %p11804_p13 = scmp.lt.s32.totalorder %s11802_s26, %s11798_s6 }
  0xa2   :  { %p11805_p0 = por %p11804_p13, %p11803_p12 }
  0xa4   :  { %p11806_p1 = pnand %p11805_p0, %p11799_p11 }
  0xa6   :  { %11809 = shalt.err (!%p11806_p1)
}
  0xa7   :  { %112 = dma.hbm_to_vmem [thread:$0]  %s15263_s11, 16, %s110_s27, [#allocation12]  }
  0xa8   :  { %s11810_s29 = scalar_lea.hbm %s15265_s13, 16 }
  0xa9   :  { %p11811_p2 = scmp.ne.s32.totalorder %s15265_s13, %s11810_s29  ;;  %p11814_p3 = scmp.lt.u32.totalorder %s11810_s29, %s15265_s13 }
  0xab   :  { %p11816_p4 = pnand %p11814_p3, %p11811_p2 }
  0xad   :  { %11819 = shalt.err (!%p11816_p4)
}
  0xae   :  { %s11820_s21 = scalar_lea.vmem %s130_s24, 16  ;;  %s11824_s1 = scalar_lea.vmem %s130_s24, 32 }
  0xaf   :  { %p11821_p5 = scmp.ne.s32.totalorder %s130_s24, %s11820_s21  ;;  %p11825_p6 = scmp.lt.s32.totalorder %s130_s24, %s130_s24 }
  0xb0   :  { %p11826_p7 = scmp.lt.s32.totalorder %s11824_s1, %s11820_s21 }
  0xb2   :  { %p11827_p8 = por %p11826_p7, %p11825_p6 }
  0xb4   :  { %p11828_p9 = pnand %p11827_p8, %p11821_p5 }
  0xb6   :  { %11831 = shalt.err (!%p11828_p9)
}
  0xb7   :  { %132 = dma.hbm_to_vmem [thread:$0]  %s15265_s13, 16, %s130_s24, [#allocation15]  }
  0xb8   :  { %s11878_s20 = smov [#allocation19]   ;;  %s11832_s22 = scalar_lea.hbm %s15269_s17, 16 }
  0xb9   :  { %s153_s5 = sshll.u32 %s11878_s20, 4  ;;  %p11833_p10 = scmp.ne.s32.totalorder %s15269_s17, %s11832_s22  ;;  %s154_s5 = int_to_ptr.vmem [resolvable:$true] %s153_s5 }
  0xba   :  { %p11836_p11 = scmp.lt.u32.totalorder %s11832_s22, %s15269_s17 }
  0xbc   :  { %p11838_p12 = pnand %p11836_p11, %p11833_p10 }
  0xbe   :  { %11841 = shalt.err (!%p11838_p12)
}
  0xbf   :  { %s11842_s28 = scalar_lea.vmem %s154_s5, 16  ;;  %s11846_s13 = scalar_lea.vmem %s154_s5, 32 }
  0xc0   :  { %p11843_p13 = scmp.ne.s32.totalorder %s154_s5, %s11842_s28  ;;  %p11847_p0 = scmp.lt.s32.totalorder %s154_s5, %s154_s5 }
  0xc1   :  { %p11848_p1 = scmp.lt.s32.totalorder %s11846_s13, %s11842_s28 }
  0xc3   :  { %p11849_p2 = por %p11848_p1, %p11847_p0 }
  0xc5   :  { %p11850_p3 = pnand %p11849_p2, %p11843_p13 }
  0xc7   :  { %11853 = shalt.err (!%p11850_p3)
}
  0xc8   :  { %156 = dma.hbm_to_vmem [thread:$0]  %s15269_s17, 16, %s154_s5, [#allocation18]  }
  0xc9   :  { %11854 = dma.done.wait [#allocation4], 2048  }
  0xca   :  { %11855 = vsyncadd [#allocation4], 4294965248 }
  0xcb   :  { %11856 = dma.done.wait [#allocation6], 4624  }
  0xcc   :  { %11857 = vsyncadd [#allocation6], 4294962672 }
  0xcd   :  { %11858 = dma.done.wait [#allocation9], 32  }
  0xce   :  { %11859 = vsyncadd [#allocation9], 4294967264 }
  0xcf   :  { %11860 = dma.done.wait [#allocation12], 32  }
  0xd0   :  { %11861 = vsyncadd [#allocation12], 4294967264 }
  0xd1   :  { %11862 = dma.done.wait [#allocation15], 32  }
  0xd2   :  { %11863 = vsyncadd [#allocation15], 4294967264 }
  0xd3   :  { %11864 = dma.done.wait [#allocation18], 32  }
  0xd4   :  { %11865 = vsyncadd [#allocation18], 4294967264  ;;  %vm206_vm0 = vcmask 261120   ;;  %v347_v0 = vlaneseq  ;;  %v11879_v1 = vmov 0.0   ;;  %v1810_v6 = vld [vmem:[#allocation7 + $0x20] sm:$0xff]  ;;  %v1811_v7 = vld [vmem:[#allocation7 + $0x28] sm:$0xff] }
  0xd5   :  { %208 = vst.msk [vmem:[#allocation2 + $0x8] sm:$0xff] %vm206_vm0, %v11879_v1  ;;  %207 = vst.msk [vmem:[#allocation2] sm:$0xff] %vm206_vm0, %v11879_v1  ;;  %v1812_v8 = vld [vmem:[#allocation7 + $0x30] sm:$0xff]  ;;  %v10279_v9 = vpack.c.bf16 %v1811_v7, %v1810_v6  ;;  %v1813_v10 = vld [vmem:[#allocation7 + $0x38] sm:$0xff]  ;;  %s15301_s12 = sld [smem:[#allocation46_spill]]  ;;  %vm583_vm1 = vcmask 1045504  }
  0xd6   :  { %209 = vst.msk [vmem:[#allocation2 + $0x10] sm:$0xff] %vm206_vm0, %v11879_v1  ;;  %210 = vst.msk [vmem:[#allocation2 + $0x18] sm:$0xff] %vm206_vm0, %v11879_v1  ;;  %v348_v2 = vshrl.u32 %v347_v0, 7  ;;  %v10283_v13 = vpack.c.bf16 %v1813_v10, %v1812_v8  ;;  %v12204_v17 = vld [vmem:[#allocation3] sm:$0xff]  ;;  %v12206_v18 = vld [vmem:[#allocation3 + $0x8] sm:$0xff]  ;;  %s15315_s1 = sld [smem:[#allocation47_spill]] }
  0xd7   :  { %211 = vst.msk [vmem:[#allocation2 + $0x20] sm:$0xff] %vm206_vm0, %v11879_v1  ;;  %212 = vst.msk [vmem:[#allocation2 + $0x28] sm:$0xff] %vm206_vm0, %v11879_v1  ;;  %10280 = vmatprep.subr.bf16.mxu0 %v10279_v9  ;;  %v12223_v31 = vld [vmem:[#allocation3 + $0x10] sm:$0xff]  ;;  %v12230_v35 = vld [vmem:[#allocation3 + $0x18] sm:$0xff]  ;;  %vm1630_vm2 = vcmask 261127   ;;  %vm1632_vm3 = vcmask 260096  }
  0xd8   :  { %213 = vst.msk [vmem:[#allocation2 + $0x30] sm:$0xff] %vm206_vm0, %v11879_v1  ;;  %214 = vst.msk [vmem:[#allocation2 + $0x38] sm:$0xff] %vm206_vm0, %v11879_v1  ;;  %v12185_v3 = vsub.s32 0, %v348_v2  ;;  %v12187_v4 = vsub.s32 1, %v348_v2  ;;  %v12189_v5 = vsub.s32 2, %v348_v2  ;;  %10282 = vmatpush3.bf16.msra.mxu0 %v10279_v9  ;;  %v12243_v42 = vld [vmem:[#allocation3 + $0x20] sm:$0xff] }
  0xd9   :  { %215 = vst.msk [vmem:[#allocation2 + $0x40] sm:$0xff] %vm206_vm0, %v11879_v1  ;;  %216 = vst.msk [vmem:[#allocation2 + $0x48] sm:$0xff] %vm206_vm0, %v11879_v1  ;;  %10284 = vmatprep.subr.bf16.mxu0 %v10283_v13  ;;  %v12249_v45 = vld [vmem:[#allocation3 + $0x28] sm:$0xff]  ;;  %v12264_v55 = vld [vmem:[#allocation3 + $0x30] sm:$0xff]  ;;  %vm1756_vm4 = vcmask 1040384   ;;  %vm2184_vm5 = vcmask 1046528  }
  0xda   :  { %217 = vst.msk [vmem:[#allocation2 + $0x50] sm:$0xff] %vm206_vm0, %v11879_v1  ;;  %218 = vst.msk [vmem:[#allocation2 + $0x58] sm:$0xff] %vm206_vm0, %v11879_v1  ;;  %v12273_v61 = vld [vmem:[#allocation3 + $0x38] sm:$0xff]  ;;  %v1806_v10 = vld [vmem:[#allocation7 + $0x8] sm:$0xff]  ;;  %vm3897_vm6 = vcmask 64512   ;;  %s11881_s11 = smov 64  }
  0xdb   :  { %219 = vst.msk [vmem:[#allocation2 + $0x60] sm:$0xff] %vm206_vm0, %v11879_v1  ;;  %220 = vst.msk [vmem:[#allocation2 + $0x68] sm:$0xff] %vm206_vm0, %v11879_v1  ;;  %v344_v12 = vld [vmem:[%s15301_s12] sm:$0x7]  ;;  %v345_v24 = vld [vmem:[%s15301_s12 + $0x4] sm:$0x7] }
  0xdc   :  { %221 = vst.msk [vmem:[#allocation2 + $0x70] sm:$0xff] %vm206_vm0, %v11879_v1  ;;  %222 = vst.msk [vmem:[#allocation2 + $0x78] sm:$0xff] %vm206_vm0, %v11879_v1  ;;  %v285_v11 = vld [vmem:[#allocation2 + $0x8] sm:$0xff]  ;;  %v12195_v14 = vrot.slane %v344_v12, %v12185_v3  ;;  %v12198_v15 = vrot.slane %v344_v12, %v12187_v4  ;;  %v12201_v16 = vrot.slane %v344_v12, %v12189_v5  ;;  %v284_v19 = vld [vmem:[#allocation2] sm:$0xff]  ;;  %10286 = vmatpush3.bf16.msra.mxu0 %v10283_v13  ;;  %vm4212_vm8 = vcmask 523264   ;;  %s11882_s27 = smov 88  }
  0xdd   :  { %223 = vst.msk [vmem:[#allocation2 + $0x80] sm:$0xff] %vm206_vm0, %v11879_v1  ;;  %224 = vst.msk [vmem:[#allocation2 + $0x88] sm:$0xff] %vm206_vm0, %v11879_v1  ;;  %9383 = vmatprep.mubr.msk.f32.mxu0 %vm206_vm0, %v285_v11  ;;  %v286_v20 = vld [vmem:[#allocation2 + $0x10] sm:$0xff]  ;;  %v287_v26 = vld [vmem:[#allocation2 + $0x18] sm:$0xff]  ;;  %v12221_v30 = vrot.slane %v345_v24, %v12185_v3  ;;  %v12226_v34 = vrot.slane %v345_v24, %v12189_v5  ;;  %v12239_v41 = vrot.slane %v345_v24, %v12187_v4  ;;  %s11883_s20 = smov 120   ;;  %s11884_s5 = smov 56  }
  0xde   :  { %225 = vst.msk [vmem:[#allocation2 + $0x90] sm:$0xff] %vm206_vm0, %v11879_v1  ;;  %226 = vst.msk [vmem:[#allocation2 + $0x98] sm:$0xff] %vm206_vm0, %v11879_v1  ;;  %v352_v21 = vmul.f32 %v12195_v14, %v285_v11  ;;  %v419_v22 = vmul.f32 %v12198_v15, %v285_v11  ;;  %v519_v23 = vmul.f32 %v12201_v16, %v285_v11  ;;  %v289_v32 = vld [vmem:[#allocation2 + $0x28] sm:$0xff]  ;;  %v12281_v11 = vld [vmem:[#allocation3 + $0x40] sm:$0xff]  ;;  %s11885_s30 = smov 80   ;;  %s11886_s9 = smov 112  }
  0xdf   :  { %227 = vst.msk [vmem:[#allocation2 + $0xa0] sm:$0xff] %vm206_vm0, %v11879_v1  ;;  %228 = vst.msk [vmem:[#allocation2 + $0xa8] sm:$0xff] %vm206_vm0, %v11879_v1  ;;  %v351_v25 = vmul.f32 %v12195_v14, %v284_v19  ;;  %v520_v27 = vmul.f32 %v12201_v16, %v286_v20  ;;  %v346_v37 = vld [vmem:[%s15301_s12 + $0x8] sm:$0x7]  ;;  %v700_v40 = vmul.f32 %v12221_v30, %v287_v26  ;;  %v290_v62 = vld [vmem:[#allocation2 + $0x30] sm:$0xff]  ;;  %s11888_s26 = smov 72  }
  0xe0   :  { %229 = vst.msk [vmem:[#allocation2 + $0xb0] sm:$0xff] %vm206_vm0, %v11879_v1  ;;  %230 = vst.msk [vmem:[#allocation2 + $0xb8] sm:$0xff] %vm206_vm0, %v11879_v1  ;;  %v451_v28 = vrot.slane %v419_v22, 1  ;;  %v584_v29 = vrot.slane %v519_v23, 2  ;;  %v12232_v36 = vld [vmem:[#allocation2 + $0x40] sm:$0xff]  ;;  %v869_v44 = vmul.f32 %v12226_v34, %v289_v32  ;;  %v353_v47 = vmul.f32 %v12195_v14, %v287_v26  ;;  %v12283_v12 = vld [vmem:[#allocation3 + $0x48] sm:$0xff] }
  0xe1   :  { %231 = vst.msk [vmem:[#allocation2 + $0xc0] sm:$0xff] %vm206_vm0, %v11879_v1  ;;  %232 = vst.msk [vmem:[#allocation2 + $0xc8] sm:$0xff] %vm206_vm0, %v11879_v1  ;;  %v585_v33 = vrot.slane %v520_v27, 2  ;;  %v522_v48 = vmul.f32 %v12201_v16, %v289_v32  ;;  %v12259_v53 = vmul.f32 %v12201_v16, %v12232_v36  ;;  %v12262_v54 = vrot.slane %v346_v37, %v12185_v3  ;;  %v1805_v3 = vld [vmem:[#allocation7] sm:$0xff]  ;;  %s11889_s24 = smov 104   ;;  %s11890_s23 = smov 40  }
  0xe2   :  { %233 = vst.msk [vmem:[#allocation2 + $0xd0] sm:$0xff] %vm206_vm0, %v11879_v1  ;;  %234 = vst.msk [vmem:[#allocation2 + $0xd8] sm:$0xff] %vm206_vm0, %v11879_v1  ;;  %v483_v38 = vadd.f32 %v451_v28, %v351_v25  ;;  %v484_v39 = vadd.f32 %v451_v28, %v352_v21  ;;  %v12277_v2 = vrot.slane %v346_v37, %v12187_v4 }
  0xe3   :  { %235 = vst.msk [vmem:[#allocation2 + $0xe0] sm:$0xff] %vm206_vm0, %v11879_v1  ;;  %236 = vst.msk [vmem:[#allocation2 + $0xe8] sm:$0xff] %vm206_vm0, %v11879_v1  ;;  %v586_v43 = vsel %vm583_vm1, %v584_v29, %v585_v33  ;;  %v588_v6 = vrot.slane %v522_v48, 2  ;;  %v1048_v20 = vmul.f32 %v12262_v54, %v290_v62  ;;  %v12300_v27 = vrot.slane %v346_v37, %v12189_v5  ;;  %v12316_v37 = vld [vmem:[#allocation3 + $0x58] sm:$0xff] }
  0xe4   :  { %237 = vst.msk [vmem:[#allocation2 + $0xf0] sm:$0xff] %vm206_vm0, %v11879_v1  ;;  %238 = vst.msk [vmem:[#allocation2 + $0xf8] sm:$0xff] %vm206_vm0, %v11879_v1  ;;  %v664_v49 = vadd.f32 %v584_v29, %v483_v38  ;;  %v665_v50 = vadd.f32 %v586_v43, %v484_v39  ;;  %v12302_v28 = vpack.c.bf16 %v1806_v10, %v1805_v3  ;;  %v12307_v39 = vld [vmem:[#allocation3 + $0x50] sm:$0xff]  ;;  %v12336_v3 = vld [vmem:[%s15315_s1] ss:$0 sm:$0xff] }
  0xe5   :  { %239 = vst.msk [vmem:[#allocation2 + $0x100] sm:$0xff] %vm206_vm0, %v11879_v1  ;;  %240 = vst.msk [vmem:[#allocation2 + $0x108] sm:$0xff] %vm206_vm0, %v11879_v1  ;;  %v702_v29 = vmul.f32 %v12221_v30, %v290_v62  ;;  %v871_v32 = vmul.f32 %v12226_v34, %v12232_v36  ;;  %v1217_v5 = vmul.f32 %v12300_v27, %v12232_v36 }
  0xe6   :  { %241 = vst.msk [vmem:[#allocation2 + $0x110] sm:$0xff] %vm206_vm0, %v11879_v1  ;;  %242 = vst.msk [vmem:[#allocation2 + $0x118] sm:$0xff] %vm206_vm0, %v11879_v1  ;;  %v732_v58 = vadd.f32 %v700_v40, %v664_v49  ;;  %10288 = vmatprep.subr.bf16.mxu0 %v12302_v28 }
  0xe7   :  { %243 = vst.msk [vmem:[#allocation2 + $0x120] sm:$0xff] %vm206_vm0, %v11879_v1  ;;  %244 = vst.msk [vmem:[#allocation2 + $0x128] sm:$0xff] %vm206_vm0, %v11879_v1 }
  0xe8   :  { %245 = vst.msk [vmem:[#allocation2 + $0x130] sm:$0xff] %vm206_vm0, %v11879_v1  ;;  %246 = vst.msk [vmem:[#allocation2 + $0x138] sm:$0xff] %vm206_vm0, %v11879_v1 }
  0xe9   :  { %247 = vst.msk [vmem:[#allocation2 + $0x140] sm:$0xff] %vm206_vm0, %v11879_v1  ;;  %248 = vst.msk [vmem:[#allocation2 + $0x148] sm:$0xff] %vm206_vm0, %v11879_v1 }
  0xea   :  { %249 = vst.msk [vmem:[#allocation2 + $0x150] sm:$0xff] %vm206_vm0, %v11879_v1  ;;  %250 = vst.msk [vmem:[#allocation2 + $0x158] sm:$0xff] %vm206_vm0, %v11879_v1 }
  0xeb   :  { %251 = vst.msk [vmem:[#allocation2 + $0x160] sm:$0xff] %vm206_vm0, %v11879_v1  ;;  %252 = vst.msk [vmem:[#allocation2 + $0x168] sm:$0xff] %vm206_vm0, %v11879_v1 }
  0xec   :  { %253 = vst.msk [vmem:[#allocation2 + $0x170] sm:$0xff] %vm206_vm0, %v11879_v1  ;;  %254 = vst.msk [vmem:[#allocation2 + $0x178] sm:$0xff] %vm206_vm0, %v11879_v1 }
  0xed   :  { %255 = vst.msk [vmem:[#allocation2 + $0x180] sm:$0xff] %vm206_vm0, %v11879_v1  ;;  %256 = vst.msk [vmem:[#allocation2 + $0x188] sm:$0xff] %vm206_vm0, %v11879_v1 }
  0xee   :  { %257 = vst.msk [vmem:[#allocation2 + $0x190] sm:$0xff] %vm206_vm0, %v11879_v1  ;;  %258 = vst.msk [vmem:[#allocation2 + $0x198] sm:$0xff] %vm206_vm0, %v11879_v1 }
  0xef   :  { %259 = vst.msk [vmem:[#allocation2 + $0x1a0] sm:$0xff] %vm206_vm0, %v11879_v1  ;;  %260 = vst.msk [vmem:[#allocation2 + $0x1a8] sm:$0xff] %vm206_vm0, %v11879_v1 }
  0xf0   :  { %261 = vst.msk [vmem:[#allocation2 + $0x1b0] sm:$0xff] %vm206_vm0, %v11879_v1  ;;  %262 = vst.msk [vmem:[#allocation2 + $0x1b8] sm:$0xff] %vm206_vm0, %v11879_v1 }
  0xf1   :  { %263 = vst.msk [vmem:[#allocation2 + $0x1c0] sm:$0xff] %vm206_vm0, %v11879_v1  ;;  %264 = vst.msk [vmem:[#allocation2 + $0x1c8] sm:$0xff] %vm206_vm0, %v11879_v1 }
  0xf2   :  { %265 = vst.msk [vmem:[#allocation2 + $0x1d0] sm:$0xff] %vm206_vm0, %v11879_v1  ;;  %266 = vst.msk [vmem:[#allocation2 + $0x1d8] sm:$0xff] %vm206_vm0, %v11879_v1  ;;  %v933_v1 = vrot.slane %v869_v44, 2 }
  0xf3   :  { %15302 = vst [vmem:[#allocation26_spill] sm:$0xff] %v12204_v17  ;;  %15303 = vst [vmem:[#allocation27_spill] sm:$0xff] %v12206_v18 }
  0xf4   :  { %268 = vst.msk [vmem:[#allocation2 + $0x20] sm:$0xff] %vm206_vm0, %v12204_v17  ;;  %269 = vst.msk [vmem:[#allocation2 + $0x38] sm:$0xff] %vm206_vm0, %v12206_v18 }
  0xf5   :  { %15304 = vst [vmem:[#allocation28_spill] sm:$0xff] %v12223_v31  ;;  %270 = vst.msk [vmem:[#allocation2 + $0x50] sm:$0xff] %vm206_vm0, %v12223_v31 }
  0xf6   :  { %15305 = vst [vmem:[#allocation29_spill] sm:$0xff] %v12230_v35  ;;  %271 = vst.msk [vmem:[#allocation2 + $0x68] sm:$0xff] %vm206_vm0, %v12230_v35 }
  0xf7   :  { %15306 = vst [vmem:[#allocation30_spill] sm:$0xff] %v12243_v42  ;;  %272 = vst.msk [vmem:[#allocation2 + $0x80] sm:$0xff] %vm206_vm0, %v12243_v42  ;;  %v13046_v42 = vld [vmem:[#allocation2 + $0x48] sm:$0xff] }
  0xf8   :  { %15307 = vst [vmem:[#allocation31_spill] sm:$0xff] %v12249_v45  ;;  %273 = vst.msk [vmem:[#allocation2 + $0x98] sm:$0xff] %vm206_vm0, %v12249_v45 }
  0xf9   :  { %15308 = vst [vmem:[#allocation32_spill] sm:$0xff] %v12264_v55  ;;  %274 = vst.msk [vmem:[#allocation2 + $0xb0] sm:$0xff] %vm206_vm0, %v12264_v55 }
  0xfa   :  { %15309 = vst [vmem:[#allocation33_spill] sm:$0xff] %v12273_v61  ;;  %275 = vst.msk [vmem:[#allocation2 + $0xc8] sm:$0xff] %vm206_vm0, %v12273_v61 }
  0xfb   :  { %v288_v46 = vld [vmem:[#allocation2 + $0x20] sm:$0xff]  ;;  %v12266_v56 = vld [vmem:[#allocation2 + $0x38] sm:$0xff]  ;;  %15310 = vst [vmem:[#allocation34_spill] sm:$0xff] %v12281_v11  ;;  %15311 = vst [vmem:[#allocation35_spill] sm:$0xff] %v12283_v12 }
  0xfc   :  { %v420_v51 = vmul.f32 %v12198_v15, %v288_v46  ;;  %v521_v52 = vmul.f32 %v12201_v16, %v288_v46  ;;  %v701_v57 = vmul.f32 %v12221_v30, %v288_v46  ;;  %v768_v59 = vmul.f32 %v12239_v41, %v288_v46  ;;  %276 = vst.msk [vmem:[#allocation2 + $0x110] sm:$0xff] %vm206_vm0, %v12281_v11  ;;  %v1667_v11 = vld [vmem:[#allocation2 + $0x18] sm:$0xff]  ;;  %vm13791_vm7 = vmpackc.low %vm3897_vm6, %vm3897_vm6 }
  0xfd   :  { %v868_v60 = vmul.f32 %v12226_v34, %v288_v46  ;;  %v354_v63 = vmul.f32 %v12195_v14, %v288_v46  ;;  %v12287_v13 = vmul.f32 %v12198_v15, %v12266_v56  ;;  %277 = vst.msk [vmem:[#allocation2 + $0x128] sm:$0xff] %vm206_vm0, %v12283_v12  ;;  %v1049_v24 = vmul.f32 %v12262_v54, %v12266_v56 }
  0xfe   :  { %v452_v0 = vrot.slane %v420_v51, 1  ;;  %v733_v7 = vadd.f32 %v701_v57, %v665_v50  ;;  %v800_v8 = vrot.slane %v768_v59, 1  ;;  %v587_v4 = vrot.slane %v521_v52, 2  ;;  %15312 = vst [vmem:[#allocation36_spill] sm:$0xff] %v12307_v39  ;;  %278 = vst.msk [vmem:[#allocation2 + $0x140] sm:$0xff] %vm206_vm0, %v12307_v39  ;;  %v12322_v50 = vld [vmem:[#allocation3 + $0x60] sm:$0xff] }
  0xff   :  { %v932_v9 = vrot.slane %v868_v60, 2  ;;  %v1116_v26 = vmul.f32 %v12277_v2, %v12266_v56  ;;  %v1216_v44 = vmul.f32 %v12300_v27, %v12266_v56  ;;  %15313 = vst [vmem:[#allocation37_spill] sm:$0xff] %v12316_v37  ;;  %v355_v46 = vmul.f32 %v12195_v14, %v290_v62  ;;  %279 = vst.msk [vmem:[#allocation2 + $0x158] sm:$0xff] %vm206_vm0, %v12316_v37  ;;  %v12328_v62 = vld [vmem:[#allocation2 + $0x50] sm:$0xff] }
 0x100   :  { %v485_v19 = vadd.f32 %v452_v0, %v353_v47  ;;  %v832_v21 = vadd.f32 %v800_v8, %v732_v58  ;;  %v833_v22 = vadd.f32 %v800_v8, %v733_v7  ;;  %v486_v25 = vadd.f32 %v452_v0, %v354_v63  ;;  %15314 = vst [vmem:[#allocation38_spill] sm:$0xff] %v12322_v50  ;;  %v12340_v8 = vld [vmem:[#allocation3 + $0x68] sm:$0xff] }
 0x101   :  { %v934_v23 = vsel %vm583_vm1, %v932_v9, %v933_v1  ;;  %v1148_v43 = vrot.slane %v1116_v26, 1  ;;  %v589_v49 = vsel %vm583_vm1, %v587_v4, %v588_v6  ;;  %v453_v36 = vrot.slane %v12287_v13, 1  ;;  %280 = vst.msk [vmem:[#allocation2 + $0x170] sm:$0xff] %vm206_vm0, %v12322_v50  ;;  %15316 = vst [vmem:[#allocation39_spill] sm:$0xff] %v12340_v8 }
 0x102   :  { %v1012_v33 = vadd.f32 %v932_v9, %v832_v21  ;;  %v1013_v38 = vadd.f32 %v934_v23, %v833_v22  ;;  %v666_v40 = vadd.f32 %v587_v4, %v485_v19  ;;  %v1280_v51 = vrot.slane %v1216_v44, 2  ;;  %v293_v19 = vld [vmem:[#allocation2 + $0x48] sm:$0xff]  ;;  %281 = vst.msk [vmem:[#allocation2 + $0x188] sm:$0xff] %vm206_vm0, %v12340_v8  ;;  %v12348_v22 = vld [vmem:[#allocation5] ss:$0 sm:$0xff] }
 0x103   :  { %v1281_v52 = vrot.slane %v1217_v5, 2  ;;  %v667_v57 = vadd.f32 %v589_v49, %v486_v25  ;;  %v591_v58 = vrot.slane %v12259_v53, 2  ;;  %v703_v63 = vmul.f32 %v12221_v30, %v12266_v56 }
 0x104   :  { %v1080_v47 = vadd.f32 %v1048_v20, %v1012_v33  ;;  %v1081_v48 = vadd.f32 %v1049_v24, %v1013_v38  ;;  %v936_v0 = vrot.slane %v871_v32, 2  ;;  %v734_v6 = vadd.f32 %v702_v29, %v666_v40 }
 0x105   :  { %v1282_v1 = vsel %vm583_vm1, %v1280_v51, %v1281_v52  ;;  %v769_v7 = vmul.f32 %v12239_v41, %v12266_v56  ;;  %v735_v4 = vadd.f32 %v703_v63, %v667_v57  ;;  %v870_v20 = vmul.f32 %v12226_v34, %v12266_v56 }
 0x106   :  { %v1180_v59 = vadd.f32 %v1148_v43, %v1080_v47  ;;  %v1181_v60 = vadd.f32 %v1148_v43, %v1081_v48  ;;  %v487_v21 = vadd.f32 %v453_v36, %v355_v46  ;;  %v12352_v23 = vmul.f32 %v12198_v15, %v12328_v62  ;;  %v295_v47 = vld [vmem:[#allocation2 + $0x58] sm:$0xff] }
 0x107   :  { %v801_v24 = vrot.slane %v769_v7, 1  ;;  %v1050_v25 = vmul.f32 %v12262_v54, %v293_v19  ;;  %v935_v32 = vrot.slane %v870_v20, 2  ;;  %v1117_v33 = vmul.f32 %v12277_v2, %v12328_v62 }
 0x108   :  { %v1360_v9 = vadd.f32 %v1280_v51, %v1180_v59  ;;  %v1361_v10 = vadd.f32 %v1282_v1, %v1181_v60  ;;  %v1051_v43 = vmul.f32 %v12262_v54, %v12328_v62  ;;  %v1218_v44 = vmul.f32 %v12300_v27, %v12328_v62 }
 0x109   :  { %v834_v38 = vadd.f32 %v801_v24, %v734_v6  ;;  %v835_v40 = vadd.f32 %v801_v24, %v735_v4  ;;  %v937_v48 = vsel %vm583_vm1, %v935_v32, %v936_v0  ;;  %v1149_v49 = vrot.slane %v1117_v33, 1  ;;  %v12371_v4 = vld [vmem:[#allocation2 + $0x68] sm:$0xff] }
 0x10a   :  { %v1399_v26 = vmul.f32 %v12336_v3, %v1360_v9  ;;  %v1400_v29 = vmul.f32 %v12336_v3, %v1361_v10  ;;  %v1219_v57 = vmul.f32 %v12300_v27, %v295_v47  ;;  %v1283_v59 = vrot.slane %v1218_v44, 2 }
 0x10b   :  { %v1014_v51 = vadd.f32 %v935_v32, %v834_v38  ;;  %v1015_v52 = vadd.f32 %v937_v48, %v835_v40  ;;  %v12368_v1 = vmul.f32 %v12195_v14, %v293_v19  ;;  %v873_v6 = vmul.f32 %v12226_v34, %v295_v47 }
 0x10c   :  { %v1438_v5 = vadd.f32 %v12348_v22, %v1399_v26  ;;  %v1439_v46 = vadd.f32 %v12348_v22, %v1400_v29  ;;  %v1284_v10 = vrot.slane %v1219_v57, 2  ;;  %v356_v0 = vmul.f32 %v12195_v14, %v12266_v56 }
 0x10d   :  { %v1082_v7 = vadd.f32 %v1050_v25, %v1014_v51  ;;  %v1083_v9 = vadd.f32 %v1051_v43, %v1015_v52  ;;  %v12377_v24 = vmul.f32 %v12201_v16, %v295_v47  ;;  %v523_v26 = vmul.f32 %v12201_v16, %v12266_v56  ;;  %v296_v51 = vld [vmem:[#allocation2 + $0x60] sm:$0xff] }
 0x10e   :  { %v1502_v60 = vmul.f32 0.70710677, %v1438_v5  ;;  %v1503_v63 = vmul.f32 0.70710677, %v1439_v46  ;;  %v1285_v25 = vsel %vm583_vm1, %v1283_v59, %v1284_v10  ;;  %v704_v33 = vmul.f32 %v12221_v30, %v293_v19 }
 0x10f   :  { %v1182_v29 = vadd.f32 %v1149_v49, %v1082_v7  ;;  %v1183_v32 = vadd.f32 %v1149_v49, %v1083_v9  ;;  %v12385_v38 = vmul.f32 %v12198_v15, %v12371_v4  ;;  %v488_v40 = vadd.f32 %v453_v36, %v356_v0 }
 0x110   :  { %11208 = verf.f32 %v1502_v60  ;;  %v590_v43 = vrot.slane %v523_v26, 2  ;;  %v939_v44 = vrot.slane %v873_v6, 2  ;;  %v705_v56 = vmul.f32 %v12221_v30, %v12328_v62  ;;  %v298_v60 = vld [vmem:[#allocation2 + $0x70] sm:$0xff] }
 0x111   :  { %11210 = verf.f32 %v1503_v63  ;;  %v1362_v47 = vadd.f32 %v1283_v59, %v1182_v29  ;;  %v1363_v48 = vadd.f32 %v1285_v25, %v1183_v32  ;;  %v1470_v49 = vmul.f32 0.5, %v1438_v5 }
 0x112   :  { %v1471_v52 = vmul.f32 0.5, %v1439_v46  ;;  %v592_v19 = vsel %vm583_vm1, %v590_v43, %v591_v58  ;;  %v668_v57 = vadd.f32 %v590_v43, %v487_v21  ;;  %v770_v63 = vmul.f32 %v12239_v41, %v12328_v62 }
 0x113   :  { %v1401_v13 = vmul.f32 %v12336_v3, %v1362_v47  ;;  %v1402_v36 = vmul.f32 %v12336_v3, %v1363_v48  ;;  %v669_v59 = vadd.f32 %v592_v19, %v488_v40  ;;  %v359_v6 = vmul.f32 %v12195_v14, %v296_v51 }
 0x114   :  { %v736_v46 = vadd.f32 %v704_v33, %v668_v57  ;;  %v872_v53 = vmul.f32 %v12226_v34, %v12328_v62  ;;  %v802_v9 = vrot.slane %v770_v63, 1  ;;  %v12407_v10 = vmul.f32 %v12201_v16, %v298_v60  ;;  %v12419_v57 = vld [vmem:[#allocation3 + $0x70] sm:$0xff] }
 0x115   :  { %v1440_v58 = vadd.f32 %v12348_v22, %v1401_v13  ;;  %v12404_v21 = vadd.f32 %v12348_v22, %v1402_v36  ;;  %v737_v7 = vadd.f32 %v705_v56, %v669_v59  ;;  %v12410_v0 = vmul.f32 %v12226_v34, %v298_v60  ;;  %15317 = vst [vmem:[#allocation40_spill] sm:$0xff] %v12419_v57 }
 0x116   :  { %v938_v26 = vrot.slane %v872_v53, 2  ;;  %v1118_v29 = vmul.f32 %v12277_v2, %v12371_v4  ;;  %v1052_v33 = vmul.f32 %v12262_v54, %v296_v51  ;;  %v1053_v40 = vmul.f32 %v12262_v54, %v12371_v4  ;;  %282 = vst.msk [vmem:[#allocation2 + $0x1a0] sm:$0xff] %vm206_vm0, %v12419_v57 }
 0x117   :  { %v1504_v32 = vmul.f32 0.70710677, %v1440_v58  ;;  %v1505_v25 = vmul.f32 0.70710677, %v12404_v21  ;;  %v836_v47 = vadd.f32 %v802_v9, %v736_v46  ;;  %v837_v48 = vadd.f32 %v802_v9, %v737_v7 }
 0x118   :  { %v940_v56 = vsel %vm583_vm1, %v938_v26, %v939_v44  ;;  %v1150_v19 = vrot.slane %v1118_v29, 1  ;;  %v1220_v59 = vmul.f32 %v12300_v27, %v12371_v4  ;;  %v1221_v63 = vmul.f32 %v12300_v27, %v298_v60 }
 0x119   :  { %11212 = verf.f32 %v1504_v32  ;;  %v1016_v46 = vadd.f32 %v938_v26, %v836_v47  ;;  %v1017_v7 = vadd.f32 %v940_v56, %v837_v48  ;;  %v358_v5 = vmul.f32 %v12195_v14, %v12328_v62  ;;  %v12442_v47 = vld [vmem:[#allocation2 + $0x80] sm:$0xff] }
 0x11a   :  { %v11209_v43 = vpop.eup %11208  ;;  %11214 = verf.f32 %v1505_v25  ;;  %v1286_v44 = vrot.slane %v1220_v59, 2  ;;  %v1287_v29 = vrot.slane %v1221_v63, 2  ;;  %v594_v32 = vrot.slane %v12377_v24, 2 }
 0x11b   :  { %v11211_v13 = vpop.eup %11210  ;;  %v1566_v36 = vadd.f32 1.0, %v11209_v43  ;;  %v1084_v20 = vadd.f32 %v1052_v33, %v1016_v46  ;;  %v1085_v50 = vadd.f32 %v1053_v40, %v1017_v7  ;;  %v15318_v60 = vrot.slane %v12352_v23, 1 }
 0x11c   :  { %v1567_v53 = vadd.f32 1.0, %v11211_v13  ;;  %v706_v26 = vmul.f32 %v12221_v30, %v296_v51  ;;  %v525_v25 = vmul.f32 %v12201_v16, %v12328_v62  ;;  %v597_v51 = vrot.slane %v12407_v10, 2 }
 0x11d   :  { %v1598_v9 = vmul.f32 %v1566_v36, %v1470_v49  ;;  %v489_v13 = vadd.f32 %v15318_v60, %v12368_v1  ;;  %v1288_v49 = vsel %vm583_vm1, %v1286_v44, %v1287_v29  ;;  %v1184_v33 = vadd.f32 %v1150_v19, %v1084_v20 }
 0x11e   :  { %v1599_v43 = vmul.f32 %v1567_v53, %v1471_v52  ;;  %v15319_v52 = vrot.slane %v12385_v38, 1  ;;  %v1185_v40 = vadd.f32 %v1150_v19, %v1085_v50  ;;  %v15320_v48 = vmov %v15318_v60  ;;  %v299_v53 = vld [vmem:[#allocation2 + $0x78] sm:$0xff] }
 0x11f   :  { %1631 = vst.msk [vmem:[#allocation2 + $0x19] sm:$0x80] %vm1630_vm2, %v1598_v9  ;;  %v490_v1 = vadd.f32 %v15320_v48, %v358_v5  ;;  %v942_v56 = vrot.slane %v12410_v0, 2  ;;  %v593_v36 = vrot.slane %v525_v25, 2  ;;  %v771_v62 = vmul.f32 %v12239_v41, %v12371_v4  ;;  %v301_v9 = vld [vmem:[#allocation2 + $0x88] sm:$0xff] }
 0x120   :  { %1633 = vst.msk [vmem:[#allocation2 + $0x21] sm:$0x7f] %vm1632_vm3, %v1599_v43  ;;  %v12440_v24 = vadd.f32 %v15319_v52, %v359_v6  ;;  %v1364_v59 = vadd.f32 %v1286_v44, %v1184_v33  ;;  %v1365_v63 = vadd.f32 %v1288_v49, %v1185_v40  ;;  %v707_v20 = vmul.f32 %v12221_v30, %v12371_v4 }
 0x121   :  { %v874_v50 = vmul.f32 %v12226_v34, %v12371_v4  ;;  %v12456_v23 = vmul.f32 %v12198_v15, %v12442_v47  ;;  %v595_v6 = vsel %vm583_vm1, %v593_v36, %v594_v32  ;;  %v670_v5 = vadd.f32 %v593_v36, %v489_v13 }
 0x122   :  { %v803_v0 = vrot.slane %v771_v62, 1  ;;  %v1472_v19 = vmul.f32 0.5, %v1440_v58  ;;  %v1403_v46 = vmul.f32 %v12336_v3, %v1364_v59  ;;  %v1404_v7 = vmul.f32 %v12336_v3, %v1365_v63 }
 0x123   :  { %v671_v44 = vadd.f32 %v595_v6, %v490_v1  ;;  %v11213_v29 = vpop.eup %11212  ;;  %v1473_v43 = vmul.f32 0.5, %v12404_v21  ;;  %v361_v60 = vmul.f32 %v12195_v14, %v299_v53  ;;  %v738_v49 = vadd.f32 %v706_v26, %v670_v5 }
 0x124   :  { %v941_v25 = vrot.slane %v874_v50, 2  ;;  %v11215_v52 = vpop.eup %11214  ;;  %v1568_v33 = vadd.f32 1.0, %v11213_v29  ;;  %v1442_v32 = vadd.f32 %v12348_v22, %v1403_v46  ;;  %v1443_v13 = vadd.f32 %v12348_v22, %v1404_v7 }
 0x125   :  { %v739_v58 = vadd.f32 %v707_v20, %v671_v44  ;;  %v1569_v48 = vadd.f32 1.0, %v11215_v52  ;;  %v15275_v36 = vrot.slane %v12456_v23, 1  ;;  %v12467_v1 = vmul.f32 %v12201_v16, %v301_v9 }
 0x126   :  { %v838_v62 = vadd.f32 %v803_v0, %v738_v49  ;;  %v1600_v21 = vmul.f32 %v1568_v33, %v1472_v19  ;;  %v12471_v26 = vmul.f32 %v12226_v34, %v301_v9  ;;  %v1054_v59 = vmul.f32 %v12262_v54, %v299_v53 }
 0x127   :  { %v1668_v40 = vld [vmem:[#allocation2 + $0x20] sm:$0xff]  ;;  %v1055_v63 = vmul.f32 %v12262_v54, %v12442_v47  ;;  %v1601_v20 = vmul.f32 %v1569_v48, %v1473_v43  ;;  %v1506_v50 = vmul.f32 0.70710677, %v1442_v32  ;;  %v1507_v6 = vmul.f32 0.70710677, %v1443_v13  ;;  %v12488_v43 = vld [vmem:[#allocation3 + $0x78] sm:$0xff] }
 0x128   :  { %9384 = vmatmul.mubr.msk.f32.vlgmr.msra.gmra.mrb[0].mxu0 %vm206_vm0, %v1668_v40  ;;  %v943_v5 = vsel %vm583_vm1, %v941_v25, %v942_v56  ;;  %1634 = vst.msk [vmem:[#allocation2 + $0x31] sm:$0x80] %vm1630_vm2, %v1600_v21  ;;  %v839_v46 = vadd.f32 %v803_v0, %v739_v58  ;;  %v1018_v7 = vadd.f32 %v941_v25, %v838_v62  ;;  %15321 = vst [vmem:[#allocation41_spill] sm:$0xff] %v12488_v43  ;;  %v12497_v58 = vld [vmem:[#allocation2 + $0x98] sm:$0xff]  ;;  %v302_v21 = vld [vmem:[#allocation2 + $0x90] sm:$0xff] }
 0x129   :  { %10290 = vmatpush3.bf16.msra.mxu0 %v12302_v28  ;;  %v1119_v19 = vmul.f32 %v12277_v2, %v12442_v47  ;;  %v1222_v44 = vmul.f32 %v12300_v27, %v12442_v47  ;;  %1635 = vst.msk [vmem:[#allocation2 + $0x39] sm:$0x7f] %vm1632_vm3, %v1601_v20  ;;  %11216 = verf.f32 %v1506_v50  ;;  %v708_v28 = vmul.f32 %v12221_v30, %v299_v53 }
 0x12a   :  { %v1223_v29 = vmul.f32 %v12300_v27, %v301_v9  ;;  %v360_v56 = vmul.f32 %v12195_v14, %v12371_v4  ;;  %11218 = verf.f32 %v1507_v6  ;;  %v1019_v0 = vadd.f32 %v943_v5, %v839_v46  ;;  %283 = vst.msk [vmem:[#allocation2 + $0x1b8] sm:$0xff] %vm206_vm0, %v12488_v43 }
 0x12b   :  { %v1086_v49 = vadd.f32 %v1054_v59, %v1018_v7  ;;  %v1151_v25 = vrot.slane %v1119_v19, 1  ;;  %v12494_v52 = vadd.f32 %v15275_v36, %v361_v60  ;;  %v1289_v33 = vrot.slane %v1222_v44, 2  ;;  %v304_v19 = vld [vmem:[#allocation2 + $0xa0] sm:$0xff] }
 0x12c   :  { %v1290_v9 = vrot.slane %v1223_v29, 2  ;;  %v945_v40 = vrot.slane %v12471_v26, 2  ;;  %v1087_v48 = vadd.f32 %v1055_v63, %v1019_v0  ;;  %v527_v59 = vmul.f32 %v12201_v16, %v12371_v4 }
 0x12d   :  { %v1186_v62 = vadd.f32 %v1151_v25, %v1086_v49  ;;  %v1474_v20 = vmul.f32 0.5, %v1442_v32  ;;  %v1475_v50 = vmul.f32 0.5, %v1443_v13  ;;  %v15322_v60 = vrot.slane %v12385_v38, 1 }
 0x12e   :  { %v1291_v6 = vsel %vm583_vm1, %v1289_v33, %v1290_v9  ;;  %v1187_v46 = vadd.f32 %v1151_v25, %v1087_v48  ;;  %v12507_v44 = vmul.f32 %v12198_v15, %v12497_v58  ;;  %v596_v26 = vrot.slane %v527_v59, 2 }
 0x12f   :  { %v492_v5 = vadd.f32 %v15322_v60, %v360_v56  ;;  %v1366_v7 = vadd.f32 %v1289_v33, %v1186_v62  ;;  %v363_v63 = vmul.f32 %v12195_v14, %v302_v21  ;;  %v709_v4 = vmul.f32 %v12221_v30, %v12442_v47 }
 0x130   :  { %v772_v32 = vmul.f32 %v12239_v41, %v12442_v47  ;;  %v876_v38 = vmul.f32 %v12226_v34, %v12442_v47  ;;  %v1671_v13 = vld [vmem:[#allocation2 + $0x38] sm:$0xff]  ;;  %v1367_v29 = vadd.f32 %v1291_v6, %v1187_v46  ;;  %v598_v0 = vsel %vm583_vm1, %v596_v26, %v597_v51 }
 0x131   :  { %v1405_v56 = vmul.f32 %v12336_v3, %v1366_v7  ;;  %v672_v49 = vadd.f32 %v596_v26, %v12440_v24  ;;  %9386 = vmatprep.mubr.msk.f32.mxu0 %vm206_vm0, %v1671_v13  ;;  %v12523_v25 = vmul.f32 %v12201_v16, %v304_v19  ;;  %v673_v33 = vadd.f32 %v598_v0, %v492_v5 }
 0x132   :  { %v804_v9 = vrot.slane %v772_v32, 1  ;;  %v944_v48 = vrot.slane %v876_v38, 2  ;;  %v1406_v62 = vmul.f32 %v12336_v3, %v1367_v29  ;;  %v457_v6 = vrot.slane %v12507_v44, 1 }
 0x133   :  { %v1444_v59 = vadd.f32 %v12348_v22, %v1405_v56  ;;  %v740_v60 = vadd.f32 %v708_v28, %v672_v49  ;;  %v11217_v10 = vpop.eup %11216  ;;  %v710_v51 = vmul.f32 %v12221_v30, %v302_v21  ;;  %v741_v46 = vadd.f32 %v709_v4, %v673_v33 }
 0x134   :  { %v1056_v24 = vmul.f32 %v12262_v54, %v302_v21  ;;  %v1120_v7 = vmul.f32 %v12277_v2, %v12497_v58  ;;  %v11219_v26 = vpop.eup %11218  ;;  %v1570_v5 = vadd.f32 1.0, %v11217_v10  ;;  %v1445_v32 = vadd.f32 %v12348_v22, %v1406_v62 }
 0x135   :  { %v1508_v38 = vmul.f32 0.70710677, %v1444_v59  ;;  %v946_v13 = vsel %vm583_vm1, %v944_v48, %v945_v40  ;;  %v1571_v29 = vadd.f32 1.0, %v11219_v26  ;;  %v840_v56 = vadd.f32 %v804_v9, %v740_v60 }
 0x136   :  { %v841_v0 = vadd.f32 %v804_v9, %v741_v46  ;;  %v1057_v28 = vmul.f32 %v12262_v54, %v12497_v58  ;;  %v1602_v49 = vmul.f32 %v1570_v5, %v1474_v20  ;;  %v1509_v4 = vmul.f32 0.70710677, %v1445_v32  ;;  %v305_v46 = vld [vmem:[#allocation2 + $0xa8] sm:$0xff] }
 0x137   :  { %11220 = verf.f32 %v1508_v38  ;;  %v1152_v21 = vrot.slane %v1120_v7, 1  ;;  %v1603_v33 = vmul.f32 %v1571_v29, %v1475_v50  ;;  %v1020_v53 = vadd.f32 %v944_v48, %v840_v56  ;;  %v12548_v7 = vld [vmem:[#allocation2 + $0xb0] sm:$0xff] }
 0x138   :  { %v1021_v36 = vadd.f32 %v946_v13, %v841_v0  ;;  %v1224_v10 = vmul.f32 %v12300_v27, %v12497_v58  ;;  %1636 = vst.msk [vmem:[#allocation2 + $0x49] sm:$0x80] %vm1630_vm2, %v1602_v49  ;;  %11222 = verf.f32 %v1509_v4  ;;  %v603_v40 = vrot.slane %v12523_v25, 2 }
 0x139   :  { %v1225_v9 = vmul.f32 %v12300_v27, %v304_v19  ;;  %v362_v62 = vmul.f32 %v12195_v14, %v12442_v47  ;;  %1637 = vst.msk [vmem:[#allocation2 + $0x51] sm:$0x7f] %vm1632_vm3, %v1603_v33  ;;  %v12546_v20 = vadd.f32 %v457_v6, %v363_v63  ;;  %v1088_v50 = vadd.f32 %v1056_v24, %v1020_v53 }
 0x13a   :  { %v1089_v48 = vadd.f32 %v1057_v28, %v1021_v36  ;;  %v1292_v60 = vrot.slane %v1224_v10, 2  ;;  %v365_v5 = vmul.f32 %v12195_v14, %v305_v46  ;;  %v12553_v38 = vmul.f32 %v12198_v15, %v12548_v7  ;;  %v307_v10 = vld [vmem:[#allocation2 + $0xb8] sm:$0xff] }
 0x13b   :  { %v1293_v26 = vrot.slane %v1225_v9, 2  ;;  %v529_v13 = vmul.f32 %v12201_v16, %v12442_v47  ;;  %v879_v29 = vmul.f32 %v12226_v34, %v304_v19  ;;  %v1188_v63 = vadd.f32 %v1152_v21, %v1088_v50 }
 0x13c   :  { %v1189_v56 = vadd.f32 %v1152_v21, %v1089_v48  ;;  %v15323_v36 = vrot.slane %v12456_v23, 1  ;;  %v1476_v24 = vmul.f32 0.5, %v1444_v59  ;;  %v15276_v28 = vrot.slane %v12553_v38, 1 }
 0x13d   :  { %v1294_v0 = vsel %vm583_vm1, %v1292_v60, %v1293_v26  ;;  %v599_v49 = vrot.slane %v529_v13, 2  ;;  %v1368_v4 = vadd.f32 %v1292_v60, %v1188_v63  ;;  %v711_v9 = vmul.f32 %v12221_v30, %v12497_v58 }
 0x13e   :  { %v494_v53 = vadd.f32 %v15323_v36, %v362_v62  ;;  %v1369_v33 = vadd.f32 %v1294_v0, %v1189_v56  ;;  %v773_v47 = vmul.f32 %v12239_v41, %v12497_v58  ;;  %v12568_v19 = vadd.f32 %v15276_v28, %v365_v5 }
 0x13f   :  { %v12571_v23 = vmul.f32 %v12201_v16, %v307_v10  ;;  %v15324_v59 = vrot.slane %v12467_v1, 2  ;;  %v674_v62 = vadd.f32 %v599_v49, %v12494_v52  ;;  %v1407_v50 = vmul.f32 %v12336_v3, %v1368_v4 }
 0x140   :  { %v1408_v48 = vmul.f32 %v12336_v3, %v1369_v33  ;;  %v805_v26 = vrot.slane %v773_v47, 1  ;;  %v1674_v63 = vld [vmem:[#allocation2 + $0x50] sm:$0xff]  ;;  %v1477_v56 = vmul.f32 0.5, %v1445_v32  ;;  %v948_v5 = vrot.slane %v879_v29, 2 }
 0x141   :  { %v601_v21 = vsel %vm583_vm1, %v599_v49, %v15324_v59  ;;  %v11221_v13 = vpop.eup %11220  ;;  %v742_v36 = vadd.f32 %v710_v51, %v674_v62  ;;  %v878_v0 = vmul.f32 %v12226_v34, %v12497_v58  ;;  %9387 = vmatmul.mubr.msk.f32.gmra.mrb[2].mxu0 %vm206_vm0, %v1674_v63  ;;  %v1446_v59 = vadd.f32 %v12348_v22, %v1407_v50 }
 0x142   :  { %v675_v60 = vadd.f32 %v601_v21, %v494_v53  ;;  %v1572_v1 = vadd.f32 1.0, %v11221_v13  ;;  %v12584_v52 = vadd.f32 %v12348_v22, %v1408_v48  ;;  %v11223_v4 = vpop.eup %11222  ;;  %v606_v53 = vrot.slane %v12571_v23, 2 }
 0x143   :  { %v712_v33 = vmul.f32 %v12221_v30, %v305_v46  ;;  %v842_v32 = vadd.f32 %v805_v26, %v742_v36  ;;  %v947_v29 = vrot.slane %v878_v0, 2  ;;  %v1573_v51 = vadd.f32 1.0, %v11223_v4 }
 0x144   :  { %v743_v49 = vadd.f32 %v711_v9, %v675_v60  ;;  %v1604_v47 = vmul.f32 %v1572_v1, %v1476_v24  ;;  %v1058_v21 = vmul.f32 %v12262_v54, %v305_v46  ;;  %v1059_v62 = vmul.f32 %v12262_v54, %v12548_v7 }
 0x145   :  { %v1510_v13 = vmul.f32 0.70710677, %v1446_v59  ;;  %v1511_v50 = vmul.f32 0.70710677, %v12584_v52  ;;  %v949_v9 = vsel %vm583_vm1, %v947_v29, %v948_v5  ;;  %v1605_v60 = vmul.f32 %v1573_v51, %v1477_v56 }
 0x146   :  { %v843_v48 = vadd.f32 %v805_v26, %v743_v49  ;;  %1638 = vst.msk [vmem:[#allocation2 + $0x61] sm:$0x80] %vm1630_vm2, %v1604_v47  ;;  %v1022_v23 = vadd.f32 %v947_v29, %v842_v32  ;;  %v1121_v63 = vmul.f32 %v12277_v2, %v12548_v7  ;;  %v1226_v24 = vmul.f32 %v12300_v27, %v12548_v7 }
 0x147   :  { %11224 = verf.f32 %v1510_v13  ;;  %v1227_v36 = vmul.f32 %v12300_v27, %v307_v10  ;;  %v364_v0 = vmul.f32 %v12195_v14, %v12497_v58  ;;  %1639 = vst.msk [vmem:[#allocation2 + $0x69] sm:$0x7f] %vm1632_vm3, %v1605_v60  ;;  %v881_v1 = vmul.f32 %v12226_v34, %v307_v10 }
 0x148   :  { %v1023_v46 = vadd.f32 %v949_v9, %v843_v48  ;;  %11226 = verf.f32 %v1511_v50  ;;  %v1090_v26 = vadd.f32 %v1058_v21, %v1022_v23  ;;  %v1153_v56 = vrot.slane %v1121_v63, 1  ;;  %v308_v48 = vld [vmem:[#allocation2 + $0xc0] sm:$0xff] }
 0x149   :  { %v1295_v5 = vrot.slane %v1226_v24, 2  ;;  %v1296_v4 = vrot.slane %v1227_v36, 2  ;;  %v531_v32 = vmul.f32 %v12201_v16, %v12497_v58  ;;  %v496_v51 = vadd.f32 %v457_v6, %v364_v0 }
 0x14a   :  { %v1091_v49 = vadd.f32 %v1059_v62, %v1023_v46  ;;  %v1190_v29 = vadd.f32 %v1153_v56, %v1090_v26  ;;  %v533_v47 = vmul.f32 %v12201_v16, %v12548_v7  ;;  %v713_v13 = vmul.f32 %v12221_v30, %v12548_v7 }
 0x14b   :  { %v1297_v50 = vsel %vm583_vm1, %v1295_v5, %v1296_v4  ;;  %v602_v10 = vrot.slane %v531_v32, 2  ;;  %v774_v62 = vmul.f32 %v12239_v41, %v12548_v7  ;;  %v714_v60 = vmul.f32 %v12221_v30, %v308_v48 }
 0x14c   :  { %v1191_v21 = vadd.f32 %v1153_v56, %v1091_v49  ;;  %v1370_v9 = vadd.f32 %v1295_v5, %v1190_v29  ;;  %v605_v58 = vrot.slane %v533_v47, 2  ;;  %v880_v44 = vmul.f32 %v12226_v34, %v12548_v7 }
 0x14d   :  { %v604_v23 = vsel %vm583_vm1, %v602_v10, %v603_v40  ;;  %v676_v63 = vadd.f32 %v602_v10, %v12546_v20  ;;  %v806_v24 = vrot.slane %v774_v62, 1  ;;  %v951_v5 = vrot.slane %v881_v1, 2 }
 0x14e   :  { %v1371_v6 = vadd.f32 %v1297_v50, %v1191_v21  ;;  %v1409_v46 = vmul.f32 %v12336_v3, %v1370_v9  ;;  %v12623_v36 = vsel %vm583_vm1, %v605_v58, %v606_v53  ;;  %v677_v0 = vadd.f32 %v604_v23, %v496_v51  ;;  %v1677_v56 = vld [vmem:[#allocation2 + $0x68] sm:$0xff] }
 0x14f   :  { %v678_v26 = vadd.f32 %v605_v58, %v12568_v19  ;;  %v744_v4 = vadd.f32 %v712_v33, %v676_v63  ;;  %9389 = vmatprep.mubr.msk.f32.mxu0 %vm206_vm0, %v1677_v56  ;;  %v1478_v25 = vmul.f32 0.5, %v1446_v59  ;;  %v1479_v53 = vmul.f32 0.5, %v12584_v52  ;;  %v309_v9 = vld [vmem:[#allocation2 + $0xc8] sm:$0xff]  ;;  %v310_v58 = vld [vmem:[#allocation2 + $0xd0] sm:$0xff] }
 0x150   :  { %v1410_v49 = vmul.f32 %v12336_v3, %v1371_v6  ;;  %v1448_v40 = vadd.f32 %v12348_v22, %v1409_v46  ;;  %v745_v20 = vadd.f32 %v713_v13, %v677_v0  ;;  %v950_v19 = vrot.slane %v880_v44, 2 }
 0x151   :  { %v12629_v32 = vadd.f32 %v714_v60, %v678_v26  ;;  %v11225_v29 = vpop.eup %11224  ;;  %v844_v47 = vadd.f32 %v806_v24, %v744_v4  ;;  %v12634_v60 = vld [vmem:[#allocation2 + $0xf8] sm:$0xff]  ;;  %v1060_v44 = vmul.f32 %v12262_v54, %v308_v48  ;;  %v1061_v63 = vmul.f32 %v12262_v54, %v309_v9  ;;  %v314_v4 = vld [vmem:[#allocation2 + $0xf0] sm:$0xff] }
 0x152   :  { %v1449_v51 = vadd.f32 %v12348_v22, %v1410_v49  ;;  %v11227_v21 = vpop.eup %11226  ;;  %v1574_v1 = vadd.f32 1.0, %v11225_v29  ;;  %v1512_v50 = vmul.f32 0.70710677, %v1448_v40  ;;  %v845_v10 = vadd.f32 %v806_v24, %v745_v20 }
 0x153   :  { %v1575_v33 = vadd.f32 1.0, %v11227_v21  ;;  %v952_v13 = vsel %vm583_vm1, %v950_v19, %v951_v5  ;;  %v1024_v52 = vadd.f32 %v950_v19, %v844_v47  ;;  %v1122_v24 = vmul.f32 %v12277_v2, %v309_v9  ;;  %v318_v47 = vld [vmem:[#allocation2 + $0x110] sm:$0xff] }
 0x154   :  { %v1513_v62 = vmul.f32 0.70710677, %v1449_v51  ;;  %v1606_v59 = vmul.f32 %v1574_v1, %v1478_v25  ;;  %11228 = verf.f32 %v1512_v50  ;;  %v1025_v23 = vadd.f32 %v952_v13, %v845_v10 }
 0x155   :  { %v1607_v6 = vmul.f32 %v1575_v33, %v1479_v53  ;;  %v1228_v46 = vmul.f32 %v12300_v27, %v309_v9  ;;  %v1229_v0 = vmul.f32 %v12300_v27, %v310_v58  ;;  %v427_v26 = vmul.f32 %v12198_v15, %v12634_v60  ;;  %v316_v53 = vld [vmem:[#allocation2 + $0x100] sm:$0xff] }
 0x156   :  { %11230 = verf.f32 %v1513_v62  ;;  %1640 = vst.msk [vmem:[#allocation2 + $0x79] sm:$0x80] %vm1630_vm2, %v1606_v59  ;;  %v1092_v56 = vadd.f32 %v1060_v44, %v1024_v52  ;;  %v1093_v5 = vadd.f32 %v1061_v63, %v1025_v23  ;;  %v1154_v49 = vrot.slane %v1122_v24, 1  ;;  %v317_v63 = vld [vmem:[#allocation2 + $0x108] sm:$0xff] }
 0x157   :  { %1641 = vst.msk [vmem:[#allocation2 + $0x81] sm:$0x7f] %vm1632_vm3, %v1607_v6  ;;  %v1298_v25 = vrot.slane %v1228_v46, 2  ;;  %v1299_v20 = vrot.slane %v1229_v0, 2  ;;  %v459_v21 = vrot.slane %v427_v26, 1  ;;  %v535_v1 = vmul.f32 %v12201_v16, %v12634_v60 }
 0x158   :  { %v1192_v48 = vadd.f32 %v1154_v49, %v1092_v56  ;;  %v1193_v29 = vadd.f32 %v1154_v49, %v1093_v5  ;;  %v367_v50 = vmul.f32 %v12195_v14, %v314_v4  ;;  %v368_v62 = vmul.f32 %v12195_v14, %v12634_v60  ;;  %v319_v49 = vld [vmem:[#allocation2 + $0x118] sm:$0xff] }
 0x159   :  { %v1300_v19 = vsel %vm583_vm1, %v1298_v25, %v1299_v20  ;;  %v1480_v9 = vmul.f32 0.5, %v1448_v40  ;;  %v428_v59 = vmul.f32 %v12198_v15, %v318_v47  ;;  %v536_v58 = vmul.f32 %v12201_v16, %v316_v53 }
 0x15a   :  { %v1372_v10 = vadd.f32 %v1298_v25, %v1192_v48  ;;  %v1373_v33 = vadd.f32 %v1300_v19, %v1193_v29  ;;  %v1481_v52 = vmul.f32 0.5, %v1449_v51  ;;  %v499_v0 = vadd.f32 %v459_v21, %v367_v50 }
 0x15b   :  { %v608_v26 = vrot.slane %v535_v1, 2  ;;  %v500_v4 = vadd.f32 %v459_v21, %v368_v62  ;;  %v369_v25 = vmul.f32 %v12195_v14, %v317_v63  ;;  %v460_v20 = vrot.slane %v428_v59, 1 }
 0x15c   :  { %v1411_v23 = vmul.f32 %v12336_v3, %v1372_v10  ;;  %v1412_v44 = vmul.f32 %v12336_v3, %v1373_v33  ;;  %v609_v48 = vrot.slane %v536_v58, 2  ;;  %v370_v19 = vmul.f32 %v12195_v14, %v318_v47 }
 0x15d   :  { %v537_v50 = vmul.f32 %v12201_v16, %v318_v47  ;;  %v538_v10 = vmul.f32 %v12201_v16, %v319_v49  ;;  %v680_v21 = vadd.f32 %v608_v26, %v499_v0  ;;  %v716_v59 = vmul.f32 %v12221_v30, %v317_v63  ;;  %v1807_v0 = vld [vmem:[#allocation7 + $0x10] sm:$0xff] }
 0x15e   :  { %v11229_v13 = vpop.eup %11228  ;;  %v1680_v6 = vld [vmem:[#allocation2 + $0x80] sm:$0xff]  ;;  %v1450_v40 = vadd.f32 %v12348_v22, %v1411_v23  ;;  %v12658_v5 = vadd.f32 %v12348_v22, %v1412_v44  ;;  %v610_v33 = vsel %vm583_vm1, %v608_v26, %v609_v48  ;;  %v717_v58 = vmul.f32 %v12221_v30, %v318_v47 }
 0x15f   :  { %9390 = vmatmul.mubr.msk.f32.gmra.mrb[4].mxu0 %vm206_vm0, %v1680_v6  ;;  %v1576_v46 = vadd.f32 1.0, %v11229_v13  ;;  %v681_v62 = vadd.f32 %v610_v33, %v500_v4  ;;  %v502_v13 = vadd.f32 %v460_v20, %v370_v19  ;;  %v776_v6 = vmul.f32 %v12239_v41, %v318_v47  ;;  %v320_v44 = vld [vmem:[#allocation2 + $0x120] sm:$0xff]  ;;  %v12673_v4 = vld [vmem:[#allocation2 + $0x128] sm:$0xff] }
 0x160   :  { %v11231_v24 = vpop.eup %11230  ;;  %v1514_v53 = vmul.f32 0.70710677, %v1450_v40  ;;  %v1515_v1 = vmul.f32 0.70710677, %v12658_v5  ;;  %v885_v23 = vmul.f32 %v12226_v34, %v319_v49  ;;  %v1808_v26 = vld [vmem:[#allocation7 + $0x18] sm:$0xff]  ;;  %v1124_v49 = vmul.f32 %v12277_v2, %v12673_v4 }
 0x161   :  { %v1577_v56 = vadd.f32 1.0, %v11231_v24  ;;  %v1608_v51 = vmul.f32 %v1576_v46, %v1480_v9  ;;  %v501_v9 = vadd.f32 %v460_v20, %v369_v25  ;;  %v611_v24 = vrot.slane %v537_v50, 2  ;;  %v322_v25 = vld [vmem:[#allocation2 + $0x130] sm:$0xff] }
 0x162   :  { %11232 = verf.f32 %v1514_v53  ;;  %v612_v46 = vrot.slane %v538_v10, 2  ;;  %v808_v63 = vrot.slane %v776_v6, 1  ;;  %v1064_v20 = vmul.f32 %v12262_v54, %v320_v44 }
 0x163   :  { %v1609_v29 = vmul.f32 %v1577_v56, %v1481_v52  ;;  %1642 = vst.msk [vmem:[#allocation2 + $0x91] sm:$0x80] %vm1630_vm2, %v1608_v51  ;;  %11234 = verf.f32 %v1515_v1  ;;  %v884_v52 = vmul.f32 %v12226_v34, %v318_v47  ;;  %v748_v56 = vadd.f32 %v716_v59, %v680_v21 }
 0x164   :  { %v749_v51 = vadd.f32 %v717_v58, %v681_v62  ;;  %v1065_v47 = vmul.f32 %v12262_v54, %v12673_v4  ;;  %v1232_v53 = vmul.f32 %v12300_v27, %v12673_v4  ;;  %v1233_v19 = vmul.f32 %v12300_v27, %v322_v25 }
 0x165   :  { %1643 = vst.msk [vmem:[#allocation2 + $0x99] sm:$0x7f] %vm1632_vm3, %v1609_v29  ;;  %v956_v48 = vrot.slane %v884_v52, 2  ;;  %v957_v29 = vrot.slane %v885_v23, 2  ;;  %v848_v1 = vadd.f32 %v808_v63, %v748_v56  ;;  %v10291_v33 = vpack.c.bf16 %v1808_v26, %v1807_v0 }
 0x166   :  { %v849_v50 = vadd.f32 %v808_v63, %v749_v51  ;;  %v682_v62 = vadd.f32 %v611_v24, %v501_v9  ;;  %v887_v59 = vmul.f32 %v12226_v34, %v322_v25  ;;  %v1304_v58 = vrot.slane %v1232_v53, 2 }
 0x167   :  { %v958_v10 = vsel %vm583_vm1, %v956_v48, %v957_v29  ;;  %v1305_v6 = vrot.slane %v1233_v19, 2  ;;  %v718_v52 = vmul.f32 %v12221_v30, %v320_v44  ;;  %v1028_v23 = vadd.f32 %v956_v48, %v848_v1  ;;  %10292 = vmatprep.subr.bf16.mxu0 %v10291_v33 }
 0x168   :  { %v1029_v28 = vadd.f32 %v958_v10, %v849_v50  ;;  %v1156_v57 = vrot.slane %v1124_v49, 1  ;;  %v1482_v43 = vmul.f32 0.5, %v1450_v40  ;;  %v429_v56 = vmul.f32 %v12198_v15, %v12673_v4  ;;  %10294 = vmatpush3.bf16.msra.mxu0 %v10291_v33 }
 0x169   :  { %v613_v51 = vsel %vm583_vm1, %v611_v24, %v612_v46  ;;  %v719_v9 = vmul.f32 %v12221_v30, %v12673_v4  ;;  %v1483_v26 = vmul.f32 0.5, %v12658_v5  ;;  %v1096_v63 = vadd.f32 %v1064_v20, %v1028_v23 }
 0x16a   :  { %v1097_v29 = vadd.f32 %v1065_v47, %v1029_v28  ;;  %v683_v53 = vadd.f32 %v613_v51, %v502_v13  ;;  %v371_v49 = vmul.f32 %v12195_v14, %v320_v44  ;;  %v960_v40 = vrot.slane %v887_v59, 2  ;;  %v323_v44 = vld [vmem:[#allocation2 + $0x138] sm:$0xff]  ;;  %v325_v51 = vld [vmem:[#allocation2 + $0x148] sm:$0xff] }
 0x16b   :  { %v1306_v1 = vsel %vm583_vm1, %v1304_v58, %v1305_v6  ;;  %v1196_v10 = vadd.f32 %v1156_v57, %v1096_v63  ;;  %v750_v24 = vadd.f32 %v718_v52, %v682_v62  ;;  %v777_v8 = vmul.f32 %v12239_v41, %v12673_v4  ;;  %v12701_v6 = vld [vmem:[#allocation2 + $0x140] sm:$0xff] }
 0x16c   :  { %v1683_v21 = vld [vmem:[#allocation2 + $0x98] sm:$0xff]  ;;  %v11233_v0 = vpop.eup %11232  ;;  %v1197_v33 = vadd.f32 %v1156_v57, %v1097_v29  ;;  %v886_v28 = vmul.f32 %v12226_v34, %v12673_v4  ;;  %v461_v13 = vrot.slane %v429_v56, 1  ;;  %v540_v59 = vmul.f32 %v12201_v16, %v322_v25 }
 0x16d   :  { %9392 = vmatprep.mubr.msk.f32.mxu0 %vm206_vm0, %v1683_v21  ;;  %v11235_v48 = vpop.eup %11234  ;;  %v1578_v19 = vadd.f32 1.0, %v11233_v0  ;;  %v751_v21 = vadd.f32 %v719_v9, %v683_v53  ;;  %v1376_v20 = vadd.f32 %v1304_v58, %v1196_v10  ;;  %v809_v57 = vrot.slane %v777_v8, 1 }
 0x16e   :  { %v1579_v50 = vadd.f32 1.0, %v11235_v48  ;;  %v1377_v47 = vadd.f32 %v1306_v1, %v1197_v33  ;;  %v1066_v62 = vmul.f32 %v12262_v54, %v323_v44  ;;  %v1067_v58 = vmul.f32 %v12262_v54, %v12701_v6 }
 0x16f   :  { %v1610_v46 = vmul.f32 %v1578_v19, %v1482_v43  ;;  %v959_v43 = vrot.slane %v886_v28, 2  ;;  %v1415_v52 = vmul.f32 %v12336_v3, %v1376_v20  ;;  %v1125_v56 = vmul.f32 %v12277_v2, %v12701_v6 }
 0x170   :  { %v1611_v5 = vmul.f32 %v1579_v50, %v1483_v26  ;;  %v1416_v23 = vmul.f32 %v12336_v3, %v1377_v47  ;;  %v850_v25 = vadd.f32 %v809_v57, %v750_v24  ;;  %v851_v9 = vadd.f32 %v809_v57, %v751_v21 }
 0x171   :  { %1644 = vst.msk [vmem:[#allocation2 + $0xa9] sm:$0x80] %vm1630_vm2, %v1610_v46  ;;  %v961_v8 = vsel %vm583_vm1, %v959_v43, %v960_v40  ;;  %v1234_v0 = vmul.f32 %v12300_v27, %v12701_v6  ;;  %v1454_v26 = vadd.f32 %v12348_v22, %v1415_v52  ;;  %v1157_v29 = vrot.slane %v1125_v56, 1 }
 0x172   :  { %1645 = vst.msk [vmem:[#allocation2 + $0xb1] sm:$0x7f] %vm1632_vm3, %v1611_v5  ;;  %v1455_v63 = vadd.f32 %v12348_v22, %v1416_v23  ;;  %v1235_v3 = vmul.f32 %v12300_v27, %v325_v51  ;;  %v1030_v53 = vadd.f32 %v959_v43, %v850_v25  ;;  %v1031_v48 = vadd.f32 %v961_v8, %v851_v9 }
 0x173   :  { %v1307_v19 = vrot.slane %v1234_v0, 2  ;;  %v372_v1 = vmul.f32 %v12195_v14, %v12673_v4  ;;  %v1518_v50 = vmul.f32 0.70710677, %v1454_v26  ;;  %v503_v33 = vadd.f32 %v461_v13, %v371_v49 }
 0x174   :  { %v1519_v10 = vmul.f32 0.70710677, %v1455_v63  ;;  %v1098_v40 = vadd.f32 %v1066_v62, %v1030_v53  ;;  %v1099_v24 = vadd.f32 %v1067_v58, %v1031_v48  ;;  %v1308_v46 = vrot.slane %v1235_v3, 2 }
 0x175   :  { %v615_v21 = vrot.slane %v540_v59, 2  ;;  %11236 = verf.f32 %v1518_v50  ;;  %v504_v28 = vadd.f32 %v461_v13, %v372_v1  ;;  %v539_v22 = vmul.f32 %v12201_v16, %v12673_v4  ;;  %v12753_v1 = vld [vmem:[#allocation5] ss:$0 sm:$0xff] }
 0x176   :  { %11238 = verf.f32 %v1519_v10  ;;  %v1198_v20 = vadd.f32 %v1157_v29, %v1098_v40  ;;  %v1199_v47 = vadd.f32 %v1157_v29, %v1099_v24  ;;  %v1309_v57 = vsel %vm583_vm1, %v1307_v19, %v1308_v46  ;;  %v12759_v40 = vld [vmem:[#allocation2 + $0x158] sm:$0xff] }
 0x177   :  { %v12728_v49 = vmul.f32 %v12198_v15, %v12701_v6  ;;  %v720_v59 = vmul.f32 %v12221_v30, %v323_v44  ;;  %v889_v13 = vmul.f32 %v12226_v34, %v325_v51  ;;  %v614_v43 = vrot.slane %v539_v22, 2 }
 0x178   :  { %v1378_v4 = vadd.f32 %v1307_v19, %v1198_v20  ;;  %v1379_v62 = vadd.f32 %v1309_v57, %v1199_v47  ;;  %v721_v52 = vmul.f32 %v12221_v30, %v12701_v6  ;;  %v778_v23 = vmul.f32 %v12239_v41, %v12701_v6 }
 0x179   :  { %v12721_v5 = vld [vmem:[#allocation2 + $0xb0] sm:$0xff]  ;;  %v373_v58 = vmul.f32 %v12195_v14, %v323_v44  ;;  %v12740_v56 = vmul.f32 %v12201_v16, %v325_v51  ;;  %v616_v25 = vsel %vm583_vm1, %v614_v43, %v615_v21  ;;  %v684_v9 = vadd.f32 %v614_v43, %v503_v33 }
 0x17a   :  { %9393 = vmatmul.mubr.msk.f32.gmra.mrb[6].mxu0 %vm206_vm0, %v12721_v5  ;;  %v685_v29 = vadd.f32 %v616_v25, %v504_v28  ;;  %v810_v3 = vrot.slane %v778_v23, 1  ;;  %v462_v53 = vrot.slane %v12728_v49, 1  ;;  %v963_v44 = vrot.slane %v889_v13, 2  ;;  %v12757_v33 = vld [vmem:[#allocation2 + $0x150] sm:$0xff] }
 0x17b   :  { %9395 = vmatprep.mubr.msk.f32.mxu0 %vm206_vm0, %v12634_v60  ;;  %v12746_v60 = vld [vmem:[%s15315_s1] ss:$0 sm:$0xff]  ;;  %v752_v48 = vadd.f32 %v720_v59, %v684_v9  ;;  %v888_v51 = vmul.f32 %v12226_v34, %v12701_v6  ;;  %v1486_v19 = vmul.f32 0.5, %v1454_v26  ;;  %v1068_v28 = vmul.f32 %v12262_v54, %v12757_v33 }
 0x17c   :  { %v1417_v8 = vmul.f32 %v12746_v60, %v1378_v4  ;;  %v1418_v0 = vmul.f32 %v12746_v60, %v1379_v62  ;;  %v753_v24 = vadd.f32 %v721_v52, %v685_v29  ;;  %v1126_v22 = vmul.f32 %v12277_v2, %v12759_v40  ;;  %v328_v59 = vld [vmem:[#allocation2 + $0x160] sm:$0xff] }
 0x17d   :  { %v852_v46 = vadd.f32 %v810_v3, %v752_v48  ;;  %v962_v21 = vrot.slane %v888_v51, 2  ;;  %v1487_v26 = vmul.f32 0.5, %v1455_v63  ;;  %v1069_v57 = vmul.f32 %v12262_v54, %v12759_v40 }
 0x17e   :  { %v1456_v50 = vadd.f32 %v12753_v1, %v1417_v8  ;;  %v1457_v10 = vadd.f32 %v12753_v1, %v1418_v0  ;;  %v853_v13 = vadd.f32 %v810_v3, %v753_v24  ;;  %v1158_v62 = vrot.slane %v1126_v22, 1 }
 0x17f   :  { %v11237_v49 = vpop.eup %11236  ;;  %v964_v43 = vsel %vm583_vm1, %v962_v21, %v963_v44  ;;  %v1032_v4 = vadd.f32 %v962_v21, %v852_v46  ;;  %v1236_v25 = vmul.f32 %v12300_v27, %v12759_v40  ;;  %v1237_v63 = vmul.f32 %v12300_v27, %v328_v59 }
 0x180   :  { %v1520_v20 = vmul.f32 0.70710677, %v1456_v50  ;;  %v1521_v47 = vmul.f32 0.70710677, %v1457_v10  ;;  %v11239_v52 = vpop.eup %11238  ;;  %v1582_v23 = vadd.f32 1.0, %v11237_v49  ;;  %v1033_v8 = vadd.f32 %v964_v43, %v853_v13 }
 0x181   :  { %v1583_v9 = vadd.f32 1.0, %v11239_v52  ;;  %v1100_v0 = vadd.f32 %v1068_v28, %v1032_v4  ;;  %v1310_v48 = vrot.slane %v1236_v25, 2  ;;  %v1311_v51 = vrot.slane %v1237_v63, 2 }
 0x182   :  { %11240 = verf.f32 %v1520_v20  ;;  %v1614_v29 = vmul.f32 %v1582_v23, %v1486_v19  ;;  %v374_v3 = vmul.f32 %v12195_v14, %v12701_v6  ;;  %v891_v24 = vmul.f32 %v12226_v34, %v328_v59 }
 0x183   :  { %11242 = verf.f32 %v1521_v47  ;;  %v1615_v44 = vmul.f32 %v1583_v9, %v1487_v26  ;;  %v1101_v46 = vadd.f32 %v1069_v57, %v1033_v8  ;;  %v1200_v21 = vadd.f32 %v1158_v62, %v1100_v0 }
 0x184   :  { %1648 = vst.msk [vmem:[#allocation2 + $0x109] sm:$0x80] %vm1630_vm2, %v1614_v29  ;;  %v505_v22 = vadd.f32 %v462_v53, %v373_v58  ;;  %v618_v20 = vrot.slane %v12740_v56, 2  ;;  %v1312_v47 = vsel %vm583_vm1, %v1310_v48, %v1311_v51  ;;  %v541_v19 = vmul.f32 %v12201_v16, %v12701_v6 }
 0x185   :  { %1649 = vst.msk [vmem:[#allocation2 + $0x111] sm:$0x7f] %vm1632_vm3, %v1615_v44  ;;  %v1201_v28 = vadd.f32 %v1158_v62, %v1101_v46  ;;  %v1380_v49 = vadd.f32 %v1310_v48, %v1200_v21  ;;  %v506_v13 = vadd.f32 %v462_v53, %v374_v3  ;;  %v12782_v26 = vmul.f32 %v12198_v15, %v12759_v40 }
 0x186   :  { %v722_v57 = vmul.f32 %v12221_v30, %v12757_v33  ;;  %v617_v58 = vrot.slane %v541_v19, 2  ;;  %v779_v56 = vmul.f32 %v12239_v41, %v12759_v40  ;;  %v966_v43 = vrot.slane %v891_v24, 2 }
 0x187   :  { %v1381_v4 = vadd.f32 %v1312_v47, %v1201_v28  ;;  %v1419_v6 = vmul.f32 %v12746_v60, %v1380_v49  ;;  %v890_v62 = vmul.f32 %v12226_v34, %v12759_v40  ;;  %v723_v23 = vmul.f32 %v12221_v30, %v12759_v40  ;;  %v12805_v28 = vld [vmem:[#allocation2 + $0x168] sm:$0xff] }
 0x188   :  { %v619_v53 = vsel %vm583_vm1, %v617_v58, %v618_v20  ;;  %v686_v52 = vadd.f32 %v617_v58, %v505_v22  ;;  %v811_v25 = vrot.slane %v779_v56, 1  ;;  %v1488_v63 = vmul.f32 0.5, %v1456_v50 }
 0x189   :  { %v1420_v9 = vmul.f32 %v12746_v60, %v1381_v4  ;;  %v1458_v8 = vadd.f32 %v12753_v1, %v1419_v6  ;;  %v687_v0 = vadd.f32 %v619_v53, %v506_v13  ;;  %v1489_v48 = vmul.f32 0.5, %v1457_v10  ;;  %v12807_v10 = vld [vmem:[#allocation2 + $0x170] sm:$0xff] }
 0x18a   :  { %v375_v51 = vmul.f32 %v12195_v14, %v12757_v33  ;;  %v754_v3 = vadd.f32 %v722_v57, %v686_v52  ;;  %v965_v44 = vrot.slane %v890_v62, 2  ;;  %v463_v21 = vrot.slane %v12782_v26, 1  ;;  %v331_v62 = vld [vmem:[#allocation2 + $0x178] sm:$0xff] }
 0x18b   :  { %v12800_v22 = vadd.f32 %v12753_v1, %v1420_v9  ;;  %v1522_v50 = vmul.f32 0.70710677, %v1458_v8  ;;  %v544_v19 = vmul.f32 %v12201_v16, %v328_v59  ;;  %v755_v49 = vadd.f32 %v723_v23, %v687_v0 }
 0x18c   :  { %v11241_v29 = vpop.eup %11240  ;;  %v12802_v20 = vld [vmem:[#allocation2 + $0x110] sm:$0xff]  ;;  %v854_v13 = vadd.f32 %v811_v25, %v754_v3  ;;  %v967_v26 = vsel %vm583_vm1, %v965_v44, %v966_v43  ;;  %v1070_v58 = vmul.f32 %v12262_v54, %v12805_v28  ;;  %v1071_v56 = vmul.f32 %v12262_v54, %v12807_v10 }
 0x18d   :  { %v11243_v24 = vpop.eup %11242  ;;  %v1584_v46 = vadd.f32 1.0, %v11241_v29  ;;  %9396 = vmatmul.mubr.msk.f32.gmra.mrb[8].mxu0 %vm206_vm0, %v12802_v20  ;;  %v1523_v59 = vmul.f32 0.70710677, %v12800_v22  ;;  %11244 = verf.f32 %v1522_v50  ;;  %v855_v6 = vadd.f32 %v811_v25, %v755_v49 }
 0x18e   :  { %v1585_v47 = vadd.f32 1.0, %v11243_v24  ;;  %v12820_v53 = vmul.f32 %v12198_v15, %v12807_v10  ;;  %v1034_v52 = vadd.f32 %v965_v44, %v854_v13  ;;  %v1127_v43 = vmul.f32 %v12277_v2, %v12807_v10 }
 0x18f   :  { %v1616_v57 = vmul.f32 %v1584_v46, %v1488_v63  ;;  %v1238_v23 = vmul.f32 %v12300_v27, %v12807_v10  ;;  %11246 = verf.f32 %v1523_v59  ;;  %v1035_v63 = vadd.f32 %v967_v26, %v855_v6 }
 0x190   :  { %v1617_v4 = vmul.f32 %v1585_v47, %v1489_v48  ;;  %v1239_v25 = vmul.f32 %v12300_v27, %v331_v62  ;;  %v376_v9 = vmul.f32 %v12195_v14, %v12759_v40  ;;  %v507_v0 = vadd.f32 %v463_v21, %v375_v51 }
 0x191   :  { %1650 = vst.msk [vmem:[#allocation2 + $0x121] sm:$0x80] %vm1630_vm2, %v1616_v57  ;;  %v1102_v29 = vadd.f32 %v1070_v58, %v1034_v52  ;;  %v1159_v48 = vrot.slane %v1127_v43, 1  ;;  %v1313_v3 = vrot.slane %v1238_v23, 2  ;;  %v621_v44 = vrot.slane %v544_v19, 2 }
 0x192   :  { %1651 = vst.msk [vmem:[#allocation2 + $0x129] sm:$0x7f] %vm1632_vm3, %v1617_v4  ;;  %v12832_v24 = vmul.f32 %v12195_v14, %v12805_v28  ;;  %v1103_v46 = vadd.f32 %v1071_v56, %v1035_v63  ;;  %v1314_v50 = vrot.slane %v1239_v25, 2  ;;  %v12835_v47 = vmul.f32 %v12201_v16, %v331_v62 }
 0x193   :  { %v893_v49 = vmul.f32 %v12226_v34, %v331_v62  ;;  %v1202_v13 = vadd.f32 %v1159_v48, %v1102_v29  ;;  %v543_v57 = vmul.f32 %v12201_v16, %v12759_v40  ;;  %v464_v51 = vrot.slane %v12820_v53, 1 }
 0x194   :  { %v1203_v26 = vadd.f32 %v1159_v48, %v1103_v46  ;;  %v1315_v19 = vsel %vm583_vm1, %v1313_v3, %v1314_v50  ;;  %v508_v58 = vadd.f32 %v463_v21, %v376_v9  ;;  %v724_v4 = vmul.f32 %v12221_v30, %v12805_v28 }
 0x195   :  { %v1382_v56 = vadd.f32 %v1313_v3, %v1202_v13  ;;  %v620_v59 = vrot.slane %v543_v57, 2  ;;  %v780_v6 = vmul.f32 %v12239_v41, %v12807_v10  ;;  %v1490_v52 = vmul.f32 0.5, %v1458_v8 }
 0x196   :  { %v1383_v62 = vadd.f32 %v1315_v19, %v1203_v26  ;;  %v725_v43 = vmul.f32 %v12221_v30, %v12807_v10  ;;  %v892_v40 = vmul.f32 %v12226_v34, %v12807_v10  ;;  %v969_v63 = vrot.slane %v893_v49, 2  ;;  %v12859_v49 = vld [vmem:[#allocation2 + $0x180] sm:$0xff] }
 0x197   :  { %v1421_v21 = vmul.f32 %v12746_v60, %v1382_v56  ;;  %v622_v25 = vsel %vm583_vm1, %v620_v59, %v621_v44  ;;  %v688_v9 = vadd.f32 %v620_v59, %v507_v0  ;;  %v11245_v29 = vpop.eup %11244  ;;  %v812_v3 = vrot.slane %v780_v6, 1 }
 0x198   :  { %v1422_v8 = vmul.f32 %v12746_v60, %v1383_v62  ;;  %v689_v48 = vadd.f32 %v622_v25, %v508_v58  ;;  %v968_v46 = vrot.slane %v892_v40, 2  ;;  %v1491_v50 = vmul.f32 0.5, %v12800_v22  ;;  %v12865_v40 = vld [vmem:[#allocation2 + $0x188] sm:$0xff] }
 0x199   :  { %v12850_v23 = vld [vmem:[#allocation2 + $0x128] sm:$0xff]  ;;  %v1586_v13 = vadd.f32 1.0, %v11245_v29  ;;  %v1460_v57 = vadd.f32 %v12753_v1, %v1421_v21  ;;  %v756_v26 = vadd.f32 %v724_v4, %v688_v9  ;;  %v11247_v19 = vpop.eup %11246  ;;  %v624_v0 = vrot.slane %v12835_v47, 2 }
 0x19a   :  { %9398 = vmatprep.mubr.msk.f32.mxu0 %vm206_vm0, %v12850_v23  ;;  %v1461_v44 = vadd.f32 %v12753_v1, %v1422_v8  ;;  %v757_v56 = vadd.f32 %v725_v43, %v689_v48  ;;  %v1072_v59 = vmul.f32 %v12262_v54, %v12859_v49  ;;  %v1587_v58 = vadd.f32 1.0, %v11247_v19  ;;  %v12871_v43 = vld [vmem:[#allocation2 + $0x190] sm:$0xff] }
 0x19b   :  { %v1618_v6 = vmul.f32 %v1586_v13, %v1490_v52  ;;  %v1524_v62 = vmul.f32 0.70710677, %v1460_v57  ;;  %v970_v22 = vsel %vm583_vm1, %v968_v46, %v969_v63  ;;  %v856_v25 = vadd.f32 %v812_v3, %v756_v26 }
 0x19c   :  { %v1525_v21 = vmul.f32 0.70710677, %v1461_v44  ;;  %v857_v29 = vadd.f32 %v812_v3, %v757_v56  ;;  %v1073_v4 = vmul.f32 %v12262_v54, %v12865_v40  ;;  %v1619_v47 = vmul.f32 %v1587_v58, %v1491_v50 }
 0x19d   :  { %1652 = vst.msk [vmem:[#allocation2 + $0x139] sm:$0x80] %vm1630_vm2, %v1618_v6  ;;  %11248 = verf.f32 %v1524_v62  ;;  %v1128_v52 = vmul.f32 %v12277_v2, %v12865_v40  ;;  %v1240_v9 = vmul.f32 %v12300_v27, %v12865_v40  ;;  %v1036_v63 = vadd.f32 %v968_v46, %v856_v25 }
 0x19e   :  { %11250 = verf.f32 %v1525_v21  ;;  %v1037_v8 = vadd.f32 %v970_v22, %v857_v29  ;;  %v1241_v48 = vmul.f32 %v12300_v27, %v12871_v43  ;;  %1653 = vst.msk [vmem:[#allocation2 + $0x141] sm:$0x7f] %vm1632_vm3, %v1619_v47  ;;  %v12882_v3 = vmul.f32 %v12198_v15, %v12865_v40 }
 0x19f   :  { %v1160_v50 = vrot.slane %v1128_v52, 1  ;;  %v1316_v13 = vrot.slane %v1240_v9, 2  ;;  %v378_v26 = vmul.f32 %v12195_v14, %v12807_v10  ;;  %v509_v19 = vadd.f32 %v464_v51, %v12832_v24 }
 0x1a0   :  { %v1104_v46 = vadd.f32 %v1072_v59, %v1036_v63  ;;  %v1105_v56 = vadd.f32 %v1073_v4, %v1037_v8  ;;  %v1317_v58 = vrot.slane %v1241_v48, 2  ;;  %v379_v6 = vmul.f32 %v12195_v14, %v12859_v49 }
 0x1a1   :  { %v12893_v62 = vmul.f32 %v12201_v16, %v12871_v43  ;;  %v895_v22 = vmul.f32 %v12226_v34, %v12871_v43  ;;  %v545_v21 = vmul.f32 %v12201_v16, %v12807_v10  ;;  %v510_v59 = vadd.f32 %v464_v51, %v378_v26 }
 0x1a2   :  { %v1204_v25 = vadd.f32 %v1160_v50, %v1104_v46  ;;  %v1205_v29 = vadd.f32 %v1160_v50, %v1105_v56  ;;  %v1318_v24 = vsel %vm583_vm1, %v1316_v13, %v1317_v58  ;;  %v465_v4 = vrot.slane %v12882_v3, 1 }
 0x1a3   :  { %v726_v47 = vmul.f32 %v12221_v30, %v12859_v49  ;;  %v623_v52 = vrot.slane %v545_v21, 2  ;;  %v727_v9 = vmul.f32 %v12221_v30, %v12865_v40  ;;  %v781_v10 = vmul.f32 %v12239_v41, %v12865_v40 }
 0x1a4   :  { %v1384_v63 = vadd.f32 %v1316_v13, %v1204_v25  ;;  %v1385_v8 = vadd.f32 %v1318_v24, %v1205_v29  ;;  %v894_v48 = vmul.f32 %v12226_v34, %v12865_v40  ;;  %v1492_v50 = vmul.f32 0.5, %v1460_v57 }
 0x1a5   :  { %v972_v53 = vrot.slane %v895_v22, 2  ;;  %v625_v51 = vsel %vm583_vm1, %v623_v52, %v624_v0  ;;  %v690_v3 = vadd.f32 %v623_v52, %v509_v19  ;;  %v12912_v26 = vld [vmem:[#allocation2 + $0x140] sm:$0xff]  ;;  %v813_v13 = vrot.slane %v781_v10, 1  ;;  %v12920_v52 = vld [vmem:[#allocation2 + $0x198] sm:$0xff] }
 0x1a6   :  { %v1423_v46 = vmul.f32 %v12746_v60, %v1384_v63  ;;  %v1424_v56 = vmul.f32 %v12746_v60, %v1385_v8  ;;  %v691_v58 = vadd.f32 %v625_v51, %v510_v59  ;;  %9399 = vmatmul.mubr.msk.f32.gmra.mrb[10].mxu0 %vm206_vm0, %v12912_v26  ;;  %v1493_v25 = vmul.f32 0.5, %v1461_v44 }
 0x1a7   :  { %v11249_v21 = vpop.eup %11248  ;;  %v758_v29 = vadd.f32 %v726_v47, %v690_v3  ;;  %v971_v24 = vrot.slane %v894_v48, 2  ;;  %v627_v59 = vrot.slane %v12893_v62, 2  ;;  %v1074_v10 = vmul.f32 %v12262_v54, %v12920_v52 }
 0x1a8   :  { %v11251_v57 = vpop.eup %11250  ;;  %v1588_v22 = vadd.f32 1.0, %v11249_v21  ;;  %v1462_v0 = vadd.f32 %v12753_v1, %v1423_v46  ;;  %v1463_v19 = vadd.f32 %v12753_v1, %v1424_v56  ;;  %v759_v63 = vadd.f32 %v727_v9, %v691_v58  ;;  %v12926_v46 = vld [vmem:[#allocation2 + $0x1a0] sm:$0xff]  ;;  %v12929_v9 = vld [vmem:[#allocation2 + $0x1a8] sm:$0xff] }
 0x1a9   :  { %v1589_v39 = vadd.f32 1.0, %v11251_v57  ;;  %v858_v8 = vadd.f32 %v813_v13, %v758_v29  ;;  %v511_v44 = vadd.f32 %v465_v4, %v379_v6  ;;  %v973_v48 = vsel %vm583_vm1, %v971_v24, %v972_v53 }
 0x1aa   :  { %v1620_v51 = vmul.f32 %v1588_v22, %v1492_v50  ;;  %v1526_v47 = vmul.f32 0.70710677, %v1462_v0  ;;  %v1527_v21 = vmul.f32 0.70710677, %v1463_v19  ;;  %v859_v56 = vadd.f32 %v813_v13, %v759_v63 }
 0x1ab   :  { %v1621_v3 = vmul.f32 %v1589_v39, %v1493_v25  ;;  %v1038_v37 = vadd.f32 %v971_v24, %v858_v8  ;;  %v1075_v62 = vmul.f32 %v12262_v54, %v12926_v46  ;;  %v1129_v6 = vmul.f32 %v12277_v2, %v12926_v46 }
 0x1ac   :  { %1654 = vst.msk [vmem:[#allocation2 + $0x151] sm:$0x80] %vm1630_vm2, %v1620_v51  ;;  %11252 = verf.f32 %v1526_v47  ;;  %v1242_v50 = vmul.f32 %v12300_v27, %v12926_v46  ;;  %v1039_v39 = vadd.f32 %v973_v48, %v859_v56  ;;  %v1243_v58 = vmul.f32 %v12300_v27, %v12929_v9 }
 0x1ad   :  { %1655 = vst.msk [vmem:[#allocation2 + $0x159] sm:$0x7f] %vm1632_vm3, %v1621_v3  ;;  %11254 = verf.f32 %v1527_v21  ;;  %v1106_v53 = vadd.f32 %v1074_v10, %v1038_v37  ;;  %v1161_v13 = vrot.slane %v1129_v6, 1  ;;  %v380_v29 = vmul.f32 %v12195_v14, %v12865_v40 }
 0x1ae   :  { %v1319_v25 = vrot.slane %v1242_v50, 2  ;;  %v547_v24 = vmul.f32 %v12201_v16, %v12865_v40  ;;  %v1107_v57 = vadd.f32 %v1075_v62, %v1039_v39  ;;  %v1320_v22 = vrot.slane %v1243_v58, 2 }
 0x1af   :  { %v728_v63 = vmul.f32 %v12221_v30, %v12920_v52  ;;  %v1206_v8 = vadd.f32 %v1161_v13, %v1106_v53  ;;  %v512_v51 = vadd.f32 %v465_v4, %v380_v29  ;;  %v729_v48 = vmul.f32 %v12221_v30, %v12926_v46 }
 0x1b0   :  { %v626_v47 = vrot.slane %v547_v24, 2  ;;  %v1207_v37 = vadd.f32 %v1161_v13, %v1107_v57  ;;  %v1321_v10 = vsel %vm583_vm1, %v1319_v25, %v1320_v22  ;;  %v782_v3 = vmul.f32 %v12239_v41, %v12926_v46 }
 0x1b1   :  { %v897_v40 = vmul.f32 %v12226_v34, %v12929_v9  ;;  %v1386_v21 = vadd.f32 %v1319_v25, %v1206_v8  ;;  %v1494_v13 = vmul.f32 0.5, %v1462_v0  ;;  %v896_v25 = vmul.f32 %v12226_v34, %v12926_v46  ;;  %v12964_v0 = vld [vmem:[#allocation2 + $0x1b0] sm:$0xff] }
 0x1b2   :  { %v628_v56 = vsel %vm583_vm1, %v626_v47, %v627_v59  ;;  %v692_v62 = vadd.f32 %v626_v47, %v511_v44  ;;  %v1387_v6 = vadd.f32 %v1321_v10, %v1207_v37  ;;  %v814_v58 = vrot.slane %v782_v3, 1 }
 0x1b3   :  { %v693_v50 = vadd.f32 %v628_v56, %v512_v51  ;;  %v1425_v39 = vmul.f32 %v12746_v60, %v1386_v21  ;;  %v1495_v44 = vmul.f32 0.5, %v1463_v19  ;;  %v975_v57 = vrot.slane %v897_v40, 2  ;;  %v12968_v19 = vld [vmem:[#allocation2 + $0x1c0] sm:$0xff] }
 0x1b4   :  { %v12954_v4 = vld [vmem:[#allocation2 + $0x158] sm:$0xff]  ;;  %v760_v53 = vadd.f32 %v728_v63, %v692_v62  ;;  %v1426_v29 = vmul.f32 %v12746_v60, %v1387_v6  ;;  %v974_v21 = vrot.slane %v896_v25, 2 }
 0x1b5   :  { %9401 = vmatprep.mubr.msk.f32.mxu0 %vm206_vm0, %v12954_v4  ;;  %v761_v24 = vadd.f32 %v729_v48, %v693_v50  ;;  %v1464_v22 = vadd.f32 %v12753_v1, %v1425_v39  ;;  %v12966_v62 = vld [vmem:[#allocation2 + $0x1b8] sm:$0xff] }
 0x1b6   :  { %v11253_v59 = vpop.eup %11252  ;;  %v1465_v63 = vadd.f32 %v12753_v1, %v1426_v29  ;;  %v860_v47 = vadd.f32 %v814_v58, %v760_v53  ;;  %v976_v40 = vsel %vm583_vm1, %v974_v21, %v975_v57  ;;  %v1076_v53 = vmul.f32 %v12262_v54, %v12964_v0  ;;  %v2235_v29 = vld [vmem:[#allocation7 + $0x48] sm:$0xff] }
 0x1b7   :  { %v11255_v8 = vpop.eup %11254  ;;  %v1590_v51 = vadd.f32 1.0, %v11253_v59  ;;  %v861_v37 = vadd.f32 %v814_v58, %v761_v24  ;;  %v1528_v3 = vmul.f32 0.70710677, %v1464_v22  ;;  %v2234_v58 = vld [vmem:[#allocation7 + $0x40] sm:$0xff]  ;;  %v1130_v24 = vmul.f32 %v12277_v2, %v12966_v62 }
 0x1b8   :  { %v1591_v10 = vadd.f32 1.0, %v11255_v8  ;;  %v1529_v56 = vmul.f32 0.70710677, %v1465_v63  ;;  %v1040_v50 = vadd.f32 %v974_v21, %v860_v47  ;;  %v1244_v25 = vmul.f32 %v12300_v27, %v12966_v62 }
 0x1b9   :  { %v1622_v48 = vmul.f32 %v1590_v51, %v1494_v13  ;;  %11256 = verf.f32 %v1528_v3  ;;  %v1041_v39 = vadd.f32 %v976_v40, %v861_v37  ;;  %v1077_v13 = vmul.f32 %v12262_v54, %v12966_v62 }
 0x1ba   :  { %v1623_v6 = vmul.f32 %v1591_v10, %v1495_v44  ;;  %11258 = verf.f32 %v1529_v56  ;;  %v1108_v59 = vadd.f32 %v1076_v53, %v1040_v50  ;;  %v1245_v44 = vmul.f32 %v12300_v27, %v12968_v19 }
 0x1bb   :  { %1656 = vst.msk [vmem:[#allocation2 + $0x169] sm:$0x80] %vm1630_vm2, %v1622_v48  ;;  %v1109_v57 = vadd.f32 %v1077_v13, %v1041_v39  ;;  %v1162_v8 = vrot.slane %v1130_v24, 1  ;;  %v1322_v51 = vrot.slane %v1244_v25, 2  ;;  %v12983_v47 = vpack.c.bf16 %v2235_v29, %v2234_v58 }
 0x1bc   :  { %1657 = vst.msk [vmem:[#allocation2 + $0x171] sm:$0x7f] %vm1632_vm3, %v1623_v6  ;;  %v1323_v37 = vrot.slane %v1245_v44, 2  ;;  %v1496_v40 = vmul.f32 0.5, %v1464_v22  ;;  %v12993_v39 = vmul.f32 %v12198_v15, %v12926_v46  ;;  %v1497_v53 = vmul.f32 0.5, %v1465_v63 }
 0x1bd   :  { %v1208_v10 = vadd.f32 %v1162_v8, %v1108_v59  ;;  %v1209_v3 = vadd.f32 %v1162_v8, %v1109_v57  ;;  %10296 = vmatprep.subr.bf16.mxu0 %v12983_v47  ;;  %v381_v44 = vmul.f32 %v12195_v14, %v12920_v52  ;;  %v549_v63 = vmul.f32 %v12201_v16, %v12926_v46 }
 0x1be   :  { %v1324_v21 = vsel %vm583_vm1, %v1322_v51, %v1323_v37  ;;  %v466_v8 = vrot.slane %v12993_v39, 1  ;;  %v550_v39 = vmul.f32 %v12201_v16, %v12929_v9 }
 0x1bf   :  { %v1388_v48 = vadd.f32 %v1322_v51, %v1208_v10  ;;  %v1389_v56 = vadd.f32 %v1324_v21, %v1209_v3  ;;  %v629_v3 = vrot.slane %v549_v63, 2  ;;  %v11594_v21 = vld [vmem:[#allocation2 + $0xc8] sm:$0xff] }
 0x1c0   :  { %v513_v10 = vadd.f32 %v466_v8, %v381_v44  ;;  %v13027_v44 = vld [vmem:[#allocation2 + $0x8] sm:$0xff]  ;;  %v630_v55 = vrot.slane %v550_v39, 2  ;;  %v1670_v39 = vld [vmem:[#allocation2 + $0x30] sm:$0xff] }
 0x1c1   :  { %v1427_v58 = vmul.f32 %v12746_v60, %v1388_v48  ;;  %v1428_v29 = vmul.f32 %v12746_v60, %v1389_v56  ;;  %v13007_v48 = vmul.f32 %v11594_v21, %v12239_v41  ;;  %v882_v56 = vmul.f32 %v11594_v21, %v12226_v34 }
 0x1c2   :  { %v1758_v16 = vrot.slane %v13027_v44, 7 }
 0x1c3   :  { %v12987_v6 = vld [vmem:[#allocation2 + $0x170] sm:$0xff]  ;;  %v11257_v50 = vpop.eup %11256  ;;  %v1466_v59 = vadd.f32 %v12753_v1, %v1427_v58  ;;  %v1467_v22 = vadd.f32 %v12753_v1, %v1428_v29  ;;  %v730_v58 = vmul.f32 %v12221_v30, %v12964_v0  ;;  %v13017_v29 = vmul.f32 %v12239_v41, %v12966_v62 }
 0x1c4   :  { %9402 = vmatmul.mubr.msk.f32.gmra.mrb[12].mxu0 %vm206_vm0, %v12987_v6  ;;  %v11259_v13 = vpop.eup %11258  ;;  %v1592_v24 = vadd.f32 1.0, %v11257_v50  ;;  %v366_v41 = vmul.f32 %v12195_v14, %v12548_v7  ;;  %v807_v63 = vrot.slane %v13007_v48, 1 }
 0x1c5   :  { %v1593_v25 = vadd.f32 1.0, %v11259_v13  ;;  %v1530_v51 = vmul.f32 0.70710677, %v1466_v59  ;;  %v1531_v37 = vmul.f32 0.70710677, %v1467_v22  ;;  %v1499_v45 = vmul.f32 0.5, %v1467_v22 }
 0x1c6   :  { %v1624_v57 = vmul.f32 %v1592_v24, %v1496_v40  ;;  %v11595_v40 = vld [vmem:[#allocation2 + $0xd0] sm:$0xff]  ;;  %v13023_v24 = vmul.f32 %v12226_v34, %v12966_v62 }
 0x1c7   :  { %v1625_v15 = vmul.f32 %v1593_v25, %v1497_v53  ;;  %11260 = verf.f32 %v1530_v51  ;;  %v883_v50 = vmul.f32 %v11595_v40, %v12226_v34  ;;  %v694_v53 = vadd.f32 %v629_v3, %v513_v10  ;;  %v1664_v51 = vld [vmem:[#allocation2] sm:$0xff] }
 0x1c8   :  { %1658 = vst.msk [vmem:[#allocation2 + $0x181] sm:$0x80] %vm1630_vm2, %v1624_v57  ;;  %11262 = verf.f32 %v1531_v37  ;;  %v899_v25 = vmul.f32 %v12226_v34, %v12968_v19  ;;  %v13030_v57 = vld [vmem:[#allocation2 + $0x20] sm:$0xff]  ;;  %v953_v37 = vrot.slane %v882_v56, 2  ;;  %v382_v34 = vmul.f32 %v12195_v14, %v12926_v46 }
 0x1c9   :  { %1659 = vst.msk [vmem:[#allocation2 + $0x189] sm:$0x7f] %vm1632_vm3, %v1625_v15  ;;  %v1761_v15 = vrot.slane %v13030_v57, 7  ;;  %v954_v10 = vrot.slane %v883_v50, 2  ;;  %v1498_v40 = vmul.f32 0.5, %v1466_v59  ;;  %v762_v61 = vadd.f32 %v730_v58, %v694_v53 }
 0x1ca   :  { %v977_v48 = vrot.slane %v13023_v24, 2  ;;  %v978_v31 = vrot.slane %v899_v25, 2  ;;  %v1757_v17 = vrot.slane %v1664_v51, 7  ;;  %v15325_v56 = vrot.slane %v12553_v38, 1  ;;  %v13048_v24 = vld [vmem:[#allocation2 + $0xd8] sm:$0xff] }
 0x1cb   :  { %v1760_v14 = vrot.slane %v1667_v11, 7  ;;  %v846_v46 = vadd.f32 %v807_v63, %v12629_v32  ;;  %v955_v53 = vsel %vm583_vm1, %v953_v37, %v954_v10  ;;  %v514_v58 = vadd.f32 %v466_v8, %v382_v34  ;;  %v13058_v11 = vld [vmem:[#allocation2 + $0xe0] sm:$0xff]  ;;  %v13060_v32 = vld [vmem:[#allocation2 + $0xe8] sm:$0xff]  ;;  %v13070_v8 = vld [vmem:[#allocation2 + $0x38] sm:$0xff] }
 0x1cc   :  { %v498_v50 = vadd.f32 %v15325_v56, %v366_v41  ;;  %v15326_v38 = vrot.slane %v13017_v29, 1  ;;  %v13054_v41 = vsel %vm583_vm1, %v977_v48, %v978_v31  ;;  %15327 = vst [vmem:[#allocation42_spill] sm:$0xff] %v13060_v32  ;;  %v715_v31 = vmul.f32 %v11594_v21, %v12221_v30  ;;  %v13082_v21 = vld [vmem:[#allocation2 + $0x1c8] sm:$0xff]  ;;  %v13088_v56 = vld [vmem:[#allocation2 + $0x1d0] sm:$0xff] }
 0x1cd   :  { %v1062_v51 = vmul.f32 %v12262_v54, %v13048_v24  ;;  %v1230_v34 = vmul.f32 %v12300_v27, %v13058_v11  ;;  %15328 = vst [vmem:[#allocation43_spill] sm:$0xff] %v13082_v21 }
 0x1ce   :  { %v862_v25 = vadd.f32 %v15326_v38, %v762_v61  ;;  %v679_v61 = vadd.f32 %v12623_v36, %v498_v50  ;;  %v1231_v36 = vmul.f32 %v12300_v27, %v13060_v32 }
 0x1d0   :  { %v13019_v13 = vld [vmem:[#allocation2 + $0x188] sm:$0xff]  ;;  %v747_v10 = vadd.f32 %v715_v31, %v679_v61  ;;  %v1302_v38 = vrot.slane %v1231_v36, 2  ;;  %v731_v61 = vmul.f32 %v12221_v30, %v12966_v62  ;;  %v1042_v31 = vadd.f32 %v977_v48, %v862_v25 }
 0x1d1   :  { %9404 = vmatprep.mubr.msk.f32.mxu0 %vm206_vm0, %v13019_v13  ;;  %v11261_v12 = vpop.eup %11260  ;;  %v1246_v30 = vmul.f32 %v12300_v27, %v13088_v56 }
 0x1d2   :  { %v11263_v7 = vpop.eup %11262  ;;  %v1594_v35 = vadd.f32 1.0, %v11261_v12  ;;  %v631_v12 = vsel %vm583_vm1, %v629_v3, %v630_v55  ;;  %v13066_v55 = vld [vmem:[#allocation2 + $0x60] sm:$0xff]  ;;  %v1766_v3 = vrot.slane %v13046_v42, 7 }
 0x1d3   :  { %v1595_v18 = vadd.f32 1.0, %v11263_v7  ;;  %v695_v50 = vadd.f32 %v631_v12, %v514_v58 }
 0x1d4   :  { %v1626_v59 = vmul.f32 %v1594_v35, %v1498_v40  ;;  %v1759_v35 = vsel %vm1756_vm4, %v1757_v17, %v1758_v16  ;;  %v1764_v17 = vrot.slane %v13070_v8, 7  ;;  %v1026_v16 = vadd.f32 %v953_v37, %v846_v46  ;;  %v13084_v40 = vld [vmem:[#allocation2 + $0x50] sm:$0xff] }
 0x1d5   :  { %v1627_v22 = vmul.f32 %v1595_v18, %v1499_v45  ;;  %v13064_v18 = vsel %vm1756_vm4, %v1760_v14, %v1761_v15  ;;  %v1763_v45 = vrot.slane %v1670_v39, 7  ;;  %v1123_v15 = vmul.f32 %v12277_v2, %v13058_v11 }
 0x1d6   :  { %1660 = vst.msk [vmem:[#allocation2 + $0x199] sm:$0x80] %vm1630_vm2, %v1626_v59  ;;  %v1767_v42 = vrot.slane %v13084_v40, 7  ;;  %v1769_v37 = vrot.slane %v13066_v55, 7  ;;  %v1094_v7 = vadd.f32 %v1062_v51, %v1026_v16  ;;  %v847_v14 = vadd.f32 %v807_v63, %v747_v10  ;;  %v13098_v16 = vld [vmem:[#allocation2 + $0x68] sm:$0xff] }
 0x1d7   :  { %1661 = vst.msk [vmem:[#allocation2 + $0x1a1] sm:$0x7f] %vm1632_vm3, %v1627_v22  ;;  %v1063_v46 = vmul.f32 %v12262_v54, %v13058_v11  ;;  %v1155_v59 = vrot.slane %v1123_v15, 1  ;;  %v1301_v39 = vrot.slane %v1230_v34, 2  ;;  %v13092_v22 = vld [vmem:[#allocation2 + $0x1d8] sm:$0xff]  ;;  %v1078_v55 = vmul.f32 %v12262_v54, %v13082_v21 }
 0x1d8   :  { %15329 = vst [vmem:[#allocation44_spill] sm:$0xff] %v13092_v22  ;;  %v1770_v58 = vrot.slane %v13098_v16, 7  ;;  %v1027_v63 = vadd.f32 %v955_v53, %v847_v14  ;;  %v1131_v51 = vmul.f32 %v12277_v2, %v13088_v56  ;;  %v2236_v15 = vld [vmem:[#allocation7 + $0x50] sm:$0xff]  ;;  %v2237_v34 = vld [vmem:[#allocation7 + $0x58] sm:$0xff]  ;;  %v763_v36 = vadd.f32 %v731_v61, %v695_v50 }
 0x1d9   :  { %v1194_v12 = vadd.f32 %v1155_v59, %v1094_v7  ;;  %v1110_v32 = vadd.f32 %v1078_v55, %v1042_v31  ;;  %v1247_v62 = vmul.f32 %v12300_v27, %v13092_v22  ;;  %v13112_v48 = vsel %vm1756_vm4, %v1763_v45, %v1764_v17  ;;  %v1679_v53 = vld [vmem:[#allocation2 + $0x78] sm:$0xff]  ;;  %v1682_v55 = vld [vmem:[#allocation2 + $0x90] sm:$0xff] }
 0x1da   :  { %v1095_v2 = vadd.f32 %v1063_v46, %v1027_v63  ;;  %v1079_v7 = vmul.f32 %v12262_v54, %v13088_v56  ;;  %v1303_v50 = vsel %vm583_vm1, %v1301_v39, %v1302_v38  ;;  %v15330_v14 = vrot.slane %v13017_v29, 1  ;;  %v2442_v54 = vld [vmem:[#allocation7 + $0x60] sm:$0xff] }
 0x1db   :  { %v1374_v25 = vadd.f32 %v1301_v39, %v1194_v12  ;;  %v1163_v27 = vrot.slane %v1131_v51, 1  ;;  %v1325_v31 = vrot.slane %v1246_v30, 2  ;;  %v10299_v22 = vpack.c.bf16 %v2237_v34, %v2236_v15  ;;  %v2443_v12 = vld [vmem:[#allocation7 + $0x68] sm:$0xff]  ;;  %v13130_v38 = vld [vmem:[#allocation2 + $0x80] sm:$0xff] }
 0x1dc   :  { %v863_v61 = vadd.f32 %v15330_v14, %v763_v36  ;;  %v1195_v21 = vadd.f32 %v1155_v59, %v1095_v2  ;;  %v1326_v17 = vrot.slane %v1247_v62, 2  ;;  %v13122_v46 = vsel %vm1756_vm4, %v1766_v3, %v1767_v42  ;;  %v1685_v15 = vld [vmem:[#allocation2 + $0xa8] sm:$0xff] }
 0x1dd   :  { %v1413_v45 = vmul.f32 %v12746_v60, %v1374_v25  ;;  %v1772_v63 = vrot.slane %v1679_v53, 7  ;;  %v1210_v39 = vadd.f32 %v1163_v27, %v1110_v32  ;;  %v13128_v29 = vsel %vm1756_vm4, %v1769_v37, %v1770_v58  ;;  %v13137_v32 = vld [vmem:[#allocation2 + $0x98] sm:$0xff]  ;;  %v1697_v14 = vld [vmem:[#allocation2 + $0x108] sm:$0xff] }
 0x1de   :  { %v13103_v10 = vld [vmem:[#allocation2 + $0x1a0] sm:$0xff]  ;;  %v1773_v59 = vrot.slane %v13130_v38, 7  ;;  %v1375_v51 = vadd.f32 %v1303_v50, %v1195_v21  ;;  %v1776_v42 = vrot.slane %v13137_v32, 7  ;;  %v13140_v34 = vpack.c.bf16 %v2443_v12, %v2442_v54 }
 0x1df   :  { %9405 = vmatmul.mubr.msk.f32.gmra.mrb[14].mxu0 %vm206_vm0, %v13103_v10  ;;  %v1452_v3 = vadd.f32 %v12753_v1, %v1413_v45  ;;  %v1390_v58 = vadd.f32 %v1325_v31, %v1210_v39  ;;  %v1327_v30 = vsel %vm583_vm1, %v1325_v31, %v1326_v17  ;;  %v1778_v2 = vrot.slane %v1685_v15, 7  ;;  %v13155_v31 = vld [vmem:[#allocation2 + $0xf8] sm:$0xff] }
 0x1e0   :  { %9415 = vmatprep.mubr.msk.f32.mxu0 %vm206_vm0, %v1759_v35  ;;  %v1043_v35 = vadd.f32 %v13054_v41, %v863_v61  ;;  %v1775_v41 = vrot.slane %v1682_v55, 7  ;;  %v1414_v21 = vmul.f32 %v12746_v60, %v1375_v51  ;;  %v1779_v50 = vrot.slane %v12721_v5, 7  ;;  %v11604_v15 = vld [vmem:[#allocation2 + $0x138] sm:$0xff] }
 0x1e1   :  { %v1516_v36 = vmul.f32 0.70710677, %v1452_v3  ;;  %v1429_v53 = vmul.f32 %v12746_v60, %v1390_v58  ;;  %v1782_v55 = vrot.slane %v13155_v31, 7  ;;  %v1791_v58 = vrot.slane %v12912_v26, 7 }
 0x1e2   :  { %v1111_v37 = vadd.f32 %v1079_v7, %v1043_v35  ;;  %v1453_v25 = vadd.f32 %v12753_v1, %v1414_v21  ;;  %v13151_v7 = vsel %vm1756_vm4, %v1772_v63, %v1773_v59  ;;  %v13159_v45 = vsel %vm1756_vm4, %v1775_v41, %v1776_v42  ;;  %v1700_v63 = vld [vmem:[#allocation2 + $0x120] sm:$0xff] }
 0x1e3   :  { %9416 = vmatmul.mubr.msk.f32.vlgmr.msra.gmra.mrb[0].mxu0 %vm206_vm0, %v13064_v18  ;;  %11264 = verf.f32 %v1516_v36  ;;  %v1784_v35 = vrot.slane %v1697_v14, 7  ;;  %v13169_v39 = vsel %vm1756_vm4, %v1778_v2, %v1779_v50  ;;  %v1788_v41 = vrot.slane %v12850_v23, 7 }
 0x1e4   :  { %10298 = vmatpush3.bf16.msra.mxu0 %v12983_v47  ;;  %9418 = vmatprep.mubr.msk.f32.mxu0 %vm206_vm0, %v13112_v48  ;;  %v1694_v47 = vld [vmem:[#allocation2 + $0xf0] sm:$0xff]  ;;  %v1211_v62 = vadd.f32 %v1163_v27, %v1111_v37  ;;  %v1468_v27 = vadd.f32 %v12753_v1, %v1429_v53  ;;  %v1517_v54 = vmul.f32 0.70710677, %v1453_v25  ;;  %v1790_v37 = vrot.slane %v11604_v15, 7 }
 0x1e5   :  { %10300 = vmatprep.subr.bf16.mxu0 %v10299_v22  ;;  %v1781_v17 = vrot.slane %v1694_v47, 7  ;;  %v1794_v47 = vrot.slane %v12954_v4, 7  ;;  %v1796_v53 = vrot.slane %v12805_v28, 7  ;;  %v1797_v2 = vrot.slane %v12987_v6, 7 }
 0x1e6   :  { %v1391_v61 = vadd.f32 %v1327_v30, %v1211_v62  ;;  %v1532_v5 = vmul.f32 0.70710677, %v1468_v27  ;;  %11266 = verf.f32 %v1517_v54  ;;  %v1793_v30 = vrot.slane %v12757_v33, 7 }
 0x1e7   :  { %9419 = vmatmul.mubr.msk.f32.gmra.mrb[2].mxu0 %vm206_vm0, %v13122_v46  ;;  %v1783_v51 = vsel %vm1756_vm4, %v1781_v17, %v1782_v55  ;;  %v1485_v50 = vmul.f32 0.5, %v1453_v25  ;;  %v1799_v55 = vrot.slane %v12859_v49, 7  ;;  %v1800_v17 = vrot.slane %v13019_v13, 7 }
 0x1e8   :  { %9421 = vmatprep.mubr.msk.f32.mxu0 %vm206_vm0, %v13128_v29  ;;  %10302 = vmatpush3.bf16.msra.mxu0 %v10299_v22  ;;  %v1430_v12 = vmul.f32 %v12746_v60, %v1391_v61  ;;  %v1785_v22 = vrot.slane %v12802_v20, 7  ;;  %11268 = verf.f32 %v1532_v5  ;;  %v1787_v60 = vrot.slane %v1700_v63, 7  ;;  %v1666_v63 = vld [vmem:[#allocation2 + $0x10] sm:$0xff] }
 0x1e9   :  { %10304 = vmatprep.subr.bf16.mxu0 %v13140_v34  ;;  %v13196_v33 = vsel %vm1756_vm4, %v1793_v30, %v1794_v47  ;;  %v1500_v54 = vmul.f32 0.5, %v1468_v27  ;;  %v2185_v5 = vrot.slane %v13027_v44, 1  ;;  %v1802_v49 = vrot.slane %v12920_v52, 7  ;;  %v1669_v44 = vld [vmem:[#allocation2 + $0x28] sm:$0xff] }
 0x1ea   :  { %v1469_v59 = vadd.f32 %v12753_v1, %v1430_v12  ;;  %v13177_v42 = vsel %vm1756_vm4, %v1784_v35, %v1785_v22  ;;  %v1484_v1 = vmul.f32 0.5, %v1452_v3  ;;  %v13182_v36 = vsel %vm1756_vm4, %v1787_v60, %v1788_v41 }
 0x1eb   :  { %9422 = vmatmul.mubr.msk.f32.gmra.mrb[4].mxu0 %vm206_vm0, %v13151_v7  ;;  %v13192_v3 = vsel %vm1756_vm4, %v1790_v37, %v1791_v58  ;;  %v13207_v22 = vsel %vm1756_vm4, %v1796_v53, %v1797_v2  ;;  %v1803_v27 = vrot.slane %v13103_v10, 7  ;;  %v2186_v60 = vrot.slane %v1666_v63, 1  ;;  %v1672_v37 = vld [vmem:[#allocation2 + $0x40] sm:$0xff]  ;;  %v1678_v2 = vld [vmem:[#allocation2 + $0x70] sm:$0xff] }
 0x1ec   :  { %9424 = vmatprep.mubr.msk.f32.mxu0 %vm206_vm0, %v13159_v45  ;;  %v1533_v20 = vmul.f32 0.70710677, %v1469_v59  ;;  %v1501_v41 = vmul.f32 0.5, %v1469_v59  ;;  %v2188_v52 = vrot.slane %v13030_v57, 1  ;;  %v2189_v59 = vrot.slane %v1669_v44, 1 }
 0x1ed   :  { %v11265_v21 = vpop.eup %11264  ;;  %v2191_v30 = vrot.slane %v13070_v8, 1  ;;  %v2192_v47 = vrot.slane %v1672_v37, 1  ;;  %v2198_v63 = vrot.slane %v1678_v2, 1  ;;  %v1687_v37 = vld [vmem:[#allocation2 + $0xb8] sm:$0xff] }
 0x1ee   :  { %11270 = verf.f32 %v1533_v20  ;;  %v1580_v62 = vadd.f32 1.0, %v11265_v21  ;;  %v2187_v21 = vsel %vm2184_vm5, %v2185_v5, %v2186_v60  ;;  %v2200_v60 = vrot.slane %v13130_v38, 1  ;;  %v1699_v2 = vld [vmem:[#allocation2 + $0x118] sm:$0xff] }
 0x1ef   :  { %9425 = vmatmul.mubr.msk.f32.gmra.mrb[6].mxu0 %vm206_vm0, %v13169_v39 }
 0x1f0   :  { %9427 = vmatprep.mubr.msk.f32.mxu0 %vm206_vm0, %v1783_v51  ;;  %v1612_v14 = vmul.f32 %v1580_v62, %v1484_v1  ;;  %v11267_v61 = vpop.eup %11266  ;;  %v13212_v51 = vsel %vm1756_vm4, %v1799_v55, %v1800_v17  ;;  %v13222_v1 = vsel %vm1756_vm4, %v1802_v49, %v1803_v27  ;;  %v1675_v62 = vld [vmem:[#allocation2 + $0x58] sm:$0xff]  ;;  %v2194_v55 = vrot.slane %v13084_v40, 1  ;;  %v2612_v49 = vld [vmem:[#allocation7 + $0x80] sm:$0xff]  ;;  %v2613_v27 = vld [vmem:[#allocation7 + $0x88] sm:$0xff] }
 0x1f1   :  { %v1581_v12 = vadd.f32 1.0, %v11267_v61  ;;  %v13231_v61 = vsel %vm2184_vm5, %v2188_v52, %v2189_v59  ;;  %v2195_v17 = vrot.slane %v1675_v62, 1  ;;  %v1696_v52 = vld [vmem:[#allocation2 + $0x100] sm:$0xff]  ;;  %v13258_v59 = vld [vmem:[#allocation2 + $0xb0] sm:$0xff] }
 0x1f2   :  { %v11269_v28 = vpop.eup %11268  ;;  %1646 = vst.msk [vmem:[#allocation2 + $0xc1] sm:$0x80] %vm1630_vm2, %v1612_v14  ;;  %v2445_v14 = vld [vmem:[#allocation7 + $0x78] sm:$0xff] }
 0x1f3   :  { %9428 = vmatmul.mubr.msk.f32.gmra.mrb[8].mxu0 %vm206_vm0, %v13177_v42  ;;  %v1596_v25 = vadd.f32 1.0, %v11269_v28  ;;  %v1613_v35 = vmul.f32 %v1581_v12, %v1485_v50  ;;  %v2444_v50 = vld [vmem:[#allocation7 + $0x70] sm:$0xff]  ;;  %v2197_v28 = vrot.slane %v13098_v16, 1  ;;  %v1681_v12 = vld [vmem:[#allocation2 + $0x88] sm:$0xff] }
 0x1f4   :  { %9430 = vmatprep.mubr.msk.f32.mxu0 %vm206_vm0, %v13182_v36  ;;  %v10307_v5 = vpack.c.bf16 %v2445_v14, %v2444_v50  ;;  %v2201_v44 = vrot.slane %v1681_v12, 1  ;;  %v1702_v50 = vld [vmem:[#allocation2 + $0x130] sm:$0xff] }
 0x1f5   :  { %v1628_v20 = vmul.f32 %v1596_v25, %v1500_v54  ;;  %1647 = vst.msk [vmem:[#allocation2 + $0xc9] sm:$0x7f] %vm1632_vm3, %v1613_v35  ;;  %v13235_v54 = vsel %vm2184_vm5, %v2191_v30, %v2192_v47  ;;  %v1684_v25 = vld [vmem:[#allocation2 + $0xa0] sm:$0xff]  ;;  %v13244_v35 = vsel %vm2184_vm5, %v2194_v55, %v2195_v17  ;;  %v2207_v30 = vrot.slane %v1687_v37, 1  ;;  %v13267_v14 = vld [vmem:[#allocation2 + $0x110] sm:$0xff] }
 0x1f6   :  { %v2209_v47 = vrot.slane %v13155_v31, 1  ;;  %v2212_v55 = vrot.slane %v13267_v14, 1  ;;  %v2213_v31 = vrot.slane %v1699_v2, 1  ;;  %v2216_v12 = vrot.slane %v1702_v50, 1 }
 0x1f7   :  { %9431 = vmatmul.mubr.msk.f32.gmra.mrb[10].mxu0 %vm206_vm0, %v13192_v3  ;;  %1662 = vst.msk [vmem:[#allocation2 + $0x1b1] sm:$0x80] %vm1630_vm2, %v1628_v20  ;;  %v2203_v20 = vrot.slane %v13137_v32, 1  ;;  %v2224_v37 = vrot.slane %v12987_v6, 1  ;;  %v2230_v50 = vrot.slane %v13103_v10, 1 }
 0x1f8   :  { %9433 = vmatprep.mubr.msk.f32.mxu0 %vm206_vm0, %v13196_v33  ;;  %v11271_v15 = vpop.eup %11270 }
 0x1f9   :  { %v1597_v58 = vadd.f32 1.0, %v11271_v15  ;;  %v2204_v15 = vrot.slane %v1684_v25, 1  ;;  %v13281_v25 = vsel %vm2184_vm5, %v2212_v55, %v2213_v31  ;;  %v2231_v55 = vrot.slane %v12929_v9, 1 }
 0x1fb   :  { %9434 = vmatmul.mubr.msk.f32.gmra.mrb[12].mxu0 %vm206_vm0, %v13207_v22  ;;  %v1629_v53 = vmul.f32 %v1597_v58, %v1501_v41  ;;  %v13248_v41 = vsel %vm2184_vm5, %v2197_v28, %v2198_v63  ;;  %v10311_v58 = vpack.c.bf16 %v2613_v27, %v2612_v49  ;;  %v13263_v62 = vsel %vm2184_vm5, %v2203_v20, %v2204_v15  ;;  %v11607_v20 = vld [vmem:[#allocation2 + $0x160] sm:$0xff] }
 0x1fc   :  { %9436 = vmatprep.mubr.msk.f32.mxu0 %vm206_vm0, %v13212_v51  ;;  %v2215_v63 = vrot.slane %v12850_v23, 1  ;;  %v2218_v49 = vrot.slane %v12912_v26, 1  ;;  %v2222_v23 = vrot.slane %v11607_v20, 1 }
 0x1fd   :  { %1663 = vst.msk [vmem:[#allocation2 + $0x1b9] sm:$0x7f] %vm1632_vm3, %v1629_v53  ;;  %v2210_v53 = vrot.slane %v1696_v52, 1  ;;  %v11608_v52 = vld [vmem:[#allocation2 + $0x178] sm:$0xff] }
 0x1ff   :  { %9437 = vmatmul.mubr.msk.f32.gmra.mrb[14].mxu0 %vm206_vm0, %v13222_v1  ;;  %v2211_v28 = vsel %vm2184_vm5, %v2209_v47, %v2210_v53  ;;  %v2227_v47 = vrot.slane %v13019_v13, 1  ;;  %v2228_v53 = vrot.slane %v12871_v43, 1  ;;  %v13318_v43 = vsel %vm2184_vm5, %v2230_v50, %v2231_v55  ;;  %v2971_v50 = vld [vmem:[#allocation7 + $0xc8] sm:$0xff] }
 0x200   :  { %9447 = vmatprep.mubr.msk.f32.mxu0 %vm206_vm0, %v2187_v21  ;;  %v2206_v21 = vrot.slane %v13258_v59, 1 }
 0x201   :  { %v13311_v31 = vsel %vm2184_vm5, %v2227_v47, %v2228_v53  ;;  %v2793_v47 = vld [vmem:[#allocation7 + $0xb8] sm:$0xff]  ;;  %v2970_v53 = vld [vmem:[#allocation7 + $0xc0] sm:$0xff] }
 0x202   :  { %v13273_v17 = vsel %vm2184_vm5, %v2206_v21, %v2207_v30  ;;  %v2225_v21 = vrot.slane %v11608_v52, 1  ;;  %v10327_v55 = vpack.c.bf16 %v2971_v50, %v2970_v53 }
 0x203   :  { %9448 = vmatmul.mubr.msk.f32.vlgmr.msra.gmra.mrb[0].mxu0 %vm206_vm0, %v13231_v61 }
 0x204   :  { %10306 = vmatpush3.bf16.msra.mxu0 %v13140_v34  ;;  %9450 = vmatprep.mubr.msk.f32.mxu0 %vm206_vm0, %v13235_v54  ;;  %v13256_v34 = vsel %vm2184_vm5, %v2200_v60, %v2201_v44  ;;  %v13285_v60 = vsel %vm2184_vm5, %v2215_v63, %v2216_v12  ;;  %v2221_v44 = vrot.slane %v12954_v4, 1  ;;  %v13306_v2 = vsel %vm2184_vm5, %v2224_v37, %v2225_v21  ;;  %v2615_v63 = vld [vmem:[#allocation7 + $0x98] sm:$0xff]  ;;  %v2790_v12 = vld [vmem:[#allocation7 + $0xa0] sm:$0xff]  ;;  %v2792_v21 = vld [vmem:[#allocation7 + $0xb0] sm:$0xff] }
 0x205   :  { %10308 = vmatprep.subr.bf16.mxu0 %v10307_v5  ;;  %v2438_v37 = vrot.slane %v12964_v0, 7  ;;  %v10323_v0 = vpack.c.bf16 %v2793_v47, %v2792_v21  ;;  %v3318_v21 = vld [vmem:[#allocation7 + $0x100] sm:$0xff] }
 0x206   :  { %v13297_v30 = vsel %vm2184_vm5, %v2221_v44, %v2222_v23  ;;  %v13350_v23 = vld [vmem:[#allocation2 + $0x1b8] sm:$0xff] }
 0x207   :  { %9451 = vmatmul.mubr.msk.f32.gmra.mrb[2].mxu0 %vm206_vm0, %v13244_v35  ;;  %v2439_v52 = vrot.slane %v13350_v23, 7 }
 0x208   :  { %9453 = vmatprep.mubr.msk.f32.mxu0 %vm206_vm0, %v13248_v41  ;;  %10310 = vmatpush3.bf16.msra.mxu0 %v10307_v5  ;;  %v1705_v5 = vld [vmem:[#allocation2 + $0x148] sm:$0xff] }
 0x209   :  { %10312 = vmatprep.subr.bf16.mxu0 %v10311_v58  ;;  %v2219_v27 = vrot.slane %v1705_v5, 1  ;;  %v2791_v5 = vld [vmem:[#allocation7 + $0xa8] sm:$0xff] }
 0x20a   :  { %v10319_v44 = vpack.c.bf16 %v2791_v5, %v2790_v12 }
 0x20b   :  { %9454 = vmatmul.mubr.msk.f32.gmra.mrb[4].mxu0 %vm206_vm0, %v13256_v34  ;;  %v13293_v15 = vsel %vm2184_vm5, %v2218_v49, %v2219_v27  ;;  %v1688_v49 = vld [vmem:[#allocation2 + $0xc0] sm:$0xff]  ;;  %v13328_v27 = vld [vmem:[#allocation2 + $0xc8] sm:$0xff] }
 0x20c   :  { %9456 = vmatprep.mubr.msk.f32.mxu0 %vm206_vm0, %v13263_v62  ;;  %v2436_v20 = vrot.slane %v13328_v27, 7 }
 0x20f   :  { %9457 = vmatmul.mubr.msk.f32.gmra.mrb[6].mxu0 %vm206_vm0, %v13273_v17 }
 0x210   :  { %9459 = vmatprep.mubr.msk.f32.mxu0 %vm206_vm0, %v2211_v28  ;;  %v2614_v28 = vld [vmem:[#allocation7 + $0x90] sm:$0xff] }
 0x211   :  { %v10315_v9 = vpack.c.bf16 %v2615_v63, %v2614_v28  ;;  %v2973_v28 = vld [vmem:[#allocation7 + $0xd8] sm:$0xff]  ;;  %v3140_v63 = vld [vmem:[#allocation7 + $0xe0] sm:$0xff] }
 0x213   :  { %9460 = vmatmul.mubr.msk.f32.gmra.mrb[8].mxu0 %vm206_vm0, %v13281_v25 }
 0x214   :  { %9462 = vmatprep.mubr.msk.f32.mxu0 %vm206_vm0, %v13285_v60 }
 0x217   :  { %9463 = vmatmul.mubr.msk.f32.gmra.mrb[10].mxu0 %vm206_vm0, %v13293_v15 }
 0x218   :  { %9465 = vmatprep.mubr.msk.f32.mxu0 %vm206_vm0, %v13297_v30 }
 0x21b   :  { %9466 = vmatmul.mubr.msk.f32.gmra.mrb[12].mxu0 %vm206_vm0, %v13306_v2 }
 0x21c   :  { %9468 = vmatprep.mubr.msk.f32.mxu0 %vm206_vm0, %v13311_v31 }
 0x21f   :  { %9469 = vmatmul.mubr.msk.f32.gmra.mrb[14].mxu0 %vm206_vm0, %v13318_v43 }
 0x220   :  { %9479 = vmatprep.mubr.msk.f32.mxu0 %vm206_vm0, %v13064_v18  ;;  %v2435_v18 = vrot.slane %v1688_v49, 7 }
 0x223   :  { %9480 = vmatmul.mubr.msk.f32.vlgmr.msra.gmra.mrb[0].mxu0 %vm206_vm0, %v13112_v48 }
 0x224   :  { %10314 = vmatpush3.bf16.msra.mxu0 %v10311_v58  ;;  %9482 = vmatprep.mubr.msk.f32.mxu0 %vm206_vm0, %v13122_v46  ;;  %v13340_v58 = vsel %vm1756_vm4, %v2435_v18, %v2436_v20  ;;  %v2787_v18 = vrot.slane %v12968_v19, 1  ;;  %v3142_v20 = vld [vmem:[#allocation7 + $0xf0] sm:$0xff]  ;;  %v3319_v19 = vld [vmem:[#allocation7 + $0x108] sm:$0xff] }
 0x225   :  { %10316 = vmatprep.subr.bf16.mxu0 %v10315_v9  ;;  %v10343_v47 = vpack.c.bf16 %v3319_v19, %v3318_v21 }
 0x227   :  { %9483 = vmatmul.mubr.msk.f32.gmra.mrb[2].mxu0 %vm206_vm0, %v13128_v29 }
 0x228   :  { %9485 = vmatprep.mubr.msk.f32.mxu0 %vm206_vm0, %v13151_v7  ;;  %10318 = vmatpush3.bf16.msra.mxu0 %v10315_v9  ;;  %v1690_v9 = vld [vmem:[#allocation2 + $0xd0] sm:$0xff] }
 0x229   :  { %10320 = vmatprep.subr.bf16.mxu0 %v10319_v44  ;;  %v2784_v5 = vrot.slane %v1690_v9, 1 }
 0x22b   :  { %9486 = vmatmul.mubr.msk.f32.gmra.mrb[4].mxu0 %vm206_vm0, %v13159_v45 }
 0x22c   :  { %9488 = vmatprep.mubr.msk.f32.mxu0 %vm206_vm0, %v13169_v39 }
 0x22f   :  { %9489 = vmatmul.mubr.msk.f32.gmra.mrb[6].mxu0 %vm206_vm0, %v13340_v58 }
 0x230   :  { %9491 = vmatprep.mubr.msk.f32.mxu0 %vm206_vm0, %v13177_v42  ;;  %v13363_v42 = vsel %vm1756_vm4, %v2438_v37, %v2439_v52  ;;  %v3143_v37 = vld [vmem:[#allocation7 + $0xf8] sm:$0xff] }
 0x231   :  { %v10339_v52 = vpack.c.bf16 %v3143_v37, %v3142_v20  ;;  %v15338_v37 = vld [vmem:[#allocation31_spill] sm:$0xff] }
 0x233   :  { %9492 = vmatmul.mubr.msk.f32.gmra.mrb[8].mxu0 %vm206_vm0, %v13182_v36 }
 0x234   :  { %9494 = vmatprep.mubr.msk.f32.mxu0 %vm206_vm0, %v13192_v3 }
 0x237   :  { %9495 = vmatmul.mubr.msk.f32.gmra.mrb[10].mxu0 %vm206_vm0, %v13196_v33 }
 0x238   :  { %9497 = vmatprep.mubr.msk.f32.mxu0 %vm206_vm0, %v13207_v22 }
 0x23b   :  { %9498 = vmatmul.mubr.msk.f32.gmra.mrb[12].mxu0 %vm206_vm0, %v13212_v51 }
 0x23c   :  { %9500 = vmatprep.mubr.msk.f32.mxu0 %vm206_vm0, %v13222_v1 }
 0x23f   :  { %9501 = vmatmul.mubr.msk.f32.gmra.mrb[14].mxu0 %vm206_vm0, %v13363_v42 }
 0x240   :  { %9511 = vmatprep.mubr.msk.f32.mxu0 %vm206_vm0, %v13030_v57  ;;  %v13385_v57 = vld [vmem:[#allocation2 + $0x128] sm:$0xff] }
 0x243   :  { %9512 = vmatmul.mubr.msk.f32.vlgmr.msra.gmra.mrb[0].mxu0 %vm206_vm0, %v13070_v8 }
 0x244   :  { %10322 = vmatpush3.bf16.msra.mxu0 %v10319_v44  ;;  %9514 = vmatprep.mubr.msk.f32.mxu0 %vm206_vm0, %v13084_v40  ;;  %v2786_v44 = vrot.slane %v13350_v23, 1 }
 0x245   :  { %10324 = vmatprep.subr.bf16.mxu0 %v10323_v0 }
 0x247   :  { %9515 = vmatmul.mubr.msk.f32.gmra.mrb[2].mxu0 %vm206_vm0, %v13098_v16 }
 0x248   :  { %9517 = vmatprep.mubr.msk.f32.mxu0 %vm206_vm0, %v13130_v38  ;;  %10326 = vmatpush3.bf16.msra.mxu0 %v10323_v0  ;;  %v2964_v0 = vrot.slane %v13058_v11, 7 }
 0x249   :  { %10328 = vmatprep.subr.bf16.mxu0 %v10327_v55 }
 0x24b   :  { %9518 = vmatmul.mubr.msk.f32.gmra.mrb[4].mxu0 %vm206_vm0, %v13137_v32 }
 0x24c   :  { %9520 = vmatprep.mubr.msk.f32.mxu0 %vm206_vm0, %v13258_v59 }
 0x24f   :  { %9521 = vmatmul.mubr.msk.f32.gmra.mrb[6].mxu0 %vm206_vm0, %v13328_v27 }
 0x250   :  { %9523 = vmatprep.mubr.msk.f32.mxu0 %vm206_vm0, %v13267_v14  ;;  %v2972_v14 = vld [vmem:[#allocation7 + $0xd0] sm:$0xff] }
 0x253   :  { %9524 = vmatmul.mubr.msk.f32.gmra.mrb[8].mxu0 %vm206_vm0, %v13385_v57 }
 0x254   :  { %9526 = vmatprep.mubr.msk.f32.mxu0 %vm206_vm0, %v12912_v26  ;;  %v10331_v26 = vpack.c.bf16 %v2973_v28, %v2972_v14 }
 0x257   :  { %9527 = vmatmul.mubr.msk.f32.gmra.mrb[10].mxu0 %vm206_vm0, %v12954_v4  ;;  %v3141_v4 = vld [vmem:[#allocation7 + $0xe8] sm:$0xff] }
 0x258   :  { %9529 = vmatprep.mubr.msk.f32.mxu0 %vm206_vm0, %v12987_v6  ;;  %v10335_v12 = vpack.c.bf16 %v3141_v4, %v3140_v63 }
 0x25b   :  { %9530 = vmatmul.mubr.msk.f32.gmra.mrb[12].mxu0 %vm206_vm0, %v13019_v13 }
 0x25c   :  { %9532 = vmatprep.mubr.msk.f32.mxu0 %vm206_vm0, %v13103_v10 }
 0x25f   :  { %9533 = vmatmul.mubr.msk.f32.gmra.mrb[14].mxu0 %vm206_vm0, %v13350_v23 }
 0x260   :  { %9543 = vmatprep.mubr.msk.f32.mxu0 %vm206_vm0, %v13231_v61  ;;  %v2783_v61 = vrot.slane %v13328_v27, 1 }
 0x262   :  { %v13417_v49 = vsel %vm2184_vm5, %v2783_v61, %v2784_v5 }
 0x263   :  { %9544 = vmatmul.mubr.msk.f32.vlgmr.msra.gmra.mrb[0].mxu0 %vm206_vm0, %v13235_v54 }
 0x264   :  { %10330 = vmatpush3.bf16.msra.mxu0 %v10327_v55  ;;  %9546 = vmatprep.mubr.msk.f32.mxu0 %vm206_vm0, %v13244_v35 }
 0x265   :  { %10332 = vmatprep.subr.bf16.mxu0 %v10331_v26 }
 0x267   :  { %9547 = vmatmul.mubr.msk.f32.gmra.mrb[2].mxu0 %vm206_vm0, %v13248_v41 }
 0x268   :  { %9549 = vmatprep.mubr.msk.f32.mxu0 %vm206_vm0, %v13256_v34  ;;  %10334 = vmatpush3.bf16.msra.mxu0 %v10331_v26  ;;  %v15336_v26 = vld [vmem:[#allocation29_spill] sm:$0xff] }
 0x269   :  { %10336 = vmatprep.subr.bf16.mxu0 %v10335_v12 }
 0x26b   :  { %9550 = vmatmul.mubr.msk.f32.gmra.mrb[4].mxu0 %vm206_vm0, %v13263_v62 }
 0x26c   :  { %9552 = vmatprep.mubr.msk.f32.mxu0 %vm206_vm0, %v13273_v17 }
 0x26f   :  { %9553 = vmatmul.mubr.msk.f32.gmra.mrb[6].mxu0 %vm206_vm0, %v13417_v49 }
 0x270   :  { %9555 = vmatprep.mubr.msk.f32.mxu0 %vm206_vm0, %v13281_v25  ;;  %v13438_v25 = vsel %vm2184_vm5, %v2786_v44, %v2787_v18 }
 0x273   :  { %9556 = vmatmul.mubr.msk.f32.gmra.mrb[8].mxu0 %vm206_vm0, %v13285_v60 }
 0x274   :  { %9558 = vmatprep.mubr.msk.f32.mxu0 %vm206_vm0, %v13293_v15 }
 0x277   :  { %9559 = vmatmul.mubr.msk.f32.gmra.mrb[10].mxu0 %vm206_vm0, %v13297_v30 }
 0x278   :  { %9561 = vmatprep.mubr.msk.f32.mxu0 %vm206_vm0, %v13306_v2 }
 0x27b   :  { %9562 = vmatmul.mubr.msk.f32.gmra.mrb[12].mxu0 %vm206_vm0, %v13311_v31 }
 0x27c   :  { %9564 = vmatprep.mubr.msk.f32.mxu0 %vm206_vm0, %v13318_v43 }
 0x27f   :  { %9565 = vmatmul.mubr.msk.f32.gmra.mrb[14].mxu0 %vm206_vm0, %v13438_v25 }
 0x280   :  { %9575 = vmatprep.mubr.msk.f32.mxu0 %vm206_vm0, %v13112_v48  ;;  %v2963_v48 = vrot.slane %v13048_v24, 7  ;;  %v15331_v24 = vld [vmem:[#allocation43_spill] sm:$0xff] }
 0x283   :  { %9576 = vmatmul.mubr.msk.f32.vlgmr.msra.gmra.mrb[0].mxu0 %vm206_vm0, %v13122_v46  ;;  %v2965_v46 = vsel %vm1756_vm4, %v2963_v48, %v2964_v0 }
 0x284   :  { %10338 = vmatpush3.bf16.msra.mxu0 %v10335_v12  ;;  %9578 = vmatprep.mubr.msk.f32.mxu0 %vm206_vm0, %v13128_v29  ;;  %v2966_v29 = vrot.slane %v15331_v24, 7  ;;  %v15337_v12 = vld [vmem:[#allocation28_spill] sm:$0xff] }
 0x285   :  { %10340 = vmatprep.subr.bf16.mxu0 %v10339_v52 }
 0x287   :  { %9579 = vmatmul.mubr.msk.f32.gmra.mrb[2].mxu0 %vm206_vm0, %v13151_v7  ;;  %v2967_v7 = vrot.slane %v13088_v56, 7 }
 0x288   :  { %9581 = vmatprep.mubr.msk.f32.mxu0 %vm206_vm0, %v13159_v45  ;;  %10342 = vmatpush3.bf16.msra.mxu0 %v10339_v52 }
 0x289   :  { %10344 = vmatprep.subr.bf16.mxu0 %v10343_v47  ;;  %v2968_v45 = vsel %vm1756_vm4, %v2966_v29, %v2967_v7 }
 0x28b   :  { %9582 = vmatmul.mubr.msk.f32.gmra.mrb[4].mxu0 %vm206_vm0, %v13169_v39  ;;  %v3320_v39 = vld [vmem:[#allocation7 + $0x110] sm:$0xff] }
 0x28c   :  { %9584 = vmatprep.mubr.msk.f32.mxu0 %vm206_vm0, %v13340_v58 }
 0x28f   :  { %9585 = vmatmul.mubr.msk.f32.gmra.mrb[6].mxu0 %vm206_vm0, %v2965_v46 }
 0x290   :  { %9587 = vmatprep.mubr.msk.f32.mxu0 %vm206_vm0, %v13182_v36  ;;  %v3321_v36 = vld [vmem:[#allocation7 + $0x118] sm:$0xff] }
 0x293   :  { %9588 = vmatmul.mubr.msk.f32.gmra.mrb[8].mxu0 %vm206_vm0, %v13192_v3  ;;  %v10347_v3 = vpack.c.bf16 %v3321_v36, %v3320_v39  ;;  %v15340_v39 = vld [vmem:[#allocation33_spill] sm:$0xff] }
 0x294   :  { %9590 = vmatprep.mubr.msk.f32.mxu0 %vm206_vm0, %v13196_v33 }
 0x297   :  { %9591 = vmatmul.mubr.msk.f32.gmra.mrb[10].mxu0 %vm206_vm0, %v13207_v22  ;;  %v3653_v22 = vld [vmem:[%s15260_s8] sm:$0xff] }
 0x298   :  { %9593 = vmatprep.mubr.msk.f32.mxu0 %vm206_vm0, %v13212_v51 }
 0x29b   :  { %9594 = vmatmul.mubr.msk.f32.gmra.mrb[12].mxu0 %vm206_vm0, %v13222_v1  ;;  %v3655_v1 = vld [vmem:[%s15260_s8 + $0x10] sm:$0xff] }
 0x29c   :  { %9596 = vmatprep.mubr.msk.f32.mxu0 %vm206_vm0, %v13363_v42 }
 0x29f   :  { %9597 = vmatmul.mubr.msk.f32.gmra.mrb[14].mxu0 %vm206_vm0, %v2968_v45 }
 0x2a0   :  { %9607 = vmatprep.mubr.msk.f32.mxu0 %vm206_vm0, %v13070_v8  ;;  %v11610_v8 = vld [vmem:[#allocation2 + $0x140] sm:$0xff] }
 0x2a3   :  { %9608 = vmatmul.mubr.msk.f32.vlgmr.msra.gmra.mrb[0].mxu0 %vm206_vm0, %v13084_v40  ;;  %v11611_v40 = vld [vmem:[#allocation2 + $0x158] sm:$0xff] }
 0x2a4   :  { %10346 = vmatpush3.bf16.msra.mxu0 %v10343_v47  ;;  %9610 = vmatprep.mubr.msk.f32.mxu0 %vm206_vm0, %v13098_v16  ;;  %v15339_v47 = vld [vmem:[#allocation30_spill] sm:$0xff] }
 0x2a5   :  { %10348 = vmatprep.subr.bf16.mxu0 %v10347_v3 }
 0x2a7   :  { %9611 = vmatmul.mubr.msk.f32.gmra.mrb[2].mxu0 %vm206_vm0, %v13130_v38  ;;  %v15333_v38 = vld [vmem:[#allocation44_spill] sm:$0xff] }
 0x2a8   :  { %9613 = vmatprep.mubr.msk.f32.mxu0 %vm206_vm0, %v13137_v32  ;;  %10350 = vmatpush3.bf16.msra.mxu0 %v10347_v3  ;;  %v3315_v32 = vrot.slane %v15333_v38, 1 }
 0x2ab   :  { %9614 = vmatmul.mubr.msk.f32.gmra.mrb[4].mxu0 %vm206_vm0, %v13258_v59  ;;  %v13558_v59 = vld [vmem:[#allocation10] ss:$0 sm:$0xff] }
 0x2ac   :  { %9616 = vmatprep.mubr.msk.f32.mxu0 %vm206_vm0, %v13328_v27 }
 0x2af   :  { %9617 = vmatmul.mubr.msk.f32.gmra.mrb[6].mxu0 %vm206_vm0, %v13058_v11 }
 0x2b0   :  { %9619 = vmatprep.mubr.msk.f32.mxu0 %vm206_vm0, %v13385_v57 }
 0x2b3   :  { %9620 = vmatmul.mubr.msk.f32.gmra.mrb[8].mxu0 %vm206_vm0, %v11610_v8 }
 0x2b4   :  { %9622 = vmatprep.mubr.msk.f32.mxu0 %vm206_vm0, %v11611_v40  ;;  %v15341_v40 = vld [vmem:[#allocation32_spill] sm:$0xff] }
 0x2b7   :  { %9623 = vmatmul.mubr.msk.f32.gmra.mrb[10].mxu0 %vm206_vm0, %v12987_v6  ;;  %v3311_v6 = vrot.slane %v13058_v11, 1  ;;  %v3314_v11 = vrot.slane %v13088_v56, 1 }
 0x2b8   :  { %9625 = vmatprep.mubr.msk.f32.mxu0 %vm206_vm0, %v13019_v13  ;;  %v15332_v13 = vld [vmem:[#allocation42_spill] sm:$0xff] }
 0x2b9   :  { %v3312_v16 = vrot.slane %v15332_v13, 1  ;;  %v3316_v33 = vsel %vm2184_vm5, %v3314_v11, %v3315_v32 }
 0x2bb   :  { %9626 = vmatmul.mubr.msk.f32.gmra.mrb[12].mxu0 %vm206_vm0, %v13103_v10  ;;  %v3313_v10 = vsel %vm2184_vm5, %v3311_v6, %v3312_v16 }
 0x2bc   :  { %9628 = vmatprep.mubr.msk.f32.mxu0 %vm206_vm0, %v13350_v23  ;;  %v15335_v23 = vld [vmem:[#allocation26_spill] sm:$0xff] }
 0x2bf   :  { %9629 = vmatmul.mubr.msk.f32.gmra.mrb[14].mxu0 %vm206_vm0, %v13088_v56  ;;  %v3654_v56 = vld [vmem:[%s15260_s8 + $0x8] sm:$0xff] }
 0x2c0   :  { %9639 = vmatprep.mubr.msk.f32.mxu0 %vm206_vm0, %v13235_v54  ;;  %v10351_v51 = vpack.c.bf16 %v3654_v56, %v3653_v22  ;;  %v3656_v54 = vld [vmem:[%s15260_s8 + $0x18] sm:$0xff]  ;;  %s11887_s8 = smov 48  }
 0x2c1   :  { %v15342_v56 = vld [vmem:[#allocation35_spill] sm:$0xff] }
 0x2c2   :  { %10352 = vmatprep.subr.bf16.mxu1 %v10351_v51 }
 0x2c3   :  { %9640 = vmatmul.mubr.msk.f32.vlgmr.msra.gmra.mrb[0].mxu0 %vm206_vm0, %v13244_v35  ;;  %10354 = vmatpush3.bf16.msra.mxu1 %v10351_v51  ;;  %v10355_v35 = vpack.c.bf16 %v3656_v54, %v3655_v1 }
 0x2c4   :  { %9642 = vmatprep.mubr.msk.f32.mxu0 %vm206_vm0, %v13248_v41  ;;  %v13556_v41 = vld [vmem:[#allocation8] ss:$0 sm:$0xff] }
 0x2c5   :  { %10356 = vmatprep.subr.bf16.mxu1 %v10355_v35 }
 0x2c7   :  { %9643 = vmatmul.mubr.msk.f32.gmra.mrb[2].mxu0 %vm206_vm0, %v13256_v34  ;;  %10358 = vmatpush3.bf16.msra.mxu1 %v10355_v35 }
 0x2c8   :  { %9645 = vmatprep.mubr.msk.f32.mxu0 %vm206_vm0, %v13263_v62 }
 0x2cb   :  { %9646 = vmatmul.mubr.msk.f32.gmra.mrb[4].mxu0 %vm206_vm0, %v13273_v17 }
 0x2cc   :  { %9648 = vmatprep.mubr.msk.f32.mxu0 %vm206_vm0, %v13417_v49 }
 0x2cf   :  { %9649 = vmatmul.mubr.msk.f32.gmra.mrb[6].mxu0 %vm206_vm0, %v3313_v10 }
 0x2d0   :  { %9651 = vmatprep.mubr.msk.f32.mxu0 %vm206_vm0, %v13285_v60 }
 0x2d3   :  { %9652 = vmatmul.mubr.msk.f32.gmra.mrb[8].mxu0 %vm206_vm0, %v13293_v15 }
 0x2d4   :  { %9654 = vmatprep.mubr.msk.f32.mxu0 %vm206_vm0, %v13297_v30 }
 0x2d7   :  { %9655 = vmatmul.mubr.msk.f32.gmra.mrb[10].mxu0 %vm206_vm0, %v13306_v2 }
 0x2d8   :  { %9657 = vmatprep.mubr.msk.f32.mxu0 %vm206_vm0, %v13311_v31  ;;  %v15334_v31 = vld [vmem:[#allocation27_spill] sm:$0xff] }
 0x2db   :  { %9658 = vmatmul.mubr.msk.f32.gmra.mrb[12].mxu0 %vm206_vm0, %v13318_v43 }
 0x2dc   :  { %9660 = vmatprep.mubr.msk.f32.mxu0 %vm206_vm0, %v13438_v25 }
 0x2df   :  { %9661 = vmatmul.mubr.msk.f32.gmra.mrb[14].mxu0 %vm206_vm0, %v3316_v33 }
 0x396   :  { %v9641_v34 = vpop.f32.mrb[0].mxu0 }
 0x397   :  { %v3495_v62 = vmul.f32 %v9641_v34, %v13556_v41  ;;  %v3392_v17 = vpop.f32.mrb[1].mxu0  ;;  %v15343_v34 = vld [vmem:[#allocation34_spill] sm:$0xff] }
 0x398   :  { %v3494_v60 = vmul.f32 %v13556_v41, %v3392_v17 }
 0x399   :  { %v3518_v15 = vadd.f32 %v13558_v59, %v3495_v62 }
 0x39a   :  { %v3517_v30 = vadd.f32 %v13558_v59, %v3494_v60  ;;  %v9644_v2 = vpop.f32.mrb[2].mxu0 }
 0x39b   :  { %v3534_v43 = vadd.f32 %v3518_v15, %v15334_v31  ;;  %v3497_v27 = vmul.f32 %v9644_v2, %v13556_v41  ;;  %v3402_v58 = vpop.f32.mrb[3].mxu0 }
 0x39c   :  { %v3533_v42 = vadd.f32 %v3517_v30, %v15335_v23  ;;  %v3496_v53 = vmul.f32 %v13556_v41, %v3402_v58 }
 0x39d   :  { %v3566_v50 = vmul.f32 0.70710677, %v3534_v43  ;;  %v3520_v55 = vadd.f32 %v13558_v59, %v3497_v27  ;;  %v3550_v30 = vmul.f32 0.5, %v3534_v43 }
 0x39e   :  { %v3565_v57 = vmul.f32 0.70710677, %v3533_v42  ;;  %v3519_v14 = vadd.f32 %v13558_v59, %v3496_v53  ;;  %v9647_v28 = vpop.f32.mrb[4].mxu0  ;;  %v3549_v60 = vmul.f32 0.5, %v3533_v42 }
 0x39f   :  { %11272 = verf.f32 %v3566_v50  ;;  %v3536_v63 = vadd.f32 %v3520_v55, %v15336_v26  ;;  %v3499_v4 = vmul.f32 %v9647_v28, %v13556_v41  ;;  %v3412_v9 = vpop.f32.mrb[5].mxu0  ;;  %v15344_v28 = vld [vmem:[#allocation37_spill] sm:$0xff] }
 0x3a0   :  { %11274 = verf.f32 %v3565_v57  ;;  %v3535_v61 = vadd.f32 %v3519_v14, %v15337_v12  ;;  %v3498_v5 = vmul.f32 %v13556_v41, %v3412_v9  ;;  %v15345_v9 = vld [vmem:[#allocation36_spill] sm:$0xff] }
 0x3a1   :  { %v3568_v49 = vmul.f32 0.70710677, %v3536_v63  ;;  %v3522_v44 = vadd.f32 %v13558_v59, %v3499_v4  ;;  %v3552_v23 = vmul.f32 0.5, %v3536_v63 }
 0x3a2   :  { %v3567_v18 = vmul.f32 0.70710677, %v3535_v61  ;;  %v3521_v25 = vadd.f32 %v13558_v59, %v3498_v5  ;;  %v9650_v20 = vpop.f32.mrb[6].mxu0  ;;  %v3551_v4 = vmul.f32 0.5, %v3535_v61  ;;  %v13620_v5 = vld [vmem:[%s15259_s7] sm:$0xff] }
 0x3a3   :  { %11276 = verf.f32 %v3568_v49  ;;  %v13577_v52 = vadd.f32 %v3522_v44, %v15338_v37  ;;  %v3501_v21 = vmul.f32 %v9650_v20, %v13556_v41  ;;  %v3422_v19 = vpop.f32.mrb[7].mxu0 }
 0x3a4   :  { %11278 = verf.f32 %v3567_v18  ;;  %v3537_v48 = vadd.f32 %v3521_v25, %v15339_v47  ;;  %v3500_v0 = vmul.f32 %v13556_v41, %v3422_v19 }
 0x3a5   :  { %v3570_v46 = vmul.f32 0.70710677, %v13577_v52  ;;  %v3524_v24 = vadd.f32 %v13558_v59, %v3501_v21 }
 0x3a6   :  { %v3569_v29 = vmul.f32 0.70710677, %v3537_v48  ;;  %v3523_v7 = vadd.f32 %v13558_v59, %v3500_v0  ;;  %v9653_v45 = vpop.f32.mrb[8].mxu0  ;;  %v3553_v21 = vmul.f32 0.5, %v3537_v48  ;;  %v15347_v48 = vld [vmem:[#allocation38_spill] sm:$0xff] }
 0x3a7   :  { %11280 = verf.f32 %v3570_v46  ;;  %v13586_v36 = vadd.f32 %v3524_v24, %v15340_v39  ;;  %v3503_v3 = vmul.f32 %v9653_v45, %v13556_v41  ;;  %v3432_v8 = vpop.f32.mrb[9].mxu0  ;;  %v13629_v46 = vld [vmem:[%s15259_s7 + $0x8] sm:$0xff] }
 0x3a8   :  { %11282 = verf.f32 %v3569_v29  ;;  %v13590_v6 = vadd.f32 %v3523_v7, %v15341_v40  ;;  %v3502_v13 = vmul.f32 %v13556_v41, %v3432_v8  ;;  %v15346_v29 = vld [vmem:[#allocation39_spill] sm:$0xff] }
 0x3a9   :  { %v11273_v16 = vpop.eup %11272  ;;  %v3572_v10 = vmul.f32 0.70710677, %v13586_v36  ;;  %v3526_v11 = vadd.f32 %v13558_v59, %v3503_v3 }
 0x3aa   :  { %v11275_v38 = vpop.eup %11274  ;;  %v3571_v32 = vmul.f32 0.70710677, %v13590_v6  ;;  %v3525_v33 = vadd.f32 %v13558_v59, %v3502_v13  ;;  %v9656_v22 = vpop.f32.mrb[10].mxu0  ;;  %v3598_v2 = vadd.f32 1.0, %v11273_v16  ;;  %v13642_v13 = vld [vmem:[%s15259_s7 + $0x10] sm:$0xff] }
 0x3ab   :  { %11284 = verf.f32 %v3572_v10  ;;  %v13598_v51 = vadd.f32 %v3526_v11, %v15342_v56  ;;  %v3505_v1 = vmul.f32 %v9656_v22, %v13556_v41  ;;  %v3442_v54 = vpop.f32.mrb[11].mxu0  ;;  %v3597_v35 = vadd.f32 1.0, %v11275_v38 }
 0x3ac   :  { %11286 = verf.f32 %v3571_v32  ;;  %v13602_v62 = vadd.f32 %v3525_v33, %v15343_v34  ;;  %v3504_v17 = vmul.f32 %v13556_v41, %v3442_v54  ;;  %v3614_v44 = vmul.f32 %v3598_v2, %v3550_v30  ;;  %v13659_v34 = vld [vmem:[%s15259_s7 + $0x20] sm:$0xff]  ;;  %v15348_v30 = vld [vmem:[#allocation41_spill] sm:$0xff] }
 0x3ad   :  { %v11277_v15 = vpop.eup %11276  ;;  %v3574_v31 = vmul.f32 0.70710677, %v13598_v51  ;;  %v3528_v27 = vadd.f32 %v13558_v59, %v3505_v1  ;;  %v3613_v57 = vmul.f32 %v3597_v35, %v3549_v60  ;;  %v3554_v22 = vmul.f32 0.5, %v13577_v52  ;;  %v13654_v35 = vld [vmem:[%s15259_s7 + $0x18] sm:$0xff] }
 0x3ae   :  { %v11279_v58 = vpop.eup %11278  ;;  %v3573_v53 = vmul.f32 0.70710677, %v13602_v62  ;;  %v3527_v50 = vadd.f32 %v13558_v59, %v3504_v17  ;;  %v9659_v55 = vpop.f32.mrb[12].mxu0  ;;  %v3600_v18 = vadd.f32 1.0, %v11277_v15  ;;  %v3638_v32 = vadd.f32 %v13629_v46, %v3614_v44 }
 0x3af   :  { %v3599_v14 = vadd.f32 1.0, %v11279_v58  ;;  %11288 = verf.f32 %v3574_v31  ;;  %v13610_v26 = vadd.f32 %v3528_v27, %v15344_v28  ;;  %v3507_v43 = vmul.f32 %v9659_v55, %v13556_v41  ;;  %v3452_v42 = vpop.f32.mrb[13].mxu0 }
 0x3b0   :  { %11290 = verf.f32 %v3573_v53  ;;  %v13614_v12 = vadd.f32 %v3527_v50, %v15345_v9  ;;  %v3506_v63 = vmul.f32 %v13556_v41, %v3452_v42  ;;  %v3637_v45 = vadd.f32 %v13620_v5, %v3613_v57 }
 0x3b1   :  { %v11281_v49 = vpop.eup %11280  ;;  %v3576_v25 = vmul.f32 0.70710677, %v13610_v26  ;;  %v3530_v20 = vadd.f32 %v13558_v59, %v3507_v43  ;;  %v3615_v61 = vmul.f32 %v3599_v14, %v3551_v4  ;;  %v3616_v10 = vmul.f32 %v3600_v18, %v3552_v23  ;;  %v3634_v14 = vld [vmem:[%s15259_s7 + $0x28] sm:$0xff] }
 0x3b2   :  { %v11283_v37 = vpop.eup %11282  ;;  %v3575_v19 = vmul.f32 0.70710677, %v13614_v12  ;;  %v3529_v47 = vadd.f32 %v13558_v59, %v3506_v63  ;;  %v9662_v0 = vpop.f32.mrb[14].mxu0  ;;  %v3602_v3 = vadd.f32 1.0, %v11281_v49  ;;  %9671 = vmatprep.mubr.msk.f32.mxu1 %vm206_vm0, %v3637_v45  ;;  %v3555_v56 = vmul.f32 0.5, %v13590_v6  ;;  %v15349_v43 = vld [vmem:[#allocation40_spill] sm:$0xff] }
 0x3b3   :  { %v3601_v24 = vadd.f32 1.0, %v11283_v37  ;;  %11292 = verf.f32 %v3576_v25  ;;  %v13632_v7 = vadd.f32 %v3530_v20, %v15346_v29  ;;  %v3462_v39 = vpop.f32.mrb[15].mxu0  ;;  %v3509_v40 = vmul.f32 %v9662_v0, %v13556_v41  ;;  %9672 = vmatmul.mubr.msk.f32.vlgmr.msra.gmra.mrb[0].mxu1 %vm206_vm0, %v3638_v32 }
 0x3b4   :  { %11294 = verf.f32 %v3575_v19  ;;  %v13636_v8 = vadd.f32 %v3529_v47, %v15347_v48  ;;  %v3508_v52 = vmul.f32 %v13556_v41, %v3462_v39  ;;  %v3639_v6 = vadd.f32 %v13642_v13, %v3615_v61  ;;  %v3635_v41 = vld [vmem:[%s15259_s7 + $0x30] sm:$0xff] }
 0x3b5   :  { %v11285_v16 = vpop.eup %11284  ;;  %v3617_v11 = vmul.f32 %v3601_v24, %v3553_v21  ;;  %v3578_v38 = vmul.f32 0.70710677, %v13632_v7  ;;  %v3532_v54 = vadd.f32 %v13558_v59, %v3509_v40  ;;  %v3618_v60 = vmul.f32 %v3602_v3, %v3554_v22 }
 0x3b6   :  { %v11287_v33 = vpop.eup %11286  ;;  %v3577_v1 = vmul.f32 0.70710677, %v13636_v8  ;;  %v3604_v15 = vadd.f32 1.0, %v11285_v16  ;;  %v3531_v58 = vadd.f32 %v13558_v59, %v3508_v52  ;;  %9674 = vmatprep.mubr.msk.f32.mxu1 %vm206_vm0, %v3639_v6  ;;  %v3640_v23 = vadd.f32 %v13654_v35, %v3616_v10 }
 0x3b7   :  { %v3603_v17 = vadd.f32 1.0, %v11287_v33  ;;  %11296 = verf.f32 %v3578_v38  ;;  %v3548_v2 = vadd.f32 %v3532_v54, %v15348_v30  ;;  %v3641_v53 = vadd.f32 %v13659_v34, %v3617_v11 }
 0x3b8   :  { %11298 = verf.f32 %v3577_v1  ;;  %v3556_v55 = vmul.f32 0.5, %v13586_v36  ;;  %v3557_v59 = vmul.f32 0.5, %v13602_v62  ;;  %v3547_v42 = vadd.f32 %v3531_v58, %v15349_v43  ;;  %9675 = vmatmul.mubr.msk.f32.gmra.mrb[2].mxu1 %vm206_vm0, %v3640_v23  ;;  %v3636_v62 = vld [vmem:[%s15259_s7 + $0x38] sm:$0xff]  ;;  %s11880_s7 = smov 96  }
 0x3b9   :  { %v11289_v31 = vpop.eup %11288  ;;  %v3619_v27 = vmul.f32 %v3603_v17, %v3555_v56  ;;  %v3580_v57 = vmul.f32 0.70710677, %v3548_v2  ;;  %9677 = vmatprep.mubr.msk.f32.mxu1 %vm206_vm0, %v3641_v53  ;;  %v3642_v18 = vadd.f32 %v3634_v14, %v3618_v60  ;;  %v3558_v20 = vmul.f32 0.5, %v13598_v51  ;;  %v8536_v17 = vld [vmem:[#allocation11] ss:$0 sm:$0xff] }
 0x3ba   :  { %v11291_v50 = vpop.eup %11290  ;;  %v3620_v4 = vmul.f32 %v3604_v15, %v3556_v55  ;;  %v3606_v49 = vadd.f32 1.0, %v11289_v31  ;;  %v3579_v44 = vmul.f32 0.70710677, %v3547_v42  ;;  %v3559_v37 = vmul.f32 0.5, %v13614_v12 }
 0x3bb   :  { %v3605_v28 = vadd.f32 1.0, %v11291_v50  ;;  %11300 = verf.f32 %v3580_v57  ;;  %v3643_v9 = vadd.f32 %v3635_v41, %v3619_v27  ;;  %v3560_v39 = vmul.f32 0.5, %v13610_v26 }
 0x3bc   :  { %11302 = verf.f32 %v3579_v44  ;;  %9678 = vmatmul.mubr.msk.f32.gmra.mrb[4].mxu1 %vm206_vm0, %v3642_v18  ;;  %v3622_v47 = vmul.f32 %v3606_v49, %v3558_v20  ;;  %v3644_v29 = vadd.f32 %v3636_v62, %v3620_v4  ;;  %v3561_v51 = vmul.f32 0.5, %v13636_v8 }
 0x3bd   :  { %v11293_v63 = vpop.eup %11292  ;;  %v3621_v36 = vmul.f32 %v3605_v28, %v3557_v59  ;;  %9680 = vmatprep.mubr.msk.f32.mxu1 %vm206_vm0, %v3643_v9  ;;  %v3562_v11 = vmul.f32 0.5, %v13632_v7  ;;  %v3564_v56 = vmul.f32 0.5, %v3548_v2 }
 0x3be   :  { %v11295_v25 = vpop.eup %11294  ;;  %v3608_v0 = vadd.f32 1.0, %v11293_v63  ;;  %v3646_v16 = vadd.f32 %v13629_v46, %v3622_v47 }
 0x3bf   :  { %v3607_v61 = vadd.f32 1.0, %v11295_v25  ;;  %v3645_v21 = vadd.f32 %v13620_v5, %v3621_v36 }
 0x3c0   :  { %9681 = vmatmul.mubr.msk.f32.gmra.mrb[6].mxu1 %vm206_vm0, %v3644_v29  ;;  %v3624_v5 = vmul.f32 %v3608_v0, %v3560_v39 }
 0x3c1   :  { %v11297_v19 = vpop.eup %11296  ;;  %v3623_v24 = vmul.f32 %v3607_v61, %v3559_v37  ;;  %9683 = vmatprep.mubr.msk.f32.mxu1 %vm206_vm0, %v3645_v21 }
 0x3c2   :  { %v11299_v45 = vpop.eup %11298  ;;  %v3610_v48 = vadd.f32 1.0, %v11297_v19  ;;  %v3648_v33 = vadd.f32 %v13654_v35, %v3624_v5 }
 0x3c3   :  { %v3609_v3 = vadd.f32 1.0, %v11299_v45  ;;  %v3647_v12 = vadd.f32 %v13642_v13, %v3623_v24  ;;  %v3563_v13 = vmul.f32 0.5, %v3547_v42 }
 0x3c4   :  { %9684 = vmatmul.mubr.msk.f32.gmra.mrb[8].mxu1 %vm206_vm0, %v3646_v16  ;;  %v3626_v38 = vmul.f32 %v3610_v48, %v3562_v11 }
 0x3c5   :  { %v3625_v40 = vmul.f32 %v3609_v3, %v3561_v51  ;;  %v11301_v10 = vpop.eup %11300  ;;  %9686 = vmatprep.mubr.msk.f32.mxu1 %vm206_vm0, %v3647_v12 }
 0x3c6   :  { %v11303_v8 = vpop.eup %11302  ;;  %v3612_v32 = vadd.f32 1.0, %v11301_v10  ;;  %v3650_v1 = vadd.f32 %v3634_v14, %v3626_v38 }
 0x3c7   :  { %v3649_v26 = vadd.f32 %v13659_v34, %v3625_v40  ;;  %v3611_v22 = vadd.f32 1.0, %v11303_v8 }
 0x3c8   :  { %9687 = vmatmul.mubr.msk.f32.gmra.mrb[10].mxu1 %vm206_vm0, %v3648_v33  ;;  %v3628_v7 = vmul.f32 %v3612_v32, %v3564_v56 }
 0x3c9   :  { %v3627_v46 = vmul.f32 %v3611_v22, %v3563_v13  ;;  %9689 = vmatprep.mubr.msk.f32.mxu1 %vm206_vm0, %v3649_v26 }
 0x3ca   :  { %v3652_v34 = vadd.f32 %v3636_v62, %v3628_v7 }
 0x3cb   :  { %v3651_v54 = vadd.f32 %v3635_v41, %v3627_v46 }
 0x3cc   :  { %9690 = vmatmul.mubr.msk.f32.gmra.mrb[12].mxu1 %vm206_vm0, %v3650_v1 }
 0x3cd   :  { %9692 = vmatprep.mubr.msk.f32.mxu1 %vm206_vm0, %v3651_v54 }
 0x3d0   :  { %9693 = vmatmul.mubr.msk.f32.gmra.mrb[14].mxu1 %vm206_vm0, %v3652_v34 }
 0x486   :  { %v9673_v35 = vpop.f32.mrb[0].mxu1 }
 0x487   :  { %v13704_v52 = vadd.f32 %v9673_v35, %v8536_v17  ;;  %v3778_v6 = vpop.f32.mrb[1].mxu1 }
 0x488   :  { %v3779_v60 = vadd.f32 %v8536_v17, %v3778_v6 }
 0x489   :  { %v13814_v6 = vmul.f32 0.35355338, %v13704_v52 }
 0x48a   :  { %v13707_v30 = vpack.i.bf16 %v13704_v52, %v3779_v60  ;;  %v13709_v2 = vmul.f32 0.35355338, %v3779_v60 }
 0x48b   :  { %v9676_v15 = vpop.f32.mrb[2].mxu1 }
 0x48c   :  { %v13711_v31 = vadd.f32 %v9676_v15, %v8536_v17  ;;  %v3788_v27 = vpop.f32.mrb[3].mxu1  ;;  %10889 = vrot.lane.b32.xlu0 %v13707_v30, %s11880_s7  ;;  %9711 = vmatprep.mubr.msk.f32.mxu1 %vm3897_vm6, %v13709_v2 }
 0x48d   :  { %v13713_v58 = vadd.f32 %v8536_v17, %v3788_v27 }
 0x48e   :  { %v13828_v52 = vmul.f32 0.35355338, %v13711_v31 }
 0x48f   :  { %v9679_v23 = vpop.f32.mrb[4].mxu1  ;;  %v13721_v53 = vpack.i.bf16 %v13711_v31, %v13713_v58  ;;  %v13817_v60 = vmul.f32 0.35355338, %v13713_v58 }
 0x490   :  { %v13723_v41 = vadd.f32 %v9679_v23, %v8536_v17  ;;  %v3798_v50 = vpop.f32.mrb[5].mxu1 }
 0x491   :  { %v13725_v55 = vadd.f32 %v8536_v17, %v3798_v50  ;;  %10894 = vrot.lane.b32.xlu0 %v13721_v53, %s11880_s7 }
 0x493   :  { %v9682_v57 = vpop.f32.mrb[6].mxu1  ;;  %v13731_v14 = vpack.i.bf16 %v13723_v41, %v13725_v55  ;;  %v13831_v58 = vmul.f32 0.35355338, %v13725_v55 }
 0x494   :  { %v13733_v59 = vadd.f32 %v9682_v57, %v8536_v17  ;;  %v3808_v28 = vpop.f32.mrb[7].mxu1  ;;  %v13838_v57 = vmul.f32 0.35355338, %v13723_v41 }
 0x495   :  { %v13735_v43 = vadd.f32 %v8536_v17, %v3808_v28  ;;  %10899 = vrot.lane.b32.xlu1 %v13731_v14, %s11880_s7 }
 0x496   :  { %v13852_v41 = vmul.f32 0.35355338, %v13733_v59 }
 0x497   :  { %v9685_v42 = vpop.f32.mrb[8].mxu1  ;;  %v13741_v4 = vpack.i.bf16 %v13733_v59, %v13735_v43  ;;  %v13841_v28 = vmul.f32 0.35355338, %v13735_v43 }
 0x498   :  { %v13743_v9 = vadd.f32 %v9685_v42, %v8536_v17  ;;  %v3818_v63 = vpop.f32.mrb[9].mxu1 }
 0x499   :  { %v13745_v49 = vadd.f32 %v8536_v17, %v3818_v63  ;;  %10904 = vrot.lane.b32.xlu1 %v13741_v4, %s11880_s7 }
 0x49b   :  { %v9688_v36 = vpop.f32.mrb[10].mxu1  ;;  %v13751_v44 = vpack.i.bf16 %v13743_v9, %v13745_v49  ;;  %v13855_v55 = vmul.f32 0.35355338, %v13745_v49 }
 0x49c   :  { %v13753_v18 = vadd.f32 %v9688_v36, %v8536_v17  ;;  %v3828_v25 = vpop.f32.mrb[11].mxu1 }
 0x49d   :  { %v13755_v62 = vadd.f32 %v8536_v17, %v3828_v25  ;;  %10909 = vrot.lane.b32.xlu0 %v13751_v44, %s11880_s7 }
 0x49f   :  { %v9691_v20 = vpop.f32.mrb[12].mxu1  ;;  %v13761_v37 = vpack.i.bf16 %v13753_v18, %v13755_v62 }
 0x4a0   :  { %v13763_v61 = vadd.f32 %v9691_v20, %v8536_v17  ;;  %v3838_v21 = vpop.f32.mrb[13].mxu1 }
 0x4a1   :  { %v13765_v19 = vadd.f32 %v8536_v17, %v3838_v21  ;;  %10914 = vrot.lane.b32.xlu1 %v13761_v37, %s11880_s7 }
 0x4a3   :  { %v9694_v47 = vpop.f32.mrb[14].mxu1  ;;  %v13771_v0 = vpack.i.bf16 %v13763_v61, %v13765_v19 }
 0x4a4   :  { %v13773_v24 = vadd.f32 %v9694_v47, %v8536_v17  ;;  %v3848_v29 = vpop.f32.mrb[15].mxu1 }
 0x4a5   :  { %v13775_v45 = vadd.f32 %v8536_v17, %v3848_v29  ;;  %10919 = vrot.lane.b32.xlu0 %v13771_v0, %s11880_s7 }
 0x4a7   :  { %v13781_v39 = vpack.i.bf16 %v13773_v24, %v13775_v45 }
 0x4a9   :  { %10929 = vrot.lane.b32.xlu0 %v13707_v30, %s11881_s11  ;;  %10924 = vrot.lane.b32.xlu1 %v13781_v39, %s11880_s7 }
 0x4ad   :  { %10934 = vrot.lane.b32.xlu1 %v13721_v53, %s11881_s11 }
 0x4fe   :  { %v10890_v51 = vpop.permute.xlu0 %10889 }
 0x4ff   :  { %v10892_v3 = vunpack.i.h.bf16 %v10890_v51  ;;  %v10891_v12 = vunpack.i.l.bf16 %v10890_v51  ;;  %v13868_v51 = vmul.f32 0.35355338, %v13743_v9  ;;  %v13888_v9 = vmul.f32 0.35355338, %v13763_v61 }
 0x501   :  { %v10359_v48 = vpack.c.bf16 %v10892_v3, %v10891_v12  ;;  %v13871_v3 = vmul.f32 0.35355338, %v13755_v62  ;;  %v13891_v62 = vmul.f32 0.35355338, %v13775_v45 }
 0x503   :  { %v10895_v40 = vpop.permute.xlu0 %10894  ;;  %10361 = vmatprep.subr.msk.bf16.mxu1 %vm13791_vm7, %v10359_v48  ;;  %15353 = vst [vmem:[#allocation42_spill] sm:$0xff] %v13891_v62 }
 0x504   :  { %v10897_v16 = vunpack.i.h.bf16 %v10895_v40  ;;  %v10896_v10 = vunpack.i.l.bf16 %v10895_v40  ;;  %10364 = vmatpush3.bf16.xpose.msk.msra.mxu1 %vm13791_vm7, %v10359_v48  ;;  %v13878_v48 = vmul.f32 0.35355338, %v13753_v18  ;;  %v13881_v40 = vmul.f32 0.35355338, %v13765_v19 }
 0x505   :  { %v13898_v18 = vmul.f32 0.35355338, %v13773_v24 }
 0x506   :  { %v10365_v11 = vpack.c.bf16 %v10897_v16, %v10896_v10  ;;  %15352 = vst [vmem:[#allocation43_spill] sm:$0xff] %v13881_v40 }
 0x507   :  { %v10900_v26 = vpop.permute.xlu1 %10899 }
 0x508   :  { %v10902_v8 = vunpack.i.h.bf16 %v10900_v26  ;;  %v10901_v38 = vunpack.i.l.bf16 %v10900_v26  ;;  %10367 = vmatprep.subr.msk.bf16.mxu1 %vm13791_vm7, %v10365_v11 }
 0x50a   :  { %v10371_v32 = vpack.c.bf16 %v10902_v8, %v10901_v38 }
 0x50b   :  { %v10905_v33 = vpop.permute.xlu1 %10904 }
 0x50c   :  { %10370 = vmatpush3.bf16.xpose.msk.msra.mxu1 %vm13791_vm7, %v10365_v11  ;;  %v10907_v13 = vunpack.i.h.bf16 %v10905_v33  ;;  %v10906_v22 = vunpack.i.l.bf16 %v10905_v33 }
 0x50d   :  { %10373 = vmatprep.subr.msk.bf16.mxu1 %vm13791_vm7, %v10371_v32 }
 0x50e   :  { %v10377_v56 = vpack.c.bf16 %v10907_v13, %v10906_v22 }
 0x50f   :  { %v10910_v46 = vpop.permute.xlu0 %10909 }
 0x510   :  { %v10912_v7 = vunpack.i.h.bf16 %v10910_v46  ;;  %v10911_v1 = vunpack.i.l.bf16 %v10910_v46 }
 0x512   :  { %v10383_v54 = vpack.c.bf16 %v10912_v7, %v10911_v1 }
 0x513   :  { %v10915_v34 = vpop.permute.xlu1 %10914 }
 0x514   :  { %10376 = vmatpush3.bf16.xpose.msk.msra.mxu1 %vm13791_vm7, %v10371_v32  ;;  %v10917_v17 = vunpack.i.h.bf16 %v10915_v34  ;;  %v10916_v35 = vunpack.i.l.bf16 %v10915_v34 }
 0x515   :  { %10379 = vmatprep.subr.msk.bf16.mxu1 %vm13791_vm7, %v10377_v56 }
 0x516   :  { %v10389_v15 = vpack.c.bf16 %v10917_v17, %v10916_v35 }
 0x517   :  { %v10920_v27 = vpop.permute.xlu0 %10919 }
 0x518   :  { %v10922_v23 = vunpack.i.h.bf16 %v10920_v27  ;;  %v10921_v50 = vunpack.i.l.bf16 %v10920_v27 }
 0x51a   :  { %v10395_v42 = vpack.c.bf16 %v10922_v23, %v10921_v50 }
 0x51b   :  { %v10925_v31 = vpop.permute.xlu1 %10924  ;;  %v10930_v25 = vpop.permute.xlu0 %10929 }
 0x51c   :  { %10382 = vmatpush3.bf16.xpose.msk.msra.mxu1 %vm13791_vm7, %v10377_v56  ;;  %v10927_v43 = vunpack.i.h.bf16 %v10925_v31  ;;  %v10926_v63 = vunpack.i.l.bf16 %v10925_v31  ;;  %v10932_v59 = vunpack.i.h.bf16 %v10930_v25  ;;  %v10931_v20 = vunpack.i.l.bf16 %v10930_v25 }
 0x51d   :  { %10385 = vmatprep.subr.msk.bf16.mxu1 %vm13791_vm7, %v10383_v54 }
 0x51e   :  { %v10401_v36 = vpack.c.bf16 %v10927_v43, %v10926_v63  ;;  %v10407_v49 = vpack.c.bf16 %v10932_v59, %v10931_v20 }
 0x51f   :  { %v10935_v21 = vpop.permute.xlu1 %10934 }
 0x520   :  { %v10937_v47 = vunpack.i.h.bf16 %v10935_v21  ;;  %v10936_v29 = vunpack.i.l.bf16 %v10935_v21 }
 0x522   :  { %v10411_v12 = vpack.c.bf16 %v10937_v47, %v10936_v29 }
 0x523   :  { %9712 = vmatmul.mubr.msk.f32.vlgmr.msra.gmra.mrb[16].mxu1 %vm3897_vm6, %v13814_v6 }
 0x524   :  { %9714 = vmatprep.mubr.msk.f32.mxu1 %vm3897_vm6, %v13817_v60  ;;  %10388 = vmatpush3.bf16.xpose.msk.msra.mxu1 %vm13791_vm7, %v10383_v54 }
 0x525   :  { %10391 = vmatprep.subr.msk.bf16.mxu1 %vm13791_vm7, %v10389_v15 }
 0x527   :  { %9715 = vmatmul.mubr.msk.f32.gmra.mrb[18].mxu1 %vm3897_vm6, %v13828_v52 }
 0x528   :  { %9717 = vmatprep.mubr.msk.f32.mxu1 %vm3897_vm6, %v13831_v58 }
 0x52b   :  { %9718 = vmatmul.mubr.msk.f32.gmra.mrb[20].mxu1 %vm3897_vm6, %v13838_v57 }
 0x52c   :  { %9720 = vmatprep.mubr.msk.f32.mxu1 %vm3897_vm6, %v13841_v28  ;;  %10394 = vmatpush3.bf16.xpose.msk.msra.mxu1 %vm13791_vm7, %v10389_v15 }
 0x52d   :  { %10397 = vmatprep.subr.msk.bf16.mxu1 %vm13791_vm7, %v10395_v42 }
 0x52f   :  { %9721 = vmatmul.mubr.msk.f32.gmra.mrb[22].mxu1 %vm3897_vm6, %v13852_v41 }
 0x530   :  { %9739 = vmatprep.mubr.msk.f32.mxu1 %vm3897_vm6, %v13855_v55 }
 0x534   :  { %10400 = vmatpush3.bf16.xpose.msk.msra.mxu1 %vm13791_vm7, %v10395_v42 }
 0x535   :  { %10403 = vmatprep.subr.msk.bf16.mxu1 %vm13791_vm7, %v10401_v36 }
 0x53c   :  { %10406 = vmatpush3.bf16.xpose.msk.msra.mxu1 %vm13791_vm7, %v10401_v36 }
 0x53d   :  { %10408 = vmatprep.subr.bf16.mxu1 %v10407_v49 }
 0x543   :  { %9740 = vmatmul.mubr.msk.f32.vlgmr.msra.gmra.mrb[24].mxu1 %vm3897_vm6, %v13868_v51 }
 0x544   :  { %9742 = vmatprep.mubr.msk.f32.mxu1 %vm3897_vm6, %v13871_v3  ;;  %10410 = vmatpush3.bf16.msra.mxu1 %v10407_v49 }
 0x545   :  { %10412 = vmatprep.subr.bf16.mxu1 %v10411_v12 }
 0x547   :  { %9743 = vmatmul.mubr.msk.f32.gmra.mrb[26].mxu1 %vm3897_vm6, %v13878_v48 }
 0x548   :  { %9745 = vmatprep.mubr.msk.f32.mxu1 %vm3897_vm6, %v13881_v40  ;;  %10414 = vmatpush3.bf16.msra.mxu1 %v10411_v12 }
 0x54b   :  { %9746 = vmatmul.mubr.msk.f32.gmra.mrb[28].mxu1 %vm3897_vm6, %v13888_v9 }
 0x54c   :  { %9748 = vmatprep.mubr.msk.f32.mxu1 %vm3897_vm6, %v13891_v62 }
 0x54f   :  { %9749 = vmatmul.mubr.msk.f32.gmra.mrb[30].mxu1 %vm3897_vm6, %v13898_v18 }
 0x5f6   :  { %v9713_v19 = vpop.f32.mrb[16].mxu1 }
 0x5f7   :  { %v4004_v16 = vpop.f32.mrb[17].mxu1  ;;  %v4216_v61 = vsel %vm4212_vm8, %v9713_v19, -inf }
 0x5f8   :  { %4217 = vmax.xlane.f32.xlu1 %v4216_v61  ;;  %v4213_v45 = vsel %vm4212_vm8, %v4004_v16, -inf }
 0x5f9   :  { %4214 = vmax.xlane.f32.xlu0 %v4213_v45 }
 0x5fa   :  { %v9716_v10 = vpop.f32.mrb[18].mxu1 }
 0x5fb   :  { %v13904_v11 = vpop.f32.mrb[19].mxu1  ;;  %v4222_v26 = vsel %vm4212_vm8, %v9716_v10, -inf }
 0x5fc   :  { %v4219_v38 = vsel %vm4212_vm8, %v13904_v11, -inf }
 0x5fd   :  { %4223 = vmax.xlane.f32.xlu0 %v4222_v26 }
 0x5fe   :  { %v13907_v24 = vpop.f32.mrb[20].mxu1 }
 0x5ff   :  { %v4024_v8 = vpop.f32.mrb[21].mxu1  ;;  %v4228_v22 = vsel %vm4212_vm8, %v13907_v24, -inf }
 0x600   :  { %v4225_v32 = vsel %vm4212_vm8, %v4024_v8, -inf }
 0x601   :  { %4220 = vmax.xlane.f32.xlu0 %v4219_v38  ;;  %4226 = vmax.xlane.f32.xlu1 %v4225_v32 }
 0x602   :  { %v13912_v33 = vpop.f32.mrb[22].mxu1 }
 0x603   :  { %v13914_v13 = vpop.f32.mrb[23].mxu1  ;;  %v4234_v46 = vsel %vm4212_vm8, %v13912_v33, -inf }
 0x604   :  { %v4231_v56 = vsel %vm4212_vm8, %v13914_v13, -inf }
 0x605   :  { %4229 = vmax.xlane.f32.xlu0 %v4228_v22  ;;  %4232 = vmax.xlane.f32.xlu1 %v4231_v56 }
 0x609   :  { %4235 = vmax.xlane.f32.xlu0 %v4234_v46 }
 0x616   :  { %v13922_v7 = vpop.f32.mrb[24].mxu1 }
 0x617   :  { %v13924_v1 = vpop.f32.mrb[25].mxu1  ;;  %v4240_v54 = vsel %vm4212_vm8, %v13922_v7, -inf }
 0x618   :  { %4241 = vmax.xlane.f32.xlu0 %v4240_v54  ;;  %v4237_v34 = vsel %vm4212_vm8, %v13924_v1, -inf }
 0x619   :  { %4238 = vmax.xlane.f32.xlu1 %v4237_v34 }
 0x61a   :  { %v13930_v17 = vpop.f32.mrb[26].mxu1 }
 0x61b   :  { %v13932_v35 = vpop.f32.mrb[27].mxu1  ;;  %v4246_v15 = vsel %vm4212_vm8, %v13930_v17, -inf }
 0x61c   :  { %4247 = vmax.xlane.f32.xlu0 %v4246_v15  ;;  %v4243_v27 = vsel %vm4212_vm8, %v13932_v35, -inf }
 0x61d   :  { %4244 = vmax.xlane.f32.xlu1 %v4243_v27 }
 0x61e   :  { %v13938_v23 = vpop.f32.mrb[28].mxu1 }
 0x61f   :  { %v13940_v50 = vpop.f32.mrb[29].mxu1  ;;  %v4252_v42 = vsel %vm4212_vm8, %v13938_v23, -inf }
 0x620   :  { %4253 = vmax.xlane.f32.xlu0 %v4252_v42  ;;  %v4249_v31 = vsel %vm4212_vm8, %v13940_v50, -inf }
 0x621   :  { %4250 = vmax.xlane.f32.xlu1 %v4249_v31 }
 0x622   :  { %v13946_v43 = vpop.f32.mrb[30].mxu1 }
 0x623   :  { %v13948_v63 = vpop.f32.mrb[31].mxu1  ;;  %v4258_v36 = vsel %vm4212_vm8, %v13946_v43, -inf }
 0x624   :  { %4259 = vmax.xlane.f32.xlu0 %v4258_v36  ;;  %v4255_v25 = vsel %vm4212_vm8, %v13948_v63, -inf }
 0x632   :  { %10944 = vrot.lane.b32.xlu1 %v13741_v4, %s11881_s11 }
 0x636   :  { %10949 = vrot.lane.b32.xlu1 %v13751_v44, %s11881_s11 }
 0x63a   :  { %10954 = vrot.lane.b32.xlu1 %v13761_v37, %s11881_s11  ;;  %10939 = vrot.lane.b32.xlu0 %v13731_v14, %s11881_s11 }
 0x63e   :  { %10959 = vrot.lane.b32.xlu1 %v13771_v0, %s11881_s11 }
 0x642   :  { %10964 = vrot.lane.b32.xlu1 %v13781_v39, %s11881_s11 }
 0x666   :  { %4256 = vmax.xlane.f32.xlu1 %v4255_v25 }
 0x685   :  { %v4218_v59 = vpop.xlane.xlu1 %4217 }
 0x686   :  { %v4262_v20 = vsub.f32 %v9713_v19, %v4218_v59  ;;  %v4215_v49 = vpop.xlane.xlu0 %4214 }
 0x687   :  { %v4261_v21 = vsub.f32 %v4004_v16, %v4215_v49 }
 0x688   :  { %v4279_v47 = vmul.f32 1.442695, %v4262_v20 }
 0x689   :  { %v4277_v29 = vmul.f32 1.442695, %v4261_v21 }
 0x68a   :  { %11304 = vpow2.f32 %v4279_v47  ;;  %v4224_v12 = vpop.xlane.xlu0 %4223 }
 0x68b   :  { %11306 = vpow2.f32 %v4277_v29  ;;  %v4264_v61 = vsub.f32 %v9716_v10, %v4224_v12 }
 0x68d   :  { %v4283_v45 = vmul.f32 1.442695, %v4264_v61 }
 0x68e   :  { %v4221_v26 = vpop.xlane.xlu0 %4220  ;;  %v4227_v38 = vpop.xlane.xlu1 %4226 }
 0x68f   :  { %11308 = vpow2.f32 %v4283_v45  ;;  %v4263_v32 = vsub.f32 %v13904_v11, %v4221_v26  ;;  %v4265_v22 = vsub.f32 %v4024_v8, %v4227_v38 }
 0x691   :  { %v4281_v56 = vmul.f32 1.442695, %v4263_v32  ;;  %v4285_v46 = vmul.f32 1.442695, %v4265_v22 }
 0x692   :  { %v4230_v54 = vpop.xlane.xlu0 %4229  ;;  %v4233_v34 = vpop.xlane.xlu1 %4232 }
 0x693   :  { %11310 = vpow2.f32 %v4281_v56  ;;  %v4266_v19 = vsub.f32 %v13907_v24, %v4230_v54  ;;  %v4267_v27 = vsub.f32 %v13914_v13, %v4233_v34 }
 0x694   :  { %v13968_v16 = vpop.eup %11304  ;;  %11312 = vpow2.f32 %v4285_v46 }
 0x695   :  { %v13970_v15 = vpop.eup %11306  ;;  %v4287_v10 = vmul.f32 1.442695, %v4266_v19  ;;  %v4312_v42 = vsel %vm4212_vm8, %v13968_v16, 0.0  ;;  %v4289_v36 = vmul.f32 1.442695, %v4267_v27 }
 0x696   :  { %v4236_v11 = vpop.xlane.xlu0 %4235  ;;  %4313 = vadd.xlane.f32.xlu0 %v4312_v42  ;;  %v4309_v8 = vsel %vm4212_vm8, %v13970_v15, 0.0 }
 0x697   :  { %11314 = vpow2.f32 %v4287_v10  ;;  %v4268_v31 = vsub.f32 %v13912_v33, %v4236_v11  ;;  %4310 = vadd.xlane.f32.xlu1 %v4309_v8 }
 0x699   :  { %v13978_v24 = vpop.eup %11308  ;;  %v4291_v25 = vmul.f32 1.442695, %v4268_v31 }
 0x69a   :  { %v4318_v59 = vsel %vm4212_vm8, %v13978_v24, 0.0 }
 0x69b   :  { %11316 = vpow2.f32 %v4291_v25  ;;  %4319 = vadd.xlane.f32.xlu1 %v4318_v59 }
 0x69c   :  { %11318 = vpow2.f32 %v4289_v36 }
 0x69d   :  { %v13982_v13 = vpop.eup %11310 }
 0x69e   :  { %v4315_v20 = vsel %vm4212_vm8, %v13982_v13, 0.0  ;;  %v13986_v49 = vpop.eup %11312 }
 0x69f   :  { %4316 = vadd.xlane.f32.xlu1 %v4315_v20  ;;  %v4321_v47 = vsel %vm4212_vm8, %v13986_v49, 0.0 }
 0x6a1   :  { %v13988_v33 = vpop.eup %11314 }
 0x6a2   :  { %v4324_v21 = vsel %vm4212_vm8, %v13988_v33, 0.0 }
 0x6a3   :  { %4325 = vadd.xlane.f32.xlu0 %v4324_v21  ;;  %4322 = vadd.xlane.f32.xlu1 %v4321_v47 }
 0x6a5   :  { %v13994_v29 = vpop.eup %11316  ;;  %v4242_v12 = vpop.xlane.xlu0 %4241 }
 0x6a6   :  { %v4270_v61 = vsub.f32 %v13922_v7, %v4242_v12  ;;  %v4239_v45 = vpop.xlane.xlu1 %4238  ;;  %v4330_v26 = vsel %vm4212_vm8, %v13994_v29, 0.0  ;;  %v13999_v38 = vpop.eup %11318 }
 0x6a7   :  { %4331 = vadd.xlane.f32.xlu1 %v4330_v26  ;;  %v4327_v46 = vsel %vm4212_vm8, %v13999_v38, 0.0  ;;  %v4269_v26 = vsub.f32 %v13924_v1, %v4239_v45 }
 0x6a8   :  { %v4295_v32 = vmul.f32 1.442695, %v4270_v61 }
 0x6a9   :  { %v4248_v22 = vpop.xlane.xlu0 %4247 }
 0x6aa   :  { %11320 = vpow2.f32 %v4295_v32  ;;  %v4245_v56 = vpop.xlane.xlu1 %4244  ;;  %v4272_v61 = vsub.f32 %v13930_v17, %v4248_v22 }
 0x6ab   :  { %4328 = vadd.xlane.f32.xlu1 %v4327_v46 }
 0x6ac   :  { %v4299_v32 = vmul.f32 1.442695, %v4272_v61 }
 0x6ad   :  { %v4254_v54 = vpop.xlane.xlu0 %4253 }
 0x6ae   :  { %v4251_v34 = vpop.xlane.xlu1 %4250  ;;  %v4274_v46 = vsub.f32 %v13938_v23, %v4254_v54  ;;  %11322 = vpow2.f32 %v4299_v32 }
 0x6b1   :  { %v4260_v19 = vpop.xlane.xlu0 %4259 }
 0x6b2   :  { %v10945_v10 = vpop.permute.xlu1 %10944 }
 0x6b3   :  { %v10947_v11 = vunpack.i.h.bf16 %v10945_v10  ;;  %v10946_v8 = vunpack.i.l.bf16 %v10945_v10  ;;  %v4293_v10 = vmul.f32 1.442695, %v4269_v26 }
 0x6b4   :  { %v14003_v7 = vpop.eup %11320 }
 0x6b5   :  { %v10940_v27 = vpop.permute.xlu0 %10939  ;;  %v4336_v42 = vsel %vm4212_vm8, %v14003_v7, 0.0  ;;  %v10419_v47 = vpack.c.bf16 %v10947_v11, %v10946_v8  ;;  %v4273_v11 = vsub.f32 %v13940_v50, %v4251_v34  ;;  %11324 = vpow2.f32 %v4293_v10 }
 0x6b6   :  { %v10942_v31 = vunpack.i.h.bf16 %v10940_v27  ;;  %v10941_v36 = vunpack.i.l.bf16 %v10940_v27  ;;  %4337 = vadd.xlane.f32.xlu0 %v4336_v42  ;;  %v10950_v25 = vpop.permute.xlu1 %10949  ;;  %v4271_v27 = vsub.f32 %v13932_v35, %v4245_v56  ;;  %v4303_v42 = vmul.f32 1.442695, %v4274_v46 }
 0x6b7   :  { %v10952_v20 = vunpack.i.h.bf16 %v10950_v25  ;;  %v10951_v21 = vunpack.i.l.bf16 %v10950_v25 }
 0x6b8   :  { %v10415_v59 = vpack.c.bf16 %v10942_v31, %v10941_v36  ;;  %v4297_v8 = vmul.f32 1.442695, %v4271_v27  ;;  %11326 = vpow2.f32 %v4303_v42  ;;  %v4301_v31 = vmul.f32 1.442695, %v4273_v11  ;;  %v14026_v1 = vpop.eup %11322 }
 0x6b9   :  { %v14009_v12 = vpack.c.bf16 %v10952_v20, %v10951_v21  ;;  %v4276_v36 = vsub.f32 %v13946_v43, %v4260_v19  ;;  %v4342_v35 = vsel %vm4212_vm8, %v14026_v1, 0.0 }
 0x6ba   :  { %10416 = vmatprep.subr.bf16.mxu1 %v10415_v59  ;;  %11328 = vpow2.f32 %v4297_v8 }
 0x6bb   :  { %10418 = vmatpush3.bf16.msra.mxu1 %v10415_v59  ;;  %11330 = vpow2.f32 %v4301_v31  ;;  %v4307_v17 = vmul.f32 1.442695, %v4276_v36  ;;  %v10955_v59 = vpop.permute.xlu1 %10954 }
 0x6bc   :  { %10420 = vmatprep.subr.bf16.mxu1 %v10419_v47  ;;  %10974 = vrot.lane.b32.xlu1 %v13721_v53, %s11882_s27  ;;  %v10957_v31 = vunpack.i.h.bf16 %v10955_v59  ;;  %v10956_v36 = vunpack.i.l.bf16 %v10955_v59 }
 0x6bd   :  { %11332 = vpow2.f32 %v4307_v17 }
 0x6bf   :  { %10422 = vmatpush3.bf16.msra.mxu1 %v10419_v47  ;;  %v14028_v45 = vpop.eup %11324  ;;  %v10960_v20 = vpop.permute.xlu1 %10959 }
 0x6c0   :  { %10424 = vmatprep.subr.bf16.mxu1 %v14009_v12  ;;  %10979 = vrot.lane.b32.xlu1 %v13731_v14, %s11882_s27  ;;  %v4333_v50 = vsel %vm4212_vm8, %v14028_v45, 0.0 }
 0x6c2   :  { %v14032_v23 = vpop.eup %11326 }
 0x6c3   :  { %v4348_v43 = vsel %vm4212_vm8, %v14032_v23, 0.0  ;;  %v10965_v21 = vpop.permute.xlu1 %10964 }
 0x6c4   :  { %10984 = vrot.lane.b32.xlu1 %v13741_v4, %s11882_s27  ;;  %v14036_v22 = vpop.eup %11328 }
 0x6c5   :  { %v14040_v56 = vpop.eup %11330  ;;  %v4339_v54 = vsel %vm4212_vm8, %v14036_v22, 0.0 }
 0x6c6   :  { %v4345_v34 = vsel %vm4212_vm8, %v14040_v56, 0.0 }
 0x6c7   :  { %v14046_v19 = vpop.eup %11332 }
 0x6c8   :  { %10989 = vrot.lane.b32.xlu1 %v13751_v44, %s11882_s27  ;;  %v4354_v25 = vsel %vm4212_vm8, %v14046_v19, 0.0 }
 0x6cc   :  { %10969 = vrot.lane.b32.xlu0 %v13707_v30, %s11882_s27 }
 0x6eb   :  { %4343 = vadd.xlane.f32.xlu0 %v4342_v35 }
 0x6ec   :  { %4334 = vadd.xlane.f32.xlu1 %v4333_v50 }
 0x6ef   :  { %4349 = vadd.xlane.f32.xlu0 %v4348_v43 }
 0x6f0   :  { %4340 = vadd.xlane.f32.xlu1 %v4339_v54  ;;  %v10962_v54 = vunpack.i.h.bf16 %v10960_v20 }
 0x6f3   :  { %4346 = vadd.xlane.f32.xlu0 %v4345_v34  ;;  %v4257_v47 = vpop.xlane.xlu1 %4256  ;;  %v10961_v34 = vunpack.i.l.bf16 %v10960_v20 }
 0x6f4   :  { %v4275_v61 = vsub.f32 %v13948_v63, %v4257_v47 }
 0x6f6   :  { %v4305_v26 = vmul.f32 1.442695, %v4275_v61  ;;  %v10967_v61 = vunpack.i.h.bf16 %v10965_v21 }
 0x6f7   :  { %4355 = vadd.xlane.f32.xlu0 %v4354_v25  ;;  %v10427_v25 = vpack.c.bf16 %v10957_v31, %v10956_v36 }
 0x6f8   :  { %11334 = vpow2.f32 %v4305_v26  ;;  %v10431_v26 = vpack.c.bf16 %v10962_v54, %v10961_v34 }
 0x701   :  { %4698 = vrot.lane.b32.xlu1 %v13814_v6, %s11883_s20 }
 0x702   :  { %v14063_v32 = vpop.eup %11334 }
 0x703   :  { %v4351_v10 = vsel %vm4212_vm8, %v14063_v32, 0.0 }
 0x70d   :  { %4696 = vrot.lane.b32.xlu0 %v13709_v2, %s11883_s20 }
 0x711   :  { %4704 = vrot.lane.b32.xlu0 %v13831_v58, %s11883_s20 }
 0x715   :  { %4708 = vrot.lane.b32.xlu0 %v13841_v28, %s11883_s20 }
 0x719   :  { %4865 = vrot.lane.b32.xlu0 %v13855_v55, %s11883_s20 }
 0x71d   :  { %4869 = vrot.lane.b32.xlu0 %v13871_v3, %s11883_s20 }
 0x721   :  { %4873 = vrot.lane.b32.xlu0 %v13881_v40, %s11883_s20 }
 0x723   :  { %v4314_v63 = vpop.xlane.xlu0 %4313 }
 0x724   :  { %11336 = vrcp.f32 %v4314_v63  ;;  %v4311_v46 = vpop.xlane.xlu1 %4310 }
 0x725   :  { %11338 = vrcp.f32 %v4311_v46  ;;  %4877 = vrot.lane.b32.xlu0 %v13891_v62, %s11883_s20  ;;  %4352 = vadd.xlane.f32.xlu1 %v4351_v10 }
 0x728   :  { %v4320_v27 = vpop.xlane.xlu1 %4319 }
 0x729   :  { %11009 = vrot.lane.b32.xlu0 %v13707_v30, %s11884_s5  ;;  %11340 = vrcp.f32 %v4320_v27 }
 0x72c   :  { %v4317_v42 = vpop.xlane.xlu1 %4316 }
 0x72d   :  { %11342 = vrcp.f32 %v4317_v42  ;;  %11019 = vrot.lane.b32.xlu0 %v13731_v14, %s11884_s5 }
 0x72e   :  { %v11337_v11 = vpop.eup %11336 }
 0x72f   :  { %v11339_v8 = vpop.eup %11338  ;;  %v4374_v43 = vmul.f32 %v11337_v11, %v13968_v16  ;;  %v10966_v16 = vunpack.i.l.bf16 %v10965_v21 }
 0x730   :  { %v4326_v17 = vpop.xlane.xlu0 %4325  ;;  %v4323_v35 = vpop.xlane.xlu1 %4322  ;;  %v4373_v50 = vmul.f32 %v11339_v8, %v13970_v15 }
 0x731   :  { %11344 = vrcp.f32 %v4326_v17  ;;  %v10435_v10 = vpack.c.bf16 %v10967_v61, %v10966_v16 }
 0x732   :  { %11346 = vrcp.f32 %v4323_v35  ;;  %9767 = vmatprep.mubr.msk.f32.mxu1 %vm4212_vm8, %v4373_v50 }
 0x733   :  { %9768 = vmatmul.mubr.msk.f32.vlgmr.msra.gmra.mrb[32].mxu1 %vm4212_vm8, %v4374_v43  ;;  %v11341_v59 = vpop.eup %11340 }
 0x734   :  { %10426 = vmatpush3.bf16.msra.mxu1 %v14009_v12  ;;  %v4332_v47 = vpop.xlane.xlu1 %4331  ;;  %v4376_v46 = vmul.f32 %v11341_v59, %v13978_v24 }
 0x735   :  { %10428 = vmatprep.subr.bf16.mxu1 %v10427_v25  ;;  %11348 = vrcp.f32 %v4332_v47 }
 0x736   :  { %10994 = vrot.lane.b32.xlu1 %v13761_v37, %s11882_s27 }
 0x737   :  { %v11343_v15 = vpop.eup %11342 }
 0x738   :  { %10430 = vmatpush3.bf16.msra.mxu1 %v10427_v25  ;;  %v4329_v63 = vpop.xlane.xlu1 %4328  ;;  %v4375_v20 = vmul.f32 %v11343_v15, %v13982_v13 }
 0x739   :  { %10432 = vmatprep.subr.bf16.mxu1 %v10431_v26  ;;  %11350 = vrcp.f32 %v4329_v63 }
 0x73a   :  { %10999 = vrot.lane.b32.xlu1 %v13771_v0, %s11882_s27  ;;  %9770 = vmatprep.mubr.msk.f32.mxu1 %vm4212_vm8, %v4375_v20 }
 0x73b   :  { %v11345_v12 = vpop.eup %11344  ;;  %9771 = vmatmul.mubr.msk.f32.gmra.mrb[34].mxu1 %vm4212_vm8, %v4376_v46 }
 0x73c   :  { %v11347_v21 = vpop.eup %11346  ;;  %10434 = vmatpush3.bf16.msra.mxu1 %v10431_v26  ;;  %v4378_v27 = vmul.f32 %v11345_v12, %v13988_v33 }
 0x73d   :  { %10436 = vmatprep.subr.bf16.mxu1 %v10435_v10  ;;  %v4377_v13 = vmul.f32 %v11347_v21, %v13986_v49 }
 0x73e   :  { %4700 = vrot.lane.b32.xlu1 %v13817_v60, %s11883_s20 }
 0x73f   :  { %9773 = vmatprep.mubr.msk.f32.mxu1 %vm4212_vm8, %v4377_v13  ;;  %v11349_v24 = vpop.eup %11348 }
 0x740   :  { %9774 = vmatmul.mubr.msk.f32.gmra.mrb[36].mxu1 %vm4212_vm8, %v4378_v27  ;;  %v4380_v33 = vmul.f32 %v11349_v24, %v13994_v29  ;;  %v10975_v29 = vpop.permute.xlu1 %10974 }
 0x741   :  { %10438 = vmatpush3.bf16.msra.mxu1 %v10435_v10  ;;  %v10977_v61 = vunpack.i.h.bf16 %v10975_v29  ;;  %v10976_v16 = vunpack.i.l.bf16 %v10975_v29 }
 0x742   :  { %4702 = vrot.lane.b32.xlu1 %v13828_v52, %s11883_s20 }
 0x743   :  { %v11351_v42 = vpop.eup %11350  ;;  %v4338_v11 = vpop.xlane.xlu0 %4337  ;;  %v10445_v12 = vpack.c.bf16 %v10977_v61, %v10976_v16 }
 0x744   :  { %v4379_v8 = vmul.f32 %v11351_v42, %v13999_v38  ;;  %v10980_v38 = vpop.permute.xlu1 %10979  ;;  %11352 = vrcp.f32 %v4338_v11 }
 0x745   :  { %v10981_v13 = vunpack.i.l.bf16 %v10980_v38 }
 0x746   :  { %11004 = vrot.lane.b32.xlu1 %v13781_v39, %s11882_s27  ;;  %9776 = vmatprep.mubr.msk.f32.mxu1 %vm4212_vm8, %v4379_v8 }
 0x747   :  { %v10970_v49 = vpop.permute.xlu0 %10969  ;;  %9777 = vmatmul.mubr.msk.f32.gmra.mrb[38].mxu1 %vm4212_vm8, %v4380_v33 }
 0x748   :  { %v10972_v31 = vunpack.i.h.bf16 %v10970_v49  ;;  %v10971_v36 = vunpack.i.l.bf16 %v10970_v49  ;;  %v10985_v35 = vpop.permute.xlu1 %10984 }
 0x749   :  { %v10986_v11 = vunpack.i.l.bf16 %v10985_v35 }
 0x74a   :  { %v10439_v17 = vpack.c.bf16 %v10972_v31, %v10971_v36  ;;  %4706 = vrot.lane.b32.xlu1 %v13838_v57, %s11883_s20 }
 0x74c   :  { %10441 = vmatprep.subr.msk.bf16.mxu1 %vm13791_vm7, %v10439_v17  ;;  %v10990_v50 = vpop.permute.xlu1 %10989 }
 0x74e   :  { %4710 = vrot.lane.b32.xlu1 %v13852_v41, %s11883_s20  ;;  %v11353_v59 = vpop.eup %11352 }
 0x74f   :  { %v4382_v63 = vmul.f32 %v11353_v59, %v14003_v7  ;;  %v10982_v7 = vunpack.i.h.bf16 %v10980_v38 }
 0x752   :  { %4867 = vrot.lane.b32.xlu1 %v13868_v51, %s11883_s20 }
 0x756   :  { %4871 = vrot.lane.b32.xlu1 %v13878_v48, %s11883_s20 }
 0x75a   :  { %4875 = vrot.lane.b32.xlu1 %v13888_v9, %s11883_s20 }
 0x75e   :  { %4879 = vrot.lane.b32.xlu1 %v13898_v18, %s11883_s20 }
 0x762   :  { %11014 = vrot.lane.b32.xlu1 %v13721_v53, %s11884_s5 }
 0x778   :  { %v4344_v43 = vpop.xlane.xlu0 %4343 }
 0x779   :  { %v4335_v54 = vpop.xlane.xlu1 %4334 }
 0x77a   :  { %11354 = vrcp.f32 %v4335_v54 }
 0x77b   :  { %11356 = vrcp.f32 %v4344_v43 }
 0x77c   :  { %v4350_v34 = vpop.xlane.xlu0 %4349 }
 0x77d   :  { %v4341_v25 = vpop.xlane.xlu1 %4340 }
 0x77e   :  { %11358 = vrcp.f32 %v4341_v25 }
 0x77f   :  { %11360 = vrcp.f32 %v4350_v34 }
 0x780   :  { %v4347_v47 = vpop.xlane.xlu0 %4346 }
 0x781   :  { %11362 = vrcp.f32 %v4347_v47  ;;  %v4699_v36 = vpop.permute.xlu1 %4698 }
 0x784   :  { %v11355_v15 = vpop.eup %11354  ;;  %v4356_v49 = vpop.xlane.xlu0 %4355 }
 0x785   :  { %v4381_v26 = vmul.f32 %v11355_v15, %v14028_v45  ;;  %v11357_v20 = vpop.eup %11356  ;;  %11364 = vrcp.f32 %v4356_v49 }
 0x786   :  { %v4384_v45 = vmul.f32 %v11357_v20, %v14026_v1  ;;  %v10987_v1 = vunpack.i.h.bf16 %v10985_v35 }
 0x787   :  { %9795 = vmatprep.mubr.msk.f32.mxu1 %vm4212_vm8, %v4381_v26 }
 0x788   :  { %v11359_v46 = vpop.eup %11358  ;;  %9796 = vmatmul.mubr.msk.f32.vlgmr.msra.gmra.mrb[40].mxu1 %vm4212_vm8, %v4382_v63  ;;  %v10457_v8 = vpack.c.bf16 %v10987_v1, %v10986_v11  ;;  %v4697_v31 = vpop.permute.xlu0 %4696 }
 0x789   :  { %10444 = vmatpush3.bf16.xpose.msk.msra.mxu1 %vm13791_vm7, %v10439_v17  ;;  %v4383_v10 = vmul.f32 %v11359_v46, %v14036_v22  ;;  %v11361_v21 = vpop.eup %11360  ;;  %v10451_v22 = vpack.c.bf16 %v10982_v7, %v10981_v13 }
 0x78a   :  { %10447 = vmatprep.subr.msk.bf16.mxu1 %vm13791_vm7, %v10445_v12  ;;  %v4386_v42 = vmul.f32 %v11361_v21, %v14032_v23  ;;  %v10991_v23 = vunpack.i.l.bf16 %v10990_v50 }
 0x78b   :  { %v11363_v27 = vpop.eup %11362  ;;  %9798 = vmatprep.mubr.msk.f32.mxu1 %vm4212_vm8, %v4383_v10 }
 0x78c   :  { %9799 = vmatmul.mubr.msk.f32.gmra.mrb[42].mxu1 %vm4212_vm8, %v4384_v45  ;;  %v4385_v24 = vmul.f32 %v11363_v27, %v14040_v56  ;;  %v10992_v56 = vunpack.i.h.bf16 %v10990_v50  ;;  %v4705_v17 = vpop.permute.xlu0 %4704 }
 0x78e   :  { %9801 = vmatprep.mubr.msk.f32.mxu1 %vm4212_vm8, %v4385_v24  ;;  %v10463_v33 = vpack.c.bf16 %v10992_v56, %v10991_v23 }
 0x78f   :  { %v11365_v54 = vpop.eup %11364 }
 0x790   :  { %9802 = vmatmul.mubr.msk.f32.gmra.mrb[44].mxu1 %vm4212_vm8, %v4386_v42  ;;  %v4709_v35 = vpop.permute.xlu0 %4708  ;;  %v4388_v59 = vmul.f32 %v11365_v54, %v14046_v19 }
 0x791   :  { %10450 = vmatpush3.bf16.xpose.msk.msra.mxu1 %vm13791_vm7, %v10445_v12 }
 0x792   :  { %10453 = vmatprep.subr.msk.bf16.mxu1 %vm13791_vm7, %v10451_v22 }
 0x794   :  { %v4866_v50 = vpop.permute.xlu0 %4865 }
 0x798   :  { %v4870_v26 = vpop.permute.xlu0 %4869 }
 0x799   :  { %10456 = vmatpush3.bf16.xpose.msk.msra.mxu1 %vm13791_vm7, %v10451_v22 }
 0x79a   :  { %10459 = vmatprep.subr.msk.bf16.mxu1 %vm13791_vm7, %v10457_v8 }
 0x79c   :  { %v4874_v46 = vpop.permute.xlu0 %4873 }
 0x7a0   :  { %v4878_v45 = vpop.permute.xlu0 %4877 }
 0x7a1   :  { %10462 = vmatpush3.bf16.xpose.msk.msra.mxu1 %vm13791_vm7, %v10457_v8 }
 0x7a2   :  { %10465 = vmatprep.subr.msk.bf16.mxu1 %vm13791_vm7, %v10463_v33 }
 0x7a4   :  { %v11010_v42 = vpop.permute.xlu0 %11009 }
 0x7a5   :  { %v11012_v1 = vunpack.i.h.bf16 %v11010_v42  ;;  %v11011_v11 = vunpack.i.l.bf16 %v11010_v42 }
 0x7a7   :  { %v10487_v56 = vpack.c.bf16 %v11012_v1, %v11011_v11 }
 0x7b2   :  { %v4353_v29 = vpop.xlane.xlu1 %4352 }
 0x7b3   :  { %11366 = vrcp.f32 %v4353_v29 }
 0x7b6   :  { %v10995_v38 = vpop.permute.xlu1 %10994 }
 0x7b7   :  { %v10997_v15 = vunpack.i.h.bf16 %v10995_v38  ;;  %v10996_v61 = vunpack.i.l.bf16 %v10995_v38 }
 0x7b9   :  { %v10469_v63 = vpack.c.bf16 %v10997_v15, %v10996_v61 }
 0x7ba   :  { %v11000_v43 = vpop.permute.xlu1 %10999 }
 0x7bb   :  { %v11002_v19 = vunpack.i.h.bf16 %v11000_v43 }
 0x7bd   :  { %v11367_v34 = vpop.eup %11366 }
 0x7be   :  { %v4701_v25 = vpop.permute.xlu1 %4700  ;;  %v4387_v47 = vmul.f32 %v11367_v34, %v14063_v32  ;;  %v11001_v32 = vunpack.i.l.bf16 %v11000_v43 }
 0x7c0   :  { %9804 = vmatprep.mubr.msk.f32.mxu1 %vm4212_vm8, %v4387_v47  ;;  %v10475_v10 = vpack.c.bf16 %v11002_v19, %v11001_v32 }
 0x7c1   :  { %9805 = vmatmul.mubr.msk.f32.gmra.mrb[46].mxu1 %vm4212_vm8, %v4388_v59 }
 0x7c2   :  { %9823 = vmatprep.mubr.msk.f32.mxu1 %vm3897_vm6, %v4697_v31  ;;  %v4703_v16 = vpop.permute.xlu1 %4702 }
 0x7c5   :  { %9824 = vmatmul.mubr.msk.f32.vlgmr.msra.gmra.mrb[48].mxu1 %vm3897_vm6, %v4699_v36 }
 0x7c6   :  { %10468 = vmatpush3.bf16.xpose.msk.msra.mxu1 %vm13791_vm7, %v10463_v33  ;;  %v11005_v20 = vpop.permute.xlu1 %11004  ;;  %9826 = vmatprep.mubr.msk.f32.mxu1 %vm3897_vm6, %v4701_v25  ;;  %v11020_v33 = vpop.permute.xlu0 %11019 }
 0x7c7   :  { %10471 = vmatprep.subr.msk.bf16.mxu1 %vm13791_vm7, %v10469_v63  ;;  %v11007_v27 = vunpack.i.h.bf16 %v11005_v20  ;;  %v11006_v7 = vunpack.i.l.bf16 %v11005_v20  ;;  %v11021_v29 = vunpack.i.l.bf16 %v11020_v33 }
 0x7c9   :  { %9827 = vmatmul.mubr.msk.f32.gmra.mrb[50].mxu1 %vm3897_vm6, %v4703_v16  ;;  %v10481_v24 = vpack.c.bf16 %v11007_v27, %v11006_v7 }
 0x7ca   :  { %v4707_v12 = vpop.permute.xlu1 %4706  ;;  %9829 = vmatprep.mubr.msk.f32.mxu1 %vm3897_vm6, %v4705_v17  ;;  %v11022_v17 = vunpack.i.h.bf16 %v11020_v33 }
 0x7cd   :  { %9830 = vmatmul.mubr.msk.f32.gmra.mrb[52].mxu1 %vm3897_vm6, %v4707_v12 }
 0x7ce   :  { %10474 = vmatpush3.bf16.xpose.msk.msra.mxu1 %vm13791_vm7, %v10469_v63  ;;  %v4711_v21 = vpop.permute.xlu1 %4710  ;;  %9832 = vmatprep.mubr.msk.f32.mxu1 %vm3897_vm6, %v4709_v35  ;;  %v10495_v35 = vpack.c.bf16 %v11022_v17, %v11021_v29 }
 0x7cf   :  { %10477 = vmatprep.subr.msk.bf16.mxu1 %vm13791_vm7, %v10475_v10 }
 0x7d1   :  { %9833 = vmatmul.mubr.msk.f32.gmra.mrb[54].mxu1 %vm3897_vm6, %v4711_v21 }
 0x7d2   :  { %v4868_v13 = vpop.permute.xlu1 %4867  ;;  %9851 = vmatprep.mubr.msk.f32.mxu1 %vm3897_vm6, %v4866_v50 }
 0x7d6   :  { %10480 = vmatpush3.bf16.xpose.msk.msra.mxu1 %vm13791_vm7, %v10475_v10  ;;  %v4872_v22 = vpop.permute.xlu1 %4871 }
 0x7d7   :  { %10483 = vmatprep.subr.msk.bf16.mxu1 %vm13791_vm7, %v10481_v24 }
 0x7da   :  { %v4876_v8 = vpop.permute.xlu1 %4875 }
 0x7de   :  { %10486 = vmatpush3.bf16.xpose.msk.msra.mxu1 %vm13791_vm7, %v10481_v24  ;;  %v4880_v23 = vpop.permute.xlu1 %4879 }
 0x7df   :  { %10488 = vmatprep.subr.bf16.mxu1 %v10487_v56 }
 0x7e2   :  { %v11015_v49 = vpop.permute.xlu1 %11014 }
 0x7e3   :  { %v11017_v31 = vunpack.i.h.bf16 %v11015_v49  ;;  %v11016_v36 = vunpack.i.l.bf16 %v11015_v49 }
 0x7e5   :  { %9852 = vmatmul.mubr.msk.f32.vlgmr.msra.gmra.mrb[56].mxu1 %vm3897_vm6, %v4868_v13  ;;  %v10491_v38 = vpack.c.bf16 %v11017_v31, %v11016_v36 }
 0x7e6   :  { %9854 = vmatprep.mubr.msk.f32.mxu1 %vm3897_vm6, %v4870_v26  ;;  %10490 = vmatpush3.bf16.msra.mxu1 %v10487_v56 }
 0x7e7   :  { %10492 = vmatprep.subr.bf16.mxu1 %v10491_v38 }
 0x7e9   :  { %9855 = vmatmul.mubr.msk.f32.gmra.mrb[58].mxu1 %vm3897_vm6, %v4872_v22 }
 0x7ea   :  { %9857 = vmatprep.mubr.msk.f32.mxu1 %vm3897_vm6, %v4874_v46  ;;  %10494 = vmatpush3.bf16.msra.mxu1 %v10491_v38 }
 0x7eb   :  { %10496 = vmatprep.subr.bf16.mxu1 %v10495_v35 }
 0x7ed   :  { %9858 = vmatmul.mubr.msk.f32.gmra.mrb[60].mxu1 %vm3897_vm6, %v4876_v8 }
 0x7ee   :  { %9860 = vmatprep.mubr.msk.f32.mxu1 %vm3897_vm6, %v4878_v45  ;;  %10498 = vmatpush3.bf16.msra.mxu1 %v10495_v35 }
 0x7f1   :  { %9861 = vmatmul.mubr.msk.f32.gmra.mrb[62].mxu1 %vm3897_vm6, %v4880_v23 }
 0x806   :  { %v14180_v43 = vpop.f32.mrb[32].mxu1 }
 0x807   :  { %v14182_v54 = vpop.f32.mrb[33].mxu1 }
 0x80e   :  { %v14184_v34 = vpop.f32.mrb[34].mxu1 }
 0x80f   :  { %v14186_v50 = vpop.f32.mrb[35].mxu1 }
 0x813   :  { %v14188_v25 = vpop.f32.mrb[36].mxu1 }
 0x814   :  { %v14190_v47 = vpop.f32.mrb[37].mxu1 }
 0x81a   :  { %v14192_v59 = vpop.f32.mrb[38].mxu1 }
 0x81b   :  { %15354 = vst [vmem:[#allocation44_spill] sm:$0xff] %v14192_v59  ;;  %v14194_v15 = vpop.f32.mrb[39].mxu1 }
 0x81c   :  { %15355 = vst [vmem:[#allocation27_spill] sm:$0xff] %v14194_v15 }
 0x85b   :  { %v14196_v61 = vpop.f32.mrb[40].mxu1 }
 0x85c   :  { %15356 = vst [vmem:[#allocation26_spill] sm:$0xff] %v14196_v61  ;;  %v14198_v16 = vpop.f32.mrb[41].mxu1 }
 0x85d   :  { %15357 = vst [vmem:[#allocation29_spill] sm:$0xff] %v14198_v16 }
 0x85f   :  { %v14200_v26 = vpop.f32.mrb[42].mxu1 }
 0x860   :  { %15358 = vst [vmem:[#allocation28_spill] sm:$0xff] %v14200_v26  ;;  %v14202_v63 = vpop.f32.mrb[43].mxu1 }
 0x861   :  { %15359 = vst [vmem:[#allocation31_spill] sm:$0xff] %v14202_v63 }
 0x863   :  { %v14204_v20 = vpop.f32.mrb[44].mxu1 }
 0x864   :  { %15360 = vst [vmem:[#allocation30_spill] sm:$0xff] %v14204_v20  ;;  %v14206_v19 = vpop.f32.mrb[45].mxu1 }
 0x865   :  { %15361 = vst [vmem:[#allocation33_spill] sm:$0xff] %v14206_v19 }
 0x894   :  { %v14208_v32 = vpop.f32.mrb[46].mxu1 }
 0x895   :  { %15362 = vst [vmem:[#allocation32_spill] sm:$0xff] %v14208_v32  ;;  %v14210_v46 = vpop.f32.mrb[47].mxu1 }
 0x896   :  { %15363 = vst [vmem:[#allocation35_spill] sm:$0xff] %v14210_v46 }
 0x898   :  { %v9825_v12 = vpop.f32.mrb[48].mxu1 }
 0x899   :  { %v4826_v10 = vpop.f32.mrb[49].mxu1  ;;  %v5037_v21 = vsel %vm4212_vm8, %v9825_v12, -inf }
 0x89a   :  { %5038 = vmax.xlane.f32.xlu1 %v5037_v21  ;;  %v5034_v45 = vsel %vm4212_vm8, %v4826_v10, -inf }
 0x89b   :  { %5035 = vmax.xlane.f32.xlu0 %v5034_v45 }
 0x89c   :  { %v9828_v27 = vpop.f32.mrb[50].mxu1 }
 0x89d   :  { %v4836_v7 = vpop.f32.mrb[51].mxu1  ;;  %v5043_v13 = vsel %vm4212_vm8, %v9828_v27, -inf }
 0x89e   :  { %v5040_v1 = vsel %vm4212_vm8, %v4836_v7, -inf }
 0x89f   :  { %5044 = vmax.xlane.f32.xlu0 %v5043_v13 }
 0x8a0   :  { %v9831_v24 = vpop.f32.mrb[52].mxu1 }
 0x8a1   :  { %v14215_v42 = vpop.f32.mrb[53].mxu1  ;;  %v5049_v22 = vsel %vm4212_vm8, %v9831_v24, -inf }
 0x8a2   :  { %5050 = vmax.xlane.f32.xlu1 %v5049_v22  ;;  %v5046_v23 = vsel %vm4212_vm8, %v14215_v42, -inf }
 0x8a3   :  { %5041 = vmax.xlane.f32.xlu0 %v5040_v1 }
 0x8a4   :  { %v9834_v11 = vpop.f32.mrb[54].mxu1 }
 0x8a5   :  { %v14219_v8 = vpop.f32.mrb[55].mxu1  ;;  %v5055_v56 = vsel %vm4212_vm8, %v9834_v11, -inf }
 0x8a6   :  { %5056 = vmax.xlane.f32.xlu1 %v5055_v56  ;;  %v5052_v33 = vsel %vm4212_vm8, %v14219_v8, -inf }
 0x8a7   :  { %5047 = vmax.xlane.f32.xlu0 %v5046_v23 }
 0x8ab   :  { %5053 = vmax.xlane.f32.xlu0 %v5052_v33 }
 0x8b8   :  { %v14226_v49 = vpop.f32.mrb[56].mxu1 }
 0x8b9   :  { %v14228_v31 = vpop.f32.mrb[57].mxu1  ;;  %v5061_v36 = vsel %vm4212_vm8, %v14226_v49, -inf }
 0x8ba   :  { %5062 = vmax.xlane.f32.xlu1 %v5061_v36  ;;  %v5058_v17 = vsel %vm4212_vm8, %v14228_v31, -inf }
 0x8bb   :  { %5059 = vmax.xlane.f32.xlu0 %v5058_v17 }
 0x8bc   :  { %v14234_v29 = vpop.f32.mrb[58].mxu1 }
 0x8bd   :  { %v14236_v38 = vpop.f32.mrb[59].mxu1  ;;  %v5067_v35 = vsel %vm4212_vm8, %v14234_v29, -inf }
 0x8be   :  { %5068 = vmax.xlane.f32.xlu1 %v5067_v35  ;;  %v5064_v21 = vsel %vm4212_vm8, %v14236_v38, -inf }
 0x8bf   :  { %5065 = vmax.xlane.f32.xlu0 %v5064_v21 }
 0x8c0   :  { %v14242_v45 = vpop.f32.mrb[60].mxu1 }
 0x8c1   :  { %v14244_v13 = vpop.f32.mrb[61].mxu1  ;;  %v5073_v22 = vsel %vm4212_vm8, %v14242_v45, -inf }
 0x8c2   :  { %5074 = vmax.xlane.f32.xlu1 %v5073_v22  ;;  %v5070_v1 = vsel %vm4212_vm8, %v14244_v13, -inf }
 0x8c3   :  { %5071 = vmax.xlane.f32.xlu0 %v5070_v1 }
 0x8c4   :  { %v14250_v56 = vpop.f32.mrb[62].mxu1 }
 0x8c5   :  { %v14252_v23 = vpop.f32.mrb[63].mxu1  ;;  %v5079_v33 = vsel %vm4212_vm8, %v14250_v56, -inf }
 0x8c6   :  { %5080 = vmax.xlane.f32.xlu1 %v5079_v33  ;;  %v5076_v36 = vsel %vm4212_vm8, %v14252_v23, -inf }
 0x8d7   :  { %11024 = vrot.lane.b32.xlu1 %v13741_v4, %s11884_s5 }
 0x8d9   :  { %11029 = vrot.lane.b32.xlu0 %v13751_v44, %s11884_s5 }
 0x8f8   :  { %5077 = vmax.xlane.f32.xlu0 %v5076_v36 }
 0x90e   :  { %11034 = vrot.lane.b32.xlu0 %v13761_v37, %s11884_s5 }
 0x927   :  { %v5039_v17 = vpop.xlane.xlu1 %5038 }
 0x928   :  { %v5083_v35 = vsub.f32 %v9825_v12, %v5039_v17  ;;  %v5036_v21 = vpop.xlane.xlu0 %5035 }
 0x929   :  { %v5082_v22 = vsub.f32 %v4826_v10, %v5036_v21 }
 0x92a   :  { %v5100_v1 = vmul.f32 1.442695, %v5083_v35 }
 0x92b   :  { %v5098_v32 = vmul.f32 1.442695, %v5082_v22 }
 0x92c   :  { %11368 = vpow2.f32 %v5100_v1  ;;  %v5045_v33 = vpop.xlane.xlu0 %5044 }
 0x92d   :  { %11370 = vpow2.f32 %v5098_v32  ;;  %v5085_v46 = vsub.f32 %v9828_v27, %v5045_v33 }
 0x92f   :  { %v5104_v20 = vmul.f32 1.442695, %v5085_v46  ;;  %v5051_v19 = vpop.xlane.xlu1 %5050 }
 0x930   :  { %v5087_v26 = vsub.f32 %v9831_v24, %v5051_v19  ;;  %v5042_v63 = vpop.xlane.xlu0 %5041 }
 0x931   :  { %11372 = vpow2.f32 %v5104_v20  ;;  %v5084_v61 = vsub.f32 %v4836_v7, %v5042_v63 }
 0x932   :  { %v5108_v36 = vmul.f32 1.442695, %v5087_v26 }
 0x933   :  { %v5102_v16 = vmul.f32 1.442695, %v5084_v61  ;;  %v5057_v59 = vpop.xlane.xlu1 %5056 }
 0x934   :  { %11374 = vpow2.f32 %v5108_v36  ;;  %v5089_v15 = vsub.f32 %v9834_v11, %v5057_v59  ;;  %v5048_v12 = vpop.xlane.xlu0 %5047 }
 0x935   :  { %11376 = vpow2.f32 %v5102_v16  ;;  %v5086_v10 = vsub.f32 %v14215_v42, %v5048_v12 }
 0x936   :  { %v14265_v17 = vpop.eup %11368  ;;  %v5112_v35 = vmul.f32 1.442695, %v5089_v15 }
 0x937   :  { %v14267_v32 = vpop.eup %11370  ;;  %v5106_v46 = vmul.f32 1.442695, %v5086_v10  ;;  %v5133_v19 = vsel %vm4212_vm8, %v14265_v17, 0.0 }
 0x938   :  { %11378 = vpow2.f32 %v5112_v35  ;;  %v5054_v63 = vpop.xlane.xlu0 %5053  ;;  %5134 = vadd.xlane.f32.xlu1 %v5133_v19  ;;  %v5130_v61 = vsel %vm4212_vm8, %v14267_v32, 0.0 }
 0x939   :  { %11380 = vpow2.f32 %v5106_v46  ;;  %v5088_v59 = vsub.f32 %v14219_v8, %v5054_v63  ;;  %5131 = vadd.xlane.f32.xlu0 %v5130_v61 }
 0x93b   :  { %v14274_v16 = vpop.eup %11372  ;;  %v5110_v26 = vmul.f32 1.442695, %v5088_v59 }
 0x93c   :  { %v5139_v15 = vsel %vm4212_vm8, %v14274_v16, 0.0 }
 0x93d   :  { %11382 = vpow2.f32 %v5110_v26  ;;  %5140 = vadd.xlane.f32.xlu1 %v5139_v15 }
 0x93e   :  { %v14278_v20 = vpop.eup %11374 }
 0x93f   :  { %v14280_v27 = vpop.eup %11376  ;;  %v5145_v7 = vsel %vm4212_vm8, %v14278_v20, 0.0 }
 0x940   :  { %v5136_v24 = vsel %vm4212_vm8, %v14280_v27, 0.0 }
 0x941   :  { %5146 = vadd.xlane.f32.xlu1 %v5145_v7  ;;  %5137 = vadd.xlane.f32.xlu0 %v5136_v24 }
 0x942   :  { %v14286_v42 = vpop.eup %11378 }
 0x943   :  { %v14288_v11 = vpop.eup %11380  ;;  %v5151_v8 = vsel %vm4212_vm8, %v14286_v42, 0.0 }
 0x944   :  { %v5142_v21 = vsel %vm4212_vm8, %v14288_v11, 0.0 }
 0x945   :  { %5152 = vadd.xlane.f32.xlu1 %v5151_v8  ;;  %5143 = vadd.xlane.f32.xlu0 %v5142_v21 }
 0x947   :  { %v14294_v22 = vpop.eup %11382  ;;  %v5063_v1 = vpop.xlane.xlu1 %5062 }
 0x948   :  { %v5091_v33 = vsub.f32 %v14226_v49, %v5063_v1  ;;  %v5060_v36 = vpop.xlane.xlu0 %5059  ;;  %v5148_v12 = vsel %vm4212_vm8, %v14294_v22, 0.0 }
 0x949   :  { %v5090_v10 = vsub.f32 %v14228_v31, %v5060_v36  ;;  %5149 = vadd.xlane.f32.xlu1 %v5148_v12 }
 0x94a   :  { %v5116_v35 = vmul.f32 1.442695, %v5091_v33 }
 0x94b   :  { %v5114_v46 = vmul.f32 1.442695, %v5090_v10  ;;  %v5069_v19 = vpop.xlane.xlu1 %5068 }
 0x94c   :  { %11384 = vpow2.f32 %v5116_v35  ;;  %v5093_v63 = vsub.f32 %v14234_v29, %v5069_v19  ;;  %v5066_v61 = vpop.xlane.xlu0 %5065 }
 0x94d   :  { %11386 = vpow2.f32 %v5114_v46  ;;  %v5092_v59 = vsub.f32 %v14236_v38, %v5066_v61 }
 0x94e   :  { %v5120_v26 = vmul.f32 1.442695, %v5093_v63 }
 0x94f   :  { %v5118_v15 = vmul.f32 1.442695, %v5092_v59  ;;  %v5075_v49 = vpop.xlane.xlu1 %5074 }
 0x950   :  { %11388 = vpow2.f32 %v5120_v26  ;;  %v5095_v7 = vsub.f32 %v14242_v45, %v5075_v49  ;;  %v5072_v24 = vpop.xlane.xlu0 %5071 }
 0x951   :  { %v5094_v31 = vsub.f32 %v14244_v13, %v5072_v24  ;;  %11390 = vpow2.f32 %v5118_v15 }
 0x952   :  { %v5124_v8 = vmul.f32 1.442695, %v5095_v7 }
 0x953   :  { %v5122_v21 = vmul.f32 1.442695, %v5094_v31  ;;  %v5081_v1 = vpop.xlane.xlu1 %5080 }
 0x954   :  { %v5097_v33 = vsub.f32 %v14250_v56, %v5081_v1  ;;  %v11030_v29 = vpop.permute.xlu0 %11029 }
 0x955   :  { %11392 = vpow2.f32 %v5122_v21  ;;  %v11032_v10 = vunpack.i.h.bf16 %v11030_v29  ;;  %v11031_v13 = vunpack.i.l.bf16 %v11030_v29 }
 0x956   :  { %v14305_v36 = vpop.eup %11384  ;;  %11394 = vpow2.f32 %v5124_v8  ;;  %v5128_v38 = vmul.f32 1.442695, %v5097_v33 }
 0x957   :  { %v14307_v12 = vpop.eup %11386  ;;  %v11025_v35 = vpop.permute.xlu1 %11024  ;;  %v5157_v45 = vsel %vm4212_vm8, %v14305_v36, 0.0  ;;  %v14319_v15 = vpack.c.bf16 %v11032_v10, %v11031_v13 }
 0x958   :  { %v11027_v46 = vunpack.i.h.bf16 %v11025_v35  ;;  %v11026_v19 = vunpack.i.l.bf16 %v11025_v35  ;;  %5158 = vadd.xlane.f32.xlu1 %v5157_v45  ;;  %v5154_v56 = vsel %vm4212_vm8, %v14307_v12, 0.0  ;;  %11396 = vpow2.f32 %v5128_v38 }
 0x959   :  { %5155 = vadd.xlane.f32.xlu0 %v5154_v56 }
 0x95a   :  { %v14313_v63 = vpop.eup %11388  ;;  %v10499_v61 = vpack.c.bf16 %v11027_v46, %v11026_v19 }
 0x95b   :  { %v5163_v59 = vsel %vm4212_vm8, %v14313_v63, 0.0  ;;  %v14317_v26 = vpop.eup %11390 }
 0x95c   :  { %5164 = vadd.xlane.f32.xlu1 %v5163_v59  ;;  %10500 = vmatprep.subr.bf16.mxu1 %v10499_v61  ;;  %v5160_v7 = vsel %vm4212_vm8, %v14317_v26, 0.0 }
 0x95d   :  { %10502 = vmatpush3.bf16.msra.mxu1 %v10499_v61 }
 0x95e   :  { %10504 = vmatprep.subr.bf16.mxu1 %v14319_v15 }
 0x95f   :  { %v14322_v49 = vpop.eup %11392 }
 0x960   :  { %v14326_v24 = vpop.eup %11394  ;;  %5161 = vadd.xlane.f32.xlu1 %v5160_v7  ;;  %v5166_v31 = vsel %vm4212_vm8, %v14322_v49, 0.0 }
 0x961   :  { %5167 = vadd.xlane.f32.xlu0 %v5166_v31  ;;  %v5169_v8 = vsel %vm4212_vm8, %v14326_v24, 0.0 }
 0x962   :  { %v14332_v21 = vpop.eup %11396 }
 0x963   :  { %v5175_v1 = vsel %vm4212_vm8, %v14332_v21, 0.0 }
 0x964   :  { %5170 = vadd.xlane.f32.xlu1 %v5169_v8 }
 0x968   :  { %5176 = vadd.xlane.f32.xlu1 %v5175_v1 }
 0x977   :  { %11044 = vrot.lane.b32.xlu0 %v13781_v39, %s11884_s5 }
 0x97b   :  { %11049 = vrot.lane.b32.xlu0 %v13707_v30, %s11885_s30 }
 0x97f   :  { %11054 = vrot.lane.b32.xlu0 %v13721_v53, %s11885_s30 }
 0x983   :  { %11059 = vrot.lane.b32.xlu0 %v13731_v14, %s11885_s30 }
 0x985   :  { %v5078_v33 = vpop.xlane.xlu0 %5077 }
 0x986   :  { %v5096_v29 = vsub.f32 %v14252_v23, %v5078_v33 }
 0x987   :  { %11069 = vrot.lane.b32.xlu0 %v13741_v4, %s11885_s30 }
 0x988   :  { %v5126_v38 = vmul.f32 1.442695, %v5096_v29 }
 0x989   :  { %v11035_v23 = vpop.permute.xlu0 %11034 }
 0x98a   :  { %11398 = vpow2.f32 %v5126_v38  ;;  %v11037_v7 = vunpack.i.h.bf16 %v11035_v23  ;;  %v11036_v31 = vunpack.i.l.bf16 %v11035_v23 }
 0x98b   :  { %11079 = vrot.lane.b32.xlu0 %v13771_v0, %s11885_s30 }
 0x98c   :  { %v10507_v38 = vpack.c.bf16 %v11037_v7, %v11036_v31 }
 0x98f   :  { %5905 = vrot.lane.b32.xlu0 %v13814_v6, %s11886_s9 }
 0x993   :  { %5909 = vrot.lane.b32.xlu0 %v13828_v52, %s11886_s9 }
 0x994   :  { %v14348_v10 = vpop.eup %11398 }
 0x995   :  { %v5172_v35 = vsel %vm4212_vm8, %v14348_v10, 0.0 }
 0x996   :  { %5173 = vadd.xlane.f32.xlu1 %v5172_v35 }
 0x997   :  { %5911 = vrot.lane.b32.xlu0 %v13831_v58, %s11886_s9 }
 0x99b   :  { %5915 = vrot.lane.b32.xlu0 %v13841_v28, %s11886_s9 }
 0x99f   :  { %6072 = vrot.lane.b32.xlu0 %v13855_v55, %s11886_s9 }
 0x9a3   :  { %6076 = vrot.lane.b32.xlu0 %v13871_v3, %s11886_s9 }
 0x9a7   :  { %6080 = vrot.lane.b32.xlu0 %v13881_v40, %s11886_s9  ;;  %11039 = vrot.lane.b32.xlu1 %v13771_v0, %s11884_s5 }
 0x9ab   :  { %6084 = vrot.lane.b32.xlu0 %v13891_v62, %s11886_s9  ;;  %11064 = vrot.lane.b32.xlu1 %v13751_v44, %s11885_s30 }
 0x9af   :  { %11074 = vrot.lane.b32.xlu1 %v13761_v37, %s11885_s30 }
 0x9b3   :  { %5903 = vrot.lane.b32.xlu1 %v13709_v2, %s11886_s9 }
 0x9b7   :  { %5907 = vrot.lane.b32.xlu1 %v13817_v60, %s11886_s9 }
 0x9bb   :  { %11084 = vrot.lane.b32.xlu1 %v13781_v39, %s11885_s30 }
 0x9bf   :  { %5913 = vrot.lane.b32.xlu1 %v13838_v57, %s11886_s9 }
 0x9c3   :  { %5917 = vrot.lane.b32.xlu1 %v13852_v41, %s11886_s9 }
 0x9c5   :  { %v5135_v45 = vpop.xlane.xlu1 %5134 }
 0x9c6   :  { %11400 = vrcp.f32 %v5135_v45  ;;  %v5132_v13 = vpop.xlane.xlu0 %5131 }
 0x9c7   :  { %6074 = vrot.lane.b32.xlu1 %v13868_v51, %s11886_s9  ;;  %11402 = vrcp.f32 %v5132_v13 }
 0x9ca   :  { %v5141_v46 = vpop.xlane.xlu1 %5140 }
 0x9cb   :  { %6078 = vrot.lane.b32.xlu1 %v13878_v48, %s11886_s9  ;;  %11404 = vrcp.f32 %v5141_v46 }
 0x9ce   :  { %v5147_v19 = vpop.xlane.xlu1 %5146  ;;  %v5138_v56 = vpop.xlane.xlu0 %5137 }
 0x9cf   :  { %6082 = vrot.lane.b32.xlu1 %v13888_v9, %s11886_s9  ;;  %11406 = vrcp.f32 %v5138_v56 }
 0x9d0   :  { %v11401_v61 = vpop.eup %11400  ;;  %11408 = vrcp.f32 %v5147_v19 }
 0x9d1   :  { %v11403_v59 = vpop.eup %11402  ;;  %v5195_v29 = vmul.f32 %v11401_v61, %v14265_v17 }
 0x9d2   :  { %v5153_v8 = vpop.xlane.xlu1 %5152  ;;  %v5144_v1 = vpop.xlane.xlu0 %5143  ;;  %v5194_v33 = vmul.f32 %v11403_v59, %v14267_v32 }
 0x9d3   :  { %6086 = vrot.lane.b32.xlu1 %v13898_v18, %s11886_s9  ;;  %11410 = vrcp.f32 %v5144_v1 }
 0x9d4   :  { %9879 = vmatprep.mubr.msk.f32.mxu1 %vm4212_vm8, %v5194_v33  ;;  %11412 = vrcp.f32 %v5153_v8 }
 0x9d5   :  { %9880 = vmatmul.mubr.msk.f32.vlgmr.msra.gmra.mrb[64].mxu1 %vm4212_vm8, %v5195_v29  ;;  %v11405_v23 = vpop.eup %11404 }
 0x9d6   :  { %10506 = vmatpush3.bf16.msra.mxu1 %v14319_v15  ;;  %v5150_v35 = vpop.xlane.xlu1 %5149  ;;  %v5197_v45 = vmul.f32 %v11405_v23, %v14274_v16 }
 0x9d7   :  { %11414 = vrcp.f32 %v5150_v35  ;;  %10508 = vmatprep.subr.bf16.mxu1 %v10507_v38 }
 0x9d9   :  { %v11407_v32 = vpop.eup %11406 }
 0x9da   :  { %10510 = vmatpush3.bf16.msra.mxu1 %v10507_v38  ;;  %v5196_v17 = vmul.f32 %v11407_v32, %v14280_v27  ;;  %v11409_v13 = vpop.eup %11408 }
 0x9db   :  { %v5199_v15 = vmul.f32 %v11409_v13, %v14278_v20 }
 0x9dc   :  { %9882 = vmatprep.mubr.msk.f32.mxu1 %vm4212_vm8, %v5196_v17 }
 0x9dd   :  { %v11411_v46 = vpop.eup %11410  ;;  %9883 = vmatmul.mubr.msk.f32.gmra.mrb[66].mxu1 %vm4212_vm8, %v5197_v45 }
 0x9de   :  { %v5198_v19 = vmul.f32 %v11411_v46, %v14288_v11  ;;  %v11413_v56 = vpop.eup %11412 }
 0x9df   :  { %v5201_v16 = vmul.f32 %v11413_v56, %v14286_v42 }
 0x9e0   :  { %9885 = vmatprep.mubr.msk.f32.mxu1 %vm4212_vm8, %v5198_v19 }
 0x9e1   :  { %v11415_v61 = vpop.eup %11414  ;;  %9886 = vmatmul.mubr.msk.f32.gmra.mrb[68].mxu1 %vm4212_vm8, %v5199_v15 }
 0x9e2   :  { %v5200_v27 = vmul.f32 %v11415_v61, %v14294_v22 }
 0x9e4   :  { %9888 = vmatprep.mubr.msk.f32.mxu1 %vm4212_vm8, %v5200_v27 }
 0x9e5   :  { %9889 = vmatmul.mubr.msk.f32.gmra.mrb[70].mxu1 %vm4212_vm8, %v5201_v16  ;;  %v5159_v29 = vpop.xlane.xlu1 %5158 }
 0x9e6   :  { %v5156_v59 = vpop.xlane.xlu0 %5155 }
 0x9e7   :  { %11416 = vrcp.f32 %v5156_v59 }
 0x9e8   :  { %11418 = vrcp.f32 %v5159_v29 }
 0x9e9   :  { %v5165_v35 = vpop.xlane.xlu1 %5164 }
 0x9ee   :  { %v5168_v7 = vpop.xlane.xlu0 %5167 }
 0x9f1   :  { %v11417_v11 = vpop.eup %11416 }
 0x9f2   :  { %v11045_v31 = vpop.permute.xlu0 %11044  ;;  %v5202_v20 = vmul.f32 %v11417_v11, %v14307_v12  ;;  %v5162_v12 = vpop.xlane.xlu1 %5161 }
 0x9f3   :  { %11420 = vrcp.f32 %v5162_v12  ;;  %v11047_v15 = vunpack.i.h.bf16 %v11045_v31  ;;  %v11046_v61 = vunpack.i.l.bf16 %v11045_v31  ;;  %v11419_v29 = vpop.eup %11418  ;;  %v5516_v31 = vld [vmem:[%s15262_s10 + $0x8] sm:$0xff] }
 0x9f4   :  { %9907 = vmatprep.mubr.msk.f32.mxu1 %vm4212_vm8, %v5202_v20  ;;  %11422 = vrcp.f32 %v5165_v35 }
 0x9f5   :  { %11424 = vrcp.f32 %v5168_v7  ;;  %v10515_v40 = vpack.c.bf16 %v11047_v15, %v11046_v61 }
 0x9f6   :  { %v14404_v8 = vpop.permute.xlu0 %11049  ;;  %v5171_v45 = vpop.xlane.xlu1 %5170 }
 0x9f7   :  { %11426 = vrcp.f32 %v5171_v45 }
 0x9fa   :  { %v14406_v1 = vpop.permute.xlu0 %11054  ;;  %v5177_v46 = vpop.xlane.xlu1 %5176 }
 0x9fe   :  { %v14408_v22 = vpop.permute.xlu0 %11059 }
 0xa02   :  { %v14410_v33 = vpop.permute.xlu0 %11069 }
 0xa06   :  { %v14412_v42 = vpop.permute.xlu0 %11079 }
 0xa0a   :  { %v14414_v38 = vpop.permute.xlu0 %5905 }
 0xa0e   :  { %v14416_v23 = vpop.permute.xlu0 %5909 }
 0xa12   :  { %v14418_v32 = vpop.permute.xlu0 %5911 }
 0xa16   :  { %v14420_v17 = vpop.permute.xlu0 %5915 }
 0xa1a   :  { %v6073_v13 = vpop.permute.xlu0 %6072 }
 0xa1b   :  { %10015 = vmatprep.mubr.msk.f32.mxu0 %vm3897_vm6, %v6073_v13 }
 0xa23   :  { %v5174_v19 = vpop.xlane.xlu1 %5173 }
 0xa24   :  { %11428 = vrcp.f32 %v5174_v19 }
 0xa25   :  { %11430 = vrcp.f32 %v5177_v46  ;;  %v11082_v46 = vunpack.i.h.bf16 %v14412_v42 }
 0xa27   :  { %v11040_v56 = vpop.permute.xlu1 %11039 }
 0xa28   :  { %v11042_v27 = vunpack.i.h.bf16 %v11040_v56  ;;  %v11041_v16 = vunpack.i.l.bf16 %v11040_v56  ;;  %v11421_v56 = vpop.eup %11420 }
 0xa29   :  { %v11423_v19 = vpop.eup %11422  ;;  %v5204_v61 = vmul.f32 %v11421_v56, %v14317_v26 }
 0xa2a   :  { %v10511_v59 = vpack.c.bf16 %v11042_v27, %v11041_v16  ;;  %v4695_v27 = vld [vmem:[%s15262_s10] sm:$0xff]  ;;  %v11425_v16 = vpop.eup %11424 }
 0xa2b   :  { %v11065_v11 = vpop.permute.xlu1 %11064  ;;  %v11427_v26 = vpop.eup %11426 }
 0xa2c   :  { %v11067_v20 = vunpack.i.h.bf16 %v11065_v11  ;;  %v11066_v62 = vunpack.i.l.bf16 %v11065_v11  ;;  %10512 = vmatprep.subr.bf16.mxu1 %v10511_v59  ;;  %v5206_v11 = vmul.f32 %v11425_v16, %v14322_v49 }
 0xa2d   :  { %10514 = vmatpush3.bf16.msra.mxu1 %v10511_v59 }
 0xa2e   :  { %v10543_v13 = vpack.c.bf16 %v11067_v20, %v11066_v62  ;;  %10516 = vmatprep.subr.bf16.mxu1 %v10515_v40  ;;  %v5203_v62 = vmul.f32 %v11419_v29, %v14305_v36  ;;  %v5205_v36 = vmul.f32 %v11423_v19, %v14313_v63  ;;  %v11429_v20 = vpop.eup %11428  ;;  %v5207_v63 = vmul.f32 %v11427_v26, %v14326_v24 }
 0xa2f   :  { %v11075_v12 = vpop.permute.xlu1 %11074 }
 0xa30   :  { %v11077_v35 = vunpack.i.h.bf16 %v11075_v12  ;;  %v11076_v7 = vunpack.i.l.bf16 %v11075_v12  ;;  %10545 = vmatprep.subr.msk.bf16.mxu0 %vm13791_vm7, %v10543_v13  ;;  %v5208_v12 = vmul.f32 %v11429_v20, %v14348_v10 }
 0xa31   :  { %10518 = vmatpush3.bf16.msra.mxu1 %v10515_v40  ;;  %10548 = vmatpush3.bf16.xpose.msk.msra.mxu0 %vm13791_vm7, %v10543_v13  ;;  %v11081_v40 = vunpack.i.l.bf16 %v14412_v42  ;;  %v11431_v42 = vpop.eup %11430 }
 0xa32   :  { %v10549_v45 = vpack.c.bf16 %v11077_v35, %v11076_v7  ;;  %9919 = vmatprep.subr.mxu1 %v5516_v31  ;;  %v5209_v56 = vmul.f32 %v11431_v42, %v14332_v21 }
 0xa33   :  { %v14431_v15 = vpop.permute.xlu1 %5903  ;;  %v10555_v13 = vpack.c.bf16 %v11082_v46, %v11081_v40  ;;  %v11052_v46 = vunpack.i.h.bf16 %v14404_v8  ;;  %v11051_v40 = vunpack.i.l.bf16 %v14404_v8 }
 0xa34   :  { %9908 = vmatmul.mubr.msk.f32.vlgmr.msra.gmra.mrb[72].mxu1 %vm4212_vm8, %v5203_v62  ;;  %10551 = vmatprep.subr.msk.bf16.mxu0 %vm13791_vm7, %v10549_v45  ;;  %v6077_v62 = vpop.permute.xlu0 %6076 }
 0xa35   :  { %9910 = vmatprep.mubr.msk.f32.mxu1 %vm4212_vm8, %v5204_v61  ;;  %9920 = vmatpush3.msra.mxu1 %v5516_v31 }
 0xa36   :  { %9945 = vmatprep.subr.mxu1 %v4695_v27 }
 0xa37   :  { %v14444_v59 = vpop.permute.xlu1 %5907 }
 0xa38   :  { %9911 = vmatmul.mubr.msk.f32.gmra.mrb[74].mxu1 %vm4212_vm8, %v5205_v36  ;;  %v6081_v21 = vpop.permute.xlu0 %6080 }
 0xa39   :  { %9913 = vmatprep.mubr.msk.f32.mxu1 %vm4212_vm8, %v5206_v11  ;;  %10554 = vmatpush3.bf16.xpose.msk.msra.mxu0 %vm13791_vm7, %v10549_v45  ;;  %v10519_v11 = vpack.c.bf16 %v11052_v46, %v11051_v40  ;;  %v15365_v46 = vld [vmem:[#allocation44_spill] sm:$0xff]  ;;  %v15366_v40 = vld [vmem:[#allocation29_spill] sm:$0xff] }
 0xa3a   :  { %10557 = vmatprep.subr.msk.bf16.mxu0 %vm13791_vm7, %v10555_v13 }
 0xa3b   :  { %v11085_v29 = vpop.permute.xlu1 %11084 }
 0xa3c   :  { %v11087_v31 = vunpack.i.h.bf16 %v11085_v29  ;;  %v11086_v49 = vunpack.i.l.bf16 %v11085_v29  ;;  %9914 = vmatmul.mubr.msk.f32.gmra.mrb[76].mxu1 %vm4212_vm8, %v5207_v63  ;;  %v6085_v61 = vpop.permute.xlu0 %6084 }
 0xa3d   :  { %9916 = vmatprep.mubr.msk.f32.mxu1 %vm4212_vm8, %v5208_v12 }
 0xa3e   :  { %v10561_v7 = vpack.c.bf16 %v11087_v31, %v11086_v49 }
 0xa3f   :  { %v14458_v35 = vpop.permute.xlu1 %5913 }
 0xa40   :  { %9917 = vmatmul.mubr.msk.f32.gmra.mrb[78].mxu1 %vm4212_vm8, %v5209_v56 }
 0xa41   :  { %10560 = vmatpush3.bf16.xpose.msk.msra.mxu0 %vm13791_vm7, %v10555_v13 }
 0xa42   :  { %10563 = vmatprep.subr.msk.bf16.mxu0 %vm13791_vm7, %v10561_v7 }
 0xa43   :  { %v14465_v24 = vpop.permute.xlu1 %5917 }
 0xa47   :  { %v6075_v10 = vpop.permute.xlu1 %6074 }
 0xa49   :  { %10566 = vmatpush3.bf16.xpose.msk.msra.mxu0 %vm13791_vm7, %v10561_v7 }
 0xa4b   :  { %v6079_v45 = vpop.permute.xlu1 %6078 }
 0xa4f   :  { %v6083_v19 = vpop.permute.xlu1 %6082 }
 0xa50   :  { %10016 = vmatmul.mubr.msk.f32.vlgmr.msra.gmra.mrb[16].mxu0 %vm3897_vm6, %v6075_v10 }
 0xa51   :  { %10018 = vmatprep.mubr.msk.f32.mxu0 %vm3897_vm6, %v6077_v62 }
 0xa53   :  { %v6087_v16 = vpop.permute.xlu1 %6086 }
 0xa54   :  { %10019 = vmatmul.mubr.msk.f32.gmra.mrb[18].mxu0 %vm3897_vm6, %v6079_v45  ;;  %v11057_v45 = vunpack.i.h.bf16 %v14406_v1 }
 0xa55   :  { %10021 = vmatprep.mubr.msk.f32.mxu0 %vm3897_vm6, %v6081_v21  ;;  %v11056_v21 = vunpack.i.l.bf16 %v14406_v1  ;;  %v11062_v1 = vunpack.i.h.bf16 %v14408_v22 }
 0xa58   :  { %10022 = vmatmul.mubr.msk.f32.gmra.mrb[20].mxu0 %vm3897_vm6, %v6083_v19  ;;  %v10525_v19 = vpack.c.bf16 %v11057_v45, %v11056_v21  ;;  %v15372_v45 = vld [vmem:[#allocation35_spill] sm:$0xff]  ;;  %v15373_v21 = vld [vmem:[#allocation32_spill] sm:$0xff] }
 0xa59   :  { %10024 = vmatprep.mubr.msk.f32.mxu0 %vm3897_vm6, %v6085_v61  ;;  %v11061_v61 = vunpack.i.l.bf16 %v14408_v22 }
 0xa5c   :  { %10025 = vmatmul.mubr.msk.f32.gmra.mrb[22].mxu0 %vm3897_vm6, %v6087_v16  ;;  %v11072_v16 = vunpack.i.h.bf16 %v14410_v33 }
 0xaa8   :  { %v9881_v36 = vpop.f32.mrb[64].mxu1 }
 0xaa9   :  { %v5324_v26 = vpop.f32.mrb[65].mxu1 }
 0xaaa   :  { %9921 = vmatprep.mubr.msk.f32.mxu1 %vm3897_vm6, %v5324_v26 }
 0xaab   :  { %9922 = vmatmul.mubr.msk.f32.vlgmr.msra.gmra.mrb[80].mxu1 %vm3897_vm6, %v9881_v36 }
 0xaac   :  { %9946 = vmatpush3.msra.mxu1 %v4695_v27 }
 0xaad   :  { %10521 = vmatprep.subr.msk.bf16.mxu1 %vm13791_vm7, %v10519_v11 }
 0xab0   :  { %v9884_v20 = vpop.f32.mrb[66].mxu1 }
 0xab1   :  { %v5334_v13 = vpop.f32.mrb[67].mxu1 }
 0xab2   :  { %9924 = vmatprep.mubr.msk.f32.mxu1 %vm3897_vm6, %v5334_v13 }
 0xab3   :  { %9925 = vmatmul.mubr.msk.f32.gmra.mrb[82].mxu1 %vm3897_vm6, %v9884_v20 }
 0xab4   :  { %v9887_v63 = vpop.f32.mrb[68].mxu1 }
 0xab5   :  { %v5344_v42 = vpop.f32.mrb[69].mxu1 }
 0xab6   :  { %9927 = vmatprep.mubr.msk.f32.mxu1 %vm3897_vm6, %v5344_v42 }
 0xab7   :  { %9928 = vmatmul.mubr.msk.f32.gmra.mrb[84].mxu1 %vm3897_vm6, %v9887_v63  ;;  %v15368_v63 = vld [vmem:[#allocation31_spill] sm:$0xff] }
 0xab8   :  { %v9890_v8 = vpop.f32.mrb[70].mxu1 }
 0xab9   :  { %v5354_v29 = vpop.f32.mrb[71].mxu1 }
 0xaba   :  { %9930 = vmatprep.mubr.msk.f32.mxu1 %vm3897_vm6, %v5354_v29 }
 0xabb   :  { %9931 = vmatmul.mubr.msk.f32.gmra.mrb[86].mxu1 %vm3897_vm6, %v9890_v8 }
 0xb07   :  { %v9909_v27 = vpop.f32.mrb[72].mxu1 }
 0xb08   :  { %v5477_v12 = vpop.f32.mrb[73].mxu1 }
 0xb09   :  { %9933 = vmatprep.mubr.msk.f32.mxu1 %vm3897_vm6, %v5477_v12  ;;  %v15369_v12 = vld [vmem:[#allocation28_spill] sm:$0xff] }
 0xb0a   :  { %9934 = vmatmul.mubr.msk.f32.gmra.mrb[88].mxu1 %vm3897_vm6, %v9909_v27 }
 0xb0b   :  { %v9912_v31 = vpop.f32.mrb[74].mxu1 }
 0xb0c   :  { %v5487_v49 = vpop.f32.mrb[75].mxu1 }
 0xb0d   :  { %9936 = vmatprep.mubr.msk.f32.mxu1 %vm3897_vm6, %v5487_v49 }
 0xb0e   :  { %9937 = vmatmul.mubr.msk.f32.gmra.mrb[90].mxu1 %vm3897_vm6, %v9912_v31  ;;  %v15370_v31 = vld [vmem:[#allocation33_spill] sm:$0xff] }
 0xb0f   :  { %v9915_v56 = vpop.f32.mrb[76].mxu1 }
 0xb10   :  { %v5497_v7 = vpop.f32.mrb[77].mxu1 }
 0xb11   :  { %9939 = vmatprep.mubr.msk.f32.mxu1 %vm3897_vm6, %v5497_v7 }
 0xb12   :  { %9940 = vmatmul.mubr.msk.f32.gmra.mrb[92].mxu1 %vm3897_vm6, %v9915_v56 }
 0xb13   :  { %v9918_v10 = vpop.f32.mrb[78].mxu1 }
 0xb14   :  { %v5507_v62 = vpop.f32.mrb[79].mxu1 }
 0xb15   :  { %9942 = vmatprep.mubr.msk.f32.mxu1 %vm3897_vm6, %v5507_v62  ;;  %v15371_v62 = vld [vmem:[#allocation30_spill] sm:$0xff] }
 0xb16   :  { %9943 = vmatmul.mubr.msk.f32.gmra.mrb[94].mxu1 %vm3897_vm6, %v9918_v10 }
 0xb17   :  { %9947 = vmatprep.mubr.msk.f32.mxu1 %vm3897_vm6, %v14182_v54  ;;  %v15364_v54 = vld [vmem:[#allocation27_spill] sm:$0xff] }
 0xb1a   :  { %9948 = vmatmul.mubr.msk.f32.vlgmr.msra.gmra.mrb[80].mxu1 %vm3897_vm6, %v14180_v43  ;;  %v10531_v43 = vpack.c.bf16 %v11062_v1, %v11061_v61 }
 0xb1b   :  { %10524 = vmatpush3.bf16.xpose.msk.msra.mxu1 %vm13791_vm7, %v10519_v11  ;;  %9950 = vmatprep.mubr.msk.f32.mxu1 %vm3897_vm6, %v14186_v50 }
 0xb1c   :  { %10527 = vmatprep.subr.msk.bf16.mxu1 %vm13791_vm7, %v10525_v19 }
 0xb1e   :  { %9951 = vmatmul.mubr.msk.f32.gmra.mrb[82].mxu1 %vm3897_vm6, %v14184_v34 }
 0xb1f   :  { %9953 = vmatprep.mubr.msk.f32.mxu1 %vm3897_vm6, %v14190_v47 }
 0xb22   :  { %9954 = vmatmul.mubr.msk.f32.gmra.mrb[84].mxu1 %vm3897_vm6, %v14188_v25  ;;  %v11071_v25 = vunpack.i.l.bf16 %v14410_v33  ;;  %v15367_v33 = vld [vmem:[#allocation26_spill] sm:$0xff] }
 0xb23   :  { %10530 = vmatpush3.bf16.xpose.msk.msra.mxu1 %vm13791_vm7, %v10525_v19  ;;  %9956 = vmatprep.mubr.msk.f32.mxu1 %vm3897_vm6, %v15364_v54  ;;  %v10017_v50 = vpop.f32.mrb[16].mxu0 }
 0xb24   :  { %10533 = vmatprep.subr.msk.bf16.mxu1 %vm13791_vm7, %v10531_v43  ;;  %v6202_v22 = vpop.f32.mrb[17].mxu0  ;;  %v6268_v34 = vsel %vm4212_vm8, %v10017_v50, -inf  ;;  %v10537_v13 = vpack.c.bf16 %v11072_v16, %v11071_v25 }
 0xb25   :  { %6269 = vmax.xlane.f32.xlu1 %v6268_v34  ;;  %v6265_v47 = vsel %vm4212_vm8, %v6202_v22, -inf }
 0xb26   :  { %6266 = vmax.xlane.f32.xlu0 %v6265_v47  ;;  %9957 = vmatmul.mubr.msk.f32.gmra.mrb[86].mxu1 %vm3897_vm6, %v15365_v46 }
 0xb27   :  { %9959 = vmatprep.mubr.msk.f32.mxu1 %vm3897_vm6, %v15366_v40  ;;  %v14530_v36 = vpop.f32.mrb[18].mxu0 }
 0xb28   :  { %v14532_v26 = vpop.f32.mrb[19].mxu0  ;;  %v6274_v11 = vsel %vm4212_vm8, %v14530_v36, -inf }
 0xb29   :  { %6275 = vmax.xlane.f32.xlu1 %v6274_v11  ;;  %v6271_v20 = vsel %vm4212_vm8, %v14532_v26, -inf }
 0xb2a   :  { %6272 = vmax.xlane.f32.xlu0 %v6271_v20  ;;  %9960 = vmatmul.mubr.msk.f32.gmra.mrb[88].mxu1 %vm3897_vm6, %v15367_v33 }
 0xb2b   :  { %10536 = vmatpush3.bf16.xpose.msk.msra.mxu1 %vm13791_vm7, %v10531_v43  ;;  %9962 = vmatprep.mubr.msk.f32.mxu1 %vm3897_vm6, %v15368_v63  ;;  %v14544_v42 = vpop.f32.mrb[20].mxu0 }
 0xb2c   :  { %10539 = vmatprep.subr.msk.bf16.mxu1 %vm13791_vm7, %v10537_v13  ;;  %v14548_v8 = vpop.f32.mrb[21].mxu0  ;;  %v6280_v29 = vsel %vm4212_vm8, %v14544_v42, -inf }
 0xb2d   :  { %6281 = vmax.xlane.f32.xlu1 %v6280_v29  ;;  %v6277_v27 = vsel %vm4212_vm8, %v14548_v8, -inf }
 0xb2e   :  { %6278 = vmax.xlane.f32.xlu0 %v6277_v27  ;;  %9963 = vmatmul.mubr.msk.f32.gmra.mrb[90].mxu1 %vm3897_vm6, %v15369_v12 }
 0xb2f   :  { %9965 = vmatprep.mubr.msk.f32.mxu1 %vm3897_vm6, %v15370_v31  ;;  %v14558_v49 = vpop.f32.mrb[22].mxu0 }
 0xb30   :  { %v14560_v56 = vpop.f32.mrb[23].mxu0  ;;  %v6286_v7 = vsel %vm4212_vm8, %v14558_v49, -inf }
 0xb31   :  { %6287 = vmax.xlane.f32.xlu1 %v6286_v7  ;;  %v6283_v10 = vsel %vm4212_vm8, %v14560_v56, -inf }
 0xb32   :  { %6284 = vmax.xlane.f32.xlu0 %v6283_v10  ;;  %9966 = vmatmul.mubr.msk.f32.gmra.mrb[92].mxu1 %vm3897_vm6, %v15371_v62 }
 0xb33   :  { %10542 = vmatpush3.bf16.xpose.msk.msra.mxu1 %vm13791_vm7, %v10537_v13  ;;  %9968 = vmatprep.mubr.msk.f32.mxu1 %vm3897_vm6, %v15372_v45 }
 0xb36   :  { %9969 = vmatmul.mubr.msk.f32.gmra.mrb[94].mxu1 %vm3897_vm6, %v15373_v21 }
 0xb37   :  { %9987 = vmatprep.mubr.msk.f32.mxu1 %vm3897_vm6, %v14431_v15 }
 0xb3a   :  { %9988 = vmatmul.mubr.msk.f32.vlgmr.msra.gmra.mrb[96].mxu1 %vm3897_vm6, %v14414_v38 }
 0xb3b   :  { %9990 = vmatprep.mubr.msk.f32.mxu1 %vm3897_vm6, %v14444_v59 }
 0xb3e   :  { %9991 = vmatmul.mubr.msk.f32.gmra.mrb[98].mxu1 %vm3897_vm6, %v14416_v23 }
 0xb3f   :  { %9993 = vmatprep.mubr.msk.f32.mxu1 %vm3897_vm6, %v14418_v32 }
 0xb42   :  { %11094 = vrot.lane.b32.xlu1 %v13721_v53, %s11887_s8  ;;  %9994 = vmatmul.mubr.msk.f32.gmra.mrb[100].mxu1 %vm3897_vm6, %v14458_v35 }
 0xb43   :  { %9996 = vmatprep.mubr.msk.f32.mxu1 %vm3897_vm6, %v14420_v17 }
 0xb46   :  { %9997 = vmatmul.mubr.msk.f32.gmra.mrb[102].mxu1 %vm3897_vm6, %v14465_v24 }
 0xb48   :  { %11089 = vrot.lane.b32.xlu0 %v13707_v30, %s11887_s8 }
 0xbb2   :  { %v6270_v38 = vpop.xlane.xlu1 %6269 }
 0xbb3   :  { %v6298_v23 = vsub.f32 %v10017_v50, %v6270_v38  ;;  %v6267_v15 = vpop.xlane.xlu0 %6266 }
 0xbb4   :  { %v6297_v32 = vsub.f32 %v6202_v22, %v6267_v15 }
 0xbb5   :  { %v6323_v59 = vmul.f32 1.442695, %v6298_v23 }
 0xbb6   :  { %v6321_v19 = vmul.f32 1.442695, %v6297_v32  ;;  %v6276_v1 = vpop.xlane.xlu1 %6275 }
 0xbb7   :  { %11432 = vpow2.f32 %v6323_v59  ;;  %v6273_v61 = vpop.xlane.xlu0 %6272  ;;  %v6300_v29 = vsub.f32 %v14530_v36, %v6276_v1 }
 0xbb8   :  { %11434 = vpow2.f32 %v6321_v19 }
 0xbb9   :  { %v6327_v10 = vmul.f32 1.442695, %v6300_v29 }
 0xbba   :  { %v14594_v35 = vpop.xlane.xlu1 %6281 }
 0xbbb   :  { %v6279_v43 = vpop.xlane.xlu0 %6278 }
 0xbbc   :  { %v6301_v17 = vsub.f32 %v14548_v8, %v6279_v43  ;;  %v6299_v8 = vsub.f32 %v14532_v26, %v6273_v61 }
 0xbbe   :  { %v14597_v54 = vpop.xlane.xlu1 %6287  ;;  %v6325_v27 = vmul.f32 1.442695, %v6299_v8 }
 0xbbf   :  { %v14599_v24 = vpop.xlane.xlu0 %6284 }
 0xbc0   :  { %v6303_v50 = vsub.f32 %v14560_v56, %v14599_v24  ;;  %11436 = vpow2.f32 %v6325_v27 }
 0xbc1   :  { %v14603_v34 = vpop.eup %11432  ;;  %11438 = vpow2.f32 %v6327_v10 }
 0xbc2   :  { %v14605_v22 = vpop.eup %11434  ;;  %v11095_v47 = vpop.permute.xlu1 %11094  ;;  %v6364_v16 = vsel %vm4212_vm8, %v14603_v34, 0.0 }
 0xbc3   :  { %6365 = vadd.xlane.f32.xlu1 %v6364_v16  ;;  %v11090_v25 = vpop.permute.xlu0 %11089  ;;  %v6361_v46 = vsel %vm4212_vm8, %v14605_v22, 0.0  ;;  %v11097_v40 = vunpack.i.h.bf16 %v11095_v47  ;;  %v11096_v11 = vunpack.i.l.bf16 %v11095_v47  ;;  %v6302_v16 = vsub.f32 %v14544_v42, %v14594_v35 }
 0xbc4   :  { %v11092_v20 = vunpack.i.h.bf16 %v11090_v25  ;;  %v11091_v13 = vunpack.i.l.bf16 %v11090_v25  ;;  %6362 = vadd.xlane.f32.xlu0 %v6361_v46  ;;  %v6329_v25 = vmul.f32 1.442695, %v6301_v17 }
 0xbc5   :  { %v10571_v63 = vpack.c.bf16 %v11097_v40, %v11096_v11  ;;  %v6331_v46 = vmul.f32 1.442695, %v6302_v16  ;;  %v6304_v40 = vsub.f32 %v14558_v49, %v14597_v54  ;;  %v6333_v11 = vmul.f32 1.442695, %v6303_v50 }
 0xbc6   :  { %v10567_v33 = vpack.c.bf16 %v11092_v20, %v11091_v13  ;;  %11440 = vpow2.f32 %v6329_v25 }
 0xbc7   :  { %11442 = vpow2.f32 %v6331_v46  ;;  %v6335_v20 = vmul.f32 1.442695, %v6304_v40 }
 0xbc8   :  { %10568 = vmatprep.subr.bf16.mxu1 %v10567_v33  ;;  %11444 = vpow2.f32 %v6333_v11 }
 0xbc9   :  { %10570 = vmatpush3.bf16.msra.mxu1 %v10567_v33  ;;  %11446 = vpow2.f32 %v6335_v20 }
 0xbca   :  { %10572 = vmatprep.subr.bf16.mxu1 %v10571_v63  ;;  %v14641_v19 = vpop.eup %11436 }
 0xbcb   :  { %v6367_v61 = vsel %vm4212_vm8, %v14641_v19, 0.0  ;;  %v14647_v43 = vpop.eup %11438 }
 0xbcc   :  { %v6370_v47 = vsel %vm4212_vm8, %v14647_v43, 0.0 }
 0xbcd   :  { %10574 = vmatpush3.bf16.msra.mxu1 %v10571_v63 }
 0xbd0   :  { %v14661_v13 = vpop.eup %11440 }
 0xbd1   :  { %v14663_v63 = vpop.eup %11442  ;;  %v6373_v42 = vsel %vm4212_vm8, %v14661_v13, 0.0 }
 0xbd2   :  { %v6376_v35 = vsel %vm4212_vm8, %v14663_v63, 0.0  ;;  %v14669_v17 = vpop.eup %11444 }
 0xbd3   :  { %v14671_v49 = vpop.eup %11446  ;;  %v6379_v54 = vsel %vm4212_vm8, %v14669_v17, 0.0 }
 0xbd4   :  { %v6382_v29 = vsel %vm4212_vm8, %v14671_v49, 0.0 }
 0xc0d   :  { %v14613_v12 = vpop.f32.mrb[96].mxu1 }
 0xc0e   :  { %v14615_v31 = vpop.f32.mrb[97].mxu1  ;;  %v6244_v56 = vsel %vm4212_vm8, %v14613_v12, -inf }
 0xc0f   :  { %6245 = vmax.xlane.f32.xlu1 %v6244_v56  ;;  %v6241_v7 = vsel %vm4212_vm8, %v14615_v31, -inf }
 0xc10   :  { %6242 = vmax.xlane.f32.xlu0 %v6241_v7 }
 0xc11   :  { %v14621_v62 = vpop.f32.mrb[98].mxu1 }
 0xc12   :  { %v14623_v26 = vpop.f32.mrb[99].mxu1  ;;  %v6250_v36 = vsel %vm4212_vm8, %v14621_v62, -inf }
 0xc13   :  { %v6247_v23 = vsel %vm4212_vm8, %v14623_v26, -inf }
 0xc14   :  { %6251 = vmax.xlane.f32.xlu0 %v6250_v36 }
 0xc15   :  { %v14627_v45 = vpop.f32.mrb[100].mxu1 }
 0xc16   :  { %v14629_v21 = vpop.f32.mrb[101].mxu1  ;;  %v6256_v38 = vsel %vm4212_vm8, %v14627_v45, -inf }
 0xc17   :  { %6257 = vmax.xlane.f32.xlu1 %v6256_v38  ;;  %v6253_v1 = vsel %vm4212_vm8, %v14629_v21, -inf }
 0xc18   :  { %6248 = vmax.xlane.f32.xlu0 %v6247_v23 }
 0xc19   :  { %v14635_v15 = vpop.f32.mrb[102].mxu1 }
 0xc1a   :  { %v14637_v32 = vpop.f32.mrb[103].mxu1  ;;  %v6262_v59 = vsel %vm4212_vm8, %v14635_v15, -inf }
 0xc1b   :  { %6263 = vmax.xlane.f32.xlu1 %v6262_v59  ;;  %v6259_v24 = vsel %vm4212_vm8, %v14637_v32, -inf }
 0xc1c   :  { %6254 = vmax.xlane.f32.xlu0 %v6253_v1 }
 0xc1f   :  { %6368 = vadd.xlane.f32.xlu1 %v6367_v61 }
 0xc20   :  { %6260 = vmax.xlane.f32.xlu0 %v6259_v24 }
 0xc23   :  { %6371 = vadd.xlane.f32.xlu1 %v6370_v47 }
 0xc34   :  { %11104 = vrot.lane.b32.xlu1 %v13741_v4, %s11887_s8 }
 0xc36   :  { %11099 = vrot.lane.b32.xlu0 %v13731_v14, %s11887_s8 }
 0xc50   :  { %v14683_v27 = vpop.xlane.xlu1 %6365 }
 0xc51   :  { %v6363_v33 = vpop.xlane.xlu0 %6362 }
 0xc52   :  { %11448 = vrcp.f32 %v6363_v33 }
 0xc55   :  { %6374 = vadd.xlane.f32.xlu0 %v6373_v42 }
 0xc58   :  { %6377 = vadd.xlane.f32.xlu1 %v6376_v35 }
 0xc5c   :  { %v11449_v50 = vpop.eup %11448  ;;  %6380 = vadd.xlane.f32.xlu1 %v6379_v54 }
 0xc5d   :  { %v6409_v8 = vmul.f32 %v11449_v50, %v14605_v22 }
 0xc5f   :  { %10071 = vmatprep.mubr.msk.f32.mxu0 %vm4212_vm8, %v6409_v8 }
 0xc60   :  { %6383 = vadd.xlane.f32.xlu1 %v6382_v29 }
 0xc6b   :  { %11109 = vrot.lane.b32.xlu0 %v13751_v44, %s11887_s8 }
 0xc6f   :  { %11114 = vrot.lane.b32.xlu0 %v13761_v37, %s11887_s8 }
 0xc9c   :  { %v6246_v56 = vpop.xlane.xlu1 %6245 }
 0xc9d   :  { %v6290_v7 = vsub.f32 %v14613_v12, %v6246_v56  ;;  %v6243_v10 = vpop.xlane.xlu0 %6242 }
 0xc9e   :  { %v6289_v22 = vsub.f32 %v14615_v31, %v6243_v10 }
 0xc9f   :  { %v6307_v36 = vmul.f32 1.442695, %v6290_v7 }
 0xca0   :  { %v6305_v38 = vmul.f32 1.442695, %v6289_v22 }
 0xca1   :  { %11450 = vpow2.f32 %v6307_v36  ;;  %v6252_v23 = vpop.xlane.xlu0 %6251 }
 0xca2   :  { %11452 = vpow2.f32 %v6305_v38  ;;  %v6292_v59 = vsub.f32 %v14621_v62, %v6252_v23 }
 0xca4   :  { %v6311_v1 = vmul.f32 1.442695, %v6292_v59  ;;  %v6258_v61 = vpop.xlane.xlu1 %6257 }
 0xca5   :  { %v6294_v24 = vsub.f32 %v14627_v45, %v6258_v61  ;;  %v6249_v47 = vpop.xlane.xlu0 %6248 }
 0xca6   :  { %11454 = vpow2.f32 %v6311_v1  ;;  %v6291_v16 = vsub.f32 %v14623_v26, %v6249_v47 }
 0xca7   :  { %v6315_v25 = vmul.f32 1.442695, %v6294_v24 }
 0xca8   :  { %v6309_v12 = vmul.f32 1.442695, %v6291_v16  ;;  %v6264_v46 = vpop.xlane.xlu1 %6263 }
 0xca9   :  { %11456 = vpow2.f32 %v6315_v25  ;;  %v6296_v31 = vsub.f32 %v14635_v15, %v6264_v46  ;;  %v6255_v40 = vpop.xlane.xlu0 %6254 }
 0xcaa   :  { %11458 = vpow2.f32 %v6309_v12  ;;  %v6293_v11 = vsub.f32 %v14629_v21, %v6255_v40  ;;  %v6723_v40 = vld [vmem:[%s15262_s10 + $0x10] sm:$0xff] }
 0xcab   :  { %v14692_v20 = vpop.eup %11450  ;;  %v6319_v62 = vmul.f32 1.442695, %v6296_v31 }
 0xcac   :  { %v14694_v33 = vpop.eup %11452  ;;  %v6313_v45 = vmul.f32 1.442695, %v6293_v11  ;;  %v14696_v42 = vpop.xlane.xlu1 %6368  ;;  %v6340_v26 = vsel %vm4212_vm8, %v14692_v20, 0.0 }
 0xcad   :  { %11460 = vpow2.f32 %v6319_v62  ;;  %6341 = vadd.xlane.f32.xlu1 %v6340_v26  ;;  %v6261_v35 = vpop.xlane.xlu0 %6260  ;;  %v6337_v15 = vsel %vm4212_vm8, %v14694_v33, 0.0 }
 0xcae   :  { %11462 = vpow2.f32 %v6313_v45  ;;  %v6295_v21 = vsub.f32 %v14637_v32, %v6261_v35  ;;  %6338 = vadd.xlane.f32.xlu0 %v6337_v15 }
 0xcb0   :  { %v14703_v54 = vpop.eup %11454  ;;  %v6317_v50 = vmul.f32 1.442695, %v6295_v21  ;;  %v14705_v8 = vpop.xlane.xlu1 %6371 }
 0xcb1   :  { %v11100_v29 = vpop.permute.xlu0 %11099  ;;  %v6346_v56 = vsel %vm4212_vm8, %v14703_v54, 0.0 }
 0xcb2   :  { %11464 = vpow2.f32 %v6317_v50  ;;  %v11102_v7 = vunpack.i.h.bf16 %v11100_v29  ;;  %v11101_v10 = vunpack.i.l.bf16 %v11100_v29  ;;  %6347 = vadd.xlane.f32.xlu1 %v6346_v56 }
 0xcb3   :  { %v14709_v22 = vpop.eup %11456 }
 0xcb4   :  { %v14711_v36 = vpop.eup %11458  ;;  %v10575_v38 = vpack.c.bf16 %v11102_v7, %v11101_v10  ;;  %v11105_v32 = vpop.permute.xlu1 %11104  ;;  %v6352_v23 = vsel %vm4212_vm8, %v14709_v22, 0.0 }
 0xcb5   :  { %v11107_v59 = vunpack.i.h.bf16 %v11105_v32  ;;  %v11106_v1 = vunpack.i.l.bf16 %v11105_v32  ;;  %v6343_v61 = vsel %vm4212_vm8, %v14711_v36, 0.0 }
 0xcb6   :  { %6353 = vadd.xlane.f32.xlu1 %v6352_v23  ;;  %6344 = vadd.xlane.f32.xlu0 %v6343_v61 }
 0xcb7   :  { %v14717_v24 = vpop.eup %11460  ;;  %v10579_v47 = vpack.c.bf16 %v11107_v59, %v11106_v1  ;;  %10576 = vmatprep.subr.bf16.mxu1 %v10575_v38 }
 0xcb8   :  { %v14719_v16 = vpop.eup %11462  ;;  %10578 = vmatpush3.bf16.msra.mxu1 %v10575_v38  ;;  %v6358_v25 = vsel %vm4212_vm8, %v14717_v24, 0.0 }
 0xcb9   :  { %10580 = vmatprep.subr.bf16.mxu1 %v10579_v47  ;;  %v6349_v12 = vsel %vm4212_vm8, %v14719_v16, 0.0 }
 0xcba   :  { %6359 = vadd.xlane.f32.xlu1 %v6358_v25  ;;  %6350 = vadd.xlane.f32.xlu0 %v6349_v12 }
 0xcbc   :  { %v14725_v46 = vpop.eup %11464  ;;  %10582 = vmatpush3.bf16.msra.mxu1 %v10579_v47 }
 0xcbd   :  { %v6355_v31 = vsel %vm4212_vm8, %v14725_v46, 0.0  ;;  %10083 = vmatprep.subr.mxu1 %v6723_v40 }
 0xcbe   :  { %6356 = vadd.xlane.f32.xlu1 %v6355_v31 }
 0xccf   :  { %11119 = vrot.lane.b32.xlu1 %v13771_v0, %s11887_s8 }
 0xcd0   :  { %11124 = vrot.lane.b32.xlu0 %v13781_v39, %s11887_s8 }
 0xcd3   :  { %11144 = vrot.lane.b32.xlu1 %v13751_v44, %s11888_s26 }
 0xcd4   :  { %11129 = vrot.lane.b32.xlu0 %v13707_v30, %s11888_s26 }
 0xcd7   :  { %11154 = vrot.lane.b32.xlu1 %v13761_v37, %s11888_s26 }
 0xcd8   :  { %11134 = vrot.lane.b32.xlu0 %v13721_v53, %s11888_s26 }
 0xcdb   :  { %6933 = vrot.lane.b32.xlu1 %v13709_v2, %s11889_s24 }
 0xcdc   :  { %11139 = vrot.lane.b32.xlu0 %v13731_v14, %s11888_s26 }
 0xcdf   :  { %6937 = vrot.lane.b32.xlu1 %v13817_v60, %s11889_s24 }
 0xce0   :  { %11149 = vrot.lane.b32.xlu0 %v13741_v4, %s11888_s26 }
 0xce2   :  { %v14746_v11 = vpop.xlane.xlu0 %6374 }
 0xce3   :  { %11164 = vrot.lane.b32.xlu1 %v13781_v39, %s11888_s26 }
 0xce4   :  { %11159 = vrot.lane.b32.xlu0 %v13771_v0, %s11888_s26 }
 0xce6   :  { %v11110_v62 = vpop.permute.xlu0 %11109 }
 0xce7   :  { %v11112_v45 = vunpack.i.h.bf16 %v11110_v62  ;;  %v11111_v26 = vunpack.i.l.bf16 %v11110_v62  ;;  %6943 = vrot.lane.b32.xlu1 %v13838_v57, %s11889_s24 }
 0xce8   :  { %6935 = vrot.lane.b32.xlu0 %v13814_v6, %s11889_s24  ;;  %v15374_v6 = vld [vmem:[#allocation43_spill] sm:$0xff] }
 0xce9   :  { %v10583_v2 = vpack.c.bf16 %v11112_v45, %v11111_v26 }
 0xcea   :  { %v11115_v35 = vpop.permute.xlu0 %11114 }
 0xceb   :  { %v11117_v60 = vunpack.i.h.bf16 %v11115_v35  ;;  %v11116_v15 = vunpack.i.l.bf16 %v11115_v35  ;;  %6947 = vrot.lane.b32.xlu1 %v13852_v41, %s11889_s24  ;;  %10584 = vmatprep.subr.bf16.mxu0 %v10583_v2 }
 0xcec   :  { %6939 = vrot.lane.b32.xlu0 %v13828_v52, %s11889_s24  ;;  %10586 = vmatpush3.bf16.msra.mxu0 %v10583_v2  ;;  %v15375_v52 = vld [vmem:[#allocation42_spill] sm:$0xff] }
 0xced   :  { %v10587_v21 = vpack.c.bf16 %v11117_v60, %v11116_v15 }
 0xcef   :  { %7104 = vrot.lane.b32.xlu1 %v13868_v51, %s11889_s24  ;;  %10588 = vmatprep.subr.bf16.mxu0 %v10587_v21 }
 0xcf0   :  { %6941 = vrot.lane.b32.xlu0 %v13831_v58, %s11889_s24  ;;  %10590 = vmatpush3.bf16.msra.mxu0 %v10587_v21  ;;  %v6378_v58 = vpop.xlane.xlu1 %6377 }
 0xcf3   :  { %7108 = vrot.lane.b32.xlu1 %v13878_v48, %s11889_s24 }
 0xcf4   :  { %6945 = vrot.lane.b32.xlu0 %v13841_v28, %s11889_s24  ;;  %v6381_v57 = vpop.xlane.xlu1 %6380 }
 0xcf7   :  { %7112 = vrot.lane.b32.xlu1 %v13888_v9, %s11889_s24 }
 0xcf8   :  { %7102 = vrot.lane.b32.xlu0 %v13855_v55, %s11889_s24  ;;  %v14778_v28 = vpop.xlane.xlu1 %6383 }
 0xcfb   :  { %7116 = vrot.lane.b32.xlu1 %v13898_v18, %s11889_s24 }
 0xcfc   :  { %7106 = vrot.lane.b32.xlu0 %v13871_v3, %s11889_s24 }
 0xd00   :  { %7110 = vrot.lane.b32.xlu0 %v15374_v6, %s11889_s24 }
 0xd04   :  { %7114 = vrot.lane.b32.xlu0 %v15375_v52, %s11889_s24 }
 0xd3a   :  { %v6342_v41 = vpop.xlane.xlu1 %6341 }
 0xd3b   :  { %11466 = vrcp.f32 %v6342_v41  ;;  %v6339_v51 = vpop.xlane.xlu0 %6338 }
 0xd3c   :  { %11468 = vrcp.f32 %v6339_v51 }
 0xd3f   :  { %v6348_v55 = vpop.xlane.xlu1 %6347 }
 0xd40   :  { %11470 = vrcp.f32 %v6348_v55 }
 0xd43   :  { %v6354_v48 = vpop.xlane.xlu1 %6353  ;;  %v6345_v9 = vpop.xlane.xlu0 %6344 }
 0xd44   :  { %11472 = vrcp.f32 %v6345_v9 }
 0xd45   :  { %v11467_v18 = vpop.eup %11466  ;;  %11474 = vrcp.f32 %v6354_v48 }
 0xd46   :  { %v11469_v3 = vpop.eup %11468  ;;  %v6402_v7 = vmul.f32 %v11467_v18, %v14692_v20 }
 0xd47   :  { %v6360_v50 = vpop.xlane.xlu1 %6359  ;;  %v6351_v29 = vpop.xlane.xlu0 %6350  ;;  %v6401_v56 = vmul.f32 %v11469_v3, %v14694_v33 }
 0xd48   :  { %11476 = vrcp.f32 %v6351_v29 }
 0xd49   :  { %10043 = vmatprep.mubr.msk.f32.mxu1 %vm4212_vm8, %v6401_v56  ;;  %11478 = vrcp.f32 %v14683_v27 }
 0xd4a   :  { %10044 = vmatmul.mubr.msk.f32.vlgmr.msra.gmra.mrb[104].mxu1 %vm4212_vm8, %v6402_v7  ;;  %v11471_v32 = vpop.eup %11470 }
 0xd4b   :  { %v6357_v10 = vpop.xlane.xlu1 %6356  ;;  %v11125_v38 = vpop.permute.xlu0 %11124  ;;  %10084 = vmatpush3.msra.mxu1 %v6723_v40  ;;  %v6404_v31 = vmul.f32 %v11471_v32, %v14703_v54 }
 0xd4c   :  { %11480 = vrcp.f32 %v6357_v10  ;;  %v11127_v33 = vunpack.i.h.bf16 %v11125_v38  ;;  %v11126_v59 = vunpack.i.l.bf16 %v11125_v38 }
 0xd4d   :  { %11482 = vrcp.f32 %v6360_v50 }
 0xd4e   :  { %11484 = vrcp.f32 %v14696_v42  ;;  %v11473_v23 = vpop.eup %11472  ;;  %v10595_v62 = vpack.c.bf16 %v11127_v33, %v11126_v59 }
 0xd4f   :  { %v11120_v20 = vpop.permute.xlu1 %11119  ;;  %11486 = vrcp.f32 %v14705_v8  ;;  %v11130_v47 = vpop.permute.xlu0 %11129  ;;  %v6403_v25 = vmul.f32 %v11473_v23, %v14711_v36 }
 0xd50   :  { %v11122_v1 = vunpack.i.h.bf16 %v11120_v20  ;;  %v11121_v61 = vunpack.i.l.bf16 %v11120_v20  ;;  %v11475_v27 = vpop.eup %11474  ;;  %11488 = vrcp.f32 %v14746_v11  ;;  %v11132_v45 = vunpack.i.h.bf16 %v11130_v47 }
 0xd51   :  { %10046 = vmatprep.mubr.msk.f32.mxu1 %vm4212_vm8, %v6403_v25  ;;  %v11131_v26 = vunpack.i.l.bf16 %v11130_v47  ;;  %11490 = vrcp.f32 %v6378_v58  ;;  %v6406_v60 = vmul.f32 %v11475_v27, %v14709_v22 }
 0xd52   :  { %v10591_v12 = vpack.c.bf16 %v11122_v1, %v11121_v61  ;;  %v11477_v40 = vpop.eup %11476  ;;  %10047 = vmatmul.mubr.msk.f32.gmra.mrb[106].mxu1 %vm4212_vm8, %v6404_v31  ;;  %11492 = vrcp.f32 %v6381_v57 }
 0xd53   :  { %v11145_v42 = vpop.permute.xlu1 %11144  ;;  %v11479_v35 = vpop.eup %11478  ;;  %v6405_v36 = vmul.f32 %v11477_v40, %v14719_v16  ;;  %v10599_v52 = vpack.c.bf16 %v11132_v45, %v11131_v26  ;;  %11494 = vrcp.f32 %v14778_v28 }
 0xd54   :  { %v11147_v2 = vunpack.i.h.bf16 %v11145_v42  ;;  %v11146_v8 = vunpack.i.l.bf16 %v11145_v42  ;;  %10592 = vmatprep.subr.bf16.mxu0 %v10591_v12  ;;  %v6410_v22 = vmul.f32 %v11479_v35, %v14603_v34  ;;  %v11135_v16 = vpop.permute.xlu0 %11134 }
 0xd55   :  { %10594 = vmatpush3.bf16.msra.mxu0 %v10591_v12  ;;  %10049 = vmatprep.mubr.msk.f32.mxu1 %vm4212_vm8, %v6405_v36  ;;  %v11137_v28 = vunpack.i.h.bf16 %v11135_v16  ;;  %v11136_v51 = vunpack.i.l.bf16 %v11135_v16 }
 0xd56   :  { %v11481_v11 = vpop.eup %11480  ;;  %v14793_v54 = vpack.c.bf16 %v11147_v2, %v11146_v8  ;;  %10596 = vmatprep.subr.bf16.mxu0 %v10595_v62  ;;  %10050 = vmatmul.mubr.msk.f32.gmra.mrb[108].mxu1 %vm4212_vm8, %v6406_v60 }
 0xd57   :  { %v11483_v15 = vpop.eup %11482  ;;  %v6407_v21 = vmul.f32 %v11481_v11, %v14725_v46  ;;  %v10605_v9 = vpack.c.bf16 %v11137_v28, %v11136_v51 }
 0xd58   :  { %v11485_v6 = vpop.eup %11484  ;;  %10625 = vmatprep.subr.msk.bf16.mxu1 %vm13791_vm7, %v14793_v54  ;;  %v6408_v58 = vmul.f32 %v11483_v15, %v14717_v24  ;;  %v11140_v18 = vpop.permute.xlu0 %11139 }
 0xd59   :  { %10052 = vmatprep.mubr.msk.f32.mxu1 %vm4212_vm8, %v6407_v21  ;;  %10598 = vmatpush3.bf16.msra.mxu0 %v10595_v62  ;;  %v11487_v46 = vpop.eup %11486  ;;  %v6411_v57 = vmul.f32 %v11485_v6, %v14641_v19  ;;  %v11155_v19 = vpop.permute.xlu1 %11154  ;;  %v11141_v29 = vunpack.i.l.bf16 %v11140_v18 }
 0xd5a   :  { %10601 = vmatprep.subr.msk.bf16.mxu0 %vm13791_vm7, %v10599_v52  ;;  %v11489_v41 = vpop.eup %11488  ;;  %10053 = vmatmul.mubr.msk.f32.gmra.mrb[110].mxu1 %vm4212_vm8, %v6408_v58  ;;  %v6412_v34 = vmul.f32 %v11487_v46, %v14647_v43  ;;  %v11157_v27 = vunpack.i.h.bf16 %v11155_v19  ;;  %v11156_v12 = vunpack.i.l.bf16 %v11155_v19 }
 0xd5b   :  { %v11491_v55 = vpop.eup %11490  ;;  %v6413_v24 = vmul.f32 %v11489_v41, %v14661_v13  ;;  %v11142_v13 = vunpack.i.h.bf16 %v11140_v18 }
 0xd5c   :  { %10072 = vmatmul.mubr.msk.f32.vlgmr.msra.gmra.mrb[24].mxu0 %vm4212_vm8, %v6410_v22  ;;  %v11493_v48 = vpop.eup %11492  ;;  %v6414_v3 = vmul.f32 %v11491_v55, %v14663_v63  ;;  %v11150_v63 = vpop.permute.xlu0 %11149  ;;  %v10629_v62 = vpack.c.bf16 %v11157_v27, %v11156_v12 }
 0xd5d   :  { %10074 = vmatprep.mubr.msk.f32.mxu0 %vm4212_vm8, %v6411_v57  ;;  %v11495_v50 = vpop.eup %11494  ;;  %v6415_v43 = vmul.f32 %v11493_v48, %v14669_v17  ;;  %v6934_v7 = vpop.permute.xlu1 %6933  ;;  %v10611_v10 = vpack.c.bf16 %v11142_v13, %v11141_v29  ;;  %v11152_v17 = vunpack.i.h.bf16 %v11150_v63  ;;  %v11151_v38 = vunpack.i.l.bf16 %v11150_v63 }
 0xd5e   :  { %v6416_v56 = vmul.f32 %v11495_v50, %v14671_v49 }
 0xd5f   :  { %v10617_v32 = vpack.c.bf16 %v11152_v17, %v11151_v38 }
 0xd60   :  { %10075 = vmatmul.mubr.msk.f32.gmra.mrb[26].mxu0 %vm4212_vm8, %v6412_v34  ;;  %v11160_v23 = vpop.permute.xlu0 %11159 }
 0xd61   :  { %10077 = vmatprep.mubr.msk.f32.mxu0 %vm4212_vm8, %v6413_v24  ;;  %v6938_v33 = vpop.permute.xlu1 %6937  ;;  %v11162_v42 = vunpack.i.h.bf16 %v11160_v23  ;;  %v11161_v45 = vunpack.i.l.bf16 %v11160_v23 }
 0xd62   :  { %10604 = vmatpush3.bf16.xpose.msk.msra.mxu0 %vm13791_vm7, %v10599_v52 }
 0xd63   :  { %10607 = vmatprep.subr.msk.bf16.mxu0 %vm13791_vm7, %v10605_v9  ;;  %v10635_v2 = vpack.c.bf16 %v11162_v42, %v11161_v45 }
 0xd64   :  { %10078 = vmatmul.mubr.msk.f32.gmra.mrb[28].mxu0 %vm4212_vm8, %v6414_v3  ;;  %v6936_v49 = vpop.permute.xlu0 %6935 }
 0xd65   :  { %10080 = vmatprep.mubr.msk.f32.mxu0 %vm4212_vm8, %v6415_v43  ;;  %v11165_v20 = vpop.permute.xlu1 %11164 }
 0xd66   :  { %v11167_v36 = vunpack.i.h.bf16 %v11165_v20  ;;  %v11166_v11 = vunpack.i.l.bf16 %v11165_v20 }
 0xd68   :  { %10081 = vmatmul.mubr.msk.f32.gmra.mrb[30].mxu0 %vm4212_vm8, %v6416_v56  ;;  %v6940_v59 = vpop.permute.xlu0 %6939  ;;  %v10641_v21 = vpack.c.bf16 %v11167_v36, %v11166_v11 }
 0xd69   :  { %10125 = vmatprep.mubr.msk.f32.mxu0 %vm3897_vm6, %v6934_v7  ;;  %v6944_v61 = vpop.permute.xlu1 %6943 }
 0xd6a   :  { %10610 = vmatpush3.bf16.xpose.msk.msra.mxu0 %vm13791_vm7, %v10605_v9 }
 0xd6b   :  { %10613 = vmatprep.subr.msk.bf16.mxu0 %vm13791_vm7, %v10611_v10 }
 0xd6c   :  { %v6942_v1 = vpop.permute.xlu0 %6941 }
 0xd6d   :  { %v6948_v25 = vpop.permute.xlu1 %6947 }
 0xd70   :  { %v6946_v47 = vpop.permute.xlu0 %6945 }
 0xd71   :  { %v7105_v51 = vpop.permute.xlu1 %7104 }
 0xd72   :  { %10616 = vmatpush3.bf16.xpose.msk.msra.mxu0 %vm13791_vm7, %v10611_v10 }
 0xd73   :  { %10619 = vmatprep.subr.msk.bf16.mxu0 %vm13791_vm7, %v10617_v32 }
 0xd74   :  { %v7103_v41 = vpop.permute.xlu0 %7102 }
 0xd75   :  { %v7109_v55 = vpop.permute.xlu1 %7108 }
 0xd78   :  { %v7107_v34 = vpop.permute.xlu0 %7106 }
 0xd79   :  { %v7113_v24 = vpop.permute.xlu1 %7112 }
 0xd7a   :  { %10622 = vmatpush3.bf16.xpose.msk.msra.mxu0 %vm13791_vm7, %v10617_v32 }
 0xd7c   :  { %v7111_v5 = vpop.permute.xlu0 %7110 }
 0xd7d   :  { %v7117_v9 = vpop.permute.xlu1 %7116 }
 0xd80   :  { %v7115_v48 = vpop.permute.xlu0 %7114 }
 0xd81   :  { %10126 = vmatmul.mubr.msk.f32.vlgmr.msra.gmra.mrb[32].mxu0 %vm3897_vm6, %v6936_v49 }
 0xd82   :  { %10128 = vmatprep.mubr.msk.f32.mxu0 %vm3897_vm6, %v6938_v33 }
 0xd85   :  { %10129 = vmatmul.mubr.msk.f32.gmra.mrb[34].mxu0 %vm3897_vm6, %v6940_v59 }
 0xd86   :  { %10131 = vmatprep.mubr.msk.f32.mxu0 %vm3897_vm6, %v6942_v1 }
 0xd89   :  { %10132 = vmatmul.mubr.msk.f32.gmra.mrb[36].mxu0 %vm3897_vm6, %v6944_v61 }
 0xd8a   :  { %10134 = vmatprep.mubr.msk.f32.mxu0 %vm3897_vm6, %v6946_v47 }
 0xd8d   :  { %10135 = vmatmul.mubr.msk.f32.gmra.mrb[38].mxu0 %vm3897_vm6, %v6948_v25 }
 0xe1d   :  { %v10045_v31 = vpop.f32.mrb[104].mxu1 }
 0xe1e   :  { %v6531_v40 = vpop.f32.mrb[105].mxu1 }
 0xe1f   :  { %10085 = vmatprep.mubr.msk.f32.mxu1 %vm3897_vm6, %v6531_v40 }
 0xe20   :  { %10086 = vmatmul.mubr.msk.f32.vlgmr.msra.gmra.mrb[80].mxu1 %vm3897_vm6, %v10045_v31 }
 0xe21   :  { %10628 = vmatpush3.bf16.xpose.msk.msra.mxu1 %vm13791_vm7, %v14793_v54 }
 0xe22   :  { %10631 = vmatprep.subr.msk.bf16.mxu1 %vm13791_vm7, %v10629_v62 }
 0xe25   :  { %v10048_v26 = vpop.f32.mrb[106].mxu1 }
 0xe26   :  { %v6541_v8 = vpop.f32.mrb[107].mxu1 }
 0xe27   :  { %10088 = vmatprep.mubr.msk.f32.mxu1 %vm3897_vm6, %v6541_v8 }
 0xe28   :  { %10089 = vmatmul.mubr.msk.f32.gmra.mrb[82].mxu1 %vm3897_vm6, %v10048_v26 }
 0xe29   :  { %10634 = vmatpush3.bf16.xpose.msk.msra.mxu1 %vm13791_vm7, %v10629_v62  ;;  %v10051_v35 = vpop.f32.mrb[108].mxu1 }
 0xe2a   :  { %10637 = vmatprep.subr.msk.bf16.mxu1 %vm13791_vm7, %v10635_v2  ;;  %v6551_v54 = vpop.f32.mrb[109].mxu1 }
 0xe2b   :  { %10091 = vmatprep.mubr.msk.f32.mxu1 %vm3897_vm6, %v6551_v54 }
 0xe2c   :  { %10092 = vmatmul.mubr.msk.f32.gmra.mrb[84].mxu1 %vm3897_vm6, %v10051_v35 }
 0xe2d   :  { %v10054_v60 = vpop.f32.mrb[110].mxu1 }
 0xe2e   :  { %v6561_v6 = vpop.f32.mrb[111].mxu1 }
 0xe2f   :  { %v10073_v15 = vpop.f32.mrb[24].mxu0  ;;  %10094 = vmatprep.mubr.msk.f32.mxu1 %vm3897_vm6, %v6561_v6 }
 0xe30   :  { %v6684_v52 = vpop.f32.mrb[25].mxu0  ;;  %10095 = vmatmul.mubr.msk.f32.gmra.mrb[86].mxu1 %vm3897_vm6, %v10054_v60 }
 0xe31   :  { %10640 = vmatpush3.bf16.xpose.msk.msra.mxu1 %vm13791_vm7, %v10635_v2  ;;  %10097 = vmatprep.mubr.msk.f32.mxu1 %vm3897_vm6, %v6684_v52 }
 0xe32   :  { %10643 = vmatprep.subr.msk.bf16.mxu1 %vm13791_vm7, %v10641_v21 }
 0xe33   :  { %v10076_v22 = vpop.f32.mrb[26].mxu0 }
 0xe34   :  { %v6694_v16 = vpop.f32.mrb[27].mxu0  ;;  %10098 = vmatmul.mubr.msk.f32.gmra.mrb[88].mxu1 %vm3897_vm6, %v10073_v15 }
 0xe35   :  { %10100 = vmatprep.mubr.msk.f32.mxu1 %vm3897_vm6, %v6694_v16 }
 0xe37   :  { %v10079_v58 = vpop.f32.mrb[28].mxu0 }
 0xe38   :  { %v6704_v46 = vpop.f32.mrb[29].mxu0  ;;  %10101 = vmatmul.mubr.msk.f32.gmra.mrb[90].mxu1 %vm3897_vm6, %v10076_v22 }
 0xe39   :  { %10646 = vmatpush3.bf16.xpose.msk.msra.mxu1 %vm13791_vm7, %v10641_v21  ;;  %10103 = vmatprep.mubr.msk.f32.mxu1 %vm3897_vm6, %v6704_v46 }
 0xe3b   :  { %v10082_v57 = vpop.f32.mrb[30].mxu0 }
 0xe3c   :  { %v6714_v28 = vpop.f32.mrb[31].mxu0  ;;  %10104 = vmatmul.mubr.msk.f32.gmra.mrb[92].mxu1 %vm3897_vm6, %v10079_v58 }
 0xe3d   :  { %10106 = vmatprep.mubr.msk.f32.mxu1 %vm3897_vm6, %v6714_v28 }
 0xe40   :  { %10107 = vmatmul.mubr.msk.f32.gmra.mrb[94].mxu1 %vm3897_vm6, %v10082_v57 }
 0xe41   :  { %10153 = vmatprep.mubr.msk.f32.mxu1 %vm3897_vm6, %v7103_v41 }
 0xe44   :  { %10154 = vmatmul.mubr.msk.f32.vlgmr.msra.gmra.mrb[112].mxu1 %vm3897_vm6, %v7105_v51 }
 0xe45   :  { %10156 = vmatprep.mubr.msk.f32.mxu1 %vm3897_vm6, %v7107_v34 }
 0xe48   :  { %10157 = vmatmul.mubr.msk.f32.gmra.mrb[114].mxu1 %vm3897_vm6, %v7109_v55 }
 0xe49   :  { %10159 = vmatprep.mubr.msk.f32.mxu1 %vm3897_vm6, %v7111_v5 }
 0xe4c   :  { %10160 = vmatmul.mubr.msk.f32.gmra.mrb[116].mxu1 %vm3897_vm6, %v7113_v24 }
 0xe4d   :  { %10162 = vmatprep.mubr.msk.f32.mxu1 %vm3897_vm6, %v7115_v48 }
 0xe50   :  { %10163 = vmatmul.mubr.msk.f32.gmra.mrb[118].mxu1 %vm3897_vm6, %v7117_v9 }
 0xe54   :  { %v10127_v19 = vpop.f32.mrb[32].mxu0 }
 0xe55   :  { %v7063_v18 = vpop.f32.mrb[33].mxu0  ;;  %v7274_v3 = vsel %vm4212_vm8, %v10127_v19, -inf }
 0xe56   :  { %7275 = vmax.xlane.f32.xlu1 %v7274_v3  ;;  %v7271_v50 = vsel %vm4212_vm8, %v7063_v18, -inf }
 0xe57   :  { %7272 = vmax.xlane.f32.xlu0 %v7271_v50 }
 0xe58   :  { %v10130_v43 = vpop.f32.mrb[34].mxu0 }
 0xe59   :  { %v7073_v13 = vpop.f32.mrb[35].mxu0  ;;  %v7280_v63 = vsel %vm4212_vm8, %v10130_v43, -inf }
 0xe5a   :  { %v7277_v29 = vsel %vm4212_vm8, %v7073_v13, -inf }
 0xe5b   :  { %7278 = vmax.xlane.f32.xlu0 %v7277_v29 }
 0xe5c   :  { %v10133_v56 = vpop.f32.mrb[36].mxu0 }
 0xe5d   :  { %v7083_v7 = vpop.f32.mrb[37].mxu0  ;;  %v7286_v10 = vsel %vm4212_vm8, %v10133_v56, -inf }
 0xe5e   :  { %7287 = vmax.xlane.f32.xlu1 %v7286_v10  ;;  %v7283_v23 = vsel %vm4212_vm8, %v7083_v7, -inf }
 0xe5f   :  { %7281 = vmax.xlane.f32.xlu0 %v7280_v63 }
 0xe60   :  { %v10136_v17 = vpop.f32.mrb[38].mxu0 }
 0xe61   :  { %v7093_v38 = vpop.f32.mrb[39].mxu0  ;;  %v7292_v32 = vsel %vm4212_vm8, %v10136_v17, -inf }
 0xe62   :  { %7293 = vmax.xlane.f32.xlu1 %v7292_v32  ;;  %v7289_v49 = vsel %vm4212_vm8, %v7093_v38, -inf }
 0xe63   :  { %7284 = vmax.xlane.f32.xlu0 %v7283_v23 }
 0xe67   :  { %7290 = vmax.xlane.f32.xlu0 %v7289_v49 }
 0xee3   :  { %v7276_v33 = vpop.xlane.xlu1 %7275 }
 0xee4   :  { %v7320_v59 = vsub.f32 %v10127_v19, %v7276_v33  ;;  %v7273_v20 = vpop.xlane.xlu0 %7272 }
 0xee5   :  { %v7319_v1 = vsub.f32 %v7063_v18, %v7273_v20 }
 0xee6   :  { %v7337_v61 = vmul.f32 1.442695, %v7320_v59 }
 0xee7   :  { %v7335_v47 = vmul.f32 1.442695, %v7319_v1 }
 0xee8   :  { %11496 = vpow2.f32 %v7337_v61  ;;  %v7279_v25 = vpop.xlane.xlu0 %7278 }
 0xee9   :  { %11498 = vpow2.f32 %v7335_v47  ;;  %v7321_v27 = vsub.f32 %v7073_v13, %v7279_v25 }
 0xeeb   :  { %v7339_v12 = vmul.f32 1.442695, %v7321_v27  ;;  %v7288_v31 = vpop.xlane.xlu1 %7287 }
 0xeec   :  { %v7324_v40 = vsub.f32 %v10133_v56, %v7288_v31  ;;  %v7282_v62 = vpop.xlane.xlu0 %7281 }
 0xeed   :  { %11500 = vpow2.f32 %v7339_v12  ;;  %v7322_v42 = vsub.f32 %v10130_v43, %v7282_v62 }
 0xeee   :  { %v7345_v45 = vmul.f32 1.442695, %v7324_v40 }
 0xeef   :  { %v7341_v26 = vmul.f32 1.442695, %v7322_v42  ;;  %v7294_v28 = vpop.xlane.xlu1 %7293 }
 0xef0   :  { %v7285_v2 = vpop.xlane.xlu0 %7284  ;;  %v7326_v51 = vsub.f32 %v10136_v17, %v7294_v28 }
 0xef1   :  { %11502 = vpow2.f32 %v7341_v26  ;;  %v7323_v8 = vsub.f32 %v7083_v7, %v7285_v2 }
 0xef2   :  { %v14891_v35 = vpop.eup %11496  ;;  %11504 = vpow2.f32 %v7345_v45  ;;  %v7349_v9 = vmul.f32 1.442695, %v7326_v51 }
 0xef3   :  { %v14893_v36 = vpop.eup %11498  ;;  %v7343_v11 = vmul.f32 1.442695, %v7323_v8  ;;  %v7370_v54 = vsel %vm4212_vm8, %v14891_v35, 0.0 }
 0xef4   :  { %7371 = vadd.xlane.f32.xlu1 %v7370_v54  ;;  %v7367_v60 = vsel %vm4212_vm8, %v14893_v36, 0.0  ;;  %v7291_v57 = vpop.xlane.xlu0 %7290 }
 0xef5   :  { %11506 = vpow2.f32 %v7343_v11  ;;  %7368 = vadd.xlane.f32.xlu0 %v7367_v60  ;;  %v7325_v41 = vsub.f32 %v7093_v38, %v7291_v57 }
 0xef7   :  { %v14899_v15 = vpop.eup %11500  ;;  %v7347_v34 = vmul.f32 1.442695, %v7325_v41 }
 0xef8   :  { %v7373_v21 = vsel %vm4212_vm8, %v14899_v15, 0.0 }
 0xef9   :  { %7374 = vadd.xlane.f32.xlu0 %v7373_v21  ;;  %11508 = vpow2.f32 %v7347_v34 }
 0xefa   :  { %11510 = vpow2.f32 %v7349_v9 }
 0xefb   :  { %v14903_v6 = vpop.eup %11502 }
 0xefc   :  { %v7376_v52 = vsel %vm4212_vm8, %v14903_v6, 0.0  ;;  %v14907_v22 = vpop.eup %11504 }
 0xefd   :  { %7377 = vadd.xlane.f32.xlu1 %v7376_v52  ;;  %v7382_v58 = vsel %vm4212_vm8, %v14907_v22, 0.0 }
 0xeff   :  { %v14909_v16 = vpop.eup %11506 }
 0xf00   :  { %v7379_v46 = vsel %vm4212_vm8, %v14909_v16, 0.0 }
 0xf01   :  { %7383 = vadd.xlane.f32.xlu1 %v7382_v58  ;;  %7380 = vadd.xlane.f32.xlu0 %v7379_v46 }
 0xf03   :  { %v14924_v17 = vpop.eup %11508 }
 0xf04   :  { %v7385_v32 = vsel %vm4212_vm8, %v14924_v17, 0.0  ;;  %v14930_v23 = vpop.eup %11510 }
 0xf05   :  { %v7388_v49 = vsel %vm4212_vm8, %v14930_v23, 0.0 }
 0xf17   :  { %v10155_v55 = vpop.f32.mrb[112].mxu1 }
 0xf18   :  { %v7232_v5 = vpop.f32.mrb[113].mxu1  ;;  %v7298_v24 = vsel %vm4212_vm8, %v10155_v55, -inf }
 0xf19   :  { %7299 = vmax.xlane.f32.xlu1 %v7298_v24  ;;  %v7295_v48 = vsel %vm4212_vm8, %v7232_v5, -inf }
 0xf1a   :  { %7296 = vmax.xlane.f32.xlu0 %v7295_v48 }
 0xf1b   :  { %v10158_v19 = vpop.f32.mrb[114].mxu1 }
 0xf1c   :  { %v7242_v18 = vpop.f32.mrb[115].mxu1  ;;  %v7304_v3 = vsel %vm4212_vm8, %v10158_v19, -inf }
 0xf1d   :  { %7305 = vmax.xlane.f32.xlu1 %v7304_v3  ;;  %v7301_v50 = vsel %vm4212_vm8, %v7242_v18, -inf }
 0xf1e   :  { %7302 = vmax.xlane.f32.xlu0 %v7301_v50 }
 0xf1f   :  { %v10161_v43 = vpop.f32.mrb[116].mxu1 }
 0xf20   :  { %v7252_v13 = vpop.f32.mrb[117].mxu1  ;;  %v7310_v29 = vsel %vm4212_vm8, %v10161_v43, -inf }
 0xf21   :  { %7311 = vmax.xlane.f32.xlu1 %v7310_v29  ;;  %v7307_v56 = vsel %vm4212_vm8, %v7252_v13, -inf }
 0xf22   :  { %7308 = vmax.xlane.f32.xlu0 %v7307_v56 }
 0xf23   :  { %v10164_v7 = vpop.f32.mrb[118].mxu1 }
 0xf24   :  { %v14921_v10 = vpop.f32.mrb[119].mxu1  ;;  %v7316_v63 = vsel %vm4212_vm8, %v10164_v7, -inf }
 0xf25   :  { %7317 = vmax.xlane.f32.xlu1 %v7316_v63  ;;  %v7313_v38 = vsel %vm4212_vm8, %v14921_v10, -inf }
 0xf26   :  { %7314 = vmax.xlane.f32.xlu0 %v7313_v38 }
 0xf29   :  { %7386 = vadd.xlane.f32.xlu1 %v7385_v32 }
 0xf2d   :  { %7389 = vadd.xlane.f32.xlu1 %v7388_v49 }
 0xf3c   :  { %11169 = vrot.lane.b32.xlu0 %v13707_v30, %s11890_s23 }
 0xf3e   :  { %11174 = vrot.lane.b32.xlu1 %v13721_v53, %s11890_s23 }
 0xf40   :  { %11179 = vrot.lane.b32.xlu0 %v13731_v14, %s11890_s23 }
 0xf42   :  { %11184 = vrot.lane.b32.xlu1 %v13741_v4, %s11890_s23 }
 0xf44   :  { %11189 = vrot.lane.b32.xlu0 %v13751_v44, %s11890_s23 }
 0xf48   :  { %11194 = vrot.lane.b32.xlu0 %v13761_v37, %s11890_s23 }
 0xf81   :  { %v14948_v53 = vpop.xlane.xlu1 %7371 }
 0xf82   :  { %v7369_v33 = vpop.xlane.xlu0 %7368 }
 0xf83   :  { %11512 = vrcp.f32 %v7369_v33 }
 0xf86   :  { %v14952_v14 = vpop.xlane.xlu0 %7374 }
 0xf8a   :  { %v14950_v20 = vpop.xlane.xlu1 %7377 }
 0xf8d   :  { %v11513_v59 = vpop.eup %11512 }
 0xf8e   :  { %v7431_v30 = vmul.f32 %v11513_v59, %v14893_v36  ;;  %v14954_v4 = vpop.xlane.xlu1 %7383  ;;  %v14956_v1 = vpop.xlane.xlu0 %7380 }
 0xf90   :  { %10181 = vmatprep.mubr.msk.f32.mxu0 %vm4212_vm8, %v7431_v30 }
 0xfa6   :  { %v7300_v44 = vpop.xlane.xlu1 %7299 }
 0xfa7   :  { %v7328_v61 = vsub.f32 %v10155_v55, %v7300_v44  ;;  %v7297_v37 = vpop.xlane.xlu0 %7296 }
 0xfa8   :  { %v7327_v47 = vsub.f32 %v7232_v5, %v7297_v37 }
 0xfa9   :  { %v7353_v25 = vmul.f32 1.442695, %v7328_v61 }
 0xfaa   :  { %v7351_v27 = vmul.f32 1.442695, %v7327_v47  ;;  %v7306_v12 = vpop.xlane.xlu1 %7305 }
 0xfab   :  { %11514 = vpow2.f32 %v7353_v25  ;;  %v7330_v31 = vsub.f32 %v10158_v19, %v7306_v12  ;;  %v7303_v40 = vpop.xlane.xlu0 %7302 }
 0xfac   :  { %11516 = vpow2.f32 %v7351_v27  ;;  %v7329_v62 = vsub.f32 %v7242_v18, %v7303_v40 }
 0xfad   :  { %v7357_v42 = vmul.f32 1.442695, %v7330_v31 }
 0xfae   :  { %v7355_v45 = vmul.f32 1.442695, %v7329_v62  ;;  %v7312_v26 = vpop.xlane.xlu1 %7311 }
 0xfaf   :  { %11518 = vpow2.f32 %v7357_v42  ;;  %v7332_v2 = vsub.f32 %v10161_v43, %v7312_v26  ;;  %v7309_v8 = vpop.xlane.xlu0 %7308 }
 0xfb0   :  { %v7331_v36 = vsub.f32 %v7252_v13, %v7309_v8  ;;  %11520 = vpow2.f32 %v7355_v45 }
 0xfb1   :  { %v7361_v11 = vmul.f32 1.442695, %v7332_v2 }
 0xfb2   :  { %v7359_v54 = vmul.f32 1.442695, %v7331_v36  ;;  %v7318_v60 = vpop.xlane.xlu1 %7317 }
 0xfb3   :  { %v7334_v21 = vsub.f32 %v10164_v7, %v7318_v60  ;;  %v7315_v52 = vpop.xlane.xlu0 %7314 }
 0xfb4   :  { %11522 = vpow2.f32 %v7359_v54  ;;  %v7333_v57 = vsub.f32 %v14921_v10, %v7315_v52 }
 0xfb5   :  { %v14958_v58 = vpop.eup %11514  ;;  %11524 = vpow2.f32 %v7361_v11  ;;  %v7365_v46 = vmul.f32 1.442695, %v7334_v21 }
 0xfb6   :  { %v14961_v41 = vpop.eup %11516  ;;  %v7387_v28 = vpop.xlane.xlu1 %7386  ;;  %v7394_v51 = vsel %vm4212_vm8, %v14958_v58, 0.0  ;;  %v7363_v9 = vmul.f32 1.442695, %v7333_v57 }
 0xfb7   :  { %7395 = vadd.xlane.f32.xlu1 %v7394_v51  ;;  %v11170_v34 = vpop.permute.xlu0 %11169  ;;  %v7391_v55 = vsel %vm4212_vm8, %v14961_v41, 0.0  ;;  %11526 = vpow2.f32 %v7365_v46 }
 0xfb8   :  { %v11172_v5 = vunpack.i.h.bf16 %v11170_v34  ;;  %v11171_v24 = vunpack.i.l.bf16 %v11170_v34  ;;  %7392 = vadd.xlane.f32.xlu0 %v7391_v55  ;;  %11528 = vpow2.f32 %v7363_v9 }
 0xfb9   :  { %v14967_v48 = vpop.eup %11518  ;;  %11530 = vrcp.f32 %v14948_v53 }
 0xfba   :  { %v10647_v19 = vpack.c.bf16 %v11172_v5, %v11171_v24  ;;  %v7390_v18 = vpop.xlane.xlu1 %7389  ;;  %v7400_v3 = vsel %vm4212_vm8, %v14967_v48, 0.0  ;;  %v14971_v50 = vpop.eup %11520  ;;  %11532 = vrcp.f32 %v14952_v14 }
 0xfbb   :  { %7401 = vadd.xlane.f32.xlu1 %v7400_v3  ;;  %v11180_v43 = vpop.permute.xlu0 %11179  ;;  %v7397_v7 = vsel %vm4212_vm8, %v14971_v50, 0.0  ;;  %11534 = vrcp.f32 %v14950_v20 }
 0xfbc   :  { %10648 = vmatprep.subr.bf16.mxu0 %v10647_v19  ;;  %v11182_v29 = vunpack.i.h.bf16 %v11180_v43  ;;  %v11181_v63 = vunpack.i.l.bf16 %v11180_v43  ;;  %11536 = vrcp.f32 %v14956_v1 }
 0xfbd   :  { %10650 = vmatpush3.bf16.msra.mxu0 %v10647_v19  ;;  %11538 = vrcp.f32 %v14954_v4 }
 0xfbe   :  { %v14973_v13 = vpop.eup %11522  ;;  %v11175_v56 = vpop.permute.xlu1 %11174  ;;  %v10655_v27 = vpack.c.bf16 %v11182_v29, %v11181_v63  ;;  %11540 = vrcp.f32 %v7387_v28  ;;  %v7753_v29 = vld [vmem:[%s15262_s10 + $0x18] sm:$0xff] }
 0xfbf   :  { %v14977_v10 = vpop.eup %11524  ;;  %v11177_v38 = vunpack.i.h.bf16 %v11175_v56  ;;  %v11176_v32 = vunpack.i.l.bf16 %v11175_v56  ;;  %7398 = vadd.xlane.f32.xlu1 %v7397_v7  ;;  %v11190_v49 = vpop.permute.xlu0 %11189  ;;  %v7403_v33 = vsel %vm4212_vm8, %v14973_v13, 0.0  ;;  %11542 = vrcp.f32 %v7390_v18 }
 0xfc0   :  { %v11192_v59 = vunpack.i.h.bf16 %v11190_v49  ;;  %v11191_v30 = vunpack.i.l.bf16 %v11190_v49  ;;  %7404 = vadd.xlane.f32.xlu0 %v7403_v33  ;;  %v7406_v47 = vsel %vm4212_vm8, %v14977_v10, 0.0 }
 0xfc1   :  { %v10651_v44 = vpack.c.bf16 %v11177_v38, %v11176_v32  ;;  %v14985_v25 = vpop.eup %11526 }
 0xfc2   :  { %v10663_v61 = vpack.c.bf16 %v11192_v59, %v11191_v30  ;;  %v11185_v37 = vpop.permute.xlu1 %11184  ;;  %v7412_v42 = vsel %vm4212_vm8, %v14985_v25, 0.0  ;;  %v14991_v45 = vpop.eup %11528 }
 0xfc3   :  { %v11187_v12 = vunpack.i.h.bf16 %v11185_v37  ;;  %v11186_v31 = vunpack.i.l.bf16 %v11185_v37  ;;  %7407 = vadd.xlane.f32.xlu1 %v7406_v47  ;;  %v11195_v40 = vpop.permute.xlu0 %11194  ;;  %10652 = vmatprep.subr.bf16.mxu0 %v10651_v44  ;;  %v11531_v20 = vpop.eup %11530  ;;  %v7409_v1 = vsel %vm4212_vm8, %v14991_v45, 0.0 }
 0xfc4   :  { %v11197_v53 = vunpack.i.h.bf16 %v11195_v40  ;;  %v11196_v62 = vunpack.i.l.bf16 %v11195_v40  ;;  %10654 = vmatpush3.bf16.msra.mxu0 %v10651_v44  ;;  %10664 = vmatprep.subr.bf16.mxu1 %v10663_v61  ;;  %v11533_v2 = vpop.eup %11532  ;;  %v7432_v8 = vmul.f32 %v11531_v20, %v14891_v35  ;;  %v8033_v40 = vld [vmem:[%s15266_s14 + $0x8] sm:$0xff] }
 0xfc5   :  { %10656 = vmatprep.subr.bf16.mxu0 %v10655_v27  ;;  %10666 = vmatpush3.bf16.msra.mxu1 %v10663_v61  ;;  %v10659_v26 = vpack.c.bf16 %v11187_v12, %v11186_v31  ;;  %v11535_v36 = vpop.eup %11534  ;;  %v7433_v11 = vmul.f32 %v11533_v2, %v14899_v15  ;;  %v8032_v31 = vld [vmem:[%s15266_s14] sm:$0xff] }
 0xfc6   :  { %v10667_v14 = vpack.c.bf16 %v11197_v53, %v11196_v62  ;;  %v11537_v54 = vpop.eup %11536  ;;  %v7434_v4 = vmul.f32 %v11535_v36, %v14903_v6  ;;  %v10679_v53 = vpack.c.bf16 %v8033_v40, %v8032_v31  ;;  %v8034_v62 = vld [vmem:[%s15266_s14 + $0x10] sm:$0xff] }
 0xfc7   :  { %7413 = vadd.xlane.f32.xlu1 %v7412_v42  ;;  %v11539_v60 = vpop.eup %11538  ;;  %v7435_v21 = vmul.f32 %v11537_v54, %v14909_v16  ;;  %v15061_v54 = vld [vmem:[#allocation13] ss:$0 sm:$0xff] }
 0xfc8   :  { %10658 = vmatpush3.bf16.msra.mxu0 %v10655_v27  ;;  %10668 = vmatprep.subr.bf16.mxu1 %v10667_v14  ;;  %v11541_v52 = vpop.eup %11540  ;;  %v7436_v35 = vmul.f32 %v11539_v60, %v14907_v22  ;;  %v15063_v60 = vld [vmem:[#allocation14] ss:$0 sm:$0xff] }
 0xfc9   :  { %10660 = vmatprep.subr.bf16.mxu0 %v10659_v26  ;;  %10670 = vmatpush3.bf16.msra.mxu1 %v10667_v14  ;;  %v11543_v46 = vpop.eup %11542  ;;  %v7437_v15 = vmul.f32 %v11541_v52, %v14924_v17  ;;  %v8035_v14 = vld [vmem:[%s15266_s14 + $0x18] sm:$0xff] }
 0xfca   :  { %v7438_v6 = vmul.f32 %v11543_v46, %v14930_v23  ;;  %v10683_v42 = vpack.c.bf16 %v8035_v14, %v8034_v62 }
 0xfcb   :  { %7410 = vadd.xlane.f32.xlu1 %v7409_v1 }
 0xfcc   :  { %10662 = vmatpush3.bf16.msra.mxu0 %v10659_v26 }
 0xfcd   :  { %10680 = vmatprep.subr.bf16.mxu0 %v10679_v53 }
 0xfcf   :  { %10182 = vmatmul.mubr.msk.f32.vlgmr.msra.gmra.mrb[40].mxu0 %vm4212_vm8, %v7432_v8 }
 0xfd0   :  { %10184 = vmatprep.mubr.msk.f32.mxu0 %vm4212_vm8, %v7433_v11  ;;  %10682 = vmatpush3.bf16.msra.mxu0 %v10679_v53 }
 0xfd1   :  { %10684 = vmatprep.subr.bf16.mxu0 %v10683_v42 }
 0xfd3   :  { %10185 = vmatmul.mubr.msk.f32.gmra.mrb[42].mxu0 %vm4212_vm8, %v7434_v4 }
 0xfd4   :  { %10187 = vmatprep.mubr.msk.f32.mxu0 %vm4212_vm8, %v7435_v21  ;;  %10686 = vmatpush3.bf16.msra.mxu0 %v10683_v42 }
 0xfd6   :  { %11204 = vrot.lane.b32.xlu0 %v13781_v39, %s11890_s23 }
 0xfd7   :  { %10188 = vmatmul.mubr.msk.f32.gmra.mrb[44].mxu0 %vm4212_vm8, %v7436_v35 }
 0xfd8   :  { %10190 = vmatprep.mubr.msk.f32.mxu0 %vm4212_vm8, %v7437_v15  ;;  %v15068_v15 = vld [vmem:[#allocation16] ss:$0 sm:$0xff] }
 0xfdb   :  { %10191 = vmatmul.mubr.msk.f32.gmra.mrb[46].mxu0 %vm4212_vm8, %v7438_v6 }
 0xfdc   :  { %11199 = vrot.lane.b32.xlu1 %v13771_v0, %s11890_s23 }
0x1044   :  { %v7396_v16 = vpop.xlane.xlu1 %7395 }
0x1045   :  { %v7393_v57 = vpop.xlane.xlu0 %7392 }
0x1046   :  { %11544 = vrcp.f32 %v7393_v57 }
0x1047   :  { %11546 = vrcp.f32 %v7396_v16 }
0x1048   :  { %v7402_v22 = vpop.xlane.xlu1 %7401 }
0x104c   :  { %v7399_v28 = vpop.xlane.xlu1 %7398 }
0x104d   :  { %v7405_v34 = vpop.xlane.xlu0 %7404  ;;  %11548 = vrcp.f32 %v7399_v28 }
0x104e   :  { %11550 = vrcp.f32 %v7402_v22 }
0x104f   :  { %11552 = vrcp.f32 %v7405_v34 }
0x1050   :  { %v11545_v51 = vpop.eup %11544  ;;  %v7408_v39 = vpop.xlane.xlu1 %7407 }
0x1051   :  { %v7439_v17 = vmul.f32 %v11545_v51, %v14961_v41  ;;  %v11205_v23 = vpop.permute.xlu0 %11204  ;;  %11554 = vrcp.f32 %v7408_v39  ;;  %v11547_v41 = vpop.eup %11546 }
0x1052   :  { %v11207_v9 = vunpack.i.h.bf16 %v11205_v23  ;;  %v11206_v0 = vunpack.i.l.bf16 %v11205_v23  ;;  %v7440_v7 = vmul.f32 %v11547_v41, %v14958_v58 }
0x1053   :  { %10209 = vmatprep.mubr.msk.f32.mxu1 %vm4212_vm8, %v7439_v17 }
0x1054   :  { %v7414_v55 = vpop.xlane.xlu1 %7413  ;;  %v10675_v43 = vpack.c.bf16 %v11207_v9, %v11206_v0 }
0x1057   :  { %v11549_v56 = vpop.eup %11548 }
0x1058   :  { %v7411_v5 = vpop.xlane.xlu1 %7410  ;;  %v11551_v63 = vpop.eup %11550  ;;  %v7441_v38 = vmul.f32 %v11549_v56, %v14971_v50 }
0x1059   :  { %11556 = vrcp.f32 %v7411_v5  ;;  %v11553_v32 = vpop.eup %11552  ;;  %v7442_v49 = vmul.f32 %v11551_v63, %v14967_v48 }
0x105a   :  { %11558 = vrcp.f32 %v7414_v55  ;;  %v7443_v59 = vmul.f32 %v11553_v32, %v14973_v13 }
0x105b   :  { %v11555_v33 = vpop.eup %11554 }
0x105c   :  { %v11200_v24 = vpop.permute.xlu1 %11199  ;;  %v7444_v58 = vmul.f32 %v11555_v33, %v14977_v10 }
0x105d   :  { %v11202_v19 = vunpack.i.h.bf16 %v11200_v24  ;;  %v11201_v18 = vunpack.i.l.bf16 %v11200_v24 }
0x105f   :  { %v10671_v3 = vpack.c.bf16 %v11202_v19, %v11201_v18 }
0x1061   :  { %10672 = vmatprep.subr.bf16.mxu1 %v10671_v3 }
0x1062   :  { %10674 = vmatpush3.bf16.msra.mxu1 %v10671_v3 }
0x1063   :  { %10676 = vmatprep.subr.bf16.mxu1 %v10675_v43  ;;  %v11557_v30 = vpop.eup %11556 }
0x1064   :  { %v11559_v44 = vpop.eup %11558  ;;  %v7445_v50 = vmul.f32 %v11557_v30, %v14991_v45 }
0x1065   :  { %v7446_v61 = vmul.f32 %v11559_v44, %v14985_v25 }
0x1066   :  { %10678 = vmatpush3.bf16.msra.mxu1 %v10675_v43 }
0x1067   :  { %10221 = vmatprep.subr.mxu1 %v7753_v29 }
0x1069   :  { %10210 = vmatmul.mubr.msk.f32.vlgmr.msra.gmra.mrb[120].mxu1 %vm4212_vm8, %v7440_v7 }
0x106a   :  { %10212 = vmatprep.mubr.msk.f32.mxu1 %vm4212_vm8, %v7441_v38  ;;  %10222 = vmatpush3.msra.mxu1 %v7753_v29 }
0x106d   :  { %10213 = vmatmul.mubr.msk.f32.gmra.mrb[122].mxu1 %vm4212_vm8, %v7442_v49 }
0x106e   :  { %10215 = vmatprep.mubr.msk.f32.mxu1 %vm4212_vm8, %v7443_v59 }
0x1071   :  { %10216 = vmatmul.mubr.msk.f32.gmra.mrb[124].mxu1 %vm4212_vm8, %v7444_v58 }
0x1072   :  { %10218 = vmatprep.mubr.msk.f32.mxu1 %vm4212_vm8, %v7445_v50 }
0x1075   :  { %10219 = vmatmul.mubr.msk.f32.gmra.mrb[126].mxu1 %vm4212_vm8, %v7446_v61 }
0x10a2   :  { %v10183_v48 = vpop.f32.mrb[40].mxu0 }
0x10a3   :  { %v7561_v13 = vpop.f32.mrb[41].mxu0 }
0x10a4   :  { %10223 = vmatprep.mubr.msk.f32.mxu1 %vm3897_vm6, %v7561_v13 }
0x10a5   :  { %10224 = vmatmul.mubr.msk.f32.vlgmr.msra.gmra.mrb[80].mxu1 %vm3897_vm6, %v10183_v48 }
0x10a6   :  { %v10186_v37 = vpop.f32.mrb[42].mxu0 }
0x10a7   :  { %v7571_v47 = vpop.f32.mrb[43].mxu0 }
0x10a8   :  { %10226 = vmatprep.mubr.msk.f32.mxu1 %vm3897_vm6, %v7571_v47 }
0x10a9   :  { %10227 = vmatmul.mubr.msk.f32.gmra.mrb[82].mxu1 %vm3897_vm6, %v10186_v37 }
0x10aa   :  { %v10189_v10 = vpop.f32.mrb[44].mxu0 }
0x10ab   :  { %v7581_v27 = vpop.f32.mrb[45].mxu0 }
0x10ac   :  { %10229 = vmatprep.mubr.msk.f32.mxu1 %vm3897_vm6, %v7581_v27 }
0x10ad   :  { %10230 = vmatmul.mubr.msk.f32.gmra.mrb[84].mxu1 %vm3897_vm6, %v10189_v10 }
0x10ae   :  { %v10192_v25 = vpop.f32.mrb[46].mxu0 }
0x10af   :  { %v7591_v12 = vpop.f32.mrb[47].mxu0 }
0x10b0   :  { %10232 = vmatprep.mubr.msk.f32.mxu1 %vm3897_vm6, %v7591_v12 }
0x10b1   :  { %10233 = vmatmul.mubr.msk.f32.gmra.mrb[86].mxu1 %vm3897_vm6, %v10192_v25 }
0x113c   :  { %v10211_v45 = vpop.f32.mrb[120].mxu1 }
0x113d   :  { %v7714_v26 = vpop.f32.mrb[121].mxu1 }
0x113e   :  { %10235 = vmatprep.mubr.msk.f32.mxu1 %vm3897_vm6, %v7714_v26 }
0x113f   :  { %10236 = vmatmul.mubr.msk.f32.gmra.mrb[88].mxu1 %vm3897_vm6, %v10211_v45 }
0x1140   :  { %v10214_v20 = vpop.f32.mrb[122].mxu1 }
0x1141   :  { %v7724_v1 = vpop.f32.mrb[123].mxu1 }
0x1142   :  { %10238 = vmatprep.mubr.msk.f32.mxu1 %vm3897_vm6, %v7724_v1 }
0x1143   :  { %10239 = vmatmul.mubr.msk.f32.gmra.mrb[90].mxu1 %vm3897_vm6, %v10214_v20 }
0x1144   :  { %v10217_v2 = vpop.f32.mrb[124].mxu1 }
0x1145   :  { %v7734_v8 = vpop.f32.mrb[125].mxu1 }
0x1146   :  { %10241 = vmatprep.mubr.msk.f32.mxu1 %vm3897_vm6, %v7734_v8 }
0x1147   :  { %10242 = vmatmul.mubr.msk.f32.gmra.mrb[92].mxu1 %vm3897_vm6, %v10217_v2 }
0x1148   :  { %v10220_v36 = vpop.f32.mrb[126].mxu1 }
0x1149   :  { %v7744_v11 = vpop.f32.mrb[127].mxu1 }
0x114a   :  { %10244 = vmatprep.mubr.msk.f32.mxu1 %vm3897_vm6, %v7744_v11 }
0x114b   :  { %10245 = vmatmul.mubr.msk.f32.gmra.mrb[94].mxu1 %vm3897_vm6, %v10220_v36 }
0x1178   :  { %v10225_v4 = vpop.f32.mrb[80].mxu1 }
0x1179   :  { %v7971_v21 = vadd.f32 %v10225_v4, %v15061_v54  ;;  %v7868_v52 = vpop.f32.mrb[81].mxu1 }
0x117a   :  { %v7970_v35 = vadd.f32 %v15061_v54, %v7868_v52 }
0x117b   :  { %v7994_v46 = vmul.f32 %v15063_v60, %v7971_v21 }
0x117c   :  { %v7993_v6 = vmul.f32 %v15063_v60, %v7970_v35  ;;  %v10228_v16 = vpop.f32.mrb[82].mxu1  ;;  %v15131_v35 = vld [vmem:[#allocation17] ss:$0 sm:$0xff] }
0x117d   :  { %v7973_v57 = vadd.f32 %v10228_v16, %v15061_v54  ;;  %v7878_v22 = vpop.f32.mrb[83].mxu1  ;;  %v8017_v39 = vadd.f32 %v15068_v15, %v7994_v46  ;;  %v15136_v46 = vld [vmem:[%s15268_s16] ss:$0 sm:$0xff]  ;;  %v15139_v16 = vld [vmem:[#allocation19] ss:$0 sm:$0xff] }
0x117e   :  { %v8016_v28 = vadd.f32 %v15068_v15, %v7993_v6  ;;  %v7972_v51 = vadd.f32 %v15061_v54, %v7878_v22 }
0x117f   :  { %v7996_v17 = vmul.f32 %v15063_v60, %v7973_v57 }
0x1180   :  { %v7995_v34 = vmul.f32 %v15063_v60, %v7972_v51  ;;  %v10231_v55 = vpop.f32.mrb[84].mxu1  ;;  %10255 = vmatprep.mubr.msk.f32.mxu0 %vm206_vm0, %v8016_v28 }
0x1181   :  { %v7975_v5 = vadd.f32 %v10231_v55, %v15061_v54  ;;  %v7888_v23 = vpop.f32.mrb[85].mxu1  ;;  %10256 = vmatmul.mubr.msk.f32.vlgmr.msra.gmra.mrb[48].mxu0 %vm206_vm0, %v8017_v39  ;;  %v8019_v0 = vadd.f32 %v15068_v15, %v7996_v17 }
0x1182   :  { %v8018_v24 = vadd.f32 %v15068_v15, %v7995_v34  ;;  %v7974_v9 = vadd.f32 %v15061_v54, %v7888_v23 }
0x1183   :  { %v7998_v19 = vmul.f32 %v15063_v60, %v7975_v5 }
0x1184   :  { %v7997_v18 = vmul.f32 %v15063_v60, %v7974_v9  ;;  %v10234_v3 = vpop.f32.mrb[86].mxu1  ;;  %10258 = vmatprep.mubr.msk.f32.mxu0 %vm206_vm0, %v8018_v24 }
0x1185   :  { %v7977_v43 = vadd.f32 %v10234_v3, %v15061_v54  ;;  %v7898_v41 = vpop.f32.mrb[87].mxu1  ;;  %10259 = vmatmul.mubr.msk.f32.gmra.mrb[50].mxu0 %vm206_vm0, %v8019_v0  ;;  %v8021_v7 = vadd.f32 %v15068_v15, %v7998_v19 }
0x1186   :  { %v8020_v29 = vadd.f32 %v15068_v15, %v7997_v18  ;;  %v7976_v56 = vadd.f32 %v15061_v54, %v7898_v41 }
0x1187   :  { %v8000_v63 = vmul.f32 %v15063_v60, %v7977_v43 }
0x1188   :  { %v7999_v38 = vmul.f32 %v15063_v60, %v7976_v56  ;;  %10261 = vmatprep.mubr.msk.f32.mxu0 %vm206_vm0, %v8020_v29 }
0x1189   :  { %10262 = vmatmul.mubr.msk.f32.gmra.mrb[52].mxu0 %vm206_vm0, %v8021_v7  ;;  %v8023_v49 = vadd.f32 %v15068_v15, %v8000_v63 }
0x118a   :  { %v8022_v32 = vadd.f32 %v15068_v15, %v7999_v38 }
0x118c   :  { %10264 = vmatprep.mubr.msk.f32.mxu0 %vm206_vm0, %v8022_v32 }
0x118d   :  { %10265 = vmatmul.mubr.msk.f32.gmra.mrb[54].mxu0 %vm206_vm0, %v8023_v49 }
0x1212   :  { %v10237_v33 = vpop.f32.mrb[88].mxu1 }
0x1213   :  { %v7979_v59 = vadd.f32 %v10237_v33, %v15061_v54  ;;  %v7908_v30 = vpop.f32.mrb[89].mxu1 }
0x1214   :  { %v7978_v58 = vadd.f32 %v15061_v54, %v7908_v30 }
0x1215   :  { %v8002_v44 = vmul.f32 %v15063_v60, %v7979_v59 }
0x1216   :  { %v8001_v50 = vmul.f32 %v15063_v60, %v7978_v58  ;;  %v10240_v61 = vpop.f32.mrb[90].mxu1 }
0x1217   :  { %v7981_v48 = vadd.f32 %v10240_v61, %v15061_v54  ;;  %v7918_v13 = vpop.f32.mrb[91].mxu1  ;;  %v8025_v10 = vadd.f32 %v15068_v15, %v8002_v44 }
0x1218   :  { %v8024_v37 = vadd.f32 %v15068_v15, %v8001_v50  ;;  %v7980_v47 = vadd.f32 %v15061_v54, %v7918_v13 }
0x1219   :  { %v8004_v27 = vmul.f32 %v15063_v60, %v7981_v48 }
0x121a   :  { %v8003_v25 = vmul.f32 %v15063_v60, %v7980_v47  ;;  %v10243_v12 = vpop.f32.mrb[92].mxu1  ;;  %10267 = vmatprep.mubr.msk.f32.mxu0 %vm206_vm0, %v8024_v37 }
0x121b   :  { %v7983_v31 = vadd.f32 %v10243_v12, %v15061_v54  ;;  %v7928_v40 = vpop.f32.mrb[93].mxu1  ;;  %10268 = vmatmul.mubr.msk.f32.gmra.mrb[56].mxu0 %vm206_vm0, %v8025_v10  ;;  %v8027_v14 = vadd.f32 %v15068_v15, %v8004_v27 }
0x121c   :  { %v8026_v53 = vadd.f32 %v15068_v15, %v8003_v25  ;;  %v7982_v62 = vadd.f32 %v15061_v54, %v7928_v40 }
0x121d   :  { %v8006_v42 = vmul.f32 %v15063_v60, %v7983_v31 }
0x121e   :  { %v8005_v45 = vmul.f32 %v15063_v60, %v7982_v62  ;;  %v10246_v26 = vpop.f32.mrb[94].mxu1  ;;  %10270 = vmatprep.mubr.msk.f32.mxu0 %vm206_vm0, %v8026_v53 }
0x121f   :  { %v7985_v20 = vadd.f32 %v10246_v26, %v15061_v54  ;;  %v7938_v1 = vpop.f32.mrb[95].mxu1  ;;  %10271 = vmatmul.mubr.msk.f32.gmra.mrb[58].mxu0 %vm206_vm0, %v8027_v14  ;;  %v8029_v36 = vadd.f32 %v15068_v15, %v8006_v42 }
0x1220   :  { %v8028_v2 = vadd.f32 %v15068_v15, %v8005_v45  ;;  %v7984_v8 = vadd.f32 %v15061_v54, %v7938_v1 }
0x1221   :  { %v8008_v11 = vmul.f32 %v15063_v60, %v7985_v20 }
0x1222   :  { %v8007_v4 = vmul.f32 %v15063_v60, %v7984_v8  ;;  %10273 = vmatprep.mubr.msk.f32.mxu0 %vm206_vm0, %v8028_v2 }
0x1223   :  { %10274 = vmatmul.mubr.msk.f32.gmra.mrb[60].mxu0 %vm206_vm0, %v8029_v36  ;;  %v8031_v52 = vadd.f32 %v15068_v15, %v8008_v11 }
0x1224   :  { %v8030_v21 = vadd.f32 %v15068_v15, %v8007_v4 }
0x1226   :  { %10276 = vmatprep.mubr.msk.f32.mxu0 %vm206_vm0, %v8030_v21 }
0x1227   :  { %10277 = vmatmul.mubr.msk.f32.gmra.mrb[62].mxu0 %vm206_vm0, %v8031_v52 }
0x1254   :  { %v10257_v54 = vpop.f32.mrb[48].mxu0 }
0x1255   :  { %v8163_v60 = vadd.f32 %v10257_v54, %v15131_v35  ;;  %v8157_v6 = vpop.f32.mrb[49].mxu0 }
0x1256   :  { %v8158_v57 = vadd.f32 %v15131_v35, %v8157_v6 }
0x1257   :  { %v8244_v15 = vmul.f32 %v15136_v46, %v8163_v60 }
0x1258   :  { %v8243_v22 = vmul.f32 %v15136_v46, %v8158_v57  ;;  %v10260_v28 = vpop.f32.mrb[50].mxu0 }
0x1259   :  { %v8267_v51 = vadd.f32 %v15139_v16, %v8244_v15  ;;  %v8173_v39 = vadd.f32 %v10260_v28, %v15131_v35  ;;  %v8167_v17 = vpop.f32.mrb[51].mxu0 }
0x125a   :  { %v8266_v34 = vadd.f32 %v15139_v16, %v8243_v22  ;;  %v8168_v55 = vadd.f32 %v15131_v35, %v8167_v17 }
0x125b   :  { %v8299_v5 = vmul.f32 0.70710677, %v8267_v51  ;;  %v8246_v23 = vmul.f32 %v15136_v46, %v8173_v39  ;;  %v8283_v27 = vmul.f32 0.5, %v8267_v51 }
0x125c   :  { %v8298_v24 = vmul.f32 0.70710677, %v8266_v34  ;;  %v8245_v9 = vmul.f32 %v15136_v46, %v8168_v55  ;;  %v10263_v0 = vpop.f32.mrb[52].mxu0  ;;  %v8282_v31 = vmul.f32 0.5, %v8266_v34 }
0x125d   :  { %11560 = verf.f32 %v8299_v5  ;;  %v8269_v19 = vadd.f32 %v15139_v16, %v8246_v23  ;;  %v8183_v18 = vadd.f32 %v10263_v0, %v15131_v35  ;;  %v8177_v3 = vpop.f32.mrb[53].mxu0 }
0x125e   :  { %11562 = verf.f32 %v8298_v24  ;;  %v8268_v43 = vadd.f32 %v15139_v16, %v8245_v9  ;;  %v8178_v41 = vadd.f32 %v15131_v35, %v8177_v3 }
0x125f   :  { %v8301_v29 = vmul.f32 0.70710677, %v8269_v19  ;;  %v8248_v56 = vmul.f32 %v15136_v46, %v8183_v18  ;;  %v8285_v45 = vmul.f32 0.5, %v8269_v19 }
0x1260   :  { %v8300_v7 = vmul.f32 0.70710677, %v8268_v43  ;;  %v8247_v63 = vmul.f32 %v15136_v46, %v8178_v41  ;;  %v10266_v38 = vpop.f32.mrb[54].mxu0  ;;  %v8284_v20 = vmul.f32 0.5, %v8268_v43 }
0x1261   :  { %11564 = verf.f32 %v8301_v29  ;;  %v8271_v32 = vadd.f32 %v15139_v16, %v8248_v56  ;;  %v8193_v49 = vadd.f32 %v10266_v38, %v15131_v35  ;;  %v8187_v33 = vpop.f32.mrb[55].mxu0 }
0x1262   :  { %11566 = verf.f32 %v8300_v7  ;;  %v8270_v59 = vadd.f32 %v15139_v16, %v8247_v63  ;;  %v8188_v30 = vadd.f32 %v15131_v35, %v8187_v33 }
0x1263   :  { %v8303_v58 = vmul.f32 0.70710677, %v8271_v32  ;;  %v8250_v44 = vmul.f32 %v15136_v46, %v8193_v49  ;;  %v8287_v4 = vmul.f32 0.5, %v8271_v32 }
0x1264   :  { %v8302_v50 = vmul.f32 0.70710677, %v8270_v59  ;;  %v8249_v61 = vmul.f32 %v15136_v46, %v8188_v30  ;;  %v8286_v52 = vmul.f32 0.5, %v8270_v59 }
0x1265   :  { %11568 = verf.f32 %v8303_v58  ;;  %v8273_v48 = vadd.f32 %v15139_v16, %v8250_v44 }
0x1266   :  { %11570 = verf.f32 %v8302_v50  ;;  %v8272_v13 = vadd.f32 %v15139_v16, %v8249_v61 }
0x1267   :  { %v11561_v37 = vpop.eup %11560  ;;  %v8305_v47 = vmul.f32 0.70710677, %v8273_v48  ;;  %v8289_v22 = vmul.f32 0.5, %v8273_v48 }
0x1268   :  { %v11563_v10 = vpop.eup %11562  ;;  %v8331_v25 = vadd.f32 1.0, %v11561_v37  ;;  %v8304_v12 = vmul.f32 0.70710677, %v8272_v13  ;;  %v8288_v51 = vmul.f32 0.5, %v8272_v13 }
0x1269   :  { %v8330_v40 = vadd.f32 1.0, %v11563_v10  ;;  %11572 = verf.f32 %v8305_v47 }
0x126a   :  { %v8347_v53 = vmul.f32 %v8331_v25, %v8283_v27  ;;  %11574 = verf.f32 %v8304_v12 }
0x126b   :  { %v11565_v62 = vpop.eup %11564  ;;  %v8346_v14 = vmul.f32 %v8330_v40, %v8282_v31 }
0x126c   :  { %v11567_v42 = vpop.eup %11566  ;;  %8363 = vst.msk [vmem:[%s15270_s18 + $0x8] sm:$0xff] %vm4212_vm8, %v8347_v53  ;;  %v8333_v26 = vadd.f32 1.0, %v11565_v62 }
0x126d   :  { %8362 = vst.msk [vmem:[%s15270_s18] sm:$0xff] %vm4212_vm8, %v8346_v14  ;;  %v8332_v1 = vadd.f32 1.0, %v11567_v42 }
0x126e   :  { %v8349_v2 = vmul.f32 %v8333_v26, %v8285_v45 }
0x126f   :  { %v11569_v8 = vpop.eup %11568  ;;  %v8348_v36 = vmul.f32 %v8332_v1, %v8284_v20 }
0x1270   :  { %v11571_v11 = vpop.eup %11570  ;;  %8365 = vst.msk [vmem:[%s15270_s18 + $0x18] sm:$0xff] %vm4212_vm8, %v8349_v2  ;;  %v8335_v21 = vadd.f32 1.0, %v11569_v8 }
0x1271   :  { %8364 = vst.msk [vmem:[%s15270_s18 + $0x10] sm:$0xff] %vm4212_vm8, %v8348_v36  ;;  %v8334_v54 = vadd.f32 1.0, %v11571_v11 }
0x1272   :  { %v8351_v60 = vmul.f32 %v8335_v21, %v8287_v4 }
0x1273   :  { %v11573_v6 = vpop.eup %11572  ;;  %v8350_v57 = vmul.f32 %v8334_v54, %v8286_v52 }
0x1274   :  { %v11575_v15 = vpop.eup %11574  ;;  %8367 = vst.msk [vmem:[%s15270_s18 + $0x28] sm:$0xff] %vm4212_vm8, %v8351_v60  ;;  %v8337_v28 = vadd.f32 1.0, %v11573_v6 }
0x1275   :  { %8366 = vst.msk [vmem:[%s15270_s18 + $0x20] sm:$0xff] %vm4212_vm8, %v8350_v57  ;;  %v8336_v39 = vadd.f32 1.0, %v11575_v15 }
0x1276   :  { %v8353_v17 = vmul.f32 %v8337_v28, %v8289_v22 }
0x1277   :  { %v8352_v34 = vmul.f32 %v8336_v39, %v8288_v51 }
0x1278   :  { %8369 = vst.msk [vmem:[%s15270_s18 + $0x38] sm:$0xff] %vm4212_vm8, %v8353_v17 }
0x1279   :  { %8368 = vst.msk [vmem:[%s15270_s18 + $0x30] sm:$0xff] %vm4212_vm8, %v8352_v34 }
0x12ee   :  { %v10269_v55 = vpop.f32.mrb[56].mxu0 }
0x12ef   :  { %v8203_v5 = vadd.f32 %v10269_v55, %v15131_v35  ;;  %v8197_v23 = vpop.f32.mrb[57].mxu0 }
0x12f0   :  { %v8198_v24 = vadd.f32 %v15131_v35, %v8197_v23 }
0x12f1   :  { %v8252_v9 = vmul.f32 %v15136_v46, %v8203_v5 }
0x12f2   :  { %v8251_v0 = vmul.f32 %v15136_v46, %v8198_v24  ;;  %v10272_v19 = vpop.f32.mrb[58].mxu0 }
0x12f3   :  { %v8275_v18 = vadd.f32 %v15139_v16, %v8252_v9  ;;  %v8213_v3 = vadd.f32 %v10272_v19, %v15131_v35  ;;  %v8207_v43 = vpop.f32.mrb[59].mxu0 }
0x12f4   :  { %v8274_v41 = vadd.f32 %v15139_v16, %v8251_v0  ;;  %v8208_v29 = vadd.f32 %v15131_v35, %v8207_v43 }
0x12f5   :  { %v8307_v56 = vmul.f32 0.70710677, %v8275_v18  ;;  %v8254_v7 = vmul.f32 %v15136_v46, %v8213_v3  ;;  %v8291_v20 = vmul.f32 0.5, %v8275_v18 }
0x12f6   :  { %v8306_v63 = vmul.f32 0.70710677, %v8274_v41  ;;  %v8253_v38 = vmul.f32 %v15136_v46, %v8208_v29  ;;  %v10275_v32 = vpop.f32.mrb[60].mxu0  ;;  %v8290_v8 = vmul.f32 0.5, %v8274_v41 }
0x12f7   :  { %11576 = verf.f32 %v8307_v56  ;;  %v8277_v49 = vadd.f32 %v15139_v16, %v8254_v7  ;;  %v8223_v33 = vadd.f32 %v10275_v32, %v15131_v35  ;;  %v8217_v59 = vpop.f32.mrb[61].mxu0 }
0x12f8   :  { %11578 = verf.f32 %v8306_v63  ;;  %v8276_v30 = vadd.f32 %v15139_v16, %v8253_v38  ;;  %v8218_v58 = vadd.f32 %v15131_v35, %v8217_v59 }
0x12f9   :  { %v8309_v44 = vmul.f32 0.70710677, %v8277_v49  ;;  %v8256_v50 = vmul.f32 %v15136_v46, %v8223_v33 }
0x12fa   :  { %v8308_v61 = vmul.f32 0.70710677, %v8276_v30  ;;  %v8255_v48 = vmul.f32 %v15136_v46, %v8218_v58  ;;  %v10278_v13 = vpop.f32.mrb[62].mxu0  ;;  %v8292_v52 = vmul.f32 0.5, %v8276_v30 }
0x12fb   :  { %11580 = verf.f32 %v8309_v44  ;;  %v8279_v37 = vadd.f32 %v15139_v16, %v8256_v50  ;;  %v8233_v47 = vadd.f32 %v10278_v13, %v15131_v35  ;;  %v8227_v10 = vpop.f32.mrb[63].mxu0 }
0x12fc   :  { %11582 = verf.f32 %v8308_v61  ;;  %v8278_v27 = vadd.f32 %v15139_v16, %v8255_v48  ;;  %v8228_v25 = vadd.f32 %v15131_v35, %v8227_v10 }
0x12fd   :  { %v8311_v12 = vmul.f32 0.70710677, %v8279_v37  ;;  %v8258_v31 = vmul.f32 %v15136_v46, %v8233_v47  ;;  %v8295_v22 = vmul.f32 0.5, %v8279_v37 }
0x12fe   :  { %v8310_v40 = vmul.f32 0.70710677, %v8278_v27  ;;  %v8257_v53 = vmul.f32 %v15136_v46, %v8228_v25  ;;  %v8294_v51 = vmul.f32 0.5, %v8278_v27 }
0x12ff   :  { %11584 = verf.f32 %v8311_v12  ;;  %v8281_v62 = vadd.f32 %v15139_v16, %v8258_v31 }
0x1300   :  { %11586 = verf.f32 %v8310_v40  ;;  %v8280_v14 = vadd.f32 %v15139_v16, %v8257_v53  ;;  %v8293_v16 = vmul.f32 0.5, %v8277_v49 }
0x1301   :  { %v11577_v42 = vpop.eup %11576  ;;  %v8313_v45 = vmul.f32 0.70710677, %v8281_v62  ;;  %v8297_v23 = vmul.f32 0.5, %v8281_v62 }
0x1302   :  { %v11579_v26 = vpop.eup %11578  ;;  %v8339_v1 = vadd.f32 1.0, %v11577_v42  ;;  %v8312_v2 = vmul.f32 0.70710677, %v8280_v14  ;;  %v8296_v9 = vmul.f32 0.5, %v8280_v14 }
0x1303   :  { %v8338_v35 = vadd.f32 1.0, %v11579_v26  ;;  %11588 = verf.f32 %v8313_v45 }
0x1304   :  { %v8355_v36 = vmul.f32 %v8339_v1, %v8291_v20  ;;  %11590 = verf.f32 %v8312_v2 }
0x1305   :  { %v11581_v11 = vpop.eup %11580  ;;  %v8354_v4 = vmul.f32 %v8338_v35, %v8290_v8 }
0x1306   :  { %v11583_v46 = vpop.eup %11582  ;;  %8371 = vst.msk [vmem:[%s15270_s18 + $0x48] sm:$0xff] %vm4212_vm8, %v8355_v36  ;;  %v8341_v21 = vadd.f32 1.0, %v11581_v11 }
0x1307   :  { %8370 = vst.msk [vmem:[%s15270_s18 + $0x40] sm:$0xff] %vm4212_vm8, %v8354_v4  ;;  %v8340_v54 = vadd.f32 1.0, %v11583_v46 }
0x1308   :  { %v8357_v60 = vmul.f32 %v8341_v21, %v8293_v16 }
0x1309   :  { %v11585_v6 = vpop.eup %11584  ;;  %v8356_v57 = vmul.f32 %v8340_v54, %v8292_v52 }
0x130a   :  { %v11587_v15 = vpop.eup %11586  ;;  %8373 = vst.msk [vmem:[%s15270_s18 + $0x58] sm:$0xff] %vm4212_vm8, %v8357_v60  ;;  %v8343_v28 = vadd.f32 1.0, %v11585_v6 }
0x130b   :  { %8372 = vst.msk [vmem:[%s15270_s18 + $0x50] sm:$0xff] %vm4212_vm8, %v8356_v57  ;;  %v8342_v39 = vadd.f32 1.0, %v11587_v15 }
0x130c   :  { %v8359_v17 = vmul.f32 %v8343_v28, %v8295_v22 }
0x130d   :  { %v11589_v34 = vpop.eup %11588  ;;  %v8358_v55 = vmul.f32 %v8342_v39, %v8294_v51 }
0x130e   :  { %v11591_v5 = vpop.eup %11590  ;;  %8375 = vst.msk [vmem:[%s15270_s18 + $0x68] sm:$0xff] %vm4212_vm8, %v8359_v17  ;;  %v8345_v24 = vadd.f32 1.0, %v11589_v34 }
0x130f   :  { %8374 = vst.msk [vmem:[%s15270_s18 + $0x60] sm:$0xff] %vm4212_vm8, %v8358_v55  ;;  %v8344_v0 = vadd.f32 1.0, %v11591_v5 }
0x1310   :  { %v8361_v19 = vmul.f32 %v8345_v24, %v8297_v23 }
0x1311   :  { %v8360_v18 = vmul.f32 %v8344_v0, %v8296_v9 }
0x1312   :  { %8377 = vst.msk [vmem:[%s15270_s18 + $0x78] sm:$0xff] %vm4212_vm8, %v8361_v19 }
0x1313   :  { %8376 = vst.msk [vmem:[%s15270_s18 + $0x70] sm:$0xff] %vm4212_vm8, %v8360_v18 }
0x1314   :  { %8382 = vsyncpa [#allocation4], 1 }
0x1315   :  { %8383 = vsyncpa [#allocation6], 1 }
0x1316   :  { %8384 = vsyncpa [#allocation9], 1 }
0x1317   :  { %8385 = vsyncpa [#allocation12], 1 }
0x1318   :  { %8386 = vsyncpa [#allocation15], 1 }
0x1319   :  { %8387 = vsyncpa [#allocation18], 1 }

</bundles_post_ra>
